<compile_context>
chip_gen: v7x
topology: tpu7x:2x2x1
jax: 0.10.0
libtpu: 0.0.40
codegen_flags: <defaults>
</compile_context>

<pallas_src>
import functools

import jax
import jax.numpy as jnp
from jax import lax
from jax.experimental import pallas as pl
from jax.experimental.pallas import tpu as pltpu


# ----------------------------------------------------------------------------
# Tiling / VMEM helpers
# ----------------------------------------------------------------------------
def _pick_tile(n, target):
    """N-tile: multiple of 16 (bf16 sublane pairs), <= target. Callers pad N up."""
    t = min(n, target)
    t = max(16, (t // 16) * 16)
    return t


def _pad_axis(x, axis, multiple):
    """Zero-pad `axis` of x up to a multiple; returns (padded, original_len)."""
    n = x.shape[axis]
    pad = (-n) % multiple
    if pad == 0:
        return x, n
    widths = [(0, 0)] * x.ndim
    widths[axis] = (0, pad)
    return jnp.pad(x, widths), n


def _mosaic_params(vmem_est_bytes):
    # Don't request the whole physical VMEM (v7x = 64 MiB/TC): ask for what the tiles
    # need, clamp to [16 MiB, 48 MiB] so Mosaic keeps headroom for internal scratch
    # and double-buffering.
    limit = int(min(max(vmem_est_bytes, 16 * 1024 * 1024), 48 * 1024 * 1024))
    return pltpu.CompilerParams(
        dimension_semantics=("parallel", "parallel"),
        vmem_limit_bytes=limit)


# ----------------------------------------------------------------------------
# Pallas kernels
# ----------------------------------------------------------------------------
def _qgscm_kernel_split(x_ref, wr_ref, wg_ref, wb_ref, bg_ref, bias_ref, o_ref, *, k):
    """x_ref: [1, tn*k, Cin] bf16 -> o_ref: [1, tn, Cout] bf16.

    BN scale is pre-folded into Wr/Wb columns; per-edge work is just r*g + q.
    Bias + LeakyReLU are applied after the k-max (they commute with max)."""
    x = x_ref[0]                                                       # bf16 [tn*k, Cin]
    xx = x * x
    r = jnp.dot(x, wr_ref[...], preferred_element_type=jnp.float32)
    g = jnp.dot(x, wg_ref[...], preferred_element_type=jnp.float32) + bg_ref[...]
    q = jnp.dot(xx, wb_ref[...], preferred_element_type=jnp.float32)
    y = r * g + q                                                      # f32 [tn*k, Cout]
    m, cout = y.shape
    y = jnp.max(y.reshape(m // k, k, cout), axis=1)                    # k-max (k=8 sublanes)
    y = y + bias_ref[...]                                              # folded BN bias
    y = jnp.maximum(y, 0.2 * y)                                        # LeakyReLU(0.2)
    o_ref[0] = y.astype(o_ref.dtype)


def _qgscm_kernel_fused(x_ref, wrg_ref, wb_ref, bg_ref, bias_ref, o_ref, *, k, cout):
    """Same as above but Wr|Wg are fused into one [Cin, 2*Cout] RHS (Cout % 128 == 0,
    so the r/g split is lane-aligned)."""
    x = x_ref[0]
    xx = x * x
    rg = jnp.dot(x, wrg_ref[...], preferred_element_type=jnp.float32)  # [tn*k, 2*Cout]
    r = rg[:, :cout]
    g = rg[:, cout:] + bg_ref[...]
    q = jnp.dot(xx, wb_ref[...], preferred_element_type=jnp.float32)
    y = r * g + q
    m = y.shape[0]
    y = jnp.max(y.reshape(m // k, k, cout), axis=1)
    y = y + bias_ref[...]
    y = jnp.maximum(y, 0.2 * y)
    o_ref[0] = y.astype(o_ref.dtype)


def qgscm_conv(x_bnkc, wr, wg, wb, bg, bn_scale, bn_bias, *, tile_n=512):
    """x_bnkc: [B, N, K, Cin] edge features (bf16, channel-last). Returns [B, N, Cout] bf16."""
    b, n, k, cin = x_bnkc.shape
    cout = wr.shape[1]
    tn = _pick_tile(n, tile_n)
    x_bnkc, n_orig = _pad_axis(x_bnkc, 1, tn)           # pad N up (zero rows -> sliced off)
    np_ = x_bnkc.shape[1]
    xf = x_bnkc.reshape(b, np_ * k, cin).astype(jnp.bfloat16)

    # Fold the BN scale into Wr / Wb columns (exact in f32; bf16-rounds the scaled weights).
    wr_s = (wr * bn_scale).astype(jnp.bfloat16)
    wb_s = (wb * bn_scale).astype(jnp.bfloat16)
    wg_b = wg.astype(jnp.bfloat16)

    fuse_rg = (cout % 128 == 0)                         # lane-aligned r/g split only
    if fuse_rg:
        kern = functools.partial(_qgscm_kernel_fused, k=k, cout=cout)
        w_args = (jnp.concatenate([wr_s, wg_b], axis=1), wb_s)
        w_specs = [pl.BlockSpec((cin, 2 * cout), lambda i, j: (0, 0)),
                   pl.BlockSpec((cin, cout), lambda i, j: (0, 0))]
        w_bytes = 3 * cin * cout * 2
    else:
        kern = functools.partial(_qgscm_kernel_split, k=k)
        w_args = (wr_s, wg_b, wb_s)
        w_specs = [pl.BlockSpec((cin, cout), lambda i, j: (0, 0))] * 3
        w_bytes = 3 * cin * cout * 2

    flops = 2 * b * np_ * k * cin * (3 * cout)
    bytes_accessed = (b * np_ * k * cin * 2             # x (bf16)
                      + b * np_ * cout * 2              # out (bf16)
                      + w_bytes + 2 * cout * 4)         # weights + bias/bg
    vmem_est = (2 * tn * k * cin * 2                    # double-buffered bf16 input
                + 2 * tn * cout * 2                     # double-buffered bf16 output
                + w_bytes
                + 6 * tn * k * cout * 4                 # f32 r/g/q/y intermediates + slack
                + tn * k * cin * 2)                     # xx (bf16)

    out = pl.pallas_call(
        kern,
        out_shape=jax.ShapeDtypeStruct((b, np_, cout), jnp.bfloat16),
        grid=(b, np_ // tn),
        in_specs=[pl.BlockSpec((1, tn * k, cin), lambda i, j: (i, j, 0))] + w_specs + [
            pl.BlockSpec((1, cout), lambda i, j: (0, 0)),
            pl.BlockSpec((1, cout), lambda i, j: (0, 0)),
        ],
        out_specs=pl.BlockSpec((1, tn, cout), lambda i, j: (i, j, 0)),
        compiler_params=_mosaic_params(vmem_est),
        cost_estimate=pl.CostEstimate(flops=flops, transcendentals=0,
                                      bytes_accessed=bytes_accessed),
    )(xf, *w_args, bg, bn_bias)
    return out[:, :n_orig] if np_ != n_orig else out


def _pointwise_kernel(x_ref, w_ref, bias_ref, o_ref, *, act):
    """1x1 Conv1d with BN scale pre-folded into W; + bias (+ LeakyReLU)."""
    y = jnp.dot(x_ref[0], w_ref[...], preferred_element_type=jnp.float32) + bias_ref[...]
    if act:
        y = jnp.maximum(y, 0.2 * y)
    o_ref[0] = y.astype(o_ref.dtype)


def pointwise_conv(x_bnc, w, bn_scale, bn_bias, act=True, *, tile_n=2048):
    b, n, cin = x_bnc.shape
    cout = w.shape[1]
    tn = _pick_tile(n, tile_n)
    x_bnc, n_orig = _pad_axis(x_bnc, 1, tn)
    np_ = x_bnc.shape[1]
    xb = x_bnc.astype(jnp.bfloat16)
    wb = (w * bn_scale).astype(jnp.bfloat16)            # fold BN scale into W

    flops = 2 * b * np_ * cin * cout
    bytes_accessed = b * np_ * cin * 2 + b * np_ * cout * 2 + cin * cout * 2 + cout * 4
    vmem_est = (2 * tn * cin * 2 + 2 * tn * cout * 2 + cin * cout * 2
                + 3 * tn * cout * 4)

    kern = functools.partial(_pointwise_kernel, act=act)
    out = pl.pallas_call(
        kern,
        out_shape=jax.ShapeDtypeStruct((b, np_, cout), jnp.bfloat16),
        grid=(b, np_ // tn),
        in_specs=[
            pl.BlockSpec((1, tn, cin), lambda i, j: (i, j, 0)),
            pl.BlockSpec((cin, cout), lambda i, j: (0, 0)),
            pl.BlockSpec((1, cout), lambda i, j: (0, 0)),
        ],
        out_specs=pl.BlockSpec((1, tn, cout), lambda i, j: (i, j, 0)),
        compiler_params=_mosaic_params(vmem_est),
        cost_estimate=pl.CostEstimate(flops=flops, transcendentals=0,
                                      bytes_accessed=bytes_accessed),
    )(xb, wb, bn_bias)
    return out[:, :n_orig] if np_ != n_orig else out


def _head_kernel(x_ref, w5_ref, b5_ref, w6_ref, b6_ref, w7_ref, o_ref):
    """Fused conv5 -> conv6 -> (dropout=id) -> conv7; BN scales pre-folded into W5/W6.
    x_ref: [1, tn, emb] bf16; o_ref: [1, tn, 128] bf16 (lane-dense logits slab)."""
    x = x_ref[0]
    y = jnp.dot(x, w5_ref[...], preferred_element_type=jnp.float32) + b5_ref[...]
    y = jnp.maximum(y, 0.2 * y)
    y = jnp.dot(y.astype(jnp.bfloat16), w6_ref[...],
                preferred_element_type=jnp.float32) + b6_ref[...]
    y = jnp.maximum(y, 0.2 * y)
    # Dropout is identity in eval mode.
    y = jnp.dot(y.astype(jnp.bfloat16), w7_ref[...], preferred_element_type=jnp.float32)
    o_ref[0] = y.astype(o_ref.dtype)


def seg_head(x_bnc, w5, s5, b5, w6, s6, b6, w7, n_classes=21, *, tile_n=1024):
    """Fused conv5+conv6+conv7 head. x_bnc: [B, N, emb] -> logits [B, N, n_classes] bf16."""
    b, n, cin = x_bnc.shape
    c5 = w5.shape[1]
    c6 = w6.shape[1]
    cpad = 128                                           # lane-dense logits slab
    tn = _pick_tile(n, tile_n)
    x_bnc, n_orig = _pad_axis(x_bnc, 1, tn)
    np_ = x_bnc.shape[1]
    xb = x_bnc.astype(jnp.bfloat16)

    w5b = (w5 * s5).astype(jnp.bfloat16)
    w6b = (w6 * s6).astype(jnp.bfloat16)
    w7p = jnp.pad(w7, ((0, 0), (0, cpad - n_classes))).astype(jnp.bfloat16)

    flops = 2 * b * np_ * (cin * c5 + c5 * c6 + c6 * cpad)
    bytes_accessed = (b * np_ * cin * 2 + b * np_ * cpad * 2
                      + (cin * c5 + c5 * c6 + c6 * cpad) * 2)
    vmem_est = (2 * tn * cin * 2 + 2 * tn * cpad * 2
                + (cin * c5 + c5 * c6 + c6 * cpad) * 2
                + 3 * tn * (c5 + c6 + cpad) * 4)

    out = pl.pallas_call(
        _head_kernel,
        out_shape=jax.ShapeDtypeStruct((b, np_, cpad), jnp.bfloat16),
        grid=(b, np_ // tn),
        in_specs=[
            pl.BlockSpec((1, tn, cin), lambda i, j: (i, j, 0)),
            pl.BlockSpec((cin, c5), lambda i, j: (0, 0)),
            pl.BlockSpec((1, c5), lambda i, j: (0, 0)),
            pl.BlockSpec((c5, c6), lambda i, j: (0, 0)),
            pl.BlockSpec((1, c6), lambda i, j: (0, 0)),
            pl.BlockSpec((c6, cpad), lambda i, j: (0, 0)),
        ],
        out_specs=pl.BlockSpec((1, tn, cpad), lambda i, j: (i, j, 0)),
        compiler_params=_mosaic_params(vmem_est),
        cost_estimate=pl.CostEstimate(flops=flops, transcendentals=0,
                                      bytes_accessed=bytes_accessed),
    )(xb, w5b, b5, w6b, b6, w7p)
    out = out[:, :n_orig] if np_ != n_orig else out
    return out[:, :, :n_classes]


# ----------------------------------------------------------------------------
# Plain-JAX glue: graph construction, FPS, interpolation
# ----------------------------------------------------------------------------
def knn_idx(x, k):
    """x: [B, N, D] (f32) -> k nearest neighbor indices [B, N, k] (includes self)."""
    sq = jnp.sum(x * x, axis=-1)
    d2 = sq[:, :, None] + sq[:, None, :] - 2.0 * jnp.einsum('bnd,bmd->bnm', x, x)
    _, idx = lax.top_k(-d2, k)
    return idx


def _gather_nbrs(feats, idx):
    """feats: [B, N, C], idx: [B, N, k] -> [B, N, k, C]."""
    return jax.vmap(lambda f, i: f[i])(feats, idx)


def gather_rows(x, idx):
    """x: [B, N, C], idx: [B, M] -> [B, M, C]  (pointnet2 gather_operation)."""
    return jax.vmap(lambda a, i: a[i])(x, idx)


def edge_feature(feats, idx):
    """DGCNN-style edge feature: cat(nbr - center, center) -> [B, N, k, 2C] (feats dtype)."""
    nbr = _gather_nbrs(feats, idx)
    center = jnp.broadcast_to(feats[:, :, None, :], nbr.shape)
    return jnp.concatenate([nbr - center, center], axis=-1)


def graph_distance(points, idx):
    """Euclidean distance to each kNN neighbor -> [B, N, k, 1] (f32)."""
    nbr = _gather_nbrs(points, idx)
    d2 = jnp.sum((nbr - points[:, :, None, :]) ** 2, axis=-1, keepdims=True)
    return jnp.sqrt(d2)


def eigen_vals(points, idx):
    """Eigenvalues of local neighborhood covariance -> [B, N, 3] (ascending, f32)."""
    nbrs = _gather_nbrs(points, idx)                     # [B, N, k, 3]
    mean = jnp.mean(nbrs, axis=2, keepdims=True)
    c = nbrs - mean
    cov = jnp.einsum('bnki,bnkj->bnij', c, c) / nbrs.shape[2]
    return jnp.linalg.eigvalsh(cov)


def furthest_point_sample(points, npoint):
    """points: [B, N, 3] -> indices [B, npoint] (starts at index 0, like the CUDA op)."""
    b, n, _ = points.shape
    dists0 = jnp.full((b, n), 1e10, dtype=points.dtype)
    idxs0 = jnp.zeros((b, npoint), dtype=jnp.int32)

    def body(i, state):
        dists, idxs = state
        last = idxs[:, i - 1]
        last_pt = jnp.take_along_axis(points, last[:, None, None], axis=1)  # [B,1,3]
        d = jnp.sum((points - last_pt) ** 2, axis=-1)
        dists = jnp.minimum(dists, d)
        nxt = jnp.argmax(dists, axis=-1).astype(jnp.int32)
        idxs = idxs.at[:, i].set(nxt)
        return dists, idxs

    _, idxs = lax.fori_loop(1, npoint, body, (dists0, idxs0))
    return idxs


def three_nn(unknown, known):
    """For each unknown point, 3 nearest known points -> (dist [B,n,3], idx [B,n,3])."""
    d2 = jnp.sum((unknown[:, :, None, :] - known[:, None, :, :]) ** 2, axis=-1)
    neg, idx = lax.top_k(-d2, 3)
    return jnp.sqrt(jnp.maximum(-neg, 0.0)), idx


def three_interpolate(feats, idx, weight):
    """feats: [B, m, C], idx/weight: [B, n, 3] -> [B, n, C] (feats dtype preserved)."""
    g = jax.vmap(lambda f, i: f[i])(feats, idx)          # [B, n, 3, C]
    return jnp.sum(g * weight[..., None].astype(feats.dtype), axis=2)


# ----------------------------------------------------------------------------
# Model: parameters + forward
# ----------------------------------------------------------------------------
def _bn_fold(c, eps=1e-5):
    # Fresh BatchNorm (gamma=1, beta=0, running_mean=0, running_var=1), eval mode.
    scale = jnp.full((1, c), 1.0 / jnp.sqrt(1.0 + eps), jnp.float32)
    bias = jnp.zeros((1, c), jnp.float32)
    return scale, bias


def init_params(key, emb_dims=64):
    def w(k_, cin, cout):
        return 0.1 * jax.random.normal(k_, (cin, cout), jnp.float32)

    ks = jax.random.split(key, 8)
    p = {}
    # QGSCM 1: in 13 (zero-padded to 16 lanes) -> out 16
    # (conv*_g weight=0 bias=1, conv*_b weight=0, per the PyTorch __init__)
    p['w1r'] = jnp.pad(w(ks[0], 13, 16), ((0, 3), (0, 0)))
    p['w1g'] = jnp.zeros((16, 16), jnp.float32)
    p['b1g'] = jnp.ones((1, 16), jnp.float32)
    p['w1b'] = jnp.zeros((16, 16), jnp.float32)
    # QGSCM 2: in 64 -> out 64
    p['w2r'] = w(ks[1], 64, 64)
    p['w2g'] = jnp.zeros((64, 64), jnp.float32)
    p['b2g'] = jnp.ones((1, 64), jnp.float32)
    p['w2b'] = jnp.zeros((64, 64), jnp.float32)
    # QGSCM 3: in 256 -> out 256
    p['w3r'] = w(ks[2], 256, 256)
    p['w3g'] = jnp.zeros((256, 256), jnp.float32)
    p['b3g'] = jnp.ones((1, 256), jnp.float32)
    p['w3b'] = jnp.zeros((256, 256), jnp.float32)
    # conv4..conv7
    p['w4'] = w(ks[3], 336, emb_dims)
    p['w5'] = w(ks[4], emb_dims, 512)
    p['w6'] = w(ks[5], 512, 256)
    p['w7'] = w(ks[6], 256, 21)
    p['bn1'] = _bn_fold(16)
    p['bn2'] = _bn_fold(64)
    p['bn3'] = _bn_fold(256)
    p['bn4'] = _bn_fold(emb_dims)
    p['bn5'] = _bn_fold(512)
    p['bn6'] = _bn_fold(256)
    return p


def qgscm(points, feats, k, wr, wg, wb, bg, bn_scale, bn_bias,
          first_layer=False, *, tile_n=512):
    """points: [B, N, 3] f32; feats: [B, N, F] bf16 or None. Returns [B, N, Cout] bf16."""
    idx_eu = knn_idx(points, k)
    eig = eigen_vals(points, idx_eu)
    idx_ei = knn_idx(eig, k)
    if first_layer:
        # Build the edge tensor directly in bf16 so the [B,N,k,13] slab never hits HBM in f32.
        f_eu = edge_feature(points.astype(jnp.bfloat16), idx_eu)       # [B, N, k, 6]
        f_ei = edge_feature(eig.astype(jnp.bfloat16), idx_ei)          # [B, N, k, 6]
        d = graph_distance(points, idx_eu).astype(jnp.bfloat16)        # [B, N, k, 1]
        g = jnp.concatenate([f_eu, f_ei, d], axis=-1)                  # 13 channels
        pad = wr.shape[0] - g.shape[-1]                                 # pad 13 -> 16 lanes
        if pad > 0:
            g = jnp.pad(g, ((0, 0), (0, 0), (0, 0), (0, pad)))
    else:
        f_eu = edge_feature(feats, idx_eu)                              # bf16
        f_ei = edge_feature(feats, idx_ei)
        g = jnp.concatenate([f_eu, f_ei], axis=-1)                      # 4F channels, bf16
    return qgscm_conv(g, wr, wg, wb, bg, bn_scale, bn_bias, tile_n=tile_n)


def forward(x, params, k):
    """x: [B, C, N] (C >= 3, xyz first) -> logits [B, 21, N] f32."""
    b, _, n = x.shape
    xt = jnp.transpose(x, (0, 2, 1))                     # [B, N, C]
    pts1 = xt[:, :, :3]
    n2, n3 = n // 2, n // 4

    # Per-layer tile sizes: large tiles on the small-channel layers to amortize grid-step
    # overhead; layer 3 capped at 512 so f32 intermediates + double buffers fit v7x VMEM.
    x1 = qgscm(pts1, None, k, params['w1r'], params['w1g'], params['w1b'],
               params['b1g'], *params['bn1'], first_layer=True,
               tile_n=2048)                                            # [B, N, 16] bf16

    fps2 = furthest_point_sample(pts1, n2)
    pts2 = gather_rows(pts1, fps2)
    x1_ds = gather_rows(x1, fps2)
    x2 = qgscm(pts2, x1_ds, k, params['w2r'], params['w2g'], params['w2b'],
               params['b2g'], *params['bn2'], tile_n=1024)             # [B, n2, 64] bf16

    fps3 = furthest_point_sample(pts2, n3)
    pts3 = gather_rows(pts2, fps3)
    x2_ds = gather_rows(x2, fps3)
    x1_ds = gather_rows(x1_ds, fps3)
    x3 = qgscm(pts3, x2_ds, k, params['w3r'], params['w3g'], params['w3b'],
               params['b3g'], *params['bn3'], tile_n=512)              # [B, n3, 256] bf16

    feat = jnp.concatenate([x1_ds, x2_ds, x3], axis=-1)                # [B, n3, 336] bf16
    feat = pointwise_conv(feat, params['w4'], *params['bn4'],
                          act=True, tile_n=2048)                       # [B, n3, emb] bf16

    # three_nn / three_interpolate upsampling: N3 -> N2 -> N1 (bf16 features, f32 weights)
    dist, idx = three_nn(pts2, pts3)
    rec = 1.0 / (dist + 1e-8)
    wgt = rec / jnp.sum(rec, axis=-1, keepdims=True)
    feat_n2 = three_interpolate(feat, idx, wgt)                        # [B, n2, emb] bf16

    dist, idx = three_nn(pts1, pts2)
    rec = 1.0 / (dist + 1e-8)
    wgt = rec / jnp.sum(rec, axis=-1, keepdims=True)
    feat_n1 = three_interpolate(feat_n2, idx, wgt)                     # [B, N, emb] bf16

    y = seg_head(feat_n1, params['w5'], *params['bn5'],
                 params['w6'], *params['bn6'], params['w7'],
                 tile_n=1024)                                          # [B, N, 21] bf16
    # Single small pass: slice already done in seg_head; transpose + cast to f32 output.
    return jnp.transpose(y, (0, 2, 1)).astype(jnp.float32)             # [B, 21, N]


# ----------------------------------------------------------------------------
if __name__ == "__main__":
    key = jax.random.PRNGKey(0)
    k_params, k_x = jax.random.split(key)

    # args: k=8, emb_dims=64, dropout=0.5 (dropout is identity in eval mode)
    K = 8
    EMB = 64
    B, C_IN, N = 2, 6, 64       # xyz + 3 extra input features, 64 points

    params = init_params(k_params, emb_dims=EMB)
    x = jax.random.normal(k_x, (B, C_IN, N), jnp.float32)

    fwd = jax.jit(forward, static_argnums=(2,))
    out = fwd(x, params, K)
    out = jax.block_until_ready(out)
    assert out.shape == (B, 21, N), out.shape
    assert bool(jnp.all(jnp.isfinite(out)))
    print("KERNEL_OK")
</pallas_src>

<mosaic_0001>
module attributes {stable_mosaic.version = 11 : i64} {
  func.func @_qgscm_kernel_split(%arg0: i32, %arg1: i32, %arg2: memref<1x512x16xbf16, #tpu.memory_space<vmem>>, %arg3: memref<16x16xbf16, #tpu.memory_space<vmem>>, %arg4: memref<16x16xbf16, #tpu.memory_space<vmem>>, %arg5: memref<16x16xbf16, #tpu.memory_space<vmem>>, %arg6: memref<1x16xf32, #tpu.memory_space<vmem>>, %arg7: memref<1x16xf32, #tpu.memory_space<vmem>>, %arg8: memref<1x64x16xbf16, #tpu.memory_space<vmem>>) attributes {dimension_semantics = [#tpu.dimension_semantics<parallel>, #tpu.dimension_semantics<parallel>], iteration_bounds = array<i64: 2, 1>, scalar_prefetch = 0 : i64, scratch_operands = 0 : i64, tpu.core_type = #tpu.core_type<tc>, window_params = [{transform_indices = @transform_0, window_bounds = array<i64: 1, 512, 16>}, {pipeline_mode = #tpu.pipeline_mode<synchronous>, transform_indices = @transform_1, window_bounds = array<i64: 16, 16>}, {pipeline_mode = #tpu.pipeline_mode<synchronous>, transform_indices = @transform_2, window_bounds = array<i64: 16, 16>}, {pipeline_mode = #tpu.pipeline_mode<synchronous>, transform_indices = @transform_3, window_bounds = array<i64: 16, 16>}, {pipeline_mode = #tpu.pipeline_mode<synchronous>, transform_indices = @transform_4, window_bounds = array<i64: 1, 16>}, {pipeline_mode = #tpu.pipeline_mode<synchronous>, transform_indices = @transform_5, window_bounds = array<i64: 1, 16>}, {transform_indices = @transform_6, window_bounds = array<i64: 1, 64, 16>}]} {
    %c0 = arith.constant 0 : index
    %c0_0 = arith.constant 0 : index
    %c0_1 = arith.constant 0 : index
    %0 = vector.load %arg2[%c0, %c0_0, %c0_1] : memref<1x512x16xbf16, #tpu.memory_space<vmem>>, vector<1x512x16xbf16>
    %1 = vector.shape_cast %0 : vector<1x512x16xbf16> to vector<512x16xbf16>
    %2 = arith.mulf %1, %1 : vector<512x16xbf16>
    %c0_2 = arith.constant 0 : index
    %c0_3 = arith.constant 0 : index
    %3 = vector.load %arg3[%c0_2, %c0_3] : memref<16x16xbf16, #tpu.memory_space<vmem>>, vector<16x16xbf16>
    %cst = arith.constant dense<0.000000e+00> : vector<512x16xf32>
    %4 = tpu.matmul %1, %3, %cst {dimension_numbers = #tpu.dot_dimension_numbers<[1], [0], [0], [1], [0, 0, 1, 1], [], []>} : vector<512x16xbf16>, vector<16x16xbf16>, vector<512x16xf32> -> vector<512x16xf32>
    %c0_4 = arith.constant 0 : index
    %c0_5 = arith.constant 0 : index
    %5 = vector.load %arg4[%c0_4, %c0_5] : memref<16x16xbf16, #tpu.memory_space<vmem>>, vector<16x16xbf16>
    %cst_6 = arith.constant dense<0.000000e+00> : vector<512x16xf32>
    %6 = tpu.matmul %1, %5, %cst_6 {dimension_numbers = #tpu.dot_dimension_numbers<[1], [0], [0], [1], [0, 0, 1, 1], [], []>} : vector<512x16xbf16>, vector<16x16xbf16>, vector<512x16xf32> -> vector<512x16xf32>
    %c0_7 = arith.constant 0 : index
    %c0_8 = arith.constant 0 : index
    %7 = vector.load %arg6[%c0_7, %c0_8] : memref<1x16xf32, #tpu.memory_space<vmem>>, vector<1x16xf32>
    %8 = vector.broadcast %7 : vector<1x16xf32> to vector<512x16xf32>
    %9 = arith.addf %6, %8 : vector<512x16xf32>
    %c0_9 = arith.constant 0 : index
    %c0_10 = arith.constant 0 : index
    %10 = vector.load %arg5[%c0_9, %c0_10] : memref<16x16xbf16, #tpu.memory_space<vmem>>, vector<16x16xbf16>
    %cst_11 = arith.constant dense<0.000000e+00> : vector<512x16xf32>
    %11 = tpu.matmul %2, %10, %cst_11 {dimension_numbers = #tpu.dot_dimension_numbers<[1], [0], [0], [1], [0, 0, 1, 1], [], []>} : vector<512x16xbf16>, vector<16x16xbf16>, vector<512x16xf32> -> vector<512x16xf32>
    %12 = arith.mulf %4, %9 : vector<512x16xf32>
    %13 = arith.addf %12, %11 : vector<512x16xf32>
    %14 = vector.shape_cast %13 : vector<512x16xf32> to vector<64x8x16xf32>
    %cst_12 = arith.constant dense<0xFF800000> : vector<64x16xf32>
    %15 = vector.multi_reduction <maximumf>, %14, %cst_12 [1] : vector<64x8x16xf32> to vector<64x16xf32>
    %c0_13 = arith.constant 0 : index
    %c0_14 = arith.constant 0 : index
    %16 = vector.load %arg7[%c0_13, %c0_14] : memref<1x16xf32, #tpu.memory_space<vmem>>, vector<1x16xf32>
    %17 = vector.broadcast %16 : vector<1x16xf32> to vector<64x16xf32>
    %18 = arith.addf %15, %17 : vector<64x16xf32>
    %cst_15 = arith.constant 2.000000e-01 : f32
    %19 = vector.broadcast %cst_15 : f32 to vector<64x16xf32>
    %20 = arith.mulf %19, %18 : vector<64x16xf32>
    %21 = arith.maximumf %18, %20 : vector<64x16xf32>
    %22 = arith.truncf %21 : vector<64x16xf32> to vector<64x16xbf16>
    %c0_16 = arith.constant 0 : index
    %c0_17 = arith.constant 0 : index
    %c0_18 = arith.constant 0 : index
    %23 = vector.load %arg8[%c0_16, %c0_17, %c0_18] : memref<1x64x16xbf16, #tpu.memory_space<vmem>>, vector<1x64x16xbf16>
    %24 = vector.shape_cast %23 : vector<1x64x16xbf16> to vector<64x16xbf16>
    %25 = vector.shape_cast %22 : vector<64x16xbf16> to vector<1x64x16xbf16>
    tpu.vector_store %arg8[%c0_16, %c0_17, %c0_18], %25 {strides = array<i32>} : memref<1x64x16xbf16, #tpu.memory_space<vmem>>, vector<1x64x16xbf16>,
    return
  }
  func.func @transform_0(%arg0: i32, %arg1: i32) -> (i32, i32, i32) {
    %c0_i32 = arith.constant 0 : i32
    %c0_i32_0 = arith.constant 0 : i32
    return %arg0, %arg1, %c0_i32 : i32, i32, i32
  }
  func.func @transform_1(%arg0: i32, %arg1: i32) -> (i32, i32) {
    %c0_i32 = arith.constant 0 : i32
    %c0_i32_0 = arith.constant 0 : i32
    %c0_i32_1 = arith.constant 0 : i32
    return %c0_i32, %c0_i32_0 : i32, i32
  }
  func.func @transform_2(%arg0: i32, %arg1: i32) -> (i32, i32) {
    %c0_i32 = arith.constant 0 : i32
    %c0_i32_0 = arith.constant 0 : i32
    %c0_i32_1 = arith.constant 0 : i32
    return %c0_i32, %c0_i32_0 : i32, i32
  }
  func.func @transform_3(%arg0: i32, %arg1: i32) -> (i32, i32) {
    %c0_i32 = arith.constant 0 : i32
    %c0_i32_0 = arith.constant 0 : i32
    %c0_i32_1 = arith.constant 0 : i32
    return %c0_i32, %c0_i32_0 : i32, i32
  }
  func.func @transform_4(%arg0: i32, %arg1: i32) -> (i32, i32) {
    %c0_i32 = arith.constant 0 : i32
    %c0_i32_0 = arith.constant 0 : i32
    %c0_i32_1 = arith.constant 0 : i32
    return %c0_i32, %c0_i32_0 : i32, i32
  }
  func.func @transform_5(%arg0: i32, %arg1: i32) -> (i32, i32) {
    %c0_i32 = arith.constant 0 : i32
    %c0_i32_0 = arith.constant 0 : i32
    %c0_i32_1 = arith.constant 0 : i32
    return %c0_i32, %c0_i32_0 : i32, i32
  }
  func.func @transform_6(%arg0: i32, %arg1: i32) -> (i32, i32, i32) {
    %c0_i32 = arith.constant 0 : i32
    %c0_i32_0 = arith.constant 0 : i32
    return %arg0, %arg1, %c0_i32 : i32, i32, i32
  }
}

module attributes {stable_mosaic.version = 11 : i64} {
  func.func @_qgscm_kernel_split(%arg0: i32, %arg1: i32, %arg2: memref<1x256x64xbf16, #tpu.memory_space<vmem>>, %arg3: memref<64x64xbf16, #tpu.memory_space<vmem>>, %arg4: memref<64x64xbf16, #tpu.memory_space<vmem>>, %arg5: memref<64x64xbf16, #tpu.memory_space<vmem>>, %arg6: memref<1x64xf32, #tpu.memory_space<vmem>>, %arg7: memref<1x64xf32, #tpu.memory_space<vmem>>, %arg8: memref<1x32x64xbf16, #tpu.memory_space<vmem>>) attributes {dimension_semantics = [#tpu.dimension_semantics<parallel>, #tpu.dimension_semantics<parallel>], iteration_bounds = array<i64: 2, 1>, scalar_prefetch = 0 : i64, scratch_operands = 0 : i64, tpu.core_type = #tpu.core_type<tc>, window_params = [{transform_indices = @transform_0, window_bounds = array<i64: 1, 256, 64>}, {pipeline_mode = #tpu.pipeline_mode<synchronous>, transform_indices = @transform_1, window_bounds = array<i64: 64, 64>}, {pipeline_mode = #tpu.pipeline_mode<synchronous>, transform_indices = @transform_2, window_bounds = array<i64: 64, 64>}, {pipeline_mode = #tpu.pipeline_mode<synchronous>, transform_indices = @transform_3, window_bounds = array<i64: 64, 64>}, {pipeline_mode = #tpu.pipeline_mode<synchronous>, transform_indices = @transform_4, window_bounds = array<i64: 1, 64>}, {pipeline_mode = #tpu.pipeline_mode<synchronous>, transform_indices = @transform_5, window_bounds = array<i64: 1, 64>}, {transform_indices = @transform_6, window_bounds = array<i64: 1, 32, 64>}]} {
    %c0 = arith.constant 0 : index
    %c0_0 = arith.constant 0 : index
    %c0_1 = arith.constant 0 : index
    %0 = vector.load %arg2[%c0, %c0_0, %c0_1] : memref<1x256x64xbf16, #tpu.memory_space<vmem>>, vector<1x256x64xbf16>
    %1 = vector.shape_cast %0 : vector<1x256x64xbf16> to vector<256x64xbf16>
    %2 = arith.mulf %1, %1 : vector<256x64xbf16>
    %c0_2 = arith.constant 0 : index
    %c0_3 = arith.constant 0 : index
    %3 = vector.load %arg3[%c0_2, %c0_3] : memref<64x64xbf16, #tpu.memory_space<vmem>>, vector<64x64xbf16>
    %cst = arith.constant dense<0.000000e+00> : vector<256x64xf32>
    %4 = tpu.matmul %1, %3, %cst {dimension_numbers = #tpu.dot_dimension_numbers<[1], [0], [0], [1], [0, 0, 1, 1], [], []>} : vector<256x64xbf16>, vector<64x64xbf16>, vector<256x64xf32> -> vector<256x64xf32>
    %c0_4 = arith.constant 0 : index
    %c0_5 = arith.constant 0 : index
    %5 = vector.load %arg4[%c0_4, %c0_5] : memref<64x64xbf16, #tpu.memory_space<vmem>>, vector<64x64xbf16>
    %cst_6 = arith.constant dense<0.000000e+00> : vector<256x64xf32>
    %6 = tpu.matmul %1, %5, %cst_6 {dimension_numbers = #tpu.dot_dimension_numbers<[1], [0], [0], [1], [0, 0, 1, 1], [], []>} : vector<256x64xbf16>, vector<64x64xbf16>, vector<256x64xf32> -> vector<256x64xf32>
    %c0_7 = arith.constant 0 : index
    %c0_8 = arith.constant 0 : index
    %7 = vector.load %arg6[%c0_7, %c0_8] : memref<1x64xf32, #tpu.memory_space<vmem>>, vector<1x64xf32>
    %8 = vector.broadcast %7 : vector<1x64xf32> to vector<256x64xf32>
    %9 = arith.addf %6, %8 : vector<256x64xf32>
    %c0_9 = arith.constant 0 : index
    %c0_10 = arith.constant 0 : index
    %10 = vector.load %arg5[%c0_9, %c0_10] : memref<64x64xbf16, #tpu.memory_space<vmem>>, vector<64x64xbf16>
    %cst_11 = arith.constant dense<0.000000e+00> : vector<256x64xf32>
    %11 = tpu.matmul %2, %10, %cst_11 {dimension_numbers = #tpu.dot_dimension_numbers<[1], [0], [0], [1], [0, 0, 1, 1], [], []>} : vector<256x64xbf16>, vector<64x64xbf16>, vector<256x64xf32> -> vector<256x64xf32>
    %12 = arith.mulf %4, %9 : vector<256x64xf32>
    %13 = arith.addf %12, %11 : vector<256x64xf32>
    %14 = vector.shape_cast %13 : vector<256x64xf32> to vector<32x8x64xf32>
    %cst_12 = arith.constant dense<0xFF800000> : vector<32x64xf32>
    %15 = vector.multi_reduction <maximumf>, %14, %cst_12 [1] : vector<32x8x64xf32> to vector<32x64xf32>
    %c0_13 = arith.constant 0 : index
    %c0_14 = arith.constant 0 : index
    %16 = vector.load %arg7[%c0_13, %c0_14] : memref<1x64xf32, #tpu.memory_space<vmem>>, vector<1x64xf32>
    %17 = vector.broadcast %16 : vector<1x64xf32> to vector<32x64xf32>
    %18 = arith.addf %15, %17 : vector<32x64xf32>
    %cst_15 = arith.constant 2.000000e-01 : f32
    %19 = vector.broadcast %cst_15 : f32 to vector<32x64xf32>
    %20 = arith.mulf %19, %18 : vector<32x64xf32>
    %21 = arith.maximumf %18, %20 : vector<32x64xf32>
    %22 = arith.truncf %21 : vector<32x64xf32> to vector<32x64xbf16>
    %c0_16 = arith.constant 0 : index
    %c0_17 = arith.constant 0 : index
    %c0_18 = arith.constant 0 : index
    %23 = vector.load %arg8[%c0_16, %c0_17, %c0_18] : memref<1x32x64xbf16, #tpu.memory_space<vmem>>, vector<1x32x64xbf16>
    %24 = vector.shape_cast %23 : vector<1x32x64xbf16> to vector<32x64xbf16>
    %25 = vector.shape_cast %22 : vector<32x64xbf16> to vector<1x32x64xbf16>
    tpu.vector_store %arg8[%c0_16, %c0_17, %c0_18], %25 {strides = array<i32>} : memref<1x32x64xbf16, #tpu.memory_space<vmem>>, vector<1x32x64xbf16>,
    return
  }
  func.func @transform_0(%arg0: i32, %arg1: i32) -> (i32, i32, i32) {
    %c0_i32 = arith.constant 0 : i32
    %c0_i32_0 = arith.constant 0 : i32
    return %arg0, %arg1, %c0_i32 : i32, i32, i32
  }
  func.func @transform_1(%arg0: i32, %arg1: i32) -> (i32, i32) {
    %c0_i32 = arith.constant 0 : i32
    %c0_i32_0 = arith.constant 0 : i32
    %c0_i32_1 = arith.constant 0 : i32
    return %c0_i32, %c0_i32_0 : i32, i32
  }
  func.func @transform_2(%arg0: i32, %arg1: i32) -> (i32, i32) {
    %c0_i32 = arith.constant 0 : i32
    %c0_i32_0 = arith.constant 0 : i32
    %c0_i32_1 = arith.constant 0 : i32
    return %c0_i32, %c0_i32_0 : i32, i32
  }
  func.func @transform_3(%arg0: i32, %arg1: i32) -> (i32, i32) {
    %c0_i32 = arith.constant 0 : i32
    %c0_i32_0 = arith.constant 0 : i32
    %c0_i32_1 = arith.constant 0 : i32
    return %c0_i32, %c0_i32_0 : i32, i32
  }
  func.func @transform_4(%arg0: i32, %arg1: i32) -> (i32, i32) {
    %c0_i32 = arith.constant 0 : i32
    %c0_i32_0 = arith.constant 0 : i32
    %c0_i32_1 = arith.constant 0 : i32
    return %c0_i32, %c0_i32_0 : i32, i32
  }
  func.func @transform_5(%arg0: i32, %arg1: i32) -> (i32, i32) {
    %c0_i32 = arith.constant 0 : i32
    %c0_i32_0 = arith.constant 0 : i32
    %c0_i32_1 = arith.constant 0 : i32
    return %c0_i32, %c0_i32_0 : i32, i32
  }
  func.func @transform_6(%arg0: i32, %arg1: i32) -> (i32, i32, i32) {
    %c0_i32 = arith.constant 0 : i32
    %c0_i32_0 = arith.constant 0 : i32
    return %arg0, %arg1, %c0_i32 : i32, i32, i32
  }
}

module attributes {stable_mosaic.version = 11 : i64} {
  func.func @_qgscm_kernel_fused(%arg0: i32, %arg1: i32, %arg2: memref<1x128x256xbf16, #tpu.memory_space<vmem>>, %arg3: memref<256x512xbf16, #tpu.memory_space<vmem>>, %arg4: memref<256x256xbf16, #tpu.memory_space<vmem>>, %arg5: memref<1x256xf32, #tpu.memory_space<vmem>>, %arg6: memref<1x256xf32, #tpu.memory_space<vmem>>, %arg7: memref<1x16x256xbf16, #tpu.memory_space<vmem>>) attributes {dimension_semantics = [#tpu.dimension_semantics<parallel>, #tpu.dimension_semantics<parallel>], iteration_bounds = array<i64: 2, 1>, scalar_prefetch = 0 : i64, scratch_operands = 0 : i64, tpu.core_type = #tpu.core_type<tc>, window_params = [{transform_indices = @transform_0, window_bounds = array<i64: 1, 128, 256>}, {pipeline_mode = #tpu.pipeline_mode<synchronous>, transform_indices = @transform_1, window_bounds = array<i64: 256, 512>}, {pipeline_mode = #tpu.pipeline_mode<synchronous>, transform_indices = @transform_2, window_bounds = array<i64: 256, 256>}, {pipeline_mode = #tpu.pipeline_mode<synchronous>, transform_indices = @transform_3, window_bounds = array<i64: 1, 256>}, {pipeline_mode = #tpu.pipeline_mode<synchronous>, transform_indices = @transform_4, window_bounds = array<i64: 1, 256>}, {transform_indices = @transform_5, window_bounds = array<i64: 1, 16, 256>}]} {
    %c0 = arith.constant 0 : index
    %c0_0 = arith.constant 0 : index
    %c0_1 = arith.constant 0 : index
    %0 = vector.load %arg2[%c0, %c0_0, %c0_1] : memref<1x128x256xbf16, #tpu.memory_space<vmem>>, vector<1x128x256xbf16>
    %1 = vector.shape_cast %0 : vector<1x128x256xbf16> to vector<128x256xbf16>
    %2 = arith.mulf %1, %1 : vector<128x256xbf16>
    %c0_2 = arith.constant 0 : index
    %c0_3 = arith.constant 0 : index
    %3 = vector.load %arg3[%c0_2, %c0_3] : memref<256x512xbf16, #tpu.memory_space<vmem>>, vector<256x512xbf16>
    %cst = arith.constant dense<0.000000e+00> : vector<128x512xf32>
    %4 = tpu.matmul %1, %3, %cst {dimension_numbers = #tpu.dot_dimension_numbers<[1], [0], [0], [1], [0, 0, 1, 1], [], []>} : vector<128x256xbf16>, vector<256x512xbf16>, vector<128x512xf32> -> vector<128x512xf32>
    %5 = vector.extract_strided_slice %4 {offsets = [0, 0], sizes = [128, 256], strides = [1, 1]} : vector<128x512xf32> to vector<128x256xf32>
    %6 = vector.extract_strided_slice %4 {offsets = [0, 256], sizes = [128, 256], strides = [1, 1]} : vector<128x512xf32> to vector<128x256xf32>
    %c0_4 = arith.constant 0 : index
    %c0_5 = arith.constant 0 : index
    %7 = vector.load %arg5[%c0_4, %c0_5] : memref<1x256xf32, #tpu.memory_space<vmem>>, vector<1x256xf32>
    %8 = vector.broadcast %7 : vector<1x256xf32> to vector<128x256xf32>
    %9 = arith.addf %6, %8 : vector<128x256xf32>
    %c0_6 = arith.constant 0 : index
    %c0_7 = arith.constant 0 : index
    %10 = vector.load %arg4[%c0_6, %c0_7] : memref<256x256xbf16, #tpu.memory_space<vmem>>, vector<256x256xbf16>
    %cst_8 = arith.constant dense<0.000000e+00> : vector<128x256xf32>
    %11 = tpu.matmul %2, %10, %cst_8 {dimension_numbers = #tpu.dot_dimension_numbers<[1], [0], [0], [1], [0, 0, 1, 1], [], []>} : vector<128x256xbf16>, vector<256x256xbf16>, vector<128x256xf32> -> vector<128x256xf32>
    %12 = arith.mulf %5, %9 : vector<128x256xf32>
    %13 = arith.addf %12, %11 : vector<128x256xf32>
    %14 = vector.shape_cast %13 : vector<128x256xf32> to vector<16x8x256xf32>
    %cst_9 = arith.constant dense<0xFF800000> : vector<16x256xf32>
    %15 = vector.multi_reduction <maximumf>, %14, %cst_9 [1] : vector<16x8x256xf32> to vector<16x256xf32>
    %c0_10 = arith.constant 0 : index
    %c0_11 = arith.constant 0 : index
    %16 = vector.load %arg6[%c0_10, %c0_11] : memref<1x256xf32, #tpu.memory_space<vmem>>, vector<1x256xf32>
    %17 = vector.broadcast %16 : vector<1x256xf32> to vector<16x256xf32>
    %18 = arith.addf %15, %17 : vector<16x256xf32>
    %cst_12 = arith.constant 2.000000e-01 : f32
    %19 = vector.broadcast %cst_12 : f32 to vector<16x256xf32>
    %20 = arith.mulf %19, %18 : vector<16x256xf32>
    %21 = arith.maximumf %18, %20 : vector<16x256xf32>
    %22 = arith.truncf %21 : vector<16x256xf32> to vector<16x256xbf16>
    %c0_13 = arith.constant 0 : index
    %c0_14 = arith.constant 0 : index
    %c0_15 = arith.constant 0 : index
    %23 = vector.load %arg7[%c0_13, %c0_14, %c0_15] : memref<1x16x256xbf16, #tpu.memory_space<vmem>>, vector<1x16x256xbf16>
    %24 = vector.shape_cast %23 : vector<1x16x256xbf16> to vector<16x256xbf16>
    %25 = vector.shape_cast %22 : vector<16x256xbf16> to vector<1x16x256xbf16>
    tpu.vector_store %arg7[%c0_13, %c0_14, %c0_15], %25 {strides = array<i32>} : memref<1x16x256xbf16, #tpu.memory_space<vmem>>, vector<1x16x256xbf16>,
    return
  }
  func.func @transform_0(%arg0: i32, %arg1: i32) -> (i32, i32, i32) {
    %c0_i32 = arith.constant 0 : i32
    %c0_i32_0 = arith.constant 0 : i32
    return %arg0, %arg1, %c0_i32 : i32, i32, i32
  }
  func.func @transform_1(%arg0: i32, %arg1: i32) -> (i32, i32) {
    %c0_i32 = arith.constant 0 : i32
    %c0_i32_0 = arith.constant 0 : i32
    %c0_i32_1 = arith.constant 0 : i32
    return %c0_i32, %c0_i32_0 : i32, i32
  }
  func.func @transform_2(%arg0: i32, %arg1: i32) -> (i32, i32) {
    %c0_i32 = arith.constant 0 : i32
    %c0_i32_0 = arith.constant 0 : i32
    %c0_i32_1 = arith.constant 0 : i32
    return %c0_i32, %c0_i32_0 : i32, i32
  }
  func.func @transform_3(%arg0: i32, %arg1: i32) -> (i32, i32) {
    %c0_i32 = arith.constant 0 : i32
    %c0_i32_0 = arith.constant 0 : i32
    %c0_i32_1 = arith.constant 0 : i32
    return %c0_i32, %c0_i32_0 : i32, i32
  }
  func.func @transform_4(%arg0: i32, %arg1: i32) -> (i32, i32) {
    %c0_i32 = arith.constant 0 : i32
    %c0_i32_0 = arith.constant 0 : i32
    %c0_i32_1 = arith.constant 0 : i32
    return %c0_i32, %c0_i32_0 : i32, i32
  }
  func.func @transform_5(%arg0: i32, %arg1: i32) -> (i32, i32, i32) {
    %c0_i32 = arith.constant 0 : i32
    %c0_i32_0 = arith.constant 0 : i32
    return %arg0, %arg1, %c0_i32 : i32, i32, i32
  }
}

module attributes {stable_mosaic.version = 11 : i64} {
  func.func @_pointwise_kernel(%arg0: i32, %arg1: i32, %arg2: memref<1x16x336xbf16, #tpu.memory_space<vmem>>, %arg3: memref<336x64xbf16, #tpu.memory_space<vmem>>, %arg4: memref<1x64xf32, #tpu.memory_space<vmem>>, %arg5: memref<1x16x64xbf16, #tpu.memory_space<vmem>>) attributes {dimension_semantics = [#tpu.dimension_semantics<parallel>, #tpu.dimension_semantics<parallel>], iteration_bounds = array<i64: 2, 1>, scalar_prefetch = 0 : i64, scratch_operands = 0 : i64, tpu.core_type = #tpu.core_type<tc>, window_params = [{transform_indices = @transform_0, window_bounds = array<i64: 1, 16, 336>}, {pipeline_mode = #tpu.pipeline_mode<synchronous>, transform_indices = @transform_1, window_bounds = array<i64: 336, 64>}, {pipeline_mode = #tpu.pipeline_mode<synchronous>, transform_indices = @transform_2, window_bounds = array<i64: 1, 64>}, {transform_indices = @transform_3, window_bounds = array<i64: 1, 16, 64>}]} {
    %c0 = arith.constant 0 : index
    %c0_0 = arith.constant 0 : index
    %c0_1 = arith.constant 0 : index
    %0 = vector.load %arg2[%c0, %c0_0, %c0_1] : memref<1x16x336xbf16, #tpu.memory_space<vmem>>, vector<1x16x336xbf16>
    %1 = vector.shape_cast %0 : vector<1x16x336xbf16> to vector<16x336xbf16>
    %c0_2 = arith.constant 0 : index
    %c0_3 = arith.constant 0 : index
    %2 = vector.load %arg3[%c0_2, %c0_3] : memref<336x64xbf16, #tpu.memory_space<vmem>>, vector<336x64xbf16>
    %cst = arith.constant dense<0.000000e+00> : vector<16x64xf32>
    %3 = tpu.matmul %1, %2, %cst {dimension_numbers = #tpu.dot_dimension_numbers<[1], [0], [0], [1], [0, 0, 1, 1], [], []>} : vector<16x336xbf16>, vector<336x64xbf16>, vector<16x64xf32> -> vector<16x64xf32>
    %c0_4 = arith.constant 0 : index
    %c0_5 = arith.constant 0 : index
    %4 = vector.load %arg4[%c0_4, %c0_5] : memref<1x64xf32, #tpu.memory_space<vmem>>, vector<1x64xf32>
    %5 = vector.broadcast %4 : vector<1x64xf32> to vector<16x64xf32>
    %6 = arith.addf %3, %5 : vector<16x64xf32>
    %cst_6 = arith.constant 2.000000e-01 : f32
    %7 = vector.broadcast %cst_6 : f32 to vector<16x64xf32>
    %8 = arith.mulf %7, %6 : vector<16x64xf32>
    %9 = arith.maximumf %6, %8 : vector<16x64xf32>
    %10 = arith.truncf %9 : vector<16x64xf32> to vector<16x64xbf16>
    %c0_7 = arith.constant 0 : index
    %c0_8 = arith.constant 0 : index
    %c0_9 = arith.constant 0 : index
    %11 = vector.load %arg5[%c0_7, %c0_8, %c0_9] : memref<1x16x64xbf16, #tpu.memory_space<vmem>>, vector<1x16x64xbf16>
    %12 = vector.shape_cast %11 : vector<1x16x64xbf16> to vector<16x64xbf16>
    %13 = vector.shape_cast %10 : vector<16x64xbf16> to vector<1x16x64xbf16>
    tpu.vector_store %arg5[%c0_7, %c0_8, %c0_9], %13 {strides = array<i32>} : memref<1x16x64xbf16, #tpu.memory_space<vmem>>, vector<1x16x64xbf16>,
    return
  }
  func.func @transform_0(%arg0: i32, %arg1: i32) -> (i32, i32, i32) {
    %c0_i32 = arith.constant 0 : i32
    %c0_i32_0 = arith.constant 0 : i32
    return %arg0, %arg1, %c0_i32 : i32, i32, i32
  }
  func.func @transform_1(%arg0: i32, %arg1: i32) -> (i32, i32) {
    %c0_i32 = arith.constant 0 : i32
    %c0_i32_0 = arith.constant 0 : i32
    %c0_i32_1 = arith.constant 0 : i32
    return %c0_i32, %c0_i32_0 : i32, i32
  }
  func.func @transform_2(%arg0: i32, %arg1: i32) -> (i32, i32) {
    %c0_i32 = arith.constant 0 : i32
    %c0_i32_0 = arith.constant 0 : i32
    %c0_i32_1 = arith.constant 0 : i32
    return %c0_i32, %c0_i32_0 : i32, i32
  }
  func.func @transform_3(%arg0: i32, %arg1: i32) -> (i32, i32, i32) {
    %c0_i32 = arith.constant 0 : i32
    %c0_i32_0 = arith.constant 0 : i32
    return %arg0, %arg1, %c0_i32 : i32, i32, i32
  }
}

module attributes {stable_mosaic.version = 11 : i64} {
  func.func @_head_kernel(%arg0: i32, %arg1: i32, %arg2: memref<1x64x64xbf16, #tpu.memory_space<vmem>>, %arg3: memref<64x512xbf16, #tpu.memory_space<vmem>>, %arg4: memref<1x512xf32, #tpu.memory_space<vmem>>, %arg5: memref<512x256xbf16, #tpu.memory_space<vmem>>, %arg6: memref<1x256xf32, #tpu.memory_space<vmem>>, %arg7: memref<256x128xbf16, #tpu.memory_space<vmem>>, %arg8: memref<1x64x128xbf16, #tpu.memory_space<vmem>>) attributes {dimension_semantics = [#tpu.dimension_semantics<parallel>, #tpu.dimension_semantics<parallel>], iteration_bounds = array<i64: 2, 1>, scalar_prefetch = 0 : i64, scratch_operands = 0 : i64, tpu.core_type = #tpu.core_type<tc>, window_params = [{transform_indices = @transform_0, window_bounds = array<i64: 1, 64, 64>}, {pipeline_mode = #tpu.pipeline_mode<synchronous>, transform_indices = @transform_1, window_bounds = array<i64: 64, 512>}, {pipeline_mode = #tpu.pipeline_mode<synchronous>, transform_indices = @transform_2, window_bounds = array<i64: 1, 512>}, {pipeline_mode = #tpu.pipeline_mode<synchronous>, transform_indices = @transform_3, window_bounds = array<i64: 512, 256>}, {pipeline_mode = #tpu.pipeline_mode<synchronous>, transform_indices = @transform_4, window_bounds = array<i64: 1, 256>}, {pipeline_mode = #tpu.pipeline_mode<synchronous>, transform_indices = @transform_5, window_bounds = array<i64: 256, 128>}, {transform_indices = @transform_6, window_bounds = array<i64: 1, 64, 128>}]} {
    %c0 = arith.constant 0 : index
    %c0_0 = arith.constant 0 : index
    %c0_1 = arith.constant 0 : index
    %0 = vector.load %arg2[%c0, %c0_0, %c0_1] : memref<1x64x64xbf16, #tpu.memory_space<vmem>>, vector<1x64x64xbf16>
    %1 = vector.shape_cast %0 : vector<1x64x64xbf16> to vector<64x64xbf16>
    %c0_2 = arith.constant 0 : index
    %c0_3 = arith.constant 0 : index
    %2 = vector.load %arg3[%c0_2, %c0_3] : memref<64x512xbf16, #tpu.memory_space<vmem>>, vector<64x512xbf16>
    %cst = arith.constant dense<0.000000e+00> : vector<64x512xf32>
    %3 = tpu.matmul %1, %2, %cst {dimension_numbers = #tpu.dot_dimension_numbers<[1], [0], [0], [1], [0, 0, 1, 1], [], []>} : vector<64x64xbf16>, vector<64x512xbf16>, vector<64x512xf32> -> vector<64x512xf32>
    %c0_4 = arith.constant 0 : index
    %c0_5 = arith.constant 0 : index
    %4 = vector.load %arg4[%c0_4, %c0_5] : memref<1x512xf32, #tpu.memory_space<vmem>>, vector<1x512xf32>
    %5 = vector.broadcast %4 : vector<1x512xf32> to vector<64x512xf32>
    %6 = arith.addf %3, %5 : vector<64x512xf32>
    %cst_6 = arith.constant 2.000000e-01 : f32
    %7 = vector.broadcast %cst_6 : f32 to vector<64x512xf32>
    %8 = arith.mulf %7, %6 : vector<64x512xf32>
    %9 = arith.maximumf %6, %8 : vector<64x512xf32>
    %10 = arith.truncf %9 : vector<64x512xf32> to vector<64x512xbf16>
    %c0_7 = arith.constant 0 : index
    %c0_8 = arith.constant 0 : index
    %11 = vector.load %arg5[%c0_7, %c0_8] : memref<512x256xbf16, #tpu.memory_space<vmem>>, vector<512x256xbf16>
    %cst_9 = arith.constant dense<0.000000e+00> : vector<64x256xf32>
    %12 = tpu.matmul %10, %11, %cst_9 {dimension_numbers = #tpu.dot_dimension_numbers<[1], [0], [0], [1], [0, 0, 1, 1], [], []>} : vector<64x512xbf16>, vector<512x256xbf16>, vector<64x256xf32> -> vector<64x256xf32>
    %c0_10 = arith.constant 0 : index
    %c0_11 = arith.constant 0 : index
    %13 = vector.load %arg6[%c0_10, %c0_11] : memref<1x256xf32, #tpu.memory_space<vmem>>, vector<1x256xf32>
    %14 = vector.broadcast %13 : vector<1x256xf32> to vector<64x256xf32>
    %15 = arith.addf %12, %14 : vector<64x256xf32>
    %cst_12 = arith.constant 2.000000e-01 : f32
    %16 = vector.broadcast %cst_12 : f32 to vector<64x256xf32>
    %17 = arith.mulf %16, %15 : vector<64x256xf32>
    %18 = arith.maximumf %15, %17 : vector<64x256xf32>
    %19 = arith.truncf %18 : vector<64x256xf32> to vector<64x256xbf16>
    %c0_13 = arith.constant 0 : index
    %c0_14 = arith.constant 0 : index
    %20 = vector.load %arg7[%c0_13, %c0_14] : memref<256x128xbf16, #tpu.memory_space<vmem>>, vector<256x128xbf16>
    %cst_15 = arith.constant dense<0.000000e+00> : vector<64x128xf32>
    %21 = tpu.matmul %19, %20, %cst_15 {dimension_numbers = #tpu.dot_dimension_numbers<[1], [0], [0], [1], [0, 0, 1, 1], [], []>} : vector<64x256xbf16>, vector<256x128xbf16>, vector<64x128xf32> -> vector<64x128xf32>
    %22 = arith.truncf %21 : vector<64x128xf32> to vector<64x128xbf16>
    %c0_16 = arith.constant 0 : index
    %c0_17 = arith.constant 0 : index
    %c0_18 = arith.constant 0 : index
    %23 = vector.load %arg8[%c0_16, %c0_17, %c0_18] : memref<1x64x128xbf16, #tpu.memory_space<vmem>>, vector<1x64x128xbf16>
    %24 = vector.shape_cast %23 : vector<1x64x128xbf16> to vector<64x128xbf16>
    %25 = vector.shape_cast %22 : vector<64x128xbf16> to vector<1x64x128xbf16>
    tpu.vector_store %arg8[%c0_16, %c0_17, %c0_18], %25 {strides = array<i32>} : memref<1x64x128xbf16, #tpu.memory_space<vmem>>, vector<1x64x128xbf16>,
    return
  }
  func.func @transform_0(%arg0: i32, %arg1: i32) -> (i32, i32, i32) {
    %c0_i32 = arith.constant 0 : i32
    %c0_i32_0 = arith.constant 0 : i32
    return %arg0, %arg1, %c0_i32 : i32, i32, i32
  }
  func.func @transform_1(%arg0: i32, %arg1: i32) -> (i32, i32) {
    %c0_i32 = arith.constant 0 : i32
    %c0_i32_0 = arith.constant 0 : i32
    %c0_i32_1 = arith.constant 0 : i32
    return %c0_i32, %c0_i32_0 : i32, i32
  }
  func.func @transform_2(%arg0: i32, %arg1: i32) -> (i32, i32) {
    %c0_i32 = arith.constant 0 : i32
    %c0_i32_0 = arith.constant 0 : i32
    %c0_i32_1 = arith.constant 0 : i32
    return %c0_i32, %c0_i32_0 : i32, i32
  }
  func.func @transform_3(%arg0: i32, %arg1: i32) -> (i32, i32) {
    %c0_i32 = arith.constant 0 : i32
    %c0_i32_0 = arith.constant 0 : i32
    %c0_i32_1 = arith.constant 0 : i32
    return %c0_i32, %c0_i32_0 : i32, i32
  }
  func.func @transform_4(%arg0: i32, %arg1: i32) -> (i32, i32) {
    %c0_i32 = arith.constant 0 : i32
    %c0_i32_0 = arith.constant 0 : i32
    %c0_i32_1 = arith.constant 0 : i32
    return %c0_i32, %c0_i32_0 : i32, i32
  }
  func.func @transform_5(%arg0: i32, %arg1: i32) -> (i32, i32) {
    %c0_i32 = arith.constant 0 : i32
    %c0_i32_0 = arith.constant 0 : i32
    %c0_i32_1 = arith.constant 0 : i32
    return %c0_i32, %c0_i32_0 : i32, i32
  }
  func.func @transform_6(%arg0: i32, %arg1: i32) -> (i32, i32, i32) {
    %c0_i32 = arith.constant 0 : i32
    %c0_i32_0 = arith.constant 0 : i32
    return %arg0, %arg1, %c0_i32 : i32, i32, i32
  }
}

</mosaic_0001>

<bundles_post_ra>
// kernel: custom-call.48
= control target key start
LH: loop header
LB: loop body
LE: loop exit
PB: predicated region body
PF: predicated region fallthrough
CT: control target
= control target key end

     0   :  { %s6_s0 = inlined_call_operand.vmem [shape: f32[2,64], index: 0, kind: output, shape index: {}]  }

// kernel: custom-call.49
= control target key start
LH: loop header
LB: loop body
LE: loop exit
PB: predicated region body
PF: predicated region fallthrough
CT: control target
= control target key end

     0   :  { %s6_s0 = inlined_call_operand.vmem [shape: f32[2,32], index: 0, kind: output, shape index: {}]  }

// kernel: custom-call.11
= control target key start
LH: loop header
LB: loop body
LE: loop exit
PB: predicated region body
PF: predicated region fallthrough
CT: control target
= control target key end

     0   :  { %s2327_s0 = inlined_call_operand.vmem [shape: f32[2,16,2,2], index: 0, kind: input, shape index: {}]   ;;  %s2328_s1 = inlined_call_operand.vmem [shape: f32[2,16,2,2], index: 1, kind: input, shape index: {}]   ;;  %s2329_s2 = inlined_call_operand.vmem [shape: f32[2,16,2,2], index: 2, kind: input, shape index: {}]   ;;  %s2330_s3 = inlined_call_operand.vmem [shape: f32[2,16,2,2], index: 3, kind: input, shape index: {}]   ;;  %s2331_s4 = inlined_call_operand.vmem [shape: f32[2,16,2], index: 4, kind: output, shape index: {0}]   ;;  %s2332_s5 = inlined_call_operand.vmem [shape: f32[2,16,2], index: 5, kind: output, shape index: {1}]   ;;  %s2333_s6 = inlined_call_operand.hbm [shape: f32[2,16,2,2], index: 6, kind: output, shape index: {2}]   ;;  %s2334_s7 = inlined_call_operand.hbm [shape: f32[2,16,2,2], index: 7, kind: output, shape index: {3}]   ;;  %s2335_s8 = inlined_call_operand.hbm [shape: f32[2,16,2,2], index: 8, kind: output, shape index: {4}]   ;;  %s2336_s9 = inlined_call_operand.hbm [shape: f32[2,16,2,2], index: 9, kind: output, shape index: {5}]  }
   0x1   :  { %2343 = sst [smem:[#allocation42_spill]] %s2327_s0 }
   0x2   :  { %2344 = sst [smem:[#allocation43_spill]] %s2336_s9 }
   0x3   :  { %11 = vsyncpa [#allocation12], 0 }
   0x4   :  { %13 = vsyncpa [#allocation12 + $0x1], 0 }
   0x5   :  { %14 = vsyncpa [#allocation15], 0 }
   0x6   :  { %16 = vsyncpa [#allocation15 + $0x1], 0 }
   0x7   :  { %17 = vsyncpa [#allocation20], 0 }
   0x8   :  { %19 = vsyncpa [#allocation20 + $0x1], 0  ;;  %s1891_s30 = smov 0   ;;  %s1893_s10 = smov 0  }
   0x9   :  { %s1895_s11 = smov 0   ;;  %s1897_s12 = smov 0  }
   0xa   :  { %s1899_s13 = smov 0   ;;  %s1901_s14 = smov 0  }
   0xb   :  { %s1903_s15 = smov 0  }
   0xc LB: > { %2345 = sst [smem:[#allocation37_spill]] %s1804_s10  ;;  %s2337_s17 = sadd.s32 4294967295, %s1824_s15   ;;  %s1824_s15 = sphi %s1903_s15, %s25_s15   ;;  %s1820_s14 = sphi %s1901_s14, %s2372_s14   ;;  %s1816_s13 = sphi %s1899_s13, %s2374_s13   ;;  %s1812_s12 = sphi %s1897_s12, %s2370_s12   ;;  %s1808_s11 = sphi %s1895_s11, %s2373_s11   ;;  %s1804_s10 = sphi %s1893_s10, %s2369_s10   ;;  %s1800_s30 = sphi %s1891_s30, %s2368_s30  }
   0xd   : > { %2346 = sst [smem:[#allocation38_spill]] %s1820_s14  ;;  %s34_s18 = sadd.s32 1, %s1816_s13 }
   0xe   : > { %p35_p0 = scmp.ge.s32.totalorder %s34_s18, 16  ;;  %s37_s19 = sadd.s32 1, %s1820_s14 }
   0xf   : > { %s41_s20 = sshrl.u32 %s1816_s13, 3  ;;  %p58_p1 = scmp.ne.s32.totalorder %s1804_s10, %s1800_s30 }
  0x10   : > { %s2376_s18 = smov (%p35_p0, %s34_s18), 0  ;;  %s2378_s19 = smov (!%p35_p0, %s37_s19), %s1820_s14 }
  0x11   : > { %2347 = sst [smem:[#allocation39_spill]] %s2376_s18  ;;  %s42_s21 = sshrl.u32 %s2376_s18, 3 }
  0x12   : > { %p59_p2 = scmp.eq.s32.totalorder %s2337_s17, 31  ;;  %p39_p3 = scmp.ge.s32.totalorder %s2378_s19, 2 }
  0x13   : > { %s44_s22 = ssub.s32 %s41_s20, %s42_s21  ;;  %s48_s26 = sadd.s32 1, %s1804_s10 }
  0x14   : > { %p1939_p4 = por %p59_p2, %p58_p1  ;;  %s2380_s19 = smov (%p39_p3, %s2378_s19), 0 }
  0x15   : > { %2349 = sst [smem:[#allocation40_spill]] %s2380_s19  ;;  %s43_s24 = ssub.s32 %s1820_s14, %s2380_s19 }
  0x16   : > { %s45_s25 = sor.u32 %s44_s22, %s43_s24  ;;  %p1498_p6 = scmp.ge.s32.totalorder %s1824_s15, 32 }
  0x17   : > { %p46_p5 = scmp.eq.s32.totalorder %s45_s25, 0  ;;  %s113_s28 = sand.u32 (!%p1498_p6), 1, %s1824_s15  }
  0x18   : > { %111 = sbr.rel (%p1498_p6) target bundleno = 37 (0x25), region = 16  ;;  %s1500_s29 = sshll.u32 (!%p1498_p6), %s1820_s14, 4 }
  0x19   : > { %s1949_s27 = scalar_select %p46_p5, %s1804_s10, %s48_s26  }
  0x1a   : > { %s1499_s20 = sshll.u32 (!%p1498_p6), %s113_s28, 1  ;;  %s117_s21 = sadd.s32 (!%p1498_p6), %s1816_s13, %s1500_s29 }
  0x1b   : > { %2350 = sst [smem:[#allocation41_spill]] %s1949_s27  ;;  %s1501_s16 = sshll.u32 (!%p1498_p6), %s117_s21, 1 }
  0x1c   : > { %s2351_s0 = sld [smem:[#allocation42_spill]] (!%p1498_p6)  ;;  %s158_s25 = scalar_lea.vmem (!%p1498_p6), %s2328_s1, %s1501_s16 }
  0x1d   : > { %s115_s26 = scalar_lea.vmem (!%p1498_p6), [#allocation1], %s1499_s20  ;;  %v174_v1 = vld [vmem:[%s158_s25] sm:$0x3] (!%p1498_p6)  ;;  %s197_s9 = scalar_lea.vmem (!%p1498_p6), %s2329_s2, %s1501_s16 }
  0x1e   : > { %s154_s14 = scalar_lea.vmem (!%p1498_p6), [#allocation3], %s1499_s20  ;;  %v213_v2 = vld [vmem:[%s197_s9] sm:$0x3] (!%p1498_p6)  ;;  %s236_s17 = scalar_lea.vmem (!%p1498_p6), %s2330_s3, %s1501_s16 }
  0x1f   : > { %175 = vst [vmem:[%s154_s14] sm:$0x3] %v174_v1  ;;  %s193_s18 = scalar_lea.vmem [#allocation5], %s1499_s20  ;;  %v252_v3 = vld [vmem:[%s236_s17] sm:$0x3] }
  0x20   : > { %214 = vst [vmem:[%s193_s18] sm:$0x3] %v213_v2 }
  0x22   : > { %s119_s19 = scalar_lea.vmem %s2351_s0, %s1501_s16 }
  0x23   : > { %v135_v0 = vld [vmem:[%s119_s19] sm:$0x3]  ;;  %s232_s19 = scalar_lea.vmem [#allocation7], %s1499_s20 }
  0x24   : > { %136 = vst [vmem:[%s115_s26] sm:$0x3] %v135_v0  ;;  %253 = vst [vmem:[%s232_s19] sm:$0x3] %v252_v3 }
  0x25 PF: > { %p1511_p7 = scmp.ge.s32.totalorder %s1824_s15, 1  ;;  %p269_p8 = scmp.lt.s32.totalorder %s1824_s15, 33 }
  0x27   : > { %p270_p9 = pnand %p1511_p7, %p269_p8 }
  0x29   : > { %273 = sbr.rel (%p270_p9) target bundleno = 1103 (0x44f), region = 140 }
  0x30   : > { %s2352_s10 = sadd.s32 4294967295, %s1824_s15   ;;  %s310_s14 = sand.u32 1, %s1800_s30   ;;  %v374_v4 = vlaneseq  ;;  %v1834_v5 = vmov 0.0  }
  0x31   : > { %s1971_s9 = sand.u32 1, %s2352_s10   ;;  %s1977_s27 = sshll.u32 %s310_s14, 3  ;;  %369 = vst [vmem:[#allocation10] sm:$0xff] %v1834_v5  ;;  %370 = vst [vmem:[#allocation13] sm:$0xff] %v1834_v5 }
  0x32   : > { %s1975_s16 = sshll.u32 %s1971_s9, 1  ;;  %371 = vst [vmem:[#allocation16] sm:$0xff] %v1834_v5  ;;  %372 = vst [vmem:[#allocation18] sm:$0xff] %v1834_v5  ;;  %v1979_v6 = vand.u32 127, %v374_v4  ;;  %v1981_v7 = vshrl.u32 %v374_v4, 7  ;;  %s357_s24 = smov [#allocation21] }
  0x33   : > { %s294_s20 = scalar_lea.vmem [#allocation1], %s1975_s16  ;;  %s298_s30 = scalar_lea.vmem [#allocation3], %s1975_s16 }
  0x34   : > { %v341_v8 = vld [vmem:[%s294_s20] sm:$0x3]  ;;  %v345_v9 = vld [vmem:[%s298_s30] sm:$0x3]  ;;  %s302_s21 = scalar_lea.vmem [#allocation5], %s1975_s16  ;;  %s306_s22 = scalar_lea.vmem [#allocation7], %s1975_s16  ;;  %v376_v6 = vmov %v1979_v6  ;;  %v379_v7 = vmov %v1981_v7 }
  0x35   : > { %342 = vst [vmem:[#allocation0] sm:$0x3] %v341_v8  ;;  %346 = vst [vmem:[#allocation2] sm:$0x3] %v345_v9  ;;  %v349_v10 = vld [vmem:[%s302_s21] sm:$0x3]  ;;  %v389_v6 = vmov %v1979_v6  ;;  %v392_v7 = vmov %v1981_v7  ;;  %vm383_vm0 = vcmp.eq.s32.totalorder %v379_v7, %v376_v6 }
  0x36   : > { %v353_v11 = vld [vmem:[%s306_s22] sm:$0x3]  ;;  %350 = vst [vmem:[#allocation4] sm:$0x3] %v349_v10  ;;  %s360_s25 = smov [#allocation22]  ;;  %vm396_vm1 = vcmp.eq.s32.totalorder %v392_v7, %v389_v6  ;;  %s373_s26 = smov [#allocation10]  ;;  %v1370_v7 = vmov %v1981_v7 }
  0x37   : > { %354 = vst [vmem:[#allocation6] sm:$0x3] %v353_v11  ;;  %s386_s28 = smov [#allocation18]  ;;  %s363_s29 = smov [#allocation23]  ;;  %vm1375_vm2 = vcmp.lt.s32.totalorder %v1979_v6, 2  ;;  %v1367_v6 = vmov %v1979_v6 }
  0x38   : > { %s366_s17 = smov [#allocation24]  ;;  %v380_v12 = vld [vmem:[%s373_s26] sm:$0x3]  ;;  %s1371_s21 = smov [#allocation21]  ;;  %vm1380_vm3 = vcmp.eq.s32.totalorder %v1370_v7, %v1367_v6  ;;  %v1418_v6 = vmov %v1979_v6  ;;  %v1387_v7 = vmov %v1981_v7 }
  0x39   : > { %v393_v13 = vld [vmem:[%s386_s28] sm:$0x3]  ;;  %v384_v16 = vsel %vm383_vm0, 1.0, %v380_v12  ;;  %s1388_s22 = smov [#allocation22]  ;;  %v1384_v6 = vmov %v1979_v6  ;;  %v1421_v7 = vmov %v1981_v7 }
  0x3a   : > { %v397_v17 = vsel %vm396_vm1, 1.0, %v393_v13  ;;  %385 = vst [vmem:[%s373_s26] sm:$0x3] %v384_v16  ;;  %v1401_v6 = vmov %v1979_v6  ;;  %v1404_v7 = vmov %v1981_v7  ;;  %vm1431_vm4 = vcmp.eq.s32.totalorder %v1421_v7, %v1418_v6 }
  0x3b   : > { %398 = vst [vmem:[%s386_s28] sm:$0x3] %v397_v17 }
  0x3c   : > { %v358_v14 = vld [vmem:[#allocation0] sm:$0xff]  ;;  %v361_v15 = vld [vmem:[#allocation2] sm:$0xff] }
  0x3d   : > { %359 = vst [vmem:[%s357_s24] sm:$0xff] %v358_v14  ;;  %362 = vst [vmem:[%s360_s25] sm:$0xff] %v361_v15  ;;  %v364_v18 = vld [vmem:[#allocation4] sm:$0xff]  ;;  %s1405_s24 = smov [#allocation23]  ;;  %s1422_s25 = smov [#allocation24] }
  0x3e   : > { %v367_v19 = vld [vmem:[#allocation6] sm:$0xff]  ;;  %365 = vst [vmem:[%s363_s29] sm:$0xff] %v364_v18 }
  0x3f   : > { %368 = vst [vmem:[%s366_s17] sm:$0xff] %v367_v19 }
  0x44   : > { %v1377_v20 = vld [vmem:[%s1371_s21] sm:$0x3] }
  0x45   : > { %v1394_v21 = vld [vmem:[%s1388_s22] sm:$0x3]  ;;  %v1378_v22 = vsel %vm1375_vm2, %v1377_v20, 0.0 }
  0x46   : > { %v1395_v23 = vsel %vm1375_vm2, %v1394_v21, 0.0  ;;  %v1411_v24 = vld [vmem:[%s1405_s24] sm:$0x3]  ;;  %v1379_v26 = vmul.f32 %v1378_v22, %v1378_v22 }
  0x47   : > { %v1428_v25 = vld [vmem:[%s1422_s25] sm:$0x3]  ;;  %v1396_v27 = vmul.f32 %v1395_v23, %v1395_v23  ;;  %v1412_v28 = vsel %vm1375_vm2, %v1411_v24, 0.0 }
  0x48   : > { %v1429_v29 = vsel %vm1375_vm2, %v1428_v25, 0.0  ;;  %v1413_v30 = vmul.f32 %v1412_v28, %v1412_v28  ;;  %v1381_v33 = vsel %vm1380_vm3, 0.0, %v1379_v26 }
  0x49   : > { %v1398_v31 = vadd.f32 %v1396_v27, %v1379_v26  ;;  %v1430_v32 = vmul.f32 %v1429_v29, %v1429_v29  ;;  %v1397_v34 = vadd.f32 %v1396_v27, %v1381_v33 }
  0x4b   : > { %v1415_v35 = vadd.f32 %v1413_v30, %v1398_v31  ;;  %v1414_v36 = vadd.f32 %v1413_v30, %v1397_v34  ;;  %v1432_v37 = vsel %vm1431_vm4, 0.0, %v1430_v32 }
  0x4d   : > { %v1434_v38 = vadd.f32 %v1430_v32, %v1415_v35  ;;  %v1433_v39 = vadd.f32 %v1432_v37, %v1414_v36 }
  0x4f   : > { %1435 = vadd.xlane.f32.xlu0 %v1434_v38 }
  0x53   : > { %1443 = vadd.xlane.f32.xlu0 %v1433_v39 }
  0xdc   : > { %v1436_v40 = vpop.xlane.xlu0 %1435 }
  0xdd   : > { %v1437_v41 = vrot.slane %v1436_v40, 4 }
  0xdf   : > { %v1438_v42 = vadd.f32 %v1437_v41, %v1436_v40 }
  0xe0   : > { %v1444_v43 = vpop.xlane.xlu0 %1443 }
  0xe1   : > { %v1439_v44 = vrot.slane %v1438_v42, 2  ;;  %v1445_v45 = vrot.slane %v1444_v43, 4 }
  0xe3   : > { %v1446_v46 = vadd.f32 %v1445_v45, %v1444_v43  ;;  %v1440_v47 = vadd.f32 %v1439_v44, %v1438_v42 }
  0xe5   : > { %v1447_v48 = vrot.slane %v1446_v46, 2  ;;  %v1441_v50 = vrot.slane %v1440_v47, 1 }
  0xe7   : > { %v1448_v49 = vadd.f32 %v1447_v48, %v1446_v46  ;;  %v1442_v53 = vadd.f32 %v1441_v50, %v1440_v47 }
  0xe9   : > { %v1449_v51 = vrot.slane %v1448_v49, 1 }
  0xeb   : > { %v1450_v52 = vadd.f32 %v1449_v51, %v1448_v49 }
  0xed   : > { %1558 = vpush %v1450_v52 }
  0xee   : > { %1560 = vpush %v1442_v53 }
 0x11e   : > { %s1559_s26 = spop %1558 }
 0x11f   : > { %s1561_s28 = spop %1560 }
 0x120   : > { %s1453_s29 = smul.f32 1e-10, %s1561_s28 }
 0x122   : > { %p1454_p10 = scmp.le.f32.partialorder %s1559_s26, %s1453_s29 }
 0x123   : > { %s2015_s17 = smov (!%p1454_p10), 0  }
 0x124   : > { %1457 = sbr.rel (%p1454_p10) target bundleno = 974 (0x3ce), region = 357 }
 0x12b LB: >> { %s2020_s21 = smov 0   ;;  %s1828_s17 = sphi %s2015_s17, %s2353_s17  }
 0x12c LB: >>> { %s503_s22 = smov [#allocation21]  ;;  %v507_v6 = vmov %v1979_v6  ;;  %v510_v7 = vmov %v1981_v7  ;;  %s523_s24 = smov [#allocation22]  ;;  %vm826_vm14 = vcmp.eq.s32.totalorder %v1981_v7, 0  ;;  %vm838_vm15 = vcmp.eq.s32.totalorder %v1981_v7, 1  ;;  %s1832_s21 = sphi %s2020_s21, %s502_s21  }
 0x12d   : >>> { %v527_v6 = vmov %v1979_v6  ;;  %v530_v7 = vmov %v1981_v7  ;;  %v511_v54 = vld [vmem:[%s503_s22] sm:$0x3]  ;;  %vm514_vm5 = vcmp.eq.s32.totalorder %v510_v7, %v507_v6  ;;  %s543_s25 = smov [#allocation24]  ;;  %s504_s26 = smov [#allocation25] }
 0x12e   : >>> { %vm534_vm6 = vcmp.eq.s32.totalorder %v530_v7, %v527_v6  ;;  %v547_v6 = vmov %v1979_v6  ;;  %v550_v7 = vmov %v1981_v7  ;;  %v515_v55 = vsel %vm514_vm5, %v511_v54, 0.0  ;;  %v531_v56 = vld [vmem:[%s523_s24] sm:$0x3]  ;;  %s524_s28 = smov [#allocation26]  ;;  %s544_s29 = smov [#allocation27] }
 0x12f   : >>> { %vm554_vm7 = vcmp.eq.s32.totalorder %v550_v7, %v547_v6  ;;  %v516_v57 = vrot.slane %v515_v55, 4  ;;  %v535_v58 = vsel %vm534_vm6, %v531_v56, 0.0  ;;  %v551_v59 = vld [vmem:[%s543_s25] sm:$0x3]  ;;  %s567_s22 = smov [#allocation26]  ;;  %s565_s24 = smov [#allocation25]  ;;  %v616_v6 = vmov %v1979_v6 }
 0x130   : >>> { %v536_v60 = vrot.slane %v535_v58, 4  ;;  %v555_v61 = vsel %vm554_vm7, %v551_v59, 0.0  ;;  %s569_s25 = smov [#allocation27]  ;;  %v619_v7 = vmov %v1981_v7  ;;  %v631_v6 = vmov %v1979_v6  ;;  %s2037_s19 = smov [#allocation22] }
 0x131   : >>> { %v517_v62 = vadd.f32 %v516_v57, %v515_v55  ;;  %v556_v63 = vrot.slane %v555_v61, 4  ;;  %v634_v7 = vmov %v1981_v7  ;;  %vm621_vm12 = vcmp.eq.s32.totalorder %v619_v7, %v616_v6  ;;  %s2039_s18 = smov [#allocation23]  ;;  %s2045_s30 = smov [#allocation13]  ;;  %v651_v54 = vld [vmem:[%s2037_s19] sm:$0x3] }
 0x132   : >>> { %v537_v0 = vadd.f32 %v536_v60, %v535_v58  ;;  %vm636_vm13 = vcmp.eq.s32.totalorder %v634_v7, %v631_v6  ;;  %s866_s20 = smov [#allocation32]  ;;  %s2051_s14 = smov [#allocation18]  ;;  %v652_v55 = vld [vmem:[%s2039_s18] sm:$0x3]  ;;  %v729_v6 = vmov %v1979_v6  ;;  %v732_v7 = vmov %v1981_v7 }
 0x133   : >>> { %v518_v1 = vrot.slane %v517_v62, 2  ;;  %v557_v2 = vadd.f32 %v556_v63, %v555_v61  ;;  %v875_v58 = vld [vmem:[%s2045_s30] sm:$0x3]  ;;  %s644_s10 = smov [#allocation33]  ;;  %s868_s0 = smov [#allocation33]  ;;  %v743_v6 = vmov %v1979_v6  ;;  %v746_v7 = vmov %v1981_v7 }
 0x134   : >>> { %v538_v3 = vrot.slane %v537_v0, 2  ;;  %v877_v61 = vld [vmem:[%s2051_s14] sm:$0x3]  ;;  %vm736_vm0 = vcmp.eq.s32.totalorder %v732_v7, %v729_v6  ;;  %v702_v6 = vmov %v1979_v6  ;;  %v705_v7 = vmov %v1981_v7  ;;  %s502_s21 = sadd.s32 1, %s1832_s21  }
 0x135   : >>> { %v519_v4 = vadd.f32 %v518_v1, %v517_v62  ;;  %v558_v5 = vrot.slane %v557_v2, 2  ;;  %v716_v6 = vmov %v1979_v6  ;;  %v719_v7 = vmov %v1981_v7  ;;  %p499_p11 = scmp.ge.s32.totalorder %s502_s21, 3  }
 0x136   : >>> { %v539_v8 = vadd.f32 %v538_v3, %v537_v0  ;;  %vm751_vm1 = vcmp.eq.s32.totalorder %v746_v7, %v743_v6  ;;  %vm710_vm3 = vcmp.eq.s32.totalorder %v705_v7, %v702_v6  ;;  %vm723_vm4 = vcmp.eq.s32.totalorder %v719_v7, %v716_v6 }
 0x137   : >>> { %v520_v9 = vrot.slane %v519_v4, 1  ;;  %v559_v10 = vadd.f32 %v558_v5, %v557_v2  ;;  %vm765_vm5 = vcmp.eq.s32.totalorder %v1979_v6, 0  ;;  %vm769_vm6 = vcmp.eq.s32.totalorder %v1979_v6, 1 }
 0x138   : >>> { %v540_v11 = vrot.slane %v539_v8, 1  ;;  %v403_v6 = vmov (%p499_p11), %v1979_v6  ;;  %v406_v7 = vmov (%p499_p11), %v1981_v7 }
 0x139   : >>> { %v521_v12 = vadd.f32 %v520_v9, %v519_v4  ;;  %v560_v13 = vrot.slane %v559_v10, 1  ;;  %v456_v6 = vmov (%p499_p11), %v1979_v6  ;;  %vm418_vm7 = vcmp.eq.s32.totalorder (%p499_p11), %v406_v7, %v403_v6 }
 0x13a   : >>> { %v541_v14 = vadd.f32 %v540_v11, %v539_v8  ;;  %v459_v7 = vmov (%p499_p11), %v1981_v7  ;;  %v422_v6 = vmov (%p499_p11), %v1979_v6 }
 0x13b   : >>> { %522 = vst [vmem:[%s504_s26] sm:$0x1] %v521_v12  ;;  %v561_v15 = vadd.f32 %v560_v13, %v559_v10  ;;  %s604_s26 = smov [#allocation28]  ;;  %v425_v7 = vmov (%p499_p11), %v1981_v7  ;;  %v439_v6 = vmov (%p499_p11), %v1979_v6 }
 0x13c   : >>> { %542 = vst [vmem:[%s524_s28] sm:$0x1] %v541_v14  ;;  %s606_s28 = smov [#allocation29]  ;;  %v442_v7 = vmov (%p499_p11), %v1981_v7 }
 0x13d   : >>> { %562 = vst [vmem:[%s544_s29] sm:$0x1] %v561_v15  ;;  %s563_s29 = smov [#allocation30] }
 0x13e   : >>> { %s608_s29 = smov %s563_s29 }
 0x142   : >>> { %v566_v18 = vld [vmem:[%s565_s24] sm:$0xff]  ;;  %s612_s24 = smov [#allocation30] }
 0x143   : >>> { %v568_v16 = vld [vmem:[%s567_s22] sm:$0xff]  ;;  %v589_v31 = vand.u32 2147483647, %v566_v18  ;;  %s564_s22 = smov [#allocation31] }
 0x144   : >>> { %v572_v17 = vmul.f32 2.0, %v568_v16  ;;  %v570_v19 = vld [vmem:[%s569_s25] sm:$0xff]  ;;  %v590_v36 = vand.u32 2147483647, %v568_v16  ;;  %s610_s22 = smov %s564_s22  ;;  %s627_s25 = smov [#allocation31] }
 0x145   : >>> { %v571_v20 = vsub.f32 %v570_v19, %v566_v18  ;;  %v591_v32 = vand.u32 2147483647, %v570_v19 }
 0x146   : >>> { %1646 = vrcp.f32 %v572_v17 }
 0x147   : >>> { %v592_v35 = vmin.f32 %v589_v31, %v591_v32 }
 0x149   : >>> { %v593_v37 = vmul.f32 1.1920929e-08, %v592_v35 }
 0x14b   : >>> { %vm594_vm11 = vcmp.le.f32.partialorder %v590_v36, %v593_v37 }
 0x150   : >>> { %v1647_v21 = vpop.eup %1646 }
 0x151   : >>> { %v574_v22 = vmul.f32 %v1647_v21, %v571_v20 }
 0x153   : >>> { %v576_v23 = vmul.f32 %v574_v22, %v574_v22  ;;  %vm575_vm10 = vcmp.ge.f32.partialorder %v574_v22, 0.0 }
 0x155   : >>> { %v577_v24 = vadd.f32 1.0, %v576_v23 }
 0x157   : >>> { %1648 = vrsqrt.f32 %v577_v24  ;;  %vm580_vm8 = vcmp.eq.f32.partialorder %v577_v24, inf  ;;  %v583_v26 = vand.u32 2147483648, %v577_v24  ;;  %vm582_vm9 = vcmp.eq.f32.partialorder %v577_v24, 0.0 }
 0x161   : >>> { %v1649_v25 = vpop.eup %1648 }
 0x162   : >>> { %v579_v27 = vmul.f32 %v1649_v25, %v577_v24 }
 0x164   : >>> { %v581_v28 = vsel %vm580_vm8, %v577_v24, %v579_v27  ;;  %vm471_vm8 = vcmp.eq.s32.totalorder (%p499_p11), %v459_v7, %v456_v6 }
 0x165   : >>> { %v584_v29 = vsel %vm582_vm9, %v583_v26, %v581_v28 }
 0x166   : >>> { %v585_v30 = vxor.u32 2147483648, %v584_v29 }
 0x168   : >>> { %v586_v33 = vsel %vm575_vm10, %v584_v29, %v585_v30 }
 0x169   : >>> { %v587_v34 = vadd.f32 %v586_v33, %v574_v22 }
 0x16b   : >>> { %1650 = vrcp.f32 %v587_v34 }
 0x175   : >>> { %v1651_v38 = vpop.eup %1650 }
 0x176   : >>> { %v595_v39 = vsel %vm594_vm11, 0.0, %v1651_v38 }
 0x177   : >>> { %v596_v40 = vmul.f32 %v595_v39, %v595_v39  ;;  %v600_v41 = vmul.f32 %v595_v39, %v568_v16 }
 0x179   : >>> { %v597_v42 = vadd.f32 1.0, %v596_v40  ;;  %v601_v43 = vsub.f32 %v566_v18, %v600_v41  ;;  %v603_v44 = vadd.f32 %v600_v41, %v570_v19 }
 0x17b   : >>> { %1652 = vrsqrt.f32 %v597_v42  ;;  %605 = vst [vmem:[%s604_s26] sm:$0xff] %v601_v43  ;;  %607 = vst [vmem:[%s606_s28] sm:$0xff] %v603_v44  ;;  %s625_s26 = smov [#allocation32]  ;;  %s642_s28 = smov [#allocation32] }
 0x185   : >>> { %v1653_v45 = vpop.eup %1652 }
 0x186   : >>> { %609 = vst [vmem:[%s608_s29] sm:$0xff] %v1653_v45  ;;  %v599_v46 = vmul.f32 %v1653_v45, %v595_v39  ;;  %s2035_s29 = smov [#allocation21] }
 0x187   : >>> { %v650_v53 = vld [vmem:[%s2035_s29] sm:$0x3] }
 0x188   : >>> { %611 = vst [vmem:[%s610_s22] sm:$0xff] %v599_v46  ;;  %s640_s22 = smov [#allocation33] }
 0x18d   : >>> { %v613_v47 = vld [vmem:[%s612_s24] ss:$0 sm:$0xff]  ;;  %s2041_s24 = smov [#allocation24] }
 0x18e   : >>> { %v622_v48 = vsel %vm621_vm12, %v613_v47, 0.0  ;;  %v653_v56 = vld [vmem:[%s2041_s24] sm:$0x3] }
 0x18f   : >>> { %623 = vadd.xlane.f32.xlu0 %v622_v48  ;;  %v628_v49 = vld [vmem:[%s627_s25] ss:$0 sm:$0xff]  ;;  %s2043_s25 = smov [#allocation10] }
 0x190   : >>> { %v637_v50 = vsel %vm636_vm13, %v628_v49, 0.0  ;;  %v874_v57 = vld [vmem:[%s2043_s25] sm:$0x3] }
 0x193   : >>> { %638 = vadd.xlane.f32.xlu0 %v637_v50 }
 0x21c   : >>> { %v624_v51 = vpop.xlane.xlu0 %623 }
 0x21d   : >>> { %626 = vst [vmem:[%s625_s26] sm:$0xff] %v624_v51  ;;  %s2047_s26 = smov [#allocation16] }
 0x21e   : >>> { %v876_v59 = vld [vmem:[%s2047_s26] sm:$0x3] }
 0x220   : >>> { %v639_v52 = vpop.xlane.xlu0 %638 }
 0x221   : >>> { %641 = vst [vmem:[%s640_s22] sm:$0xff] %v639_v52  ;;  %s2071_s22 = smov [#allocation24] }
 0x224   : >>> { %v643_v60 = vld [vmem:[%s642_s28] sm:$0xff]  ;;  %s2069_s28 = smov [#allocation23] }
 0x225   : >>> { %v867_v62 = vld [vmem:[%s866_s20] sm:$0xff]  ;;  %v654_v63 = vmul.f32 %v650_v53, %v643_v60  ;;  %v657_v0 = vmul.f32 %v651_v54, %v643_v60  ;;  %v661_v1 = vmul.f32 %v652_v55, %v643_v60  ;;  %v664_v2 = vmul.f32 %v653_v56, %v643_v60  ;;  %s2067_s20 = smov [#allocation10] }
 0x226   : >>> { %v878_v3 = vmul.f32 %v874_v57, %v867_v62  ;;  %v881_v4 = vmul.f32 %v875_v58, %v867_v62  ;;  %v885_v5 = vmul.f32 %v876_v59, %v867_v62  ;;  %v888_v8 = vmul.f32 %v877_v61, %v867_v62 }
 0x228   : >>> { %v645_v9 = vld [vmem:[%s644_s10] sm:$0xff]  ;;  %s672_s10 = smov [#allocation31] }
 0x229   : >>> { %v869_v10 = vld [vmem:[%s868_s0] sm:$0xff]  ;;  %v655_v11 = vmul.f32 %v652_v55, %v645_v9  ;;  %v658_v12 = vmul.f32 %v653_v56, %v645_v9  ;;  %v660_v13 = vmul.f32 %v650_v53, %v645_v9  ;;  %v663_v14 = vmul.f32 %v651_v54, %v645_v9  ;;  %s670_s0 = smov [#allocation30] }
 0x22a   : >>> { %v879_v15 = vmul.f32 %v876_v59, %v869_v10  ;;  %v882_v16 = vmul.f32 %v877_v61, %v869_v10  ;;  %v884_v17 = vmul.f32 %v874_v57, %v869_v10  ;;  %v887_v18 = vmul.f32 %v875_v58, %v869_v10  ;;  %v671_v27 = vld [vmem:[%s670_s0] ss:$0 sm:$0xff]  ;;  %s699_s0 = smov [#allocation28] }
 0x22b   : >>> { %v656_v19 = vsub.f32 %v654_v63, %v655_v11  ;;  %v659_v20 = vsub.f32 %v657_v0, %v658_v12  ;;  %v662_v21 = vadd.f32 %v661_v1, %v660_v13  ;;  %v665_v22 = vadd.f32 %v664_v2, %v663_v14  ;;  %v673_v28 = vld [vmem:[%s672_s10] ss:$0 sm:$0xff]  ;;  %s698_s10 = smov [#allocation21] }
 0x22c   : >>> { %v880_v23 = vsub.f32 %v878_v3, %v879_v15  ;;  %v883_v24 = vsub.f32 %v881_v4, %v882_v16  ;;  %v886_v25 = vadd.f32 %v885_v5, %v884_v17  ;;  %v889_v26 = vadd.f32 %v888_v8, %v887_v18  ;;  %v706_v63 = vld [vmem:[%s699_s0] ss:$0 sm:$0xff]  ;;  %s942_s0 = sadd.s32 (%p499_p11), 1, %s1828_s17  }
 0x22d   : >>> { %667 = vst [vmem:[%s2037_s19] sm:$0x3] %v659_v20  ;;  %669 = vst [vmem:[%s2041_s24] sm:$0x3] %v665_v22  ;;  %s2073_s19 = smov [#allocation21]  ;;  %s740_s24 = smov [#allocation29] }
 0x22e   : >>> { %666 = vst [vmem:[%s2035_s29] sm:$0x3] %v656_v19  ;;  %668 = vst [vmem:[%s2039_s18] sm:$0x3] %v662_v21  ;;  %s2075_s18 = smov [#allocation16]  ;;  %s2083_s29 = smov [#allocation22]  ;;  %v747_v59 = vld [vmem:[%s740_s24] ss:$0 sm:$0xff] }
 0x22f   : >>> { %890 = vst [vmem:[%s2043_s25] sm:$0x3] %v880_v23  ;;  %891 = vst [vmem:[%s2045_s30] sm:$0x3] %v883_v24  ;;  %s2077_s30 = smov [#allocation13]  ;;  %s726_s25 = smov [#allocation23] }
 0x230   : >>> { %892 = vst [vmem:[%s2047_s26] sm:$0x3] %v886_v25  ;;  %893 = vst [vmem:[%s2051_s14] sm:$0x3] %v889_v26  ;;  %s2081_s14 = smov [#allocation18]  ;;  %s739_s26 = smov [#allocation24] }
 0x231   : >>> { %s842_s24 = smov [#allocation22]  ;;  %p495_p12 = scmp.ge.s32.totalorder (%p499_p11), %s942_s0, 15 }
 0x232   : >> { %s2353_s17 = smov (%p499_p11), %s942_s0 }
 0x234   : >>> { %v681_v30 = vld [vmem:[%s2071_s22] sm:$0x3] }
 0x235   : >>> { %v680_v29 = vld [vmem:[%s2069_s28] sm:$0x3]  ;;  %v689_v36 = vmul.f32 %v681_v30, %v673_v28  ;;  %v692_v42 = vmul.f32 %v681_v30, %v671_v27 }
 0x236   : >>> { %v678_v31 = vld [vmem:[%s2073_s19] sm:$0x3]  ;;  %v688_v35 = vmul.f32 %v680_v29, %v671_v27  ;;  %v691_v37 = vmul.f32 %v680_v29, %v673_v28 }
 0x237   : >>> { %v896_v32 = vld [vmem:[%s2067_s20] ss:$0 sm:$0xff]  ;;  %v1531_v34 = vld [vmem:[%s2067_s20 + $0x1] ss:$0 sm:$0xff]  ;;  %v682_v48 = vmul.f32 %v678_v31, %v671_v27  ;;  %v685_v49 = vmul.f32 %v678_v31, %v673_v28 }
 0x238   : >>> { %v1530_v33 = vld [vmem:[%s2067_s20 - $0x1] sm:$0x2]  ;;  %v1533_v40 = vld [vmem:[%s2075_s18 + $0x1] sm:$0x1]  ;;  %v690_v47 = vsub.f32 %v688_v35, %v689_v36  ;;  %v693_v53 = vadd.f32 %v692_v42, %v691_v37 }
 0x239   : >>> { %v903_v38 = vsel %vm826_vm14, %v896_v32, %v1530_v33  ;;  %v907_v39 = vld [vmem:[%s2075_s18] ss:$0 sm:$0xff]  ;;  %v915_v43 = vsel %vm838_vm15, %v1531_v34, %v1533_v40  ;;  %v1535_v45 = vld [vmem:[%s2077_s30 + $0x1] ss:$0 sm:$0xff] }
 0x23a   : >>> { %v920_v41 = vld [vmem:[%s2077_s30] ss:$0 sm:$0xff]  ;;  %906 = vst [vmem:[%s2067_s20] sm:$0x3] %v903_v38  ;;  %917 = vst [vmem:[%s2075_s18] sm:$0x3] %v915_v43  ;;  %v1537_v51 = vld [vmem:[%s2081_s14 + $0x1] sm:$0x1] }
 0x23b   : >>> { %v1534_v44 = vld [vmem:[%s2077_s30 - $0x1] sm:$0x2]  ;;  %1532 = vst [vmem:[%s2067_s20 + $0x1] sm:$0x1] %v907_v39  ;;  %v939_v54 = vsel %vm838_vm15, %v1535_v45, %v1537_v51  ;;  %696 = vst [vmem:[%s2069_s28] sm:$0x3] %v690_v47  ;;  %s713_s20 = smov [#allocation22] }
 0x23c   : >>> { %v931_v46 = vld [vmem:[%s2081_s14] ss:$0 sm:$0xff]  ;;  %v927_v50 = vsel %vm826_vm14, %v920_v41, %v1534_v44  ;;  %697 = vst [vmem:[%s2071_s22] sm:$0x3] %v693_v53  ;;  %s2125_s28 = smov [#allocation23]  ;;  %s1835_s22 = smov 1  }
 0x23d   : >>> { %v679_v52 = vld [vmem:[%s2083_s29] sm:$0x3]  ;;  %930 = vst [vmem:[%s2077_s30] sm:$0x3] %v927_v50  ;;  %941 = vst [vmem:[%s2081_s14] sm:$0x3] %v939_v54  ;;  %s755_s18 = smov [#allocation22]  ;;  %s2128_s14 = smov [#allocation24] }
 0x23e   : >>> { %v683_v55 = vmul.f32 %v679_v52, %v673_v28  ;;  %v686_v56 = vmul.f32 %v679_v52, %v671_v27  ;;  %1536 = vst [vmem:[%s2077_s30 + $0x1] sm:$0x1] %v931_v46  ;;  %s1836_s30 = smov 127  }
 0x240   : >>> { %v684_v57 = vsub.f32 %v682_v48, %v683_v55  ;;  %v687_v58 = vadd.f32 %v686_v56, %v685_v49 }
 0x242   : >>> { %694 = vst [vmem:[%s2073_s19] sm:$0x3] %v684_v57  ;;  %695 = vst [vmem:[%s2083_s29] sm:$0x3] %v687_v58  ;;  %v733_v60 = vld [vmem:[%s726_s25] sm:$0x3]  ;;  %s754_s19 = smov [#allocation21]  ;;  %s818_s29 = smov [#allocation21] }
 0x243   : >>> { %v737_v61 = vsel %vm736_vm0, 0.0, %v733_v60  ;;  %v748_v62 = vld [vmem:[%s739_s26] sm:$0x3] }
 0x244   : >>> { %738 = vst [vmem:[%s726_s25] sm:$0x3] %v737_v61  ;;  %v752_v0 = vsel %vm751_vm1, %v747_v59, %v748_v62  ;;  %s819_s25 = smov [#allocation23] }
 0x245   : >>> { %753 = vst [vmem:[%s739_s26] sm:$0x3] %v752_v0  ;;  %s843_s26 = smov [#allocation24] }
 0x249   : >>> { %v707_v1 = vld [vmem:[%s698_s10] sm:$0x3] }
 0x24a   : >>> { %v720_v2 = vld [vmem:[%s713_s20] sm:$0x3]  ;;  %v711_v3 = vsel %vm710_vm3, %v706_v63, %v707_v1 }
 0x24b   : >>> { %v724_v4 = vsel %vm723_vm4, 0.0, %v720_v2  ;;  %712 = vst [vmem:[%s698_s10] sm:$0x3] %v711_v3  ;;  %v792_v5 = vld [vmem:[%s2125_s28] sm:$0x3]  ;;  %s407_s10 = smov (%p499_p11), [#allocation21] }
 0x24c   : >>> { %725 = vst [vmem:[%s713_s20] sm:$0x3] %v724_v4  ;;  %793 = vrot.lane.b32.xlu0 %v792_v5, %s1835_s22  ;;  %v788_v11 = vld [vmem:[%s2128_s14] sm:$0x3]  ;;  %s426_s20 = smov (%p499_p11), [#allocation22] }
 0x24d   : >>> { %v809_v12 = vld [vmem:[%s2128_s14] sm:$0x3] }
 0x24e   : >>> { %v791_v30 = vld [vmem:[%s2125_s28] sm:$0x3] }
 0x252   : >>> { %v760_v8 = vld [vmem:[%s754_s19] sm:$0x3] }
 0x253   : >>> { %761 = vrot.lane.b32.xlu1 %v760_v8, %s1835_s22  ;;  %v756_v9 = vld [vmem:[%s755_s18] sm:$0x3] }
 0x254   : >>> { %v777_v10 = vld [vmem:[%s755_s18] sm:$0x3] }
 0x255   : >>> { %v759_v18 = vld [vmem:[%s754_s19] sm:$0x3] }
 0x257   : >>> { %757 = vrot.lane.b32.xlu1 %v756_v9, %s1835_s22 }
 0x25b   : >>> { %778 = vrot.lane.b32.xlu1 %v777_v10, %s1836_s30 }
 0x25f   : >>> { %789 = vrot.lane.b32.xlu1 %v788_v11, %s1835_s22  ;;  %s460_s22 = smov (%p499_p11), [#allocation24] }
 0x263   : >>> { %810 = vrot.lane.b32.xlu1 %v809_v12, %s1836_s30 }
 0x2be   : >>> { %v794_v20 = vpop.permute.xlu0 %793 }
 0x2bf   : >>> { %v798_v22 = vsel %vm765_vm5, %v792_v5, %v794_v20 }
 0x2c5   : >>> { %v762_v13 = vpop.permute.xlu1 %761 }
 0x2c6   : >>> { %v766_v14 = vsel %vm765_vm5, %v760_v8, %v762_v13 }
 0x2c9   : >>> { %v758_v15 = vpop.permute.xlu1 %757 }
 0x2ca   : >>> { %v770_v16 = vsel %vm769_vm6, %v758_v15, %v766_v14 }
 0x2cb   : >>> { %v776_v17 = vsel %vm1375_vm2, %v770_v16, 0.0 }
 0x2cc   : >>> { %784 = vst [vmem:[%s754_s19] sm:$0x3] %v776_v17 }
 0x2cd   : >>> { %v779_v19 = vpop.permute.xlu1 %778 }
 0x2ce   : >>> { %v783_v21 = vsel %vm769_vm6, %v759_v18, %v779_v19 }
 0x2cf   : >>> { %785 = vst [vmem:[%s755_s18] sm:$0x3] %v783_v21 }
 0x2d1   : >>> { %v790_v23 = vpop.permute.xlu1 %789 }
 0x2d2   : >>> { %v802_v24 = vsel %vm769_vm6, %v790_v23, %v798_v22 }
 0x2d3   : >>> { %v820_v25 = vld [vmem:[%s818_s29] ss:$0 sm:$0xff]  ;;  %v1523_v27 = vld [vmem:[%s818_s29 + $0x1] ss:$0 sm:$0xff]  ;;  %v808_v29 = vsel %vm1375_vm2, %v802_v24, 0.0 }
 0x2d4   : >>> { %v1522_v26 = vld [vmem:[%s818_s29 - $0x1] sm:$0x2]  ;;  %816 = vst [vmem:[%s2125_s28] sm:$0x3] %v808_v29  ;;  %s443_s28 = smov (%p499_p11), [#allocation23] }
 0x2d5   : >>> { %v827_v28 = vsel %vm826_vm14, %v820_v25, %v1522_v26  ;;  %v811_v31 = vpop.permute.xlu1 %810 }
 0x2d6   : >>> { %830 = vst [vmem:[%s818_s29] sm:$0x3] %v827_v28  ;;  %v844_v32 = vld [vmem:[%s842_s24] ss:$0 sm:$0xff]  ;;  %v1527_v34 = vld [vmem:[%s842_s24 + $0x1] ss:$0 sm:$0xff]  ;;  %v815_v35 = vsel %vm769_vm6, %v791_v30, %v811_v31 }
 0x2d7   : >>> { %v1526_v33 = vld [vmem:[%s842_s24 - $0x1] sm:$0x2]  ;;  %817 = vst [vmem:[%s2128_s14] sm:$0x3] %v815_v35 }
 0x2d8   : >>> { %v851_v36 = vsel %vm826_vm14, %v844_v32, %v1526_v33 }
 0x2d9   : >>> { %854 = vst [vmem:[%s842_s24] sm:$0x3] %v851_v36 }
 0x2db   : >>> { %v831_v37 = vld [vmem:[%s819_s25] ss:$0 sm:$0xff]  ;;  %v1525_v38 = vld [vmem:[%s819_s25 + $0x1] sm:$0x1] }
 0x2dc   : >>> { %1524 = vst [vmem:[%s818_s29 + $0x1] sm:$0x1] %v831_v37  ;;  %v839_v39 = vsel %vm838_vm15, %v1523_v27, %v1525_v38  ;;  %501 = sbr.rel (!%p499_p11) target bundleno = 300 (0x12c), region = 352 }
 0x2dd   : >>> { %841 = vst [vmem:[%s819_s25] sm:$0x3] %v839_v39 }
 0x2de   : >>> { %v855_v40 = vld [vmem:[%s843_s26] ss:$0 sm:$0xff]  ;;  %v1529_v41 = vld [vmem:[%s843_s26 + $0x1] sm:$0x1] }
 0x2df   : >>> { %1528 = vst [vmem:[%s842_s24 + $0x1] sm:$0x1] %v855_v40  ;;  %v863_v42 = vsel %vm838_vm15, %v1527_v34, %v1529_v41 }
 0x2e0   : >>> { %865 = vst [vmem:[%s843_s26] sm:$0x3] %v863_v42 }
 0x2e3   : >> { %v413_v43 = vld [vmem:[%s407_s10] sm:$0x3] }
 0x2e4   : >> { %v414_v45 = vsel %vm1375_vm2, %v413_v43, 0.0  ;;  %v449_v47 = vld [vmem:[%s443_s28] sm:$0x3] }
 0x2e5   : >> { %v415_v49 = vmul.f32 %v414_v45, %v414_v45  ;;  %v450_v51 = vsel %vm1375_vm2, %v449_v47, 0.0 }
 0x2e6   : >> { %v432_v44 = vld [vmem:[%s426_s20] sm:$0x3]  ;;  %v451_v53 = vmul.f32 %v450_v51, %v450_v51 }
 0x2e7   : >> { %v433_v46 = vsel %vm1375_vm2, %v432_v44, 0.0  ;;  %v466_v48 = vld [vmem:[%s460_s22] sm:$0x3]  ;;  %v419_v56 = vsel %vm418_vm7, 0.0, %v415_v49 }
 0x2e8   : >> { %v434_v50 = vmul.f32 %v433_v46, %v433_v46  ;;  %v467_v52 = vsel %vm1375_vm2, %v466_v48, 0.0 }
 0x2e9   : >> { %v468_v55 = vmul.f32 %v467_v52, %v467_v52 }
 0x2ea   : >> { %v436_v54 = vadd.f32 %v434_v50, %v415_v49  ;;  %v435_v57 = vadd.f32 %v434_v50, %v419_v56 }
 0x2eb   : >> { %v472_v60 = vsel %vm471_vm8, 0.0, %v468_v55 }
 0x2ec   : >> { %v453_v58 = vadd.f32 %v451_v53, %v436_v54  ;;  %v452_v59 = vadd.f32 %v451_v53, %v435_v57 }
 0x2ee   : >> { %v474_v61 = vadd.f32 %v468_v55, %v453_v58  ;;  %v473_v62 = vadd.f32 %v472_v60, %v452_v59 }
 0x2f0   : >> { %475 = vadd.xlane.f32.xlu0 %v474_v61 }
 0x2f4   : >> { %483 = vadd.xlane.f32.xlu0 %v473_v62 }
 0x37d   : >> { %v476_v63 = vpop.xlane.xlu0 %475 }
 0x37e   : >> { %v477_v0 = vrot.slane %v476_v63, 4 }
 0x380   : >> { %v478_v1 = vadd.f32 %v477_v0, %v476_v63 }
 0x381   : >> { %v484_v2 = vpop.xlane.xlu0 %483 }
 0x382   : >> { %v479_v3 = vrot.slane %v478_v1, 2  ;;  %v485_v4 = vrot.slane %v484_v2, 4 }
 0x384   : >> { %v486_v5 = vadd.f32 %v485_v4, %v484_v2  ;;  %v480_v8 = vadd.f32 %v479_v3, %v478_v1 }
 0x386   : >> { %v487_v9 = vrot.slane %v486_v5, 2  ;;  %v481_v11 = vrot.slane %v480_v8, 1 }
 0x388   : >> { %v488_v10 = vadd.f32 %v487_v9, %v486_v5  ;;  %v482_v14 = vadd.f32 %v481_v11, %v480_v8 }
 0x38a   : >> { %v489_v12 = vrot.slane %v488_v10, 1 }
 0x38c   : >> { %v490_v13 = vadd.f32 %v489_v12, %v488_v10 }
 0x38e   : >> { %1562 = vpush %v490_v13 }
 0x38f   : >> { %1564 = vpush %v482_v14 }
 0x3bf   : >> { %s1563_s21 = spop %1562 }
 0x3c0   : >> { %s1565_s19 = spop %1564 }
 0x3c1   : >> { %s493_s18 = smul.f32 1e-10, %s1565_s19 }
 0x3c3   : >> { %p494_p13 = scmp.le.f32.partialorder %s1563_s21, %s493_s18 }
 0x3c5   : >> { %p496_p0 = por %p495_p12, %p494_p13 }
 0x3c7   : > { %944 = sbr.rel (!%p496_p0) target bundleno = 299 (0x12b), region = 363 }
 0x3ce PF: > { %s949_s30 = smov [#allocation21]  ;;  %v953_v6 = vmov %v1979_v6  ;;  %v956_v7 = vmov %v1981_v7  ;;  %v992_v15 = vld [vmem:[#allocation10] sm:$0x3]  ;;  %v998_v16 = vld [vmem:[#allocation13] sm:$0x3]  ;;  %s2354_s17 = scalar_lea.vmem [#allocation11], %s1975_s16 }
 0x3cf   : > { %v973_v6 = vmov %v1979_v6  ;;  %v976_v7 = vmov %v1981_v7  ;;  %v957_v17 = vld [vmem:[%s949_s30] sm:$0x3]  ;;  %vm960_vm9 = vcmp.eq.s32.totalorder %v956_v7, %v953_v6  ;;  %994 = vst [vmem:[%s2354_s17] sm:$0x3] %v992_v15  ;;  %s2355_s14 = scalar_lea.vmem [#allocation14], %s1975_s16  ;;  %v1004_v18 = vld [vmem:[#allocation16] sm:$0x3] }
 0x3d0   : > { %vm980_vm10 = vcmp.eq.s32.totalorder %v976_v7, %v973_v6  ;;  %1000 = vst [vmem:[%s2355_s14] sm:$0x3] %v998_v16  ;;  %v1010_v19 = vld [vmem:[#allocation18] sm:$0x3]  ;;  %v961_v20 = vsel %vm960_vm9, %v957_v17, 0.0  ;;  %s969_s29 = smov [#allocation24]  ;;  %s2356_s24 = scalar_lea.vmem [#allocation17], %s1975_s16 }
 0x3d1   : > { %1006 = vst [vmem:[%s2356_s24] sm:$0x3] %v1004_v18  ;;  %s2357_s25 = scalar_lea.vmem [#allocation19], %s1975_s16  ;;  %v962_v21 = vrot.slane %v961_v20, 4  ;;  %v977_v22 = vld [vmem:[%s969_s29] sm:$0x3]  ;;  %s945_s26 = sand.u32 7, %s1808_s11  }
 0x3d2   : > { %1012 = vst [vmem:[%s2357_s25] sm:$0x3] %v1010_v19  ;;  %v981_v23 = vsel %vm980_vm10, %v977_v22, 0.0  ;;  %s2358_s0 = scalar_lea.vmem [#allocation8], %s1977_s27  ;;  %s2359_s20 = scalar_lea.vmem [#allocation9], %s1977_s27 }
 0x3d3   : > { %v963_v24 = vadd.f32 %v962_v21, %v961_v20  ;;  %v982_v25 = vrot.slane %v981_v23, 4  ;;  %s946_s10 = scalar_lea.vmem %s2358_s0, %s945_s26 [#allocation8]  ;;  %s948_s28 = scalar_lea.vmem %s2359_s20, %s945_s26 [#allocation9] }
 0x3d4   : > { %s950_s10 = smov %s946_s10  ;;  %s970_s28 = smov %s948_s28 }
 0x3d5   : > { %v964_v6 = vrot.slane %v963_v24, 2  ;;  %v983_v7 = vadd.f32 %v982_v25, %v981_v23  ;;  %s1022_s22 = scalar_lea.sflag [#allocation12], %s1971_s9  ;;  %s1027_s21 = scalar_lea.sflag [#allocation15], %s1971_s9 }
 0x3d6   : > { %s1037_s19 = scalar_lea.sflag [#allocation20], %s1971_s9  ;;  %s1044_s18 = sshrl.u32 (%p1939_p4), %s1808_s11, 3 }
 0x3d7   : > { %v965_v26 = vadd.f32 %v964_v6, %v963_v24  ;;  %v984_v27 = vrot.slane %v983_v7, 2  ;;  %s1544_s30 = sshll.u32 (%p1939_p4), %s1812_s12, 1  ;;  %s2360_s14 = scalar_lea.vmem (%p1939_p4), [#allocation8], %s1977_s27 }
 0x3d8   : > { %s1046_s17 = sadd.s32 (%p1939_p4), %s1544_s30, %s1044_s18 }
 0x3d9   : > { %v966_v28 = vrot.slane %v965_v26, 1  ;;  %v985_v29 = vadd.f32 %v984_v27, %v983_v7  ;;  %1043 = sbr.rel (!%p1939_p4) target bundleno = 998 (0x3e6), region = 158  ;;  %s1545_s29 = sshll.u32 (%p1939_p4), %s1046_s17, 3 }
 0x3da   : > { %s1048_s26 = scalar_lea.vmem (%p1939_p4), %s2331_s4, %s1545_s29 }
 0x3db   : > { %v967_v30 = vadd.f32 %v966_v28, %v965_v26  ;;  %v986_v31 = vrot.slane %v985_v29, 1 }
 0x3dd   : > { %968 = vst [vmem:[%s950_s10] sm:$0x1] %v967_v30  ;;  %v987_v32 = vadd.f32 %v986_v31, %v985_v29 }
 0x3df   : > { %988 = vst [vmem:[%s970_s28] sm:$0x1] %v987_v32 }
 0x3e4   : > { %v1076_v33 = vld [vmem:[%s2360_s14] sm:$0xff] }
 0x3e5   : > { %1077 = vst [vmem:[%s1048_s26] sm:$0xff] %v1076_v33 }
 0x3e6 PF: > { %1083 = sbr.rel (!%p1939_p4) target bundleno = 1006 (0x3ee), region = 196  ;;  %s1084_s0 = sshrl.u32 (%p1939_p4), %s1808_s11, 3 }
 0x3e7   : > { %s1546_s10 = sshll.u32 (%p1939_p4), %s1812_s12, 1  ;;  %s2361_s28 = scalar_lea.vmem (%p1939_p4), [#allocation9], %s1977_s27 }
 0x3e8   : > { %s1086_s20 = sadd.s32 (%p1939_p4), %s1546_s10, %s1084_s0 }
 0x3e9   : > { %s1547_s18 = sshll.u32 (%p1939_p4), %s1086_s20, 3 }
 0x3ea   : > { %s1088_s14 = scalar_lea.vmem (%p1939_p4), %s2332_s5, %s1547_s18 }
 0x3ec   : > { %v1116_v34 = vld [vmem:[%s2361_s28] sm:$0xff] (%p1939_p4) }
 0x3ed   : > { %1117 = vst [vmem:[%s1088_s14] sm:$0xff] %v1116_v34 }
 0x3ee PF: > { %s1548_s23 = sshll.u32 %s1812_s12, 4  ;;  %s2362_s29 = scalar_lea.vmem [#allocation14], %s1975_s16 }
 0x3ef   : > { %s1141_s24 = sshll.u32 %s2362_s29, 4  ;;  %s1125_s25 = sadd.s32 %s1808_s11, %s1548_s23  ;;  %s1142_s24 = int_to_ptr.vmem [resolvable:$true] %s1141_s24 }
 0x3f0   : > { %s2226_s26 = sshll.u32 %s1125_s25, 5  ;;  %s2363_s27 = scalar_lea.vmem [#allocation11], %s1975_s16 }
 0x3f1   : > { %s1129_s0 = sshll.u32 %s2363_s27, 4  ;;  %s1139_s28 = scalar_lea.hbm %s2334_s7, %s2226_s26  ;;  %s1130_s0 = int_to_ptr.vmem [resolvable:$true] %s1129_s0 }
 0x3f2   : > { %s2238_s17 = scalar_lea.hbm %s2333_s6, %s2226_s26  ;;  %s1654_s12 = scalar_lea.vmem %s1142_s24, 32 }
 0x3f3   : > { %p1655_p1 = scmp.ne.s32.totalorder %s1142_s24, %s1654_s12  ;;  %s1837_s14 = smov [#allocation14]  }
 0x3f4   : > { %s1656_s11 = sshll.u32 %s1837_s14, 4  ;;  %s1657_s11 = int_to_ptr.vmem [resolvable:$false] %s1656_s11 }
 0x3f5   : > { %s1658_s23 = scalar_lea.vmem %s1657_s11, 64  ;;  %p1659_p2 = scmp.lt.s32.totalorder %s1142_s24, %s1657_s11 }
 0x3f6   : > { %p1660_p3 = scmp.lt.s32.totalorder %s1658_s23, %s1654_s12 }
 0x3f8   : > { %p1661_p4 = por %p1660_p3, %p1659_p2 }
 0x3fa   : > { %p1662_p5 = pnand %p1661_p4, %p1655_p1 }
 0x3fc   : > { %1665 = shalt.err (!%p1662_p5)
}
 0x3fd   : > { %s1666_s29 = scalar_lea.hbm %s1139_s28, 32  ;;  %s1668_s10 = scalar_lea.hbm %s2334_s7, 1024 }
 0x3fe   : > { %p1667_p6 = scmp.ne.s32.totalorder %s1139_s28, %s1666_s29  ;;  %p1669_p7 = scmp.lt.u32.totalorder %s1139_s28, %s2334_s7 }
 0x3ff   : > { %p1670_p8 = scmp.lt.u32.totalorder %s1668_s10, %s1666_s29  ;;  %p1672_p10 = scmp.lt.u32.totalorder %s1666_s29, %s1139_s28 }
 0x401   : > { %p1671_p9 = por %p1670_p8, %p1669_p7 }
 0x403   : > { %p1673_p11 = por %p1672_p10, %p1671_p9 }
 0x405   : > { %p1674_p12 = pnand %p1673_p11, %p1667_p6 }
 0x407   : > { %1677 = shalt.err (!%p1674_p12)
}
 0x408   : > { %1144 = dma.vmem_to_hbm [thread:$0]  %s1142_s24, 32, %s1139_s28, %s1027_s21  }
 0x409   : > { %s2252_s14 = scalar_lea.hbm %s2335_s8, %s2226_s26  ;;  %s1678_s11 = scalar_lea.vmem %s1130_s0, 32 }
 0x40a   : > { %p1679_p13 = scmp.ne.s32.totalorder %s1130_s0, %s1678_s11  ;;  %s1838_s23 = smov [#allocation11]  }
 0x40b   : > { %s1680_s25 = sshll.u32 %s1838_s23, 4  ;;  %s1681_s25 = int_to_ptr.vmem [resolvable:$false] %s1680_s25 }
 0x40c   : > { %s1682_s27 = scalar_lea.vmem %s1681_s25, 64  ;;  %p1683_p0 = scmp.lt.s32.totalorder %s1130_s0, %s1681_s25 }
 0x40d   : > { %p1684_p1 = scmp.lt.s32.totalorder %s1682_s27, %s1678_s11 }
 0x40f   : > { %p1685_p2 = por %p1684_p1, %p1683_p0 }
 0x411   : > { %p1686_p3 = pnand %p1685_p2, %p1679_p13 }
 0x413   : > { %1689 = shalt.err (!%p1686_p3)
}
 0x414   : > { %s1690_s24 = scalar_lea.hbm %s2238_s17, 32  ;;  %s1692_s10 = scalar_lea.hbm %s2333_s6, 1024 }
 0x415   : > { %p1691_p4 = scmp.ne.s32.totalorder %s2238_s17, %s1690_s24  ;;  %p1693_p5 = scmp.lt.u32.totalorder %s2238_s17, %s2333_s6 }
 0x416   : > { %p1694_p6 = scmp.lt.u32.totalorder %s1692_s10, %s1690_s24  ;;  %p1696_p8 = scmp.lt.u32.totalorder %s1690_s24, %s2238_s17 }
 0x418   : > { %p1695_p7 = por %p1694_p6, %p1693_p5 }
 0x41a   : > { %p1697_p9 = por %p1696_p8, %p1695_p7 }
 0x41c   : > { %p1698_p10 = pnand %p1697_p9, %p1691_p4 }
 0x41e   : > { %1701 = shalt.err (!%p1698_p10)
}
 0x41f   : > { %1132 = dma.vmem_to_hbm [thread:$0]  %s1130_s0, 32, %s2238_s17, %s1022_s22  }
 0x420   : > { %s2364_s30 = scalar_lea.vmem [#allocation17], %s1975_s16  ;;  %s2365_s25 = sld [smem:[#allocation43_spill]] }
 0x421   : > { %s1153_s12 = sshll.u32 %s2364_s30, 4  ;;  %s2366_s28 = scalar_lea.vmem [#allocation19], %s1975_s16  ;;  %s1154_s12 = int_to_ptr.vmem [resolvable:$true] %s1153_s12 }
 0x422   : > { %s1165_s24 = sshll.u32 %s2366_s28, 4  ;;  %s1702_s29 = scalar_lea.vmem %s1154_s12, 32  ;;  %s1166_s24 = int_to_ptr.vmem [resolvable:$true] %s1165_s24 }
 0x423   : > { %p1703_p11 = scmp.ne.s32.totalorder %s1154_s12, %s1702_s29  ;;  %s1839_s10 = smov [#allocation17]  }
 0x424   : > { %s1704_s20 = sshll.u32 %s1839_s10, 4  ;;  %s1705_s20 = int_to_ptr.vmem [resolvable:$false] %s1704_s20 }
 0x425   : > { %s1706_s18 = scalar_lea.vmem %s1705_s20, 64  ;;  %p1707_p12 = scmp.lt.s32.totalorder %s1154_s12, %s1705_s20 }
 0x426   : > { %s2273_s27 = scalar_lea.hbm %s2365_s25, %s2226_s26  ;;  %p1708_p13 = scmp.lt.s32.totalorder %s1706_s18, %s1702_s29 }
 0x428   : > { %p1709_p0 = por %p1708_p13, %p1707_p12 }
 0x42a   : > { %p1710_p1 = pnand %p1709_p0, %p1703_p11 }
 0x42c   : > { %1713 = shalt.err (!%p1710_p1)
}
 0x42d   : > { %s1714_s22 = scalar_lea.hbm %s2252_s14, 32  ;;  %s1716_s0 = scalar_lea.hbm %s2335_s8, 1024 }
 0x42e   : > { %p1715_p2 = scmp.ne.s32.totalorder %s2252_s14, %s1714_s22  ;;  %p1717_p3 = scmp.lt.u32.totalorder %s2252_s14, %s2335_s8 }
 0x42f   : > { %p1718_p4 = scmp.lt.u32.totalorder %s1716_s0, %s1714_s22  ;;  %p1720_p6 = scmp.lt.u32.totalorder %s1714_s22, %s2252_s14 }
 0x431   : > { %p1719_p5 = por %p1718_p4, %p1717_p3 }
 0x433   : > { %p1721_p7 = por %p1720_p6, %p1719_p5 }
 0x435   : > { %p1722_p8 = pnand %p1721_p7, %p1715_p2 }
 0x437   : > { %1725 = shalt.err (!%p1722_p8)
}
 0x438   : > { %1156 = dma.vmem_to_hbm [thread:$0]  %s1154_s12, 32, %s2252_s14, %s1027_s21  }
 0x439   : > { %s1726_s11 = scalar_lea.vmem %s1166_s24, 32  ;;  %s1840_s23 = smov [#allocation19]  }
 0x43a   : > { %p1727_p9 = scmp.ne.s32.totalorder %s1166_s24, %s1726_s11  ;;  %s1728_s28 = sshll.u32 %s1840_s23, 4  ;;  %s1729_s28 = int_to_ptr.vmem [resolvable:$false] %s1728_s28 }
 0x43b   : > { %s1730_s29 = scalar_lea.vmem %s1729_s28, 64  ;;  %p1731_p10 = scmp.lt.s32.totalorder %s1166_s24, %s1729_s28 }
 0x43c   : > { %p1732_p11 = scmp.lt.s32.totalorder %s1730_s29, %s1726_s11 }
 0x43e   : > { %p1733_p12 = por %p1732_p11, %p1731_p10 }
 0x440   : > { %p1734_p13 = pnand %p1733_p12, %p1727_p9 }
 0x442   : > { %1737 = shalt.err (!%p1734_p13)
}
 0x443   : > { %s1738_s10 = scalar_lea.hbm %s2273_s27, 32  ;;  %s1740_s14 = scalar_lea.hbm %s2365_s25, 1024 }
 0x444   : > { %p1739_p0 = scmp.ne.s32.totalorder %s2273_s27, %s1738_s10  ;;  %p1741_p1 = scmp.lt.u32.totalorder %s2273_s27, %s2365_s25 }
 0x445   : > { %p1742_p2 = scmp.lt.u32.totalorder %s1740_s14, %s1738_s10  ;;  %p1744_p4 = scmp.lt.u32.totalorder %s1738_s10, %s2273_s27 }
 0x447   : > { %p1743_p3 = por %p1742_p2, %p1741_p1 }
 0x449   : > { %p1745_p5 = por %p1744_p4, %p1743_p3 }
 0x44b   : > { %p1746_p6 = pnand %p1745_p5, %p1739_p0 }
 0x44d   : > { %1749 = shalt.err (!%p1746_p6)
}
 0x44e   : > { %1168 = dma.vmem_to_hbm [thread:$0]  %s1166_s24, 32, %s2273_s27, %s1037_s19  }
 0x44f PF: > { %p1570_p7 = scmp.ge.s32.totalorder %s1824_s15, 2  ;;  %s2367_s22 = sadd.s32 4294967294, %s1824_s15  }
 0x450   : > { %s1188_s26 = sand.u32 1, %s2367_s22  }
 0x451   : > { %s1189_s16 = scalar_lea.sflag [#allocation12], %s1188_s26 }
 0x452   : > { %1787 = dma.done.wait (%p1570_p7), %s1189_s16, 32  }
 0x453   : > { %1789 = vsyncadd (%p1570_p7), %s1189_s16, 4294967264  ;;  %s1195_s0 = scalar_lea.sflag [#allocation15], %s1188_s26 }
 0x454   : > { %1791 = dma.done.wait (%p1570_p7), %s1195_s0, 64  }
 0x455   : > { %1793 = vsyncadd (%p1570_p7), %s1195_s0, 4294967232  ;;  %s1207_s17 = scalar_lea.sflag [#allocation20], %s1188_s26 }
 0x456   : > { %1795 = dma.done.wait (%p1570_p7), %s1207_s17, 32  }
 0x457   : > { %1797 = vsyncadd (%p1570_p7), %s1207_s17, 4294967264  ;;  %s25_s15 = sadd.s32 1, %s1824_s15   ;;  %s2368_s30 = sld [smem:[#allocation37_spill]] }
 0x458   : > { %p22_p8 = scmp.ge.s32.totalorder %s25_s15, 34   ;;  %s2369_s10 = sld [smem:[#allocation41_spill]] }
 0x459   : > { %s2370_s12 = sld [smem:[#allocation38_spill]]  ;;  %s2371_s9 = sld [smem:[#allocation39_spill]] }
 0x45a   : > { %s2372_s14 = sld [smem:[#allocation40_spill]]  ;;  %s2373_s11 = smov %s1816_s13 }
 0x45b   :  { %24 = sbr.rel (!%p22_p8) target bundleno = 12 (0xc), region = 374 }
 0x45f   : > { %s2374_s13 = smov %s2371_s9 }
 0x462   :  { %1212 = vsyncpa [#allocation12], 1 }
 0x463   :  { %1214 = vsyncpa [#allocation12 + $0x1], 1 }
 0x464   :  { %1215 = vsyncpa [#allocation15], 1 }
 0x465   :  { %1217 = vsyncpa [#allocation15 + $0x1], 1 }
 0x466   :  { %1218 = vsyncpa [#allocation20], 1 }
 0x467   :  { %1220 = vsyncpa [#allocation20 + $0x1], 1 }

// kernel: custom-call.10
= control target key start
LH: loop header
LB: loop body
LE: loop exit
PB: predicated region body
PF: predicated region fallthrough
CT: control target
= control target key end

     0   :  { %s2327_s0 = inlined_call_operand.vmem [shape: f32[2,32,2,2], index: 0, kind: input, shape index: {}]   ;;  %s2328_s1 = inlined_call_operand.vmem [shape: f32[2,32,2,2], index: 1, kind: input, shape index: {}]   ;;  %s2329_s2 = inlined_call_operand.vmem [shape: f32[2,32,2,2], index: 2, kind: input, shape index: {}]   ;;  %s2330_s3 = inlined_call_operand.vmem [shape: f32[2,32,2,2], index: 3, kind: input, shape index: {}]   ;;  %s2331_s4 = inlined_call_operand.vmem [shape: f32[2,32,2], index: 4, kind: output, shape index: {0}]   ;;  %s2332_s5 = inlined_call_operand.vmem [shape: f32[2,32,2], index: 5, kind: output, shape index: {1}]   ;;  %s2333_s6 = inlined_call_operand.hbm [shape: f32[2,32,2,2], index: 6, kind: output, shape index: {2}]   ;;  %s2334_s7 = inlined_call_operand.hbm [shape: f32[2,32,2,2], index: 7, kind: output, shape index: {3}]   ;;  %s2335_s8 = inlined_call_operand.hbm [shape: f32[2,32,2,2], index: 8, kind: output, shape index: {4}]   ;;  %s2336_s9 = inlined_call_operand.hbm [shape: f32[2,32,2,2], index: 9, kind: output, shape index: {5}]  }
   0x1   :  { %2343 = sst [smem:[#allocation42_spill]] %s2327_s0 }
   0x2   :  { %2344 = sst [smem:[#allocation43_spill]] %s2336_s9 }
   0x3   :  { %11 = vsyncpa [#allocation12], 0 }
   0x4   :  { %13 = vsyncpa [#allocation12 + $0x1], 0 }
   0x5   :  { %14 = vsyncpa [#allocation15], 0 }
   0x6   :  { %16 = vsyncpa [#allocation15 + $0x1], 0 }
   0x7   :  { %17 = vsyncpa [#allocation20], 0 }
   0x8   :  { %19 = vsyncpa [#allocation20 + $0x1], 0  ;;  %s1891_s30 = smov 0   ;;  %s1893_s10 = smov 0  }
   0x9   :  { %s1895_s11 = smov 0   ;;  %s1897_s12 = smov 0  }
   0xa   :  { %s1899_s13 = smov 0   ;;  %s1901_s14 = smov 0  }
   0xb   :  { %s1903_s15 = smov 0  }
   0xc LB: > { %2345 = sst [smem:[#allocation37_spill]] %s1804_s10  ;;  %s2337_s17 = sadd.s32 4294967295, %s1824_s15   ;;  %s1824_s15 = sphi %s1903_s15, %s25_s15   ;;  %s1820_s14 = sphi %s1901_s14, %s2372_s14   ;;  %s1816_s13 = sphi %s1899_s13, %s2374_s13   ;;  %s1812_s12 = sphi %s1897_s12, %s2370_s12   ;;  %s1808_s11 = sphi %s1895_s11, %s2373_s11   ;;  %s1804_s10 = sphi %s1893_s10, %s2369_s10   ;;  %s1800_s30 = sphi %s1891_s30, %s2368_s30  }
   0xd   : > { %2346 = sst [smem:[#allocation38_spill]] %s1820_s14  ;;  %s34_s18 = sadd.s32 1, %s1816_s13 }
   0xe   : > { %p35_p0 = scmp.ge.s32.totalorder %s34_s18, 32  ;;  %s37_s19 = sadd.s32 1, %s1820_s14 }
   0xf   : > { %s41_s20 = sshrl.u32 %s1816_s13, 3  ;;  %p58_p1 = scmp.ne.s32.totalorder %s1804_s10, %s1800_s30 }
  0x10   : > { %s2376_s18 = smov (%p35_p0, %s34_s18), 0  ;;  %s2378_s19 = smov (!%p35_p0, %s37_s19), %s1820_s14 }
  0x11   : > { %2347 = sst [smem:[#allocation39_spill]] %s2376_s18  ;;  %s42_s21 = sshrl.u32 %s2376_s18, 3 }
  0x12   : > { %p59_p2 = scmp.eq.s32.totalorder %s2337_s17, 63  ;;  %p39_p3 = scmp.ge.s32.totalorder %s2378_s19, 2 }
  0x13   : > { %s44_s22 = ssub.s32 %s41_s20, %s42_s21  ;;  %s48_s26 = sadd.s32 1, %s1804_s10 }
  0x14   : > { %p1939_p4 = por %p59_p2, %p58_p1  ;;  %s2380_s19 = smov (%p39_p3, %s2378_s19), 0 }
  0x15   : > { %2349 = sst [smem:[#allocation40_spill]] %s2380_s19  ;;  %s43_s24 = ssub.s32 %s1820_s14, %s2380_s19 }
  0x16   : > { %s45_s25 = sor.u32 %s44_s22, %s43_s24  ;;  %p1498_p6 = scmp.ge.s32.totalorder %s1824_s15, 64 }
  0x17   : > { %p46_p5 = scmp.eq.s32.totalorder %s45_s25, 0  ;;  %s113_s28 = sand.u32 (!%p1498_p6), 1, %s1824_s15  }
  0x18   : > { %111 = sbr.rel (%p1498_p6) target bundleno = 37 (0x25), region = 16  ;;  %s1500_s29 = sshll.u32 (!%p1498_p6), %s1820_s14, 5 }
  0x19   : > { %s1949_s27 = scalar_select %p46_p5, %s1804_s10, %s48_s26  }
  0x1a   : > { %s1499_s20 = sshll.u32 (!%p1498_p6), %s113_s28, 1  ;;  %s117_s21 = sadd.s32 (!%p1498_p6), %s1816_s13, %s1500_s29 }
  0x1b   : > { %2350 = sst [smem:[#allocation41_spill]] %s1949_s27  ;;  %s1501_s16 = sshll.u32 (!%p1498_p6), %s117_s21, 1 }
  0x1c   : > { %s2351_s0 = sld [smem:[#allocation42_spill]] (!%p1498_p6)  ;;  %s158_s25 = scalar_lea.vmem (!%p1498_p6), %s2328_s1, %s1501_s16 }
  0x1d   : > { %s115_s26 = scalar_lea.vmem (!%p1498_p6), [#allocation1], %s1499_s20  ;;  %v174_v1 = vld [vmem:[%s158_s25] sm:$0x3] (!%p1498_p6)  ;;  %s197_s9 = scalar_lea.vmem (!%p1498_p6), %s2329_s2, %s1501_s16 }
  0x1e   : > { %s154_s14 = scalar_lea.vmem (!%p1498_p6), [#allocation3], %s1499_s20  ;;  %v213_v2 = vld [vmem:[%s197_s9] sm:$0x3] (!%p1498_p6)  ;;  %s236_s17 = scalar_lea.vmem (!%p1498_p6), %s2330_s3, %s1501_s16 }
  0x1f   : > { %175 = vst [vmem:[%s154_s14] sm:$0x3] %v174_v1  ;;  %s193_s18 = scalar_lea.vmem [#allocation5], %s1499_s20  ;;  %v252_v3 = vld [vmem:[%s236_s17] sm:$0x3] }
  0x20   : > { %214 = vst [vmem:[%s193_s18] sm:$0x3] %v213_v2 }
  0x22   : > { %s119_s19 = scalar_lea.vmem %s2351_s0, %s1501_s16 }
  0x23   : > { %v135_v0 = vld [vmem:[%s119_s19] sm:$0x3]  ;;  %s232_s19 = scalar_lea.vmem [#allocation7], %s1499_s20 }
  0x24   : > { %136 = vst [vmem:[%s115_s26] sm:$0x3] %v135_v0  ;;  %253 = vst [vmem:[%s232_s19] sm:$0x3] %v252_v3 }
  0x25 PF: > { %p1511_p7 = scmp.ge.s32.totalorder %s1824_s15, 1  ;;  %p269_p8 = scmp.lt.s32.totalorder %s1824_s15, 65 }
  0x27   : > { %p270_p9 = pnand %p1511_p7, %p269_p8 }
  0x29   : > { %273 = sbr.rel (%p270_p9) target bundleno = 1103 (0x44f), region = 140 }
  0x30   : > { %s2352_s10 = sadd.s32 4294967295, %s1824_s15   ;;  %s310_s14 = sand.u32 1, %s1800_s30   ;;  %v374_v4 = vlaneseq  ;;  %v1834_v5 = vmov 0.0  }
  0x31   : > { %s1971_s9 = sand.u32 1, %s2352_s10   ;;  %s1977_s27 = sshll.u32 %s310_s14, 3  ;;  %369 = vst [vmem:[#allocation10] sm:$0xff] %v1834_v5  ;;  %370 = vst [vmem:[#allocation13] sm:$0xff] %v1834_v5 }
  0x32   : > { %s1975_s16 = sshll.u32 %s1971_s9, 1  ;;  %371 = vst [vmem:[#allocation16] sm:$0xff] %v1834_v5  ;;  %372 = vst [vmem:[#allocation18] sm:$0xff] %v1834_v5  ;;  %v1979_v6 = vand.u32 127, %v374_v4  ;;  %v1981_v7 = vshrl.u32 %v374_v4, 7  ;;  %s357_s24 = smov [#allocation21] }
  0x33   : > { %s294_s20 = scalar_lea.vmem [#allocation1], %s1975_s16  ;;  %s298_s30 = scalar_lea.vmem [#allocation3], %s1975_s16 }
  0x34   : > { %v341_v8 = vld [vmem:[%s294_s20] sm:$0x3]  ;;  %v345_v9 = vld [vmem:[%s298_s30] sm:$0x3]  ;;  %s302_s21 = scalar_lea.vmem [#allocation5], %s1975_s16  ;;  %s306_s22 = scalar_lea.vmem [#allocation7], %s1975_s16  ;;  %v376_v6 = vmov %v1979_v6  ;;  %v379_v7 = vmov %v1981_v7 }
  0x35   : > { %342 = vst [vmem:[#allocation0] sm:$0x3] %v341_v8  ;;  %346 = vst [vmem:[#allocation2] sm:$0x3] %v345_v9  ;;  %v349_v10 = vld [vmem:[%s302_s21] sm:$0x3]  ;;  %v389_v6 = vmov %v1979_v6  ;;  %v392_v7 = vmov %v1981_v7  ;;  %vm383_vm0 = vcmp.eq.s32.totalorder %v379_v7, %v376_v6 }
  0x36   : > { %v353_v11 = vld [vmem:[%s306_s22] sm:$0x3]  ;;  %350 = vst [vmem:[#allocation4] sm:$0x3] %v349_v10  ;;  %s360_s25 = smov [#allocation22]  ;;  %vm396_vm1 = vcmp.eq.s32.totalorder %v392_v7, %v389_v6  ;;  %s373_s26 = smov [#allocation10]  ;;  %v1370_v7 = vmov %v1981_v7 }
  0x37   : > { %354 = vst [vmem:[#allocation6] sm:$0x3] %v353_v11  ;;  %s386_s28 = smov [#allocation18]  ;;  %s363_s29 = smov [#allocation23]  ;;  %vm1375_vm2 = vcmp.lt.s32.totalorder %v1979_v6, 2  ;;  %v1367_v6 = vmov %v1979_v6 }
  0x38   : > { %s366_s17 = smov [#allocation24]  ;;  %v380_v12 = vld [vmem:[%s373_s26] sm:$0x3]  ;;  %s1371_s21 = smov [#allocation21]  ;;  %vm1380_vm3 = vcmp.eq.s32.totalorder %v1370_v7, %v1367_v6  ;;  %v1418_v6 = vmov %v1979_v6  ;;  %v1387_v7 = vmov %v1981_v7 }
  0x39   : > { %v393_v13 = vld [vmem:[%s386_s28] sm:$0x3]  ;;  %v384_v16 = vsel %vm383_vm0, 1.0, %v380_v12  ;;  %s1388_s22 = smov [#allocation22]  ;;  %v1384_v6 = vmov %v1979_v6  ;;  %v1421_v7 = vmov %v1981_v7 }
  0x3a   : > { %v397_v17 = vsel %vm396_vm1, 1.0, %v393_v13  ;;  %385 = vst [vmem:[%s373_s26] sm:$0x3] %v384_v16  ;;  %v1401_v6 = vmov %v1979_v6  ;;  %v1404_v7 = vmov %v1981_v7  ;;  %vm1431_vm4 = vcmp.eq.s32.totalorder %v1421_v7, %v1418_v6 }
  0x3b   : > { %398 = vst [vmem:[%s386_s28] sm:$0x3] %v397_v17 }
  0x3c   : > { %v358_v14 = vld [vmem:[#allocation0] sm:$0xff]  ;;  %v361_v15 = vld [vmem:[#allocation2] sm:$0xff] }
  0x3d   : > { %359 = vst [vmem:[%s357_s24] sm:$0xff] %v358_v14  ;;  %362 = vst [vmem:[%s360_s25] sm:$0xff] %v361_v15  ;;  %v364_v18 = vld [vmem:[#allocation4] sm:$0xff]  ;;  %s1405_s24 = smov [#allocation23]  ;;  %s1422_s25 = smov [#allocation24] }
  0x3e   : > { %v367_v19 = vld [vmem:[#allocation6] sm:$0xff]  ;;  %365 = vst [vmem:[%s363_s29] sm:$0xff] %v364_v18 }
  0x3f   : > { %368 = vst [vmem:[%s366_s17] sm:$0xff] %v367_v19 }
  0x44   : > { %v1377_v20 = vld [vmem:[%s1371_s21] sm:$0x3] }
  0x45   : > { %v1394_v21 = vld [vmem:[%s1388_s22] sm:$0x3]  ;;  %v1378_v22 = vsel %vm1375_vm2, %v1377_v20, 0.0 }
  0x46   : > { %v1395_v23 = vsel %vm1375_vm2, %v1394_v21, 0.0  ;;  %v1411_v24 = vld [vmem:[%s1405_s24] sm:$0x3]  ;;  %v1379_v26 = vmul.f32 %v1378_v22, %v1378_v22 }
  0x47   : > { %v1428_v25 = vld [vmem:[%s1422_s25] sm:$0x3]  ;;  %v1396_v27 = vmul.f32 %v1395_v23, %v1395_v23  ;;  %v1412_v28 = vsel %vm1375_vm2, %v1411_v24, 0.0 }
  0x48   : > { %v1429_v29 = vsel %vm1375_vm2, %v1428_v25, 0.0  ;;  %v1413_v30 = vmul.f32 %v1412_v28, %v1412_v28  ;;  %v1381_v33 = vsel %vm1380_vm3, 0.0, %v1379_v26 }
  0x49   : > { %v1398_v31 = vadd.f32 %v1396_v27, %v1379_v26  ;;  %v1430_v32 = vmul.f32 %v1429_v29, %v1429_v29  ;;  %v1397_v34 = vadd.f32 %v1396_v27, %v1381_v33 }
  0x4b   : > { %v1415_v35 = vadd.f32 %v1413_v30, %v1398_v31  ;;  %v1414_v36 = vadd.f32 %v1413_v30, %v1397_v34  ;;  %v1432_v37 = vsel %vm1431_vm4, 0.0, %v1430_v32 }
  0x4d   : > { %v1434_v38 = vadd.f32 %v1430_v32, %v1415_v35  ;;  %v1433_v39 = vadd.f32 %v1432_v37, %v1414_v36 }
  0x4f   : > { %1435 = vadd.xlane.f32.xlu0 %v1434_v38 }
  0x53   : > { %1443 = vadd.xlane.f32.xlu0 %v1433_v39 }
  0xdc   : > { %v1436_v40 = vpop.xlane.xlu0 %1435 }
  0xdd   : > { %v1437_v41 = vrot.slane %v1436_v40, 4 }
  0xdf   : > { %v1438_v42 = vadd.f32 %v1437_v41, %v1436_v40 }
  0xe0   : > { %v1444_v43 = vpop.xlane.xlu0 %1443 }
  0xe1   : > { %v1439_v44 = vrot.slane %v1438_v42, 2  ;;  %v1445_v45 = vrot.slane %v1444_v43, 4 }
  0xe3   : > { %v1446_v46 = vadd.f32 %v1445_v45, %v1444_v43  ;;  %v1440_v47 = vadd.f32 %v1439_v44, %v1438_v42 }
  0xe5   : > { %v1447_v48 = vrot.slane %v1446_v46, 2  ;;  %v1441_v50 = vrot.slane %v1440_v47, 1 }
  0xe7   : > { %v1448_v49 = vadd.f32 %v1447_v48, %v1446_v46  ;;  %v1442_v53 = vadd.f32 %v1441_v50, %v1440_v47 }
  0xe9   : > { %v1449_v51 = vrot.slane %v1448_v49, 1 }
  0xeb   : > { %v1450_v52 = vadd.f32 %v1449_v51, %v1448_v49 }
  0xed   : > { %1558 = vpush %v1450_v52 }
  0xee   : > { %1560 = vpush %v1442_v53 }
 0x11e   : > { %s1559_s26 = spop %1558 }
 0x11f   : > { %s1561_s28 = spop %1560 }
 0x120   : > { %s1453_s29 = smul.f32 1e-10, %s1561_s28 }
 0x122   : > { %p1454_p10 = scmp.le.f32.partialorder %s1559_s26, %s1453_s29 }
 0x123   : > { %s2015_s17 = smov (!%p1454_p10), 0  }
 0x124   : > { %1457 = sbr.rel (%p1454_p10) target bundleno = 974 (0x3ce), region = 357 }
 0x12b LB: >> { %s2020_s21 = smov 0   ;;  %s1828_s17 = sphi %s2015_s17, %s2353_s17  }
 0x12c LB: >>> { %s503_s22 = smov [#allocation21]  ;;  %v507_v6 = vmov %v1979_v6  ;;  %v510_v7 = vmov %v1981_v7  ;;  %s523_s24 = smov [#allocation22]  ;;  %vm826_vm14 = vcmp.eq.s32.totalorder %v1981_v7, 0  ;;  %vm838_vm15 = vcmp.eq.s32.totalorder %v1981_v7, 1  ;;  %s1832_s21 = sphi %s2020_s21, %s502_s21  }
 0x12d   : >>> { %v527_v6 = vmov %v1979_v6  ;;  %v530_v7 = vmov %v1981_v7  ;;  %v511_v54 = vld [vmem:[%s503_s22] sm:$0x3]  ;;  %vm514_vm5 = vcmp.eq.s32.totalorder %v510_v7, %v507_v6  ;;  %s543_s25 = smov [#allocation24]  ;;  %s504_s26 = smov [#allocation25] }
 0x12e   : >>> { %vm534_vm6 = vcmp.eq.s32.totalorder %v530_v7, %v527_v6  ;;  %v547_v6 = vmov %v1979_v6  ;;  %v550_v7 = vmov %v1981_v7  ;;  %v515_v55 = vsel %vm514_vm5, %v511_v54, 0.0  ;;  %v531_v56 = vld [vmem:[%s523_s24] sm:$0x3]  ;;  %s524_s28 = smov [#allocation26]  ;;  %s544_s29 = smov [#allocation27] }
 0x12f   : >>> { %vm554_vm7 = vcmp.eq.s32.totalorder %v550_v7, %v547_v6  ;;  %v516_v57 = vrot.slane %v515_v55, 4  ;;  %v535_v58 = vsel %vm534_vm6, %v531_v56, 0.0  ;;  %v551_v59 = vld [vmem:[%s543_s25] sm:$0x3]  ;;  %s567_s22 = smov [#allocation26]  ;;  %s565_s24 = smov [#allocation25]  ;;  %v616_v6 = vmov %v1979_v6 }
 0x130   : >>> { %v536_v60 = vrot.slane %v535_v58, 4  ;;  %v555_v61 = vsel %vm554_vm7, %v551_v59, 0.0  ;;  %s569_s25 = smov [#allocation27]  ;;  %v619_v7 = vmov %v1981_v7  ;;  %v631_v6 = vmov %v1979_v6  ;;  %s2037_s19 = smov [#allocation22] }
 0x131   : >>> { %v517_v62 = vadd.f32 %v516_v57, %v515_v55  ;;  %v556_v63 = vrot.slane %v555_v61, 4  ;;  %v634_v7 = vmov %v1981_v7  ;;  %vm621_vm12 = vcmp.eq.s32.totalorder %v619_v7, %v616_v6  ;;  %s2039_s18 = smov [#allocation23]  ;;  %s2045_s30 = smov [#allocation13]  ;;  %v651_v54 = vld [vmem:[%s2037_s19] sm:$0x3] }
 0x132   : >>> { %v537_v0 = vadd.f32 %v536_v60, %v535_v58  ;;  %vm636_vm13 = vcmp.eq.s32.totalorder %v634_v7, %v631_v6  ;;  %s866_s20 = smov [#allocation32]  ;;  %s2051_s14 = smov [#allocation18]  ;;  %v652_v55 = vld [vmem:[%s2039_s18] sm:$0x3]  ;;  %v729_v6 = vmov %v1979_v6  ;;  %v732_v7 = vmov %v1981_v7 }
 0x133   : >>> { %v518_v1 = vrot.slane %v517_v62, 2  ;;  %v557_v2 = vadd.f32 %v556_v63, %v555_v61  ;;  %v875_v58 = vld [vmem:[%s2045_s30] sm:$0x3]  ;;  %s644_s10 = smov [#allocation33]  ;;  %s868_s0 = smov [#allocation33]  ;;  %v743_v6 = vmov %v1979_v6  ;;  %v746_v7 = vmov %v1981_v7 }
 0x134   : >>> { %v538_v3 = vrot.slane %v537_v0, 2  ;;  %v877_v61 = vld [vmem:[%s2051_s14] sm:$0x3]  ;;  %vm736_vm0 = vcmp.eq.s32.totalorder %v732_v7, %v729_v6  ;;  %v702_v6 = vmov %v1979_v6  ;;  %v705_v7 = vmov %v1981_v7  ;;  %s502_s21 = sadd.s32 1, %s1832_s21  }
 0x135   : >>> { %v519_v4 = vadd.f32 %v518_v1, %v517_v62  ;;  %v558_v5 = vrot.slane %v557_v2, 2  ;;  %v716_v6 = vmov %v1979_v6  ;;  %v719_v7 = vmov %v1981_v7  ;;  %p499_p11 = scmp.ge.s32.totalorder %s502_s21, 3  }
 0x136   : >>> { %v539_v8 = vadd.f32 %v538_v3, %v537_v0  ;;  %vm751_vm1 = vcmp.eq.s32.totalorder %v746_v7, %v743_v6  ;;  %vm710_vm3 = vcmp.eq.s32.totalorder %v705_v7, %v702_v6  ;;  %vm723_vm4 = vcmp.eq.s32.totalorder %v719_v7, %v716_v6 }
 0x137   : >>> { %v520_v9 = vrot.slane %v519_v4, 1  ;;  %v559_v10 = vadd.f32 %v558_v5, %v557_v2  ;;  %vm765_vm5 = vcmp.eq.s32.totalorder %v1979_v6, 0  ;;  %vm769_vm6 = vcmp.eq.s32.totalorder %v1979_v6, 1 }
 0x138   : >>> { %v540_v11 = vrot.slane %v539_v8, 1  ;;  %v403_v6 = vmov (%p499_p11), %v1979_v6  ;;  %v406_v7 = vmov (%p499_p11), %v1981_v7 }
 0x139   : >>> { %v521_v12 = vadd.f32 %v520_v9, %v519_v4  ;;  %v560_v13 = vrot.slane %v559_v10, 1  ;;  %v456_v6 = vmov (%p499_p11), %v1979_v6  ;;  %vm418_vm7 = vcmp.eq.s32.totalorder (%p499_p11), %v406_v7, %v403_v6 }
 0x13a   : >>> { %v541_v14 = vadd.f32 %v540_v11, %v539_v8  ;;  %v459_v7 = vmov (%p499_p11), %v1981_v7  ;;  %v422_v6 = vmov (%p499_p11), %v1979_v6 }
 0x13b   : >>> { %522 = vst [vmem:[%s504_s26] sm:$0x1] %v521_v12  ;;  %v561_v15 = vadd.f32 %v560_v13, %v559_v10  ;;  %s604_s26 = smov [#allocation28]  ;;  %v425_v7 = vmov (%p499_p11), %v1981_v7  ;;  %v439_v6 = vmov (%p499_p11), %v1979_v6 }
 0x13c   : >>> { %542 = vst [vmem:[%s524_s28] sm:$0x1] %v541_v14  ;;  %s606_s28 = smov [#allocation29]  ;;  %v442_v7 = vmov (%p499_p11), %v1981_v7 }
 0x13d   : >>> { %562 = vst [vmem:[%s544_s29] sm:$0x1] %v561_v15  ;;  %s563_s29 = smov [#allocation30] }
 0x13e   : >>> { %s608_s29 = smov %s563_s29 }
 0x142   : >>> { %v566_v18 = vld [vmem:[%s565_s24] sm:$0xff]  ;;  %s612_s24 = smov [#allocation30] }
 0x143   : >>> { %v568_v16 = vld [vmem:[%s567_s22] sm:$0xff]  ;;  %v589_v31 = vand.u32 2147483647, %v566_v18  ;;  %s564_s22 = smov [#allocation31] }
 0x144   : >>> { %v572_v17 = vmul.f32 2.0, %v568_v16  ;;  %v570_v19 = vld [vmem:[%s569_s25] sm:$0xff]  ;;  %v590_v36 = vand.u32 2147483647, %v568_v16  ;;  %s610_s22 = smov %s564_s22  ;;  %s627_s25 = smov [#allocation31] }
 0x145   : >>> { %v571_v20 = vsub.f32 %v570_v19, %v566_v18  ;;  %v591_v32 = vand.u32 2147483647, %v570_v19 }
 0x146   : >>> { %1646 = vrcp.f32 %v572_v17 }
 0x147   : >>> { %v592_v35 = vmin.f32 %v589_v31, %v591_v32 }
 0x149   : >>> { %v593_v37 = vmul.f32 1.1920929e-08, %v592_v35 }
 0x14b   : >>> { %vm594_vm11 = vcmp.le.f32.partialorder %v590_v36, %v593_v37 }
 0x150   : >>> { %v1647_v21 = vpop.eup %1646 }
 0x151   : >>> { %v574_v22 = vmul.f32 %v1647_v21, %v571_v20 }
 0x153   : >>> { %v576_v23 = vmul.f32 %v574_v22, %v574_v22  ;;  %vm575_vm10 = vcmp.ge.f32.partialorder %v574_v22, 0.0 }
 0x155   : >>> { %v577_v24 = vadd.f32 1.0, %v576_v23 }
 0x157   : >>> { %1648 = vrsqrt.f32 %v577_v24  ;;  %vm580_vm8 = vcmp.eq.f32.partialorder %v577_v24, inf  ;;  %v583_v26 = vand.u32 2147483648, %v577_v24  ;;  %vm582_vm9 = vcmp.eq.f32.partialorder %v577_v24, 0.0 }
 0x161   : >>> { %v1649_v25 = vpop.eup %1648 }
 0x162   : >>> { %v579_v27 = vmul.f32 %v1649_v25, %v577_v24 }
 0x164   : >>> { %v581_v28 = vsel %vm580_vm8, %v577_v24, %v579_v27  ;;  %vm471_vm8 = vcmp.eq.s32.totalorder (%p499_p11), %v459_v7, %v456_v6 }
 0x165   : >>> { %v584_v29 = vsel %vm582_vm9, %v583_v26, %v581_v28 }
 0x166   : >>> { %v585_v30 = vxor.u32 2147483648, %v584_v29 }
 0x168   : >>> { %v586_v33 = vsel %vm575_vm10, %v584_v29, %v585_v30 }
 0x169   : >>> { %v587_v34 = vadd.f32 %v586_v33, %v574_v22 }
 0x16b   : >>> { %1650 = vrcp.f32 %v587_v34 }
 0x175   : >>> { %v1651_v38 = vpop.eup %1650 }
 0x176   : >>> { %v595_v39 = vsel %vm594_vm11, 0.0, %v1651_v38 }
 0x177   : >>> { %v596_v40 = vmul.f32 %v595_v39, %v595_v39  ;;  %v600_v41 = vmul.f32 %v595_v39, %v568_v16 }
 0x179   : >>> { %v597_v42 = vadd.f32 1.0, %v596_v40  ;;  %v601_v43 = vsub.f32 %v566_v18, %v600_v41  ;;  %v603_v44 = vadd.f32 %v600_v41, %v570_v19 }
 0x17b   : >>> { %1652 = vrsqrt.f32 %v597_v42  ;;  %605 = vst [vmem:[%s604_s26] sm:$0xff] %v601_v43  ;;  %607 = vst [vmem:[%s606_s28] sm:$0xff] %v603_v44  ;;  %s625_s26 = smov [#allocation32]  ;;  %s642_s28 = smov [#allocation32] }
 0x185   : >>> { %v1653_v45 = vpop.eup %1652 }
 0x186   : >>> { %609 = vst [vmem:[%s608_s29] sm:$0xff] %v1653_v45  ;;  %v599_v46 = vmul.f32 %v1653_v45, %v595_v39  ;;  %s2035_s29 = smov [#allocation21] }
 0x187   : >>> { %v650_v53 = vld [vmem:[%s2035_s29] sm:$0x3] }
 0x188   : >>> { %611 = vst [vmem:[%s610_s22] sm:$0xff] %v599_v46  ;;  %s640_s22 = smov [#allocation33] }
 0x18d   : >>> { %v613_v47 = vld [vmem:[%s612_s24] ss:$0 sm:$0xff]  ;;  %s2041_s24 = smov [#allocation24] }
 0x18e   : >>> { %v622_v48 = vsel %vm621_vm12, %v613_v47, 0.0  ;;  %v653_v56 = vld [vmem:[%s2041_s24] sm:$0x3] }
 0x18f   : >>> { %623 = vadd.xlane.f32.xlu0 %v622_v48  ;;  %v628_v49 = vld [vmem:[%s627_s25] ss:$0 sm:$0xff]  ;;  %s2043_s25 = smov [#allocation10] }
 0x190   : >>> { %v637_v50 = vsel %vm636_vm13, %v628_v49, 0.0  ;;  %v874_v57 = vld [vmem:[%s2043_s25] sm:$0x3] }
 0x193   : >>> { %638 = vadd.xlane.f32.xlu0 %v637_v50 }
 0x21c   : >>> { %v624_v51 = vpop.xlane.xlu0 %623 }
 0x21d   : >>> { %626 = vst [vmem:[%s625_s26] sm:$0xff] %v624_v51  ;;  %s2047_s26 = smov [#allocation16] }
 0x21e   : >>> { %v876_v59 = vld [vmem:[%s2047_s26] sm:$0x3] }
 0x220   : >>> { %v639_v52 = vpop.xlane.xlu0 %638 }
 0x221   : >>> { %641 = vst [vmem:[%s640_s22] sm:$0xff] %v639_v52  ;;  %s2071_s22 = smov [#allocation24] }
 0x224   : >>> { %v643_v60 = vld [vmem:[%s642_s28] sm:$0xff]  ;;  %s2069_s28 = smov [#allocation23] }
 0x225   : >>> { %v867_v62 = vld [vmem:[%s866_s20] sm:$0xff]  ;;  %v654_v63 = vmul.f32 %v650_v53, %v643_v60  ;;  %v657_v0 = vmul.f32 %v651_v54, %v643_v60  ;;  %v661_v1 = vmul.f32 %v652_v55, %v643_v60  ;;  %v664_v2 = vmul.f32 %v653_v56, %v643_v60  ;;  %s2067_s20 = smov [#allocation10] }
 0x226   : >>> { %v878_v3 = vmul.f32 %v874_v57, %v867_v62  ;;  %v881_v4 = vmul.f32 %v875_v58, %v867_v62  ;;  %v885_v5 = vmul.f32 %v876_v59, %v867_v62  ;;  %v888_v8 = vmul.f32 %v877_v61, %v867_v62 }
 0x228   : >>> { %v645_v9 = vld [vmem:[%s644_s10] sm:$0xff]  ;;  %s672_s10 = smov [#allocation31] }
 0x229   : >>> { %v869_v10 = vld [vmem:[%s868_s0] sm:$0xff]  ;;  %v655_v11 = vmul.f32 %v652_v55, %v645_v9  ;;  %v658_v12 = vmul.f32 %v653_v56, %v645_v9  ;;  %v660_v13 = vmul.f32 %v650_v53, %v645_v9  ;;  %v663_v14 = vmul.f32 %v651_v54, %v645_v9  ;;  %s670_s0 = smov [#allocation30] }
 0x22a   : >>> { %v879_v15 = vmul.f32 %v876_v59, %v869_v10  ;;  %v882_v16 = vmul.f32 %v877_v61, %v869_v10  ;;  %v884_v17 = vmul.f32 %v874_v57, %v869_v10  ;;  %v887_v18 = vmul.f32 %v875_v58, %v869_v10  ;;  %v671_v27 = vld [vmem:[%s670_s0] ss:$0 sm:$0xff]  ;;  %s699_s0 = smov [#allocation28] }
 0x22b   : >>> { %v656_v19 = vsub.f32 %v654_v63, %v655_v11  ;;  %v659_v20 = vsub.f32 %v657_v0, %v658_v12  ;;  %v662_v21 = vadd.f32 %v661_v1, %v660_v13  ;;  %v665_v22 = vadd.f32 %v664_v2, %v663_v14  ;;  %v673_v28 = vld [vmem:[%s672_s10] ss:$0 sm:$0xff]  ;;  %s698_s10 = smov [#allocation21] }
 0x22c   : >>> { %v880_v23 = vsub.f32 %v878_v3, %v879_v15  ;;  %v883_v24 = vsub.f32 %v881_v4, %v882_v16  ;;  %v886_v25 = vadd.f32 %v885_v5, %v884_v17  ;;  %v889_v26 = vadd.f32 %v888_v8, %v887_v18  ;;  %v706_v63 = vld [vmem:[%s699_s0] ss:$0 sm:$0xff]  ;;  %s942_s0 = sadd.s32 (%p499_p11), 1, %s1828_s17  }
 0x22d   : >>> { %667 = vst [vmem:[%s2037_s19] sm:$0x3] %v659_v20  ;;  %669 = vst [vmem:[%s2041_s24] sm:$0x3] %v665_v22  ;;  %s2073_s19 = smov [#allocation21]  ;;  %s740_s24 = smov [#allocation29] }
 0x22e   : >>> { %666 = vst [vmem:[%s2035_s29] sm:$0x3] %v656_v19  ;;  %668 = vst [vmem:[%s2039_s18] sm:$0x3] %v662_v21  ;;  %s2075_s18 = smov [#allocation16]  ;;  %s2083_s29 = smov [#allocation22]  ;;  %v747_v59 = vld [vmem:[%s740_s24] ss:$0 sm:$0xff] }
 0x22f   : >>> { %890 = vst [vmem:[%s2043_s25] sm:$0x3] %v880_v23  ;;  %891 = vst [vmem:[%s2045_s30] sm:$0x3] %v883_v24  ;;  %s2077_s30 = smov [#allocation13]  ;;  %s726_s25 = smov [#allocation23] }
 0x230   : >>> { %892 = vst [vmem:[%s2047_s26] sm:$0x3] %v886_v25  ;;  %893 = vst [vmem:[%s2051_s14] sm:$0x3] %v889_v26  ;;  %s2081_s14 = smov [#allocation18]  ;;  %s739_s26 = smov [#allocation24] }
 0x231   : >>> { %s842_s24 = smov [#allocation22]  ;;  %p495_p12 = scmp.ge.s32.totalorder (%p499_p11), %s942_s0, 15 }
 0x232   : >> { %s2353_s17 = smov (%p499_p11), %s942_s0 }
 0x234   : >>> { %v681_v30 = vld [vmem:[%s2071_s22] sm:$0x3] }
 0x235   : >>> { %v680_v29 = vld [vmem:[%s2069_s28] sm:$0x3]  ;;  %v689_v36 = vmul.f32 %v681_v30, %v673_v28  ;;  %v692_v42 = vmul.f32 %v681_v30, %v671_v27 }
 0x236   : >>> { %v678_v31 = vld [vmem:[%s2073_s19] sm:$0x3]  ;;  %v688_v35 = vmul.f32 %v680_v29, %v671_v27  ;;  %v691_v37 = vmul.f32 %v680_v29, %v673_v28 }
 0x237   : >>> { %v896_v32 = vld [vmem:[%s2067_s20] ss:$0 sm:$0xff]  ;;  %v1531_v34 = vld [vmem:[%s2067_s20 + $0x1] ss:$0 sm:$0xff]  ;;  %v682_v48 = vmul.f32 %v678_v31, %v671_v27  ;;  %v685_v49 = vmul.f32 %v678_v31, %v673_v28 }
 0x238   : >>> { %v1530_v33 = vld [vmem:[%s2067_s20 - $0x1] sm:$0x2]  ;;  %v1533_v40 = vld [vmem:[%s2075_s18 + $0x1] sm:$0x1]  ;;  %v690_v47 = vsub.f32 %v688_v35, %v689_v36  ;;  %v693_v53 = vadd.f32 %v692_v42, %v691_v37 }
 0x239   : >>> { %v903_v38 = vsel %vm826_vm14, %v896_v32, %v1530_v33  ;;  %v907_v39 = vld [vmem:[%s2075_s18] ss:$0 sm:$0xff]  ;;  %v915_v43 = vsel %vm838_vm15, %v1531_v34, %v1533_v40  ;;  %v1535_v45 = vld [vmem:[%s2077_s30 + $0x1] ss:$0 sm:$0xff] }
 0x23a   : >>> { %v920_v41 = vld [vmem:[%s2077_s30] ss:$0 sm:$0xff]  ;;  %906 = vst [vmem:[%s2067_s20] sm:$0x3] %v903_v38  ;;  %917 = vst [vmem:[%s2075_s18] sm:$0x3] %v915_v43  ;;  %v1537_v51 = vld [vmem:[%s2081_s14 + $0x1] sm:$0x1] }
 0x23b   : >>> { %v1534_v44 = vld [vmem:[%s2077_s30 - $0x1] sm:$0x2]  ;;  %1532 = vst [vmem:[%s2067_s20 + $0x1] sm:$0x1] %v907_v39  ;;  %v939_v54 = vsel %vm838_vm15, %v1535_v45, %v1537_v51  ;;  %696 = vst [vmem:[%s2069_s28] sm:$0x3] %v690_v47  ;;  %s713_s20 = smov [#allocation22] }
 0x23c   : >>> { %v931_v46 = vld [vmem:[%s2081_s14] ss:$0 sm:$0xff]  ;;  %v927_v50 = vsel %vm826_vm14, %v920_v41, %v1534_v44  ;;  %697 = vst [vmem:[%s2071_s22] sm:$0x3] %v693_v53  ;;  %s2125_s28 = smov [#allocation23]  ;;  %s1835_s22 = smov 1  }
 0x23d   : >>> { %v679_v52 = vld [vmem:[%s2083_s29] sm:$0x3]  ;;  %930 = vst [vmem:[%s2077_s30] sm:$0x3] %v927_v50  ;;  %941 = vst [vmem:[%s2081_s14] sm:$0x3] %v939_v54  ;;  %s755_s18 = smov [#allocation22]  ;;  %s2128_s14 = smov [#allocation24] }
 0x23e   : >>> { %v683_v55 = vmul.f32 %v679_v52, %v673_v28  ;;  %v686_v56 = vmul.f32 %v679_v52, %v671_v27  ;;  %1536 = vst [vmem:[%s2077_s30 + $0x1] sm:$0x1] %v931_v46  ;;  %s1836_s30 = smov 127  }
 0x240   : >>> { %v684_v57 = vsub.f32 %v682_v48, %v683_v55  ;;  %v687_v58 = vadd.f32 %v686_v56, %v685_v49 }
 0x242   : >>> { %694 = vst [vmem:[%s2073_s19] sm:$0x3] %v684_v57  ;;  %695 = vst [vmem:[%s2083_s29] sm:$0x3] %v687_v58  ;;  %v733_v60 = vld [vmem:[%s726_s25] sm:$0x3]  ;;  %s754_s19 = smov [#allocation21]  ;;  %s818_s29 = smov [#allocation21] }
 0x243   : >>> { %v737_v61 = vsel %vm736_vm0, 0.0, %v733_v60  ;;  %v748_v62 = vld [vmem:[%s739_s26] sm:$0x3] }
 0x244   : >>> { %738 = vst [vmem:[%s726_s25] sm:$0x3] %v737_v61  ;;  %v752_v0 = vsel %vm751_vm1, %v747_v59, %v748_v62  ;;  %s819_s25 = smov [#allocation23] }
 0x245   : >>> { %753 = vst [vmem:[%s739_s26] sm:$0x3] %v752_v0  ;;  %s843_s26 = smov [#allocation24] }
 0x249   : >>> { %v707_v1 = vld [vmem:[%s698_s10] sm:$0x3] }
 0x24a   : >>> { %v720_v2 = vld [vmem:[%s713_s20] sm:$0x3]  ;;  %v711_v3 = vsel %vm710_vm3, %v706_v63, %v707_v1 }
 0x24b   : >>> { %v724_v4 = vsel %vm723_vm4, 0.0, %v720_v2  ;;  %712 = vst [vmem:[%s698_s10] sm:$0x3] %v711_v3  ;;  %v792_v5 = vld [vmem:[%s2125_s28] sm:$0x3]  ;;  %s407_s10 = smov (%p499_p11), [#allocation21] }
 0x24c   : >>> { %725 = vst [vmem:[%s713_s20] sm:$0x3] %v724_v4  ;;  %793 = vrot.lane.b32.xlu0 %v792_v5, %s1835_s22  ;;  %v788_v11 = vld [vmem:[%s2128_s14] sm:$0x3]  ;;  %s426_s20 = smov (%p499_p11), [#allocation22] }
 0x24d   : >>> { %v809_v12 = vld [vmem:[%s2128_s14] sm:$0x3] }
 0x24e   : >>> { %v791_v30 = vld [vmem:[%s2125_s28] sm:$0x3] }
 0x252   : >>> { %v760_v8 = vld [vmem:[%s754_s19] sm:$0x3] }
 0x253   : >>> { %761 = vrot.lane.b32.xlu1 %v760_v8, %s1835_s22  ;;  %v756_v9 = vld [vmem:[%s755_s18] sm:$0x3] }
 0x254   : >>> { %v777_v10 = vld [vmem:[%s755_s18] sm:$0x3] }
 0x255   : >>> { %v759_v18 = vld [vmem:[%s754_s19] sm:$0x3] }
 0x257   : >>> { %757 = vrot.lane.b32.xlu1 %v756_v9, %s1835_s22 }
 0x25b   : >>> { %778 = vrot.lane.b32.xlu1 %v777_v10, %s1836_s30 }
 0x25f   : >>> { %789 = vrot.lane.b32.xlu1 %v788_v11, %s1835_s22  ;;  %s460_s22 = smov (%p499_p11), [#allocation24] }
 0x263   : >>> { %810 = vrot.lane.b32.xlu1 %v809_v12, %s1836_s30 }
 0x2be   : >>> { %v794_v20 = vpop.permute.xlu0 %793 }
 0x2bf   : >>> { %v798_v22 = vsel %vm765_vm5, %v792_v5, %v794_v20 }
 0x2c5   : >>> { %v762_v13 = vpop.permute.xlu1 %761 }
 0x2c6   : >>> { %v766_v14 = vsel %vm765_vm5, %v760_v8, %v762_v13 }
 0x2c9   : >>> { %v758_v15 = vpop.permute.xlu1 %757 }
 0x2ca   : >>> { %v770_v16 = vsel %vm769_vm6, %v758_v15, %v766_v14 }
 0x2cb   : >>> { %v776_v17 = vsel %vm1375_vm2, %v770_v16, 0.0 }
 0x2cc   : >>> { %784 = vst [vmem:[%s754_s19] sm:$0x3] %v776_v17 }
 0x2cd   : >>> { %v779_v19 = vpop.permute.xlu1 %778 }
 0x2ce   : >>> { %v783_v21 = vsel %vm769_vm6, %v759_v18, %v779_v19 }
 0x2cf   : >>> { %785 = vst [vmem:[%s755_s18] sm:$0x3] %v783_v21 }
 0x2d1   : >>> { %v790_v23 = vpop.permute.xlu1 %789 }
 0x2d2   : >>> { %v802_v24 = vsel %vm769_vm6, %v790_v23, %v798_v22 }
 0x2d3   : >>> { %v820_v25 = vld [vmem:[%s818_s29] ss:$0 sm:$0xff]  ;;  %v1523_v27 = vld [vmem:[%s818_s29 + $0x1] ss:$0 sm:$0xff]  ;;  %v808_v29 = vsel %vm1375_vm2, %v802_v24, 0.0 }
 0x2d4   : >>> { %v1522_v26 = vld [vmem:[%s818_s29 - $0x1] sm:$0x2]  ;;  %816 = vst [vmem:[%s2125_s28] sm:$0x3] %v808_v29  ;;  %s443_s28 = smov (%p499_p11), [#allocation23] }
 0x2d5   : >>> { %v827_v28 = vsel %vm826_vm14, %v820_v25, %v1522_v26  ;;  %v811_v31 = vpop.permute.xlu1 %810 }
 0x2d6   : >>> { %830 = vst [vmem:[%s818_s29] sm:$0x3] %v827_v28  ;;  %v844_v32 = vld [vmem:[%s842_s24] ss:$0 sm:$0xff]  ;;  %v1527_v34 = vld [vmem:[%s842_s24 + $0x1] ss:$0 sm:$0xff]  ;;  %v815_v35 = vsel %vm769_vm6, %v791_v30, %v811_v31 }
 0x2d7   : >>> { %v1526_v33 = vld [vmem:[%s842_s24 - $0x1] sm:$0x2]  ;;  %817 = vst [vmem:[%s2128_s14] sm:$0x3] %v815_v35 }
 0x2d8   : >>> { %v851_v36 = vsel %vm826_vm14, %v844_v32, %v1526_v33 }
 0x2d9   : >>> { %854 = vst [vmem:[%s842_s24] sm:$0x3] %v851_v36 }
 0x2db   : >>> { %v831_v37 = vld [vmem:[%s819_s25] ss:$0 sm:$0xff]  ;;  %v1525_v38 = vld [vmem:[%s819_s25 + $0x1] sm:$0x1] }
 0x2dc   : >>> { %1524 = vst [vmem:[%s818_s29 + $0x1] sm:$0x1] %v831_v37  ;;  %v839_v39 = vsel %vm838_vm15, %v1523_v27, %v1525_v38  ;;  %501 = sbr.rel (!%p499_p11) target bundleno = 300 (0x12c), region = 352 }
 0x2dd   : >>> { %841 = vst [vmem:[%s819_s25] sm:$0x3] %v839_v39 }
 0x2de   : >>> { %v855_v40 = vld [vmem:[%s843_s26] ss:$0 sm:$0xff]  ;;  %v1529_v41 = vld [vmem:[%s843_s26 + $0x1] sm:$0x1] }
 0x2df   : >>> { %1528 = vst [vmem:[%s842_s24 + $0x1] sm:$0x1] %v855_v40  ;;  %v863_v42 = vsel %vm838_vm15, %v1527_v34, %v1529_v41 }
 0x2e0   : >>> { %865 = vst [vmem:[%s843_s26] sm:$0x3] %v863_v42 }
 0x2e3   : >> { %v413_v43 = vld [vmem:[%s407_s10] sm:$0x3] }
 0x2e4   : >> { %v414_v45 = vsel %vm1375_vm2, %v413_v43, 0.0  ;;  %v449_v47 = vld [vmem:[%s443_s28] sm:$0x3] }
 0x2e5   : >> { %v415_v49 = vmul.f32 %v414_v45, %v414_v45  ;;  %v450_v51 = vsel %vm1375_vm2, %v449_v47, 0.0 }
 0x2e6   : >> { %v432_v44 = vld [vmem:[%s426_s20] sm:$0x3]  ;;  %v451_v53 = vmul.f32 %v450_v51, %v450_v51 }
 0x2e7   : >> { %v433_v46 = vsel %vm1375_vm2, %v432_v44, 0.0  ;;  %v466_v48 = vld [vmem:[%s460_s22] sm:$0x3]  ;;  %v419_v56 = vsel %vm418_vm7, 0.0, %v415_v49 }
 0x2e8   : >> { %v434_v50 = vmul.f32 %v433_v46, %v433_v46  ;;  %v467_v52 = vsel %vm1375_vm2, %v466_v48, 0.0 }
 0x2e9   : >> { %v468_v55 = vmul.f32 %v467_v52, %v467_v52 }
 0x2ea   : >> { %v436_v54 = vadd.f32 %v434_v50, %v415_v49  ;;  %v435_v57 = vadd.f32 %v434_v50, %v419_v56 }
 0x2eb   : >> { %v472_v60 = vsel %vm471_vm8, 0.0, %v468_v55 }
 0x2ec   : >> { %v453_v58 = vadd.f32 %v451_v53, %v436_v54  ;;  %v452_v59 = vadd.f32 %v451_v53, %v435_v57 }
 0x2ee   : >> { %v474_v61 = vadd.f32 %v468_v55, %v453_v58  ;;  %v473_v62 = vadd.f32 %v472_v60, %v452_v59 }
 0x2f0   : >> { %475 = vadd.xlane.f32.xlu0 %v474_v61 }
 0x2f4   : >> { %483 = vadd.xlane.f32.xlu0 %v473_v62 }
 0x37d   : >> { %v476_v63 = vpop.xlane.xlu0 %475 }
 0x37e   : >> { %v477_v0 = vrot.slane %v476_v63, 4 }
 0x380   : >> { %v478_v1 = vadd.f32 %v477_v0, %v476_v63 }
 0x381   : >> { %v484_v2 = vpop.xlane.xlu0 %483 }
 0x382   : >> { %v479_v3 = vrot.slane %v478_v1, 2  ;;  %v485_v4 = vrot.slane %v484_v2, 4 }
 0x384   : >> { %v486_v5 = vadd.f32 %v485_v4, %v484_v2  ;;  %v480_v8 = vadd.f32 %v479_v3, %v478_v1 }
 0x386   : >> { %v487_v9 = vrot.slane %v486_v5, 2  ;;  %v481_v11 = vrot.slane %v480_v8, 1 }
 0x388   : >> { %v488_v10 = vadd.f32 %v487_v9, %v486_v5  ;;  %v482_v14 = vadd.f32 %v481_v11, %v480_v8 }
 0x38a   : >> { %v489_v12 = vrot.slane %v488_v10, 1 }
 0x38c   : >> { %v490_v13 = vadd.f32 %v489_v12, %v488_v10 }
 0x38e   : >> { %1562 = vpush %v490_v13 }
 0x38f   : >> { %1564 = vpush %v482_v14 }
 0x3bf   : >> { %s1563_s21 = spop %1562 }
 0x3c0   : >> { %s1565_s19 = spop %1564 }
 0x3c1   : >> { %s493_s18 = smul.f32 1e-10, %s1565_s19 }
 0x3c3   : >> { %p494_p13 = scmp.le.f32.partialorder %s1563_s21, %s493_s18 }
 0x3c5   : >> { %p496_p0 = por %p495_p12, %p494_p13 }
 0x3c7   : > { %944 = sbr.rel (!%p496_p0) target bundleno = 299 (0x12b), region = 363 }
 0x3ce PF: > { %s949_s30 = smov [#allocation21]  ;;  %v953_v6 = vmov %v1979_v6  ;;  %v956_v7 = vmov %v1981_v7  ;;  %v992_v15 = vld [vmem:[#allocation10] sm:$0x3]  ;;  %v998_v16 = vld [vmem:[#allocation13] sm:$0x3]  ;;  %s2354_s17 = scalar_lea.vmem [#allocation11], %s1975_s16 }
 0x3cf   : > { %v973_v6 = vmov %v1979_v6  ;;  %v976_v7 = vmov %v1981_v7  ;;  %v957_v17 = vld [vmem:[%s949_s30] sm:$0x3]  ;;  %vm960_vm9 = vcmp.eq.s32.totalorder %v956_v7, %v953_v6  ;;  %994 = vst [vmem:[%s2354_s17] sm:$0x3] %v992_v15  ;;  %s2355_s14 = scalar_lea.vmem [#allocation14], %s1975_s16  ;;  %v1004_v18 = vld [vmem:[#allocation16] sm:$0x3] }
 0x3d0   : > { %vm980_vm10 = vcmp.eq.s32.totalorder %v976_v7, %v973_v6  ;;  %1000 = vst [vmem:[%s2355_s14] sm:$0x3] %v998_v16  ;;  %v1010_v19 = vld [vmem:[#allocation18] sm:$0x3]  ;;  %v961_v20 = vsel %vm960_vm9, %v957_v17, 0.0  ;;  %s969_s29 = smov [#allocation24]  ;;  %s2356_s24 = scalar_lea.vmem [#allocation17], %s1975_s16 }
 0x3d1   : > { %1006 = vst [vmem:[%s2356_s24] sm:$0x3] %v1004_v18  ;;  %s2357_s25 = scalar_lea.vmem [#allocation19], %s1975_s16  ;;  %v962_v21 = vrot.slane %v961_v20, 4  ;;  %v977_v22 = vld [vmem:[%s969_s29] sm:$0x3]  ;;  %s945_s26 = sand.u32 7, %s1808_s11  }
 0x3d2   : > { %1012 = vst [vmem:[%s2357_s25] sm:$0x3] %v1010_v19  ;;  %v981_v23 = vsel %vm980_vm10, %v977_v22, 0.0  ;;  %s2358_s0 = scalar_lea.vmem [#allocation8], %s1977_s27  ;;  %s2359_s20 = scalar_lea.vmem [#allocation9], %s1977_s27 }
 0x3d3   : > { %v963_v24 = vadd.f32 %v962_v21, %v961_v20  ;;  %v982_v25 = vrot.slane %v981_v23, 4  ;;  %s946_s10 = scalar_lea.vmem %s2358_s0, %s945_s26 [#allocation8]  ;;  %s948_s28 = scalar_lea.vmem %s2359_s20, %s945_s26 [#allocation9] }
 0x3d4   : > { %s950_s10 = smov %s946_s10  ;;  %s970_s28 = smov %s948_s28 }
 0x3d5   : > { %v964_v6 = vrot.slane %v963_v24, 2  ;;  %v983_v7 = vadd.f32 %v982_v25, %v981_v23  ;;  %s1022_s22 = scalar_lea.sflag [#allocation12], %s1971_s9  ;;  %s1027_s21 = scalar_lea.sflag [#allocation15], %s1971_s9 }
 0x3d6   : > { %s1037_s19 = scalar_lea.sflag [#allocation20], %s1971_s9  ;;  %s1044_s18 = sshrl.u32 (%p1939_p4), %s1808_s11, 3 }
 0x3d7   : > { %v965_v26 = vadd.f32 %v964_v6, %v963_v24  ;;  %v984_v27 = vrot.slane %v983_v7, 2  ;;  %s1544_s30 = sshll.u32 (%p1939_p4), %s1812_s12, 2  ;;  %s2360_s14 = scalar_lea.vmem (%p1939_p4), [#allocation8], %s1977_s27 }
 0x3d8   : > { %s1046_s17 = sadd.s32 (%p1939_p4), %s1544_s30, %s1044_s18 }
 0x3d9   : > { %v966_v28 = vrot.slane %v965_v26, 1  ;;  %v985_v29 = vadd.f32 %v984_v27, %v983_v7  ;;  %1043 = sbr.rel (!%p1939_p4) target bundleno = 998 (0x3e6), region = 158  ;;  %s1545_s29 = sshll.u32 (%p1939_p4), %s1046_s17, 3 }
 0x3da   : > { %s1048_s26 = scalar_lea.vmem (%p1939_p4), %s2331_s4, %s1545_s29 }
 0x3db   : > { %v967_v30 = vadd.f32 %v966_v28, %v965_v26  ;;  %v986_v31 = vrot.slane %v985_v29, 1 }
 0x3dd   : > { %968 = vst [vmem:[%s950_s10] sm:$0x1] %v967_v30  ;;  %v987_v32 = vadd.f32 %v986_v31, %v985_v29 }
 0x3df   : > { %988 = vst [vmem:[%s970_s28] sm:$0x1] %v987_v32 }
 0x3e4   : > { %v1076_v33 = vld [vmem:[%s2360_s14] sm:$0xff] }
 0x3e5   : > { %1077 = vst [vmem:[%s1048_s26] sm:$0xff] %v1076_v33 }
 0x3e6 PF: > { %1083 = sbr.rel (!%p1939_p4) target bundleno = 1006 (0x3ee), region = 196  ;;  %s1084_s0 = sshrl.u32 (%p1939_p4), %s1808_s11, 3 }
 0x3e7   : > { %s1546_s10 = sshll.u32 (%p1939_p4), %s1812_s12, 2  ;;  %s2361_s28 = scalar_lea.vmem (%p1939_p4), [#allocation9], %s1977_s27 }
 0x3e8   : > { %s1086_s20 = sadd.s32 (%p1939_p4), %s1546_s10, %s1084_s0 }
 0x3e9   : > { %s1547_s18 = sshll.u32 (%p1939_p4), %s1086_s20, 3 }
 0x3ea   : > { %s1088_s14 = scalar_lea.vmem (%p1939_p4), %s2332_s5, %s1547_s18 }
 0x3ec   : > { %v1116_v34 = vld [vmem:[%s2361_s28] sm:$0xff] (%p1939_p4) }
 0x3ed   : > { %1117 = vst [vmem:[%s1088_s14] sm:$0xff] %v1116_v34 }
 0x3ee PF: > { %s1548_s23 = sshll.u32 %s1812_s12, 5  ;;  %s2362_s29 = scalar_lea.vmem [#allocation14], %s1975_s16 }
 0x3ef   : > { %s1141_s24 = sshll.u32 %s2362_s29, 4  ;;  %s1125_s25 = sadd.s32 %s1808_s11, %s1548_s23  ;;  %s1142_s24 = int_to_ptr.vmem [resolvable:$true] %s1141_s24 }
 0x3f0   : > { %s2226_s26 = sshll.u32 %s1125_s25, 5  ;;  %s2363_s27 = scalar_lea.vmem [#allocation11], %s1975_s16 }
 0x3f1   : > { %s1129_s0 = sshll.u32 %s2363_s27, 4  ;;  %s1139_s28 = scalar_lea.hbm %s2334_s7, %s2226_s26  ;;  %s1130_s0 = int_to_ptr.vmem [resolvable:$true] %s1129_s0 }
 0x3f2   : > { %s2238_s17 = scalar_lea.hbm %s2333_s6, %s2226_s26  ;;  %s1654_s12 = scalar_lea.vmem %s1142_s24, 32 }
 0x3f3   : > { %p1655_p1 = scmp.ne.s32.totalorder %s1142_s24, %s1654_s12  ;;  %s1837_s14 = smov [#allocation14]  }
 0x3f4   : > { %s1656_s11 = sshll.u32 %s1837_s14, 4  ;;  %s1657_s11 = int_to_ptr.vmem [resolvable:$false] %s1656_s11 }
 0x3f5   : > { %s1658_s23 = scalar_lea.vmem %s1657_s11, 64  ;;  %p1659_p2 = scmp.lt.s32.totalorder %s1142_s24, %s1657_s11 }
 0x3f6   : > { %p1660_p3 = scmp.lt.s32.totalorder %s1658_s23, %s1654_s12 }
 0x3f8   : > { %p1661_p4 = por %p1660_p3, %p1659_p2 }
 0x3fa   : > { %p1662_p5 = pnand %p1661_p4, %p1655_p1 }
 0x3fc   : > { %1665 = shalt.err (!%p1662_p5)
}
 0x3fd   : > { %s1666_s29 = scalar_lea.hbm %s1139_s28, 32  ;;  %s1668_s10 = scalar_lea.hbm %s2334_s7, 2048 }
 0x3fe   : > { %p1667_p6 = scmp.ne.s32.totalorder %s1139_s28, %s1666_s29  ;;  %p1669_p7 = scmp.lt.u32.totalorder %s1139_s28, %s2334_s7 }
 0x3ff   : > { %p1670_p8 = scmp.lt.u32.totalorder %s1668_s10, %s1666_s29  ;;  %p1672_p10 = scmp.lt.u32.totalorder %s1666_s29, %s1139_s28 }
 0x401   : > { %p1671_p9 = por %p1670_p8, %p1669_p7 }
 0x403   : > { %p1673_p11 = por %p1672_p10, %p1671_p9 }
 0x405   : > { %p1674_p12 = pnand %p1673_p11, %p1667_p6 }
 0x407   : > { %1677 = shalt.err (!%p1674_p12)
}
 0x408   : > { %1144 = dma.vmem_to_hbm [thread:$0]  %s1142_s24, 32, %s1139_s28, %s1027_s21  }
 0x409   : > { %s2252_s14 = scalar_lea.hbm %s2335_s8, %s2226_s26  ;;  %s1678_s11 = scalar_lea.vmem %s1130_s0, 32 }
 0x40a   : > { %p1679_p13 = scmp.ne.s32.totalorder %s1130_s0, %s1678_s11  ;;  %s1838_s23 = smov [#allocation11]  }
 0x40b   : > { %s1680_s25 = sshll.u32 %s1838_s23, 4  ;;  %s1681_s25 = int_to_ptr.vmem [resolvable:$false] %s1680_s25 }
 0x40c   : > { %s1682_s27 = scalar_lea.vmem %s1681_s25, 64  ;;  %p1683_p0 = scmp.lt.s32.totalorder %s1130_s0, %s1681_s25 }
 0x40d   : > { %p1684_p1 = scmp.lt.s32.totalorder %s1682_s27, %s1678_s11 }
 0x40f   : > { %p1685_p2 = por %p1684_p1, %p1683_p0 }
 0x411   : > { %p1686_p3 = pnand %p1685_p2, %p1679_p13 }
 0x413   : > { %1689 = shalt.err (!%p1686_p3)
}
 0x414   : > { %s1690_s24 = scalar_lea.hbm %s2238_s17, 32  ;;  %s1692_s10 = scalar_lea.hbm %s2333_s6, 2048 }
 0x415   : > { %p1691_p4 = scmp.ne.s32.totalorder %s2238_s17, %s1690_s24  ;;  %p1693_p5 = scmp.lt.u32.totalorder %s2238_s17, %s2333_s6 }
 0x416   : > { %p1694_p6 = scmp.lt.u32.totalorder %s1692_s10, %s1690_s24  ;;  %p1696_p8 = scmp.lt.u32.totalorder %s1690_s24, %s2238_s17 }
 0x418   : > { %p1695_p7 = por %p1694_p6, %p1693_p5 }
 0x41a   : > { %p1697_p9 = por %p1696_p8, %p1695_p7 }
 0x41c   : > { %p1698_p10 = pnand %p1697_p9, %p1691_p4 }
 0x41e   : > { %1701 = shalt.err (!%p1698_p10)
}
 0x41f   : > { %1132 = dma.vmem_to_hbm [thread:$0]  %s1130_s0, 32, %s2238_s17, %s1022_s22  }
 0x420   : > { %s2364_s30 = scalar_lea.vmem [#allocation17], %s1975_s16  ;;  %s2365_s25 = sld [smem:[#allocation43_spill]] }
 0x421   : > { %s1153_s12 = sshll.u32 %s2364_s30, 4  ;;  %s2366_s28 = scalar_lea.vmem [#allocation19], %s1975_s16  ;;  %s1154_s12 = int_to_ptr.vmem [resolvable:$true] %s1153_s12 }
 0x422   : > { %s1165_s24 = sshll.u32 %s2366_s28, 4  ;;  %s1702_s29 = scalar_lea.vmem %s1154_s12, 32  ;;  %s1166_s24 = int_to_ptr.vmem [resolvable:$true] %s1165_s24 }
 0x423   : > { %p1703_p11 = scmp.ne.s32.totalorder %s1154_s12, %s1702_s29  ;;  %s1839_s10 = smov [#allocation17]  }
 0x424   : > { %s1704_s20 = sshll.u32 %s1839_s10, 4  ;;  %s1705_s20 = int_to_ptr.vmem [resolvable:$false] %s1704_s20 }
 0x425   : > { %s1706_s18 = scalar_lea.vmem %s1705_s20, 64  ;;  %p1707_p12 = scmp.lt.s32.totalorder %s1154_s12, %s1705_s20 }
 0x426   : > { %s2273_s27 = scalar_lea.hbm %s2365_s25, %s2226_s26  ;;  %p1708_p13 = scmp.lt.s32.totalorder %s1706_s18, %s1702_s29 }
 0x428   : > { %p1709_p0 = por %p1708_p13, %p1707_p12 }
 0x42a   : > { %p1710_p1 = pnand %p1709_p0, %p1703_p11 }
 0x42c   : > { %1713 = shalt.err (!%p1710_p1)
}
 0x42d   : > { %s1714_s22 = scalar_lea.hbm %s2252_s14, 32  ;;  %s1716_s0 = scalar_lea.hbm %s2335_s8, 2048 }
 0x42e   : > { %p1715_p2 = scmp.ne.s32.totalorder %s2252_s14, %s1714_s22  ;;  %p1717_p3 = scmp.lt.u32.totalorder %s2252_s14, %s2335_s8 }
 0x42f   : > { %p1718_p4 = scmp.lt.u32.totalorder %s1716_s0, %s1714_s22  ;;  %p1720_p6 = scmp.lt.u32.totalorder %s1714_s22, %s2252_s14 }
 0x431   : > { %p1719_p5 = por %p1718_p4, %p1717_p3 }
 0x433   : > { %p1721_p7 = por %p1720_p6, %p1719_p5 }
 0x435   : > { %p1722_p8 = pnand %p1721_p7, %p1715_p2 }
 0x437   : > { %1725 = shalt.err (!%p1722_p8)
}
 0x438   : > { %1156 = dma.vmem_to_hbm [thread:$0]  %s1154_s12, 32, %s2252_s14, %s1027_s21  }
 0x439   : > { %s1726_s11 = scalar_lea.vmem %s1166_s24, 32  ;;  %s1840_s23 = smov [#allocation19]  }
 0x43a   : > { %p1727_p9 = scmp.ne.s32.totalorder %s1166_s24, %s1726_s11  ;;  %s1728_s28 = sshll.u32 %s1840_s23, 4  ;;  %s1729_s28 = int_to_ptr.vmem [resolvable:$false] %s1728_s28 }
 0x43b   : > { %s1730_s29 = scalar_lea.vmem %s1729_s28, 64  ;;  %p1731_p10 = scmp.lt.s32.totalorder %s1166_s24, %s1729_s28 }
 0x43c   : > { %p1732_p11 = scmp.lt.s32.totalorder %s1730_s29, %s1726_s11 }
 0x43e   : > { %p1733_p12 = por %p1732_p11, %p1731_p10 }
 0x440   : > { %p1734_p13 = pnand %p1733_p12, %p1727_p9 }
 0x442   : > { %1737 = shalt.err (!%p1734_p13)
}
 0x443   : > { %s1738_s10 = scalar_lea.hbm %s2273_s27, 32  ;;  %s1740_s14 = scalar_lea.hbm %s2365_s25, 2048 }
 0x444   : > { %p1739_p0 = scmp.ne.s32.totalorder %s2273_s27, %s1738_s10  ;;  %p1741_p1 = scmp.lt.u32.totalorder %s2273_s27, %s2365_s25 }
 0x445   : > { %p1742_p2 = scmp.lt.u32.totalorder %s1740_s14, %s1738_s10  ;;  %p1744_p4 = scmp.lt.u32.totalorder %s1738_s10, %s2273_s27 }
 0x447   : > { %p1743_p3 = por %p1742_p2, %p1741_p1 }
 0x449   : > { %p1745_p5 = por %p1744_p4, %p1743_p3 }
 0x44b   : > { %p1746_p6 = pnand %p1745_p5, %p1739_p0 }
 0x44d   : > { %1749 = shalt.err (!%p1746_p6)
}
 0x44e   : > { %1168 = dma.vmem_to_hbm [thread:$0]  %s1166_s24, 32, %s2273_s27, %s1037_s19  }
 0x44f PF: > { %p1570_p7 = scmp.ge.s32.totalorder %s1824_s15, 2  ;;  %s2367_s22 = sadd.s32 4294967294, %s1824_s15  }
 0x450   : > { %s1188_s26 = sand.u32 1, %s2367_s22  }
 0x451   : > { %s1189_s16 = scalar_lea.sflag [#allocation12], %s1188_s26 }
 0x452   : > { %1787 = dma.done.wait (%p1570_p7), %s1189_s16, 32  }
 0x453   : > { %1789 = vsyncadd (%p1570_p7), %s1189_s16, 4294967264  ;;  %s1195_s0 = scalar_lea.sflag [#allocation15], %s1188_s26 }
 0x454   : > { %1791 = dma.done.wait (%p1570_p7), %s1195_s0, 64  }
 0x455   : > { %1793 = vsyncadd (%p1570_p7), %s1195_s0, 4294967232  ;;  %s1207_s17 = scalar_lea.sflag [#allocation20], %s1188_s26 }
 0x456   : > { %1795 = dma.done.wait (%p1570_p7), %s1207_s17, 32  }
 0x457   : > { %1797 = vsyncadd (%p1570_p7), %s1207_s17, 4294967264  ;;  %s25_s15 = sadd.s32 1, %s1824_s15   ;;  %s2368_s30 = sld [smem:[#allocation37_spill]] }
 0x458   : > { %p22_p8 = scmp.ge.s32.totalorder %s25_s15, 66   ;;  %s2369_s10 = sld [smem:[#allocation41_spill]] }
 0x459   : > { %s2370_s12 = sld [smem:[#allocation38_spill]]  ;;  %s2371_s9 = sld [smem:[#allocation39_spill]] }
 0x45a   : > { %s2372_s14 = sld [smem:[#allocation40_spill]]  ;;  %s2373_s11 = smov %s1816_s13 }
 0x45b   :  { %24 = sbr.rel (!%p22_p8) target bundleno = 12 (0xc), region = 374 }
 0x45f   : > { %s2374_s13 = smov %s2371_s9 }
 0x462   :  { %1212 = vsyncpa [#allocation12], 1 }
 0x463   :  { %1214 = vsyncpa [#allocation12 + $0x1], 1 }
 0x464   :  { %1215 = vsyncpa [#allocation15], 1 }
 0x465   :  { %1217 = vsyncpa [#allocation15 + $0x1], 1 }
 0x466   :  { %1218 = vsyncpa [#allocation20], 1 }
 0x467   :  { %1220 = vsyncpa [#allocation20 + $0x1], 1 }

// kernel: custom-call.9
= control target key start
LH: loop header
LB: loop body
LE: loop exit
PB: predicated region body
PF: predicated region fallthrough
CT: control target
= control target key end

     0   :  { %s2327_s0 = inlined_call_operand.vmem [shape: f32[2,64,2,2], index: 0, kind: input, shape index: {}]   ;;  %s2328_s1 = inlined_call_operand.vmem [shape: f32[2,64,2,2], index: 1, kind: input, shape index: {}]   ;;  %s2329_s2 = inlined_call_operand.vmem [shape: f32[2,64,2,2], index: 2, kind: input, shape index: {}]   ;;  %s2330_s3 = inlined_call_operand.vmem [shape: f32[2,64,2,2], index: 3, kind: input, shape index: {}]   ;;  %s2331_s4 = inlined_call_operand.vmem [shape: f32[2,64,2], index: 4, kind: output, shape index: {0}]   ;;  %s2332_s5 = inlined_call_operand.vmem [shape: f32[2,64,2], index: 5, kind: output, shape index: {1}]   ;;  %s2333_s6 = inlined_call_operand.hbm [shape: f32[2,64,2,2], index: 6, kind: output, shape index: {2}]   ;;  %s2334_s7 = inlined_call_operand.hbm [shape: f32[2,64,2,2], index: 7, kind: output, shape index: {3}]   ;;  %s2335_s8 = inlined_call_operand.hbm [shape: f32[2,64,2,2], index: 8, kind: output, shape index: {4}]   ;;  %s2336_s9 = inlined_call_operand.hbm [shape: f32[2,64,2,2], index: 9, kind: output, shape index: {5}]  }
   0x1   :  { %2343 = sst [smem:[#allocation42_spill]] %s2327_s0 }
   0x2   :  { %2344 = sst [smem:[#allocation43_spill]] %s2336_s9 }
   0x3   :  { %11 = vsyncpa [#allocation12], 0 }
   0x4   :  { %13 = vsyncpa [#allocation12 + $0x1], 0 }
   0x5   :  { %14 = vsyncpa [#allocation15], 0 }
   0x6   :  { %16 = vsyncpa [#allocation15 + $0x1], 0 }
   0x7   :  { %17 = vsyncpa [#allocation20], 0 }
   0x8   :  { %19 = vsyncpa [#allocation20 + $0x1], 0  ;;  %s1891_s30 = smov 0   ;;  %s1893_s10 = smov 0  }
   0x9   :  { %s1895_s11 = smov 0   ;;  %s1897_s12 = smov 0  }
   0xa   :  { %s1899_s13 = smov 0   ;;  %s1901_s14 = smov 0  }
   0xb   :  { %s1903_s15 = smov 0  }
   0xc LB: > { %2345 = sst [smem:[#allocation37_spill]] %s1804_s10  ;;  %s2337_s17 = sadd.s32 4294967295, %s1824_s15   ;;  %s1824_s15 = sphi %s1903_s15, %s25_s15   ;;  %s1820_s14 = sphi %s1901_s14, %s2372_s14   ;;  %s1816_s13 = sphi %s1899_s13, %s2374_s13   ;;  %s1812_s12 = sphi %s1897_s12, %s2370_s12   ;;  %s1808_s11 = sphi %s1895_s11, %s2373_s11   ;;  %s1804_s10 = sphi %s1893_s10, %s2369_s10   ;;  %s1800_s30 = sphi %s1891_s30, %s2368_s30  }
   0xd   : > { %2346 = sst [smem:[#allocation38_spill]] %s1820_s14  ;;  %s34_s18 = sadd.s32 1, %s1816_s13 }
   0xe   : > { %p35_p0 = scmp.ge.s32.totalorder %s34_s18, 64  ;;  %s37_s19 = sadd.s32 1, %s1820_s14 }
   0xf   : > { %s41_s20 = sshrl.u32 %s1816_s13, 3  ;;  %p58_p1 = scmp.ne.s32.totalorder %s1804_s10, %s1800_s30 }
  0x10   : > { %s2376_s18 = smov (%p35_p0, %s34_s18), 0  ;;  %s2378_s19 = smov (!%p35_p0, %s37_s19), %s1820_s14 }
  0x11   : > { %2347 = sst [smem:[#allocation39_spill]] %s2376_s18  ;;  %s42_s21 = sshrl.u32 %s2376_s18, 3 }
  0x12   : > { %p59_p2 = scmp.eq.s32.totalorder %s2337_s17, 127  ;;  %p39_p3 = scmp.ge.s32.totalorder %s2378_s19, 2 }
  0x13   : > { %s44_s22 = ssub.s32 %s41_s20, %s42_s21  ;;  %s48_s26 = sadd.s32 1, %s1804_s10 }
  0x14   : > { %p1939_p4 = por %p59_p2, %p58_p1  ;;  %s2380_s19 = smov (%p39_p3, %s2378_s19), 0 }
  0x15   : > { %2349 = sst [smem:[#allocation40_spill]] %s2380_s19  ;;  %s43_s24 = ssub.s32 %s1820_s14, %s2380_s19 }
  0x16   : > { %s45_s25 = sor.u32 %s44_s22, %s43_s24  ;;  %p1498_p6 = scmp.ge.s32.totalorder %s1824_s15, 128 }
  0x17   : > { %p46_p5 = scmp.eq.s32.totalorder %s45_s25, 0  ;;  %s113_s28 = sand.u32 (!%p1498_p6), 1, %s1824_s15  }
  0x18   : > { %111 = sbr.rel (%p1498_p6) target bundleno = 37 (0x25), region = 16  ;;  %s1500_s29 = sshll.u32 (!%p1498_p6), %s1820_s14, 6 }
  0x19   : > { %s1949_s27 = scalar_select %p46_p5, %s1804_s10, %s48_s26  }
  0x1a   : > { %s1499_s20 = sshll.u32 (!%p1498_p6), %s113_s28, 1  ;;  %s117_s21 = sadd.s32 (!%p1498_p6), %s1816_s13, %s1500_s29 }
  0x1b   : > { %2350 = sst [smem:[#allocation41_spill]] %s1949_s27  ;;  %s1501_s16 = sshll.u32 (!%p1498_p6), %s117_s21, 1 }
  0x1c   : > { %s2351_s0 = sld [smem:[#allocation42_spill]] (!%p1498_p6)  ;;  %s158_s25 = scalar_lea.vmem (!%p1498_p6), %s2328_s1, %s1501_s16 }
  0x1d   : > { %s115_s26 = scalar_lea.vmem (!%p1498_p6), [#allocation1], %s1499_s20  ;;  %v174_v1 = vld [vmem:[%s158_s25] sm:$0x3] (!%p1498_p6)  ;;  %s197_s9 = scalar_lea.vmem (!%p1498_p6), %s2329_s2, %s1501_s16 }
  0x1e   : > { %s154_s14 = scalar_lea.vmem (!%p1498_p6), [#allocation3], %s1499_s20  ;;  %v213_v2 = vld [vmem:[%s197_s9] sm:$0x3] (!%p1498_p6)  ;;  %s236_s17 = scalar_lea.vmem (!%p1498_p6), %s2330_s3, %s1501_s16 }
  0x1f   : > { %175 = vst [vmem:[%s154_s14] sm:$0x3] %v174_v1  ;;  %s193_s18 = scalar_lea.vmem [#allocation5], %s1499_s20  ;;  %v252_v3 = vld [vmem:[%s236_s17] sm:$0x3] }
  0x20   : > { %214 = vst [vmem:[%s193_s18] sm:$0x3] %v213_v2 }
  0x22   : > { %s119_s19 = scalar_lea.vmem %s2351_s0, %s1501_s16 }
  0x23   : > { %v135_v0 = vld [vmem:[%s119_s19] sm:$0x3]  ;;  %s232_s19 = scalar_lea.vmem [#allocation7], %s1499_s20 }
  0x24   : > { %136 = vst [vmem:[%s115_s26] sm:$0x3] %v135_v0  ;;  %253 = vst [vmem:[%s232_s19] sm:$0x3] %v252_v3 }
  0x25 PF: > { %p1511_p7 = scmp.ge.s32.totalorder %s1824_s15, 1  ;;  %p269_p8 = scmp.lt.s32.totalorder %s1824_s15, 129 }
  0x27   : > { %p270_p9 = pnand %p1511_p7, %p269_p8 }
  0x29   : > { %273 = sbr.rel (%p270_p9) target bundleno = 1103 (0x44f), region = 140 }
  0x30   : > { %s2352_s10 = sadd.s32 4294967295, %s1824_s15   ;;  %s310_s14 = sand.u32 1, %s1800_s30   ;;  %v374_v4 = vlaneseq  ;;  %v1834_v5 = vmov 0.0  }
  0x31   : > { %s1971_s9 = sand.u32 1, %s2352_s10   ;;  %s1977_s27 = sshll.u32 %s310_s14, 3  ;;  %369 = vst [vmem:[#allocation10] sm:$0xff] %v1834_v5  ;;  %370 = vst [vmem:[#allocation13] sm:$0xff] %v1834_v5 }
  0x32   : > { %s1975_s16 = sshll.u32 %s1971_s9, 1  ;;  %371 = vst [vmem:[#allocation16] sm:$0xff] %v1834_v5  ;;  %372 = vst [vmem:[#allocation18] sm:$0xff] %v1834_v5  ;;  %v1979_v6 = vand.u32 127, %v374_v4  ;;  %v1981_v7 = vshrl.u32 %v374_v4, 7  ;;  %s357_s24 = smov [#allocation21] }
  0x33   : > { %s294_s20 = scalar_lea.vmem [#allocation1], %s1975_s16  ;;  %s298_s30 = scalar_lea.vmem [#allocation3], %s1975_s16 }
  0x34   : > { %v341_v8 = vld [vmem:[%s294_s20] sm:$0x3]  ;;  %v345_v9 = vld [vmem:[%s298_s30] sm:$0x3]  ;;  %s302_s21 = scalar_lea.vmem [#allocation5], %s1975_s16  ;;  %s306_s22 = scalar_lea.vmem [#allocation7], %s1975_s16  ;;  %v376_v6 = vmov %v1979_v6  ;;  %v379_v7 = vmov %v1981_v7 }
  0x35   : > { %342 = vst [vmem:[#allocation0] sm:$0x3] %v341_v8  ;;  %346 = vst [vmem:[#allocation2] sm:$0x3] %v345_v9  ;;  %v349_v10 = vld [vmem:[%s302_s21] sm:$0x3]  ;;  %v389_v6 = vmov %v1979_v6  ;;  %v392_v7 = vmov %v1981_v7  ;;  %vm383_vm0 = vcmp.eq.s32.totalorder %v379_v7, %v376_v6 }
  0x36   : > { %v353_v11 = vld [vmem:[%s306_s22] sm:$0x3]  ;;  %350 = vst [vmem:[#allocation4] sm:$0x3] %v349_v10  ;;  %s360_s25 = smov [#allocation22]  ;;  %vm396_vm1 = vcmp.eq.s32.totalorder %v392_v7, %v389_v6  ;;  %s373_s26 = smov [#allocation10]  ;;  %v1370_v7 = vmov %v1981_v7 }
  0x37   : > { %354 = vst [vmem:[#allocation6] sm:$0x3] %v353_v11  ;;  %s386_s28 = smov [#allocation18]  ;;  %s363_s29 = smov [#allocation23]  ;;  %vm1375_vm2 = vcmp.lt.s32.totalorder %v1979_v6, 2  ;;  %v1367_v6 = vmov %v1979_v6 }
  0x38   : > { %s366_s17 = smov [#allocation24]  ;;  %v380_v12 = vld [vmem:[%s373_s26] sm:$0x3]  ;;  %s1371_s21 = smov [#allocation21]  ;;  %vm1380_vm3 = vcmp.eq.s32.totalorder %v1370_v7, %v1367_v6  ;;  %v1418_v6 = vmov %v1979_v6  ;;  %v1387_v7 = vmov %v1981_v7 }
  0x39   : > { %v393_v13 = vld [vmem:[%s386_s28] sm:$0x3]  ;;  %v384_v16 = vsel %vm383_vm0, 1.0, %v380_v12  ;;  %s1388_s22 = smov [#allocation22]  ;;  %v1384_v6 = vmov %v1979_v6  ;;  %v1421_v7 = vmov %v1981_v7 }
  0x3a   : > { %v397_v17 = vsel %vm396_vm1, 1.0, %v393_v13  ;;  %385 = vst [vmem:[%s373_s26] sm:$0x3] %v384_v16  ;;  %v1401_v6 = vmov %v1979_v6  ;;  %v1404_v7 = vmov %v1981_v7  ;;  %vm1431_vm4 = vcmp.eq.s32.totalorder %v1421_v7, %v1418_v6 }
  0x3b   : > { %398 = vst [vmem:[%s386_s28] sm:$0x3] %v397_v17 }
  0x3c   : > { %v358_v14 = vld [vmem:[#allocation0] sm:$0xff]  ;;  %v361_v15 = vld [vmem:[#allocation2] sm:$0xff] }
  0x3d   : > { %359 = vst [vmem:[%s357_s24] sm:$0xff] %v358_v14  ;;  %362 = vst [vmem:[%s360_s25] sm:$0xff] %v361_v15  ;;  %v364_v18 = vld [vmem:[#allocation4] sm:$0xff]  ;;  %s1405_s24 = smov [#allocation23]  ;;  %s1422_s25 = smov [#allocation24] }
  0x3e   : > { %v367_v19 = vld [vmem:[#allocation6] sm:$0xff]  ;;  %365 = vst [vmem:[%s363_s29] sm:$0xff] %v364_v18 }
  0x3f   : > { %368 = vst [vmem:[%s366_s17] sm:$0xff] %v367_v19 }
  0x44   : > { %v1377_v20 = vld [vmem:[%s1371_s21] sm:$0x3] }
  0x45   : > { %v1394_v21 = vld [vmem:[%s1388_s22] sm:$0x3]  ;;  %v1378_v22 = vsel %vm1375_vm2, %v1377_v20, 0.0 }
  0x46   : > { %v1395_v23 = vsel %vm1375_vm2, %v1394_v21, 0.0  ;;  %v1411_v24 = vld [vmem:[%s1405_s24] sm:$0x3]  ;;  %v1379_v26 = vmul.f32 %v1378_v22, %v1378_v22 }
  0x47   : > { %v1428_v25 = vld [vmem:[%s1422_s25] sm:$0x3]  ;;  %v1396_v27 = vmul.f32 %v1395_v23, %v1395_v23  ;;  %v1412_v28 = vsel %vm1375_vm2, %v1411_v24, 0.0 }
  0x48   : > { %v1429_v29 = vsel %vm1375_vm2, %v1428_v25, 0.0  ;;  %v1413_v30 = vmul.f32 %v1412_v28, %v1412_v28  ;;  %v1381_v33 = vsel %vm1380_vm3, 0.0, %v1379_v26 }
  0x49   : > { %v1398_v31 = vadd.f32 %v1396_v27, %v1379_v26  ;;  %v1430_v32 = vmul.f32 %v1429_v29, %v1429_v29  ;;  %v1397_v34 = vadd.f32 %v1396_v27, %v1381_v33 }
  0x4b   : > { %v1415_v35 = vadd.f32 %v1413_v30, %v1398_v31  ;;  %v1414_v36 = vadd.f32 %v1413_v30, %v1397_v34  ;;  %v1432_v37 = vsel %vm1431_vm4, 0.0, %v1430_v32 }
  0x4d   : > { %v1434_v38 = vadd.f32 %v1430_v32, %v1415_v35  ;;  %v1433_v39 = vadd.f32 %v1432_v37, %v1414_v36 }
  0x4f   : > { %1435 = vadd.xlane.f32.xlu0 %v1434_v38 }
  0x53   : > { %1443 = vadd.xlane.f32.xlu0 %v1433_v39 }
  0xdc   : > { %v1436_v40 = vpop.xlane.xlu0 %1435 }
  0xdd   : > { %v1437_v41 = vrot.slane %v1436_v40, 4 }
  0xdf   : > { %v1438_v42 = vadd.f32 %v1437_v41, %v1436_v40 }
  0xe0   : > { %v1444_v43 = vpop.xlane.xlu0 %1443 }
  0xe1   : > { %v1439_v44 = vrot.slane %v1438_v42, 2  ;;  %v1445_v45 = vrot.slane %v1444_v43, 4 }
  0xe3   : > { %v1446_v46 = vadd.f32 %v1445_v45, %v1444_v43  ;;  %v1440_v47 = vadd.f32 %v1439_v44, %v1438_v42 }
  0xe5   : > { %v1447_v48 = vrot.slane %v1446_v46, 2  ;;  %v1441_v50 = vrot.slane %v1440_v47, 1 }
  0xe7   : > { %v1448_v49 = vadd.f32 %v1447_v48, %v1446_v46  ;;  %v1442_v53 = vadd.f32 %v1441_v50, %v1440_v47 }
  0xe9   : > { %v1449_v51 = vrot.slane %v1448_v49, 1 }
  0xeb   : > { %v1450_v52 = vadd.f32 %v1449_v51, %v1448_v49 }
  0xed   : > { %1558 = vpush %v1450_v52 }
  0xee   : > { %1560 = vpush %v1442_v53 }
 0x11e   : > { %s1559_s26 = spop %1558 }
 0x11f   : > { %s1561_s28 = spop %1560 }
 0x120   : > { %s1453_s29 = smul.f32 1e-10, %s1561_s28 }
 0x122   : > { %p1454_p10 = scmp.le.f32.partialorder %s1559_s26, %s1453_s29 }
 0x123   : > { %s2015_s17 = smov (!%p1454_p10), 0  }
 0x124   : > { %1457 = sbr.rel (%p1454_p10) target bundleno = 974 (0x3ce), region = 357 }
 0x12b LB: >> { %s2020_s21 = smov 0   ;;  %s1828_s17 = sphi %s2015_s17, %s2353_s17  }
 0x12c LB: >>> { %s503_s22 = smov [#allocation21]  ;;  %v507_v6 = vmov %v1979_v6  ;;  %v510_v7 = vmov %v1981_v7  ;;  %s523_s24 = smov [#allocation22]  ;;  %vm826_vm14 = vcmp.eq.s32.totalorder %v1981_v7, 0  ;;  %vm838_vm15 = vcmp.eq.s32.totalorder %v1981_v7, 1  ;;  %s1832_s21 = sphi %s2020_s21, %s502_s21  }
 0x12d   : >>> { %v527_v6 = vmov %v1979_v6  ;;  %v530_v7 = vmov %v1981_v7  ;;  %v511_v54 = vld [vmem:[%s503_s22] sm:$0x3]  ;;  %vm514_vm5 = vcmp.eq.s32.totalorder %v510_v7, %v507_v6  ;;  %s543_s25 = smov [#allocation24]  ;;  %s504_s26 = smov [#allocation25] }
 0x12e   : >>> { %vm534_vm6 = vcmp.eq.s32.totalorder %v530_v7, %v527_v6  ;;  %v547_v6 = vmov %v1979_v6  ;;  %v550_v7 = vmov %v1981_v7  ;;  %v515_v55 = vsel %vm514_vm5, %v511_v54, 0.0  ;;  %v531_v56 = vld [vmem:[%s523_s24] sm:$0x3]  ;;  %s524_s28 = smov [#allocation26]  ;;  %s544_s29 = smov [#allocation27] }
 0x12f   : >>> { %vm554_vm7 = vcmp.eq.s32.totalorder %v550_v7, %v547_v6  ;;  %v516_v57 = vrot.slane %v515_v55, 4  ;;  %v535_v58 = vsel %vm534_vm6, %v531_v56, 0.0  ;;  %v551_v59 = vld [vmem:[%s543_s25] sm:$0x3]  ;;  %s567_s22 = smov [#allocation26]  ;;  %s565_s24 = smov [#allocation25]  ;;  %v616_v6 = vmov %v1979_v6 }
 0x130   : >>> { %v536_v60 = vrot.slane %v535_v58, 4  ;;  %v555_v61 = vsel %vm554_vm7, %v551_v59, 0.0  ;;  %s569_s25 = smov [#allocation27]  ;;  %v619_v7 = vmov %v1981_v7  ;;  %v631_v6 = vmov %v1979_v6  ;;  %s2037_s19 = smov [#allocation22] }
 0x131   : >>> { %v517_v62 = vadd.f32 %v516_v57, %v515_v55  ;;  %v556_v63 = vrot.slane %v555_v61, 4  ;;  %v634_v7 = vmov %v1981_v7  ;;  %vm621_vm12 = vcmp.eq.s32.totalorder %v619_v7, %v616_v6  ;;  %s2039_s18 = smov [#allocation23]  ;;  %s2045_s30 = smov [#allocation13]  ;;  %v651_v54 = vld [vmem:[%s2037_s19] sm:$0x3] }
 0x132   : >>> { %v537_v0 = vadd.f32 %v536_v60, %v535_v58  ;;  %vm636_vm13 = vcmp.eq.s32.totalorder %v634_v7, %v631_v6  ;;  %s866_s20 = smov [#allocation32]  ;;  %s2051_s14 = smov [#allocation18]  ;;  %v652_v55 = vld [vmem:[%s2039_s18] sm:$0x3]  ;;  %v729_v6 = vmov %v1979_v6  ;;  %v732_v7 = vmov %v1981_v7 }
 0x133   : >>> { %v518_v1 = vrot.slane %v517_v62, 2  ;;  %v557_v2 = vadd.f32 %v556_v63, %v555_v61  ;;  %v875_v58 = vld [vmem:[%s2045_s30] sm:$0x3]  ;;  %s644_s10 = smov [#allocation33]  ;;  %s868_s0 = smov [#allocation33]  ;;  %v743_v6 = vmov %v1979_v6  ;;  %v746_v7 = vmov %v1981_v7 }
 0x134   : >>> { %v538_v3 = vrot.slane %v537_v0, 2  ;;  %v877_v61 = vld [vmem:[%s2051_s14] sm:$0x3]  ;;  %vm736_vm0 = vcmp.eq.s32.totalorder %v732_v7, %v729_v6  ;;  %v702_v6 = vmov %v1979_v6  ;;  %v705_v7 = vmov %v1981_v7  ;;  %s502_s21 = sadd.s32 1, %s1832_s21  }
 0x135   : >>> { %v519_v4 = vadd.f32 %v518_v1, %v517_v62  ;;  %v558_v5 = vrot.slane %v557_v2, 2  ;;  %v716_v6 = vmov %v1979_v6  ;;  %v719_v7 = vmov %v1981_v7  ;;  %p499_p11 = scmp.ge.s32.totalorder %s502_s21, 3  }
 0x136   : >>> { %v539_v8 = vadd.f32 %v538_v3, %v537_v0  ;;  %vm751_vm1 = vcmp.eq.s32.totalorder %v746_v7, %v743_v6  ;;  %vm710_vm3 = vcmp.eq.s32.totalorder %v705_v7, %v702_v6  ;;  %vm723_vm4 = vcmp.eq.s32.totalorder %v719_v7, %v716_v6 }
 0x137   : >>> { %v520_v9 = vrot.slane %v519_v4, 1  ;;  %v559_v10 = vadd.f32 %v558_v5, %v557_v2  ;;  %vm765_vm5 = vcmp.eq.s32.totalorder %v1979_v6, 0  ;;  %vm769_vm6 = vcmp.eq.s32.totalorder %v1979_v6, 1 }
 0x138   : >>> { %v540_v11 = vrot.slane %v539_v8, 1  ;;  %v403_v6 = vmov (%p499_p11), %v1979_v6  ;;  %v406_v7 = vmov (%p499_p11), %v1981_v7 }
 0x139   : >>> { %v521_v12 = vadd.f32 %v520_v9, %v519_v4  ;;  %v560_v13 = vrot.slane %v559_v10, 1  ;;  %v456_v6 = vmov (%p499_p11), %v1979_v6  ;;  %vm418_vm7 = vcmp.eq.s32.totalorder (%p499_p11), %v406_v7, %v403_v6 }
 0x13a   : >>> { %v541_v14 = vadd.f32 %v540_v11, %v539_v8  ;;  %v459_v7 = vmov (%p499_p11), %v1981_v7  ;;  %v422_v6 = vmov (%p499_p11), %v1979_v6 }
 0x13b   : >>> { %522 = vst [vmem:[%s504_s26] sm:$0x1] %v521_v12  ;;  %v561_v15 = vadd.f32 %v560_v13, %v559_v10  ;;  %s604_s26 = smov [#allocation28]  ;;  %v425_v7 = vmov (%p499_p11), %v1981_v7  ;;  %v439_v6 = vmov (%p499_p11), %v1979_v6 }
 0x13c   : >>> { %542 = vst [vmem:[%s524_s28] sm:$0x1] %v541_v14  ;;  %s606_s28 = smov [#allocation29]  ;;  %v442_v7 = vmov (%p499_p11), %v1981_v7 }
 0x13d   : >>> { %562 = vst [vmem:[%s544_s29] sm:$0x1] %v561_v15  ;;  %s563_s29 = smov [#allocation30] }
 0x13e   : >>> { %s608_s29 = smov %s563_s29 }
 0x142   : >>> { %v566_v18 = vld [vmem:[%s565_s24] sm:$0xff]  ;;  %s612_s24 = smov [#allocation30] }
 0x143   : >>> { %v568_v16 = vld [vmem:[%s567_s22] sm:$0xff]  ;;  %v589_v31 = vand.u32 2147483647, %v566_v18  ;;  %s564_s22 = smov [#allocation31] }
 0x144   : >>> { %v572_v17 = vmul.f32 2.0, %v568_v16  ;;  %v570_v19 = vld [vmem:[%s569_s25] sm:$0xff]  ;;  %v590_v36 = vand.u32 2147483647, %v568_v16  ;;  %s610_s22 = smov %s564_s22  ;;  %s627_s25 = smov [#allocation31] }
 0x145   : >>> { %v571_v20 = vsub.f32 %v570_v19, %v566_v18  ;;  %v591_v32 = vand.u32 2147483647, %v570_v19 }
 0x146   : >>> { %1646 = vrcp.f32 %v572_v17 }
 0x147   : >>> { %v592_v35 = vmin.f32 %v589_v31, %v591_v32 }
 0x149   : >>> { %v593_v37 = vmul.f32 1.1920929e-08, %v592_v35 }
 0x14b   : >>> { %vm594_vm11 = vcmp.le.f32.partialorder %v590_v36, %v593_v37 }
 0x150   : >>> { %v1647_v21 = vpop.eup %1646 }
 0x151   : >>> { %v574_v22 = vmul.f32 %v1647_v21, %v571_v20 }
 0x153   : >>> { %v576_v23 = vmul.f32 %v574_v22, %v574_v22  ;;  %vm575_vm10 = vcmp.ge.f32.partialorder %v574_v22, 0.0 }
 0x155   : >>> { %v577_v24 = vadd.f32 1.0, %v576_v23 }
 0x157   : >>> { %1648 = vrsqrt.f32 %v577_v24  ;;  %vm580_vm8 = vcmp.eq.f32.partialorder %v577_v24, inf  ;;  %v583_v26 = vand.u32 2147483648, %v577_v24  ;;  %vm582_vm9 = vcmp.eq.f32.partialorder %v577_v24, 0.0 }
 0x161   : >>> { %v1649_v25 = vpop.eup %1648 }
 0x162   : >>> { %v579_v27 = vmul.f32 %v1649_v25, %v577_v24 }
 0x164   : >>> { %v581_v28 = vsel %vm580_vm8, %v577_v24, %v579_v27  ;;  %vm471_vm8 = vcmp.eq.s32.totalorder (%p499_p11), %v459_v7, %v456_v6 }
 0x165   : >>> { %v584_v29 = vsel %vm582_vm9, %v583_v26, %v581_v28 }
 0x166   : >>> { %v585_v30 = vxor.u32 2147483648, %v584_v29 }
 0x168   : >>> { %v586_v33 = vsel %vm575_vm10, %v584_v29, %v585_v30 }
 0x169   : >>> { %v587_v34 = vadd.f32 %v586_v33, %v574_v22 }
 0x16b   : >>> { %1650 = vrcp.f32 %v587_v34 }
 0x175   : >>> { %v1651_v38 = vpop.eup %1650 }
 0x176   : >>> { %v595_v39 = vsel %vm594_vm11, 0.0, %v1651_v38 }
 0x177   : >>> { %v596_v40 = vmul.f32 %v595_v39, %v595_v39  ;;  %v600_v41 = vmul.f32 %v595_v39, %v568_v16 }
 0x179   : >>> { %v597_v42 = vadd.f32 1.0, %v596_v40  ;;  %v601_v43 = vsub.f32 %v566_v18, %v600_v41  ;;  %v603_v44 = vadd.f32 %v600_v41, %v570_v19 }
 0x17b   : >>> { %1652 = vrsqrt.f32 %v597_v42  ;;  %605 = vst [vmem:[%s604_s26] sm:$0xff] %v601_v43  ;;  %607 = vst [vmem:[%s606_s28] sm:$0xff] %v603_v44  ;;  %s625_s26 = smov [#allocation32]  ;;  %s642_s28 = smov [#allocation32] }
 0x185   : >>> { %v1653_v45 = vpop.eup %1652 }
 0x186   : >>> { %609 = vst [vmem:[%s608_s29] sm:$0xff] %v1653_v45  ;;  %v599_v46 = vmul.f32 %v1653_v45, %v595_v39  ;;  %s2035_s29 = smov [#allocation21] }
 0x187   : >>> { %v650_v53 = vld [vmem:[%s2035_s29] sm:$0x3] }
 0x188   : >>> { %611 = vst [vmem:[%s610_s22] sm:$0xff] %v599_v46  ;;  %s640_s22 = smov [#allocation33] }
 0x18d   : >>> { %v613_v47 = vld [vmem:[%s612_s24] ss:$0 sm:$0xff]  ;;  %s2041_s24 = smov [#allocation24] }
 0x18e   : >>> { %v622_v48 = vsel %vm621_vm12, %v613_v47, 0.0  ;;  %v653_v56 = vld [vmem:[%s2041_s24] sm:$0x3] }
 0x18f   : >>> { %623 = vadd.xlane.f32.xlu0 %v622_v48  ;;  %v628_v49 = vld [vmem:[%s627_s25] ss:$0 sm:$0xff]  ;;  %s2043_s25 = smov [#allocation10] }
 0x190   : >>> { %v637_v50 = vsel %vm636_vm13, %v628_v49, 0.0  ;;  %v874_v57 = vld [vmem:[%s2043_s25] sm:$0x3] }
 0x193   : >>> { %638 = vadd.xlane.f32.xlu0 %v637_v50 }
 0x21c   : >>> { %v624_v51 = vpop.xlane.xlu0 %623 }
 0x21d   : >>> { %626 = vst [vmem:[%s625_s26] sm:$0xff] %v624_v51  ;;  %s2047_s26 = smov [#allocation16] }
 0x21e   : >>> { %v876_v59 = vld [vmem:[%s2047_s26] sm:$0x3] }
 0x220   : >>> { %v639_v52 = vpop.xlane.xlu0 %638 }
 0x221   : >>> { %641 = vst [vmem:[%s640_s22] sm:$0xff] %v639_v52  ;;  %s2071_s22 = smov [#allocation24] }
 0x224   : >>> { %v643_v60 = vld [vmem:[%s642_s28] sm:$0xff]  ;;  %s2069_s28 = smov [#allocation23] }
 0x225   : >>> { %v867_v62 = vld [vmem:[%s866_s20] sm:$0xff]  ;;  %v654_v63 = vmul.f32 %v650_v53, %v643_v60  ;;  %v657_v0 = vmul.f32 %v651_v54, %v643_v60  ;;  %v661_v1 = vmul.f32 %v652_v55, %v643_v60  ;;  %v664_v2 = vmul.f32 %v653_v56, %v643_v60  ;;  %s2067_s20 = smov [#allocation10] }
 0x226   : >>> { %v878_v3 = vmul.f32 %v874_v57, %v867_v62  ;;  %v881_v4 = vmul.f32 %v875_v58, %v867_v62  ;;  %v885_v5 = vmul.f32 %v876_v59, %v867_v62  ;;  %v888_v8 = vmul.f32 %v877_v61, %v867_v62 }
 0x228   : >>> { %v645_v9 = vld [vmem:[%s644_s10] sm:$0xff]  ;;  %s672_s10 = smov [#allocation31] }
 0x229   : >>> { %v869_v10 = vld [vmem:[%s868_s0] sm:$0xff]  ;;  %v655_v11 = vmul.f32 %v652_v55, %v645_v9  ;;  %v658_v12 = vmul.f32 %v653_v56, %v645_v9  ;;  %v660_v13 = vmul.f32 %v650_v53, %v645_v9  ;;  %v663_v14 = vmul.f32 %v651_v54, %v645_v9  ;;  %s670_s0 = smov [#allocation30] }
 0x22a   : >>> { %v879_v15 = vmul.f32 %v876_v59, %v869_v10  ;;  %v882_v16 = vmul.f32 %v877_v61, %v869_v10  ;;  %v884_v17 = vmul.f32 %v874_v57, %v869_v10  ;;  %v887_v18 = vmul.f32 %v875_v58, %v869_v10  ;;  %v671_v27 = vld [vmem:[%s670_s0] ss:$0 sm:$0xff]  ;;  %s699_s0 = smov [#allocation28] }
 0x22b   : >>> { %v656_v19 = vsub.f32 %v654_v63, %v655_v11  ;;  %v659_v20 = vsub.f32 %v657_v0, %v658_v12  ;;  %v662_v21 = vadd.f32 %v661_v1, %v660_v13  ;;  %v665_v22 = vadd.f32 %v664_v2, %v663_v14  ;;  %v673_v28 = vld [vmem:[%s672_s10] ss:$0 sm:$0xff]  ;;  %s698_s10 = smov [#allocation21] }
 0x22c   : >>> { %v880_v23 = vsub.f32 %v878_v3, %v879_v15  ;;  %v883_v24 = vsub.f32 %v881_v4, %v882_v16  ;;  %v886_v25 = vadd.f32 %v885_v5, %v884_v17  ;;  %v889_v26 = vadd.f32 %v888_v8, %v887_v18  ;;  %v706_v63 = vld [vmem:[%s699_s0] ss:$0 sm:$0xff]  ;;  %s942_s0 = sadd.s32 (%p499_p11), 1, %s1828_s17  }
 0x22d   : >>> { %667 = vst [vmem:[%s2037_s19] sm:$0x3] %v659_v20  ;;  %669 = vst [vmem:[%s2041_s24] sm:$0x3] %v665_v22  ;;  %s2073_s19 = smov [#allocation21]  ;;  %s740_s24 = smov [#allocation29] }
 0x22e   : >>> { %666 = vst [vmem:[%s2035_s29] sm:$0x3] %v656_v19  ;;  %668 = vst [vmem:[%s2039_s18] sm:$0x3] %v662_v21  ;;  %s2075_s18 = smov [#allocation16]  ;;  %s2083_s29 = smov [#allocation22]  ;;  %v747_v59 = vld [vmem:[%s740_s24] ss:$0 sm:$0xff] }
 0x22f   : >>> { %890 = vst [vmem:[%s2043_s25] sm:$0x3] %v880_v23  ;;  %891 = vst [vmem:[%s2045_s30] sm:$0x3] %v883_v24  ;;  %s2077_s30 = smov [#allocation13]  ;;  %s726_s25 = smov [#allocation23] }
 0x230   : >>> { %892 = vst [vmem:[%s2047_s26] sm:$0x3] %v886_v25  ;;  %893 = vst [vmem:[%s2051_s14] sm:$0x3] %v889_v26  ;;  %s2081_s14 = smov [#allocation18]  ;;  %s739_s26 = smov [#allocation24] }
 0x231   : >>> { %s842_s24 = smov [#allocation22]  ;;  %p495_p12 = scmp.ge.s32.totalorder (%p499_p11), %s942_s0, 15 }
 0x232   : >> { %s2353_s17 = smov (%p499_p11), %s942_s0 }
 0x234   : >>> { %v681_v30 = vld [vmem:[%s2071_s22] sm:$0x3] }
 0x235   : >>> { %v680_v29 = vld [vmem:[%s2069_s28] sm:$0x3]  ;;  %v689_v36 = vmul.f32 %v681_v30, %v673_v28  ;;  %v692_v42 = vmul.f32 %v681_v30, %v671_v27 }
 0x236   : >>> { %v678_v31 = vld [vmem:[%s2073_s19] sm:$0x3]  ;;  %v688_v35 = vmul.f32 %v680_v29, %v671_v27  ;;  %v691_v37 = vmul.f32 %v680_v29, %v673_v28 }
 0x237   : >>> { %v896_v32 = vld [vmem:[%s2067_s20] ss:$0 sm:$0xff]  ;;  %v1531_v34 = vld [vmem:[%s2067_s20 + $0x1] ss:$0 sm:$0xff]  ;;  %v682_v48 = vmul.f32 %v678_v31, %v671_v27  ;;  %v685_v49 = vmul.f32 %v678_v31, %v673_v28 }
 0x238   : >>> { %v1530_v33 = vld [vmem:[%s2067_s20 - $0x1] sm:$0x2]  ;;  %v1533_v40 = vld [vmem:[%s2075_s18 + $0x1] sm:$0x1]  ;;  %v690_v47 = vsub.f32 %v688_v35, %v689_v36  ;;  %v693_v53 = vadd.f32 %v692_v42, %v691_v37 }
 0x239   : >>> { %v903_v38 = vsel %vm826_vm14, %v896_v32, %v1530_v33  ;;  %v907_v39 = vld [vmem:[%s2075_s18] ss:$0 sm:$0xff]  ;;  %v915_v43 = vsel %vm838_vm15, %v1531_v34, %v1533_v40  ;;  %v1535_v45 = vld [vmem:[%s2077_s30 + $0x1] ss:$0 sm:$0xff] }
 0x23a   : >>> { %v920_v41 = vld [vmem:[%s2077_s30] ss:$0 sm:$0xff]  ;;  %906 = vst [vmem:[%s2067_s20] sm:$0x3] %v903_v38  ;;  %917 = vst [vmem:[%s2075_s18] sm:$0x3] %v915_v43  ;;  %v1537_v51 = vld [vmem:[%s2081_s14 + $0x1] sm:$0x1] }
 0x23b   : >>> { %v1534_v44 = vld [vmem:[%s2077_s30 - $0x1] sm:$0x2]  ;;  %1532 = vst [vmem:[%s2067_s20 + $0x1] sm:$0x1] %v907_v39  ;;  %v939_v54 = vsel %vm838_vm15, %v1535_v45, %v1537_v51  ;;  %696 = vst [vmem:[%s2069_s28] sm:$0x3] %v690_v47  ;;  %s713_s20 = smov [#allocation22] }
 0x23c   : >>> { %v931_v46 = vld [vmem:[%s2081_s14] ss:$0 sm:$0xff]  ;;  %v927_v50 = vsel %vm826_vm14, %v920_v41, %v1534_v44  ;;  %697 = vst [vmem:[%s2071_s22] sm:$0x3] %v693_v53  ;;  %s2125_s28 = smov [#allocation23]  ;;  %s1835_s22 = smov 1  }
 0x23d   : >>> { %v679_v52 = vld [vmem:[%s2083_s29] sm:$0x3]  ;;  %930 = vst [vmem:[%s2077_s30] sm:$0x3] %v927_v50  ;;  %941 = vst [vmem:[%s2081_s14] sm:$0x3] %v939_v54  ;;  %s755_s18 = smov [#allocation22]  ;;  %s2128_s14 = smov [#allocation24] }
 0x23e   : >>> { %v683_v55 = vmul.f32 %v679_v52, %v673_v28  ;;  %v686_v56 = vmul.f32 %v679_v52, %v671_v27  ;;  %1536 = vst [vmem:[%s2077_s30 + $0x1] sm:$0x1] %v931_v46  ;;  %s1836_s30 = smov 127  }
 0x240   : >>> { %v684_v57 = vsub.f32 %v682_v48, %v683_v55  ;;  %v687_v58 = vadd.f32 %v686_v56, %v685_v49 }
 0x242   : >>> { %694 = vst [vmem:[%s2073_s19] sm:$0x3] %v684_v57  ;;  %695 = vst [vmem:[%s2083_s29] sm:$0x3] %v687_v58  ;;  %v733_v60 = vld [vmem:[%s726_s25] sm:$0x3]  ;;  %s754_s19 = smov [#allocation21]  ;;  %s818_s29 = smov [#allocation21] }
 0x243   : >>> { %v737_v61 = vsel %vm736_vm0, 0.0, %v733_v60  ;;  %v748_v62 = vld [vmem:[%s739_s26] sm:$0x3] }
 0x244   : >>> { %738 = vst [vmem:[%s726_s25] sm:$0x3] %v737_v61  ;;  %v752_v0 = vsel %vm751_vm1, %v747_v59, %v748_v62  ;;  %s819_s25 = smov [#allocation23] }
 0x245   : >>> { %753 = vst [vmem:[%s739_s26] sm:$0x3] %v752_v0  ;;  %s843_s26 = smov [#allocation24] }
 0x249   : >>> { %v707_v1 = vld [vmem:[%s698_s10] sm:$0x3] }
 0x24a   : >>> { %v720_v2 = vld [vmem:[%s713_s20] sm:$0x3]  ;;  %v711_v3 = vsel %vm710_vm3, %v706_v63, %v707_v1 }
 0x24b   : >>> { %v724_v4 = vsel %vm723_vm4, 0.0, %v720_v2  ;;  %712 = vst [vmem:[%s698_s10] sm:$0x3] %v711_v3  ;;  %v792_v5 = vld [vmem:[%s2125_s28] sm:$0x3]  ;;  %s407_s10 = smov (%p499_p11), [#allocation21] }
 0x24c   : >>> { %725 = vst [vmem:[%s713_s20] sm:$0x3] %v724_v4  ;;  %793 = vrot.lane.b32.xlu0 %v792_v5, %s1835_s22  ;;  %v788_v11 = vld [vmem:[%s2128_s14] sm:$0x3]  ;;  %s426_s20 = smov (%p499_p11), [#allocation22] }
 0x24d   : >>> { %v809_v12 = vld [vmem:[%s2128_s14] sm:$0x3] }
 0x24e   : >>> { %v791_v30 = vld [vmem:[%s2125_s28] sm:$0x3] }
 0x252   : >>> { %v760_v8 = vld [vmem:[%s754_s19] sm:$0x3] }
 0x253   : >>> { %761 = vrot.lane.b32.xlu1 %v760_v8, %s1835_s22  ;;  %v756_v9 = vld [vmem:[%s755_s18] sm:$0x3] }
 0x254   : >>> { %v777_v10 = vld [vmem:[%s755_s18] sm:$0x3] }
 0x255   : >>> { %v759_v18 = vld [vmem:[%s754_s19] sm:$0x3] }
 0x257   : >>> { %757 = vrot.lane.b32.xlu1 %v756_v9, %s1835_s22 }
 0x25b   : >>> { %778 = vrot.lane.b32.xlu1 %v777_v10, %s1836_s30 }
 0x25f   : >>> { %789 = vrot.lane.b32.xlu1 %v788_v11, %s1835_s22  ;;  %s460_s22 = smov (%p499_p11), [#allocation24] }
 0x263   : >>> { %810 = vrot.lane.b32.xlu1 %v809_v12, %s1836_s30 }
 0x2be   : >>> { %v794_v20 = vpop.permute.xlu0 %793 }
 0x2bf   : >>> { %v798_v22 = vsel %vm765_vm5, %v792_v5, %v794_v20 }
 0x2c5   : >>> { %v762_v13 = vpop.permute.xlu1 %761 }
 0x2c6   : >>> { %v766_v14 = vsel %vm765_vm5, %v760_v8, %v762_v13 }
 0x2c9   : >>> { %v758_v15 = vpop.permute.xlu1 %757 }
 0x2ca   : >>> { %v770_v16 = vsel %vm769_vm6, %v758_v15, %v766_v14 }
 0x2cb   : >>> { %v776_v17 = vsel %vm1375_vm2, %v770_v16, 0.0 }
 0x2cc   : >>> { %784 = vst [vmem:[%s754_s19] sm:$0x3] %v776_v17 }
 0x2cd   : >>> { %v779_v19 = vpop.permute.xlu1 %778 }
 0x2ce   : >>> { %v783_v21 = vsel %vm769_vm6, %v759_v18, %v779_v19 }
 0x2cf   : >>> { %785 = vst [vmem:[%s755_s18] sm:$0x3] %v783_v21 }
 0x2d1   : >>> { %v790_v23 = vpop.permute.xlu1 %789 }
 0x2d2   : >>> { %v802_v24 = vsel %vm769_vm6, %v790_v23, %v798_v22 }
 0x2d3   : >>> { %v820_v25 = vld [vmem:[%s818_s29] ss:$0 sm:$0xff]  ;;  %v1523_v27 = vld [vmem:[%s818_s29 + $0x1] ss:$0 sm:$0xff]  ;;  %v808_v29 = vsel %vm1375_vm2, %v802_v24, 0.0 }
 0x2d4   : >>> { %v1522_v26 = vld [vmem:[%s818_s29 - $0x1] sm:$0x2]  ;;  %816 = vst [vmem:[%s2125_s28] sm:$0x3] %v808_v29  ;;  %s443_s28 = smov (%p499_p11), [#allocation23] }
 0x2d5   : >>> { %v827_v28 = vsel %vm826_vm14, %v820_v25, %v1522_v26  ;;  %v811_v31 = vpop.permute.xlu1 %810 }
 0x2d6   : >>> { %830 = vst [vmem:[%s818_s29] sm:$0x3] %v827_v28  ;;  %v844_v32 = vld [vmem:[%s842_s24] ss:$0 sm:$0xff]  ;;  %v1527_v34 = vld [vmem:[%s842_s24 + $0x1] ss:$0 sm:$0xff]  ;;  %v815_v35 = vsel %vm769_vm6, %v791_v30, %v811_v31 }
 0x2d7   : >>> { %v1526_v33 = vld [vmem:[%s842_s24 - $0x1] sm:$0x2]  ;;  %817 = vst [vmem:[%s2128_s14] sm:$0x3] %v815_v35 }
 0x2d8   : >>> { %v851_v36 = vsel %vm826_vm14, %v844_v32, %v1526_v33 }
 0x2d9   : >>> { %854 = vst [vmem:[%s842_s24] sm:$0x3] %v851_v36 }
 0x2db   : >>> { %v831_v37 = vld [vmem:[%s819_s25] ss:$0 sm:$0xff]  ;;  %v1525_v38 = vld [vmem:[%s819_s25 + $0x1] sm:$0x1] }
 0x2dc   : >>> { %1524 = vst [vmem:[%s818_s29 + $0x1] sm:$0x1] %v831_v37  ;;  %v839_v39 = vsel %vm838_vm15, %v1523_v27, %v1525_v38  ;;  %501 = sbr.rel (!%p499_p11) target bundleno = 300 (0x12c), region = 352 }
 0x2dd   : >>> { %841 = vst [vmem:[%s819_s25] sm:$0x3] %v839_v39 }
 0x2de   : >>> { %v855_v40 = vld [vmem:[%s843_s26] ss:$0 sm:$0xff]  ;;  %v1529_v41 = vld [vmem:[%s843_s26 + $0x1] sm:$0x1] }
 0x2df   : >>> { %1528 = vst [vmem:[%s842_s24 + $0x1] sm:$0x1] %v855_v40  ;;  %v863_v42 = vsel %vm838_vm15, %v1527_v34, %v1529_v41 }
 0x2e0   : >>> { %865 = vst [vmem:[%s843_s26] sm:$0x3] %v863_v42 }
 0x2e3   : >> { %v413_v43 = vld [vmem:[%s407_s10] sm:$0x3] }
 0x2e4   : >> { %v414_v45 = vsel %vm1375_vm2, %v413_v43, 0.0  ;;  %v449_v47 = vld [vmem:[%s443_s28] sm:$0x3] }
 0x2e5   : >> { %v415_v49 = vmul.f32 %v414_v45, %v414_v45  ;;  %v450_v51 = vsel %vm1375_vm2, %v449_v47, 0.0 }
 0x2e6   : >> { %v432_v44 = vld [vmem:[%s426_s20] sm:$0x3]  ;;  %v451_v53 = vmul.f32 %v450_v51, %v450_v51 }
 0x2e7   : >> { %v433_v46 = vsel %vm1375_vm2, %v432_v44, 0.0  ;;  %v466_v48 = vld [vmem:[%s460_s22] sm:$0x3]  ;;  %v419_v56 = vsel %vm418_vm7, 0.0, %v415_v49 }
 0x2e8   : >> { %v434_v50 = vmul.f32 %v433_v46, %v433_v46  ;;  %v467_v52 = vsel %vm1375_vm2, %v466_v48, 0.0 }
 0x2e9   : >> { %v468_v55 = vmul.f32 %v467_v52, %v467_v52 }
 0x2ea   : >> { %v436_v54 = vadd.f32 %v434_v50, %v415_v49  ;;  %v435_v57 = vadd.f32 %v434_v50, %v419_v56 }
 0x2eb   : >> { %v472_v60 = vsel %vm471_vm8, 0.0, %v468_v55 }
 0x2ec   : >> { %v453_v58 = vadd.f32 %v451_v53, %v436_v54  ;;  %v452_v59 = vadd.f32 %v451_v53, %v435_v57 }
 0x2ee   : >> { %v474_v61 = vadd.f32 %v468_v55, %v453_v58  ;;  %v473_v62 = vadd.f32 %v472_v60, %v452_v59 }
 0x2f0   : >> { %475 = vadd.xlane.f32.xlu0 %v474_v61 }
 0x2f4   : >> { %483 = vadd.xlane.f32.xlu0 %v473_v62 }
 0x37d   : >> { %v476_v63 = vpop.xlane.xlu0 %475 }
 0x37e   : >> { %v477_v0 = vrot.slane %v476_v63, 4 }
 0x380   : >> { %v478_v1 = vadd.f32 %v477_v0, %v476_v63 }
 0x381   : >> { %v484_v2 = vpop.xlane.xlu0 %483 }
 0x382   : >> { %v479_v3 = vrot.slane %v478_v1, 2  ;;  %v485_v4 = vrot.slane %v484_v2, 4 }
 0x384   : >> { %v486_v5 = vadd.f32 %v485_v4, %v484_v2  ;;  %v480_v8 = vadd.f32 %v479_v3, %v478_v1 }
 0x386   : >> { %v487_v9 = vrot.slane %v486_v5, 2  ;;  %v481_v11 = vrot.slane %v480_v8, 1 }
 0x388   : >> { %v488_v10 = vadd.f32 %v487_v9, %v486_v5  ;;  %v482_v14 = vadd.f32 %v481_v11, %v480_v8 }
 0x38a   : >> { %v489_v12 = vrot.slane %v488_v10, 1 }
 0x38c   : >> { %v490_v13 = vadd.f32 %v489_v12, %v488_v10 }
 0x38e   : >> { %1562 = vpush %v490_v13 }
 0x38f   : >> { %1564 = vpush %v482_v14 }
 0x3bf   : >> { %s1563_s21 = spop %1562 }
 0x3c0   : >> { %s1565_s19 = spop %1564 }
 0x3c1   : >> { %s493_s18 = smul.f32 1e-10, %s1565_s19 }
 0x3c3   : >> { %p494_p13 = scmp.le.f32.partialorder %s1563_s21, %s493_s18 }
 0x3c5   : >> { %p496_p0 = por %p495_p12, %p494_p13 }
 0x3c7   : > { %944 = sbr.rel (!%p496_p0) target bundleno = 299 (0x12b), region = 363 }
 0x3ce PF: > { %s949_s30 = smov [#allocation21]  ;;  %v953_v6 = vmov %v1979_v6  ;;  %v956_v7 = vmov %v1981_v7  ;;  %v992_v15 = vld [vmem:[#allocation10] sm:$0x3]  ;;  %v998_v16 = vld [vmem:[#allocation13] sm:$0x3]  ;;  %s2354_s17 = scalar_lea.vmem [#allocation11], %s1975_s16 }
 0x3cf   : > { %v973_v6 = vmov %v1979_v6  ;;  %v976_v7 = vmov %v1981_v7  ;;  %v957_v17 = vld [vmem:[%s949_s30] sm:$0x3]  ;;  %vm960_vm9 = vcmp.eq.s32.totalorder %v956_v7, %v953_v6  ;;  %994 = vst [vmem:[%s2354_s17] sm:$0x3] %v992_v15  ;;  %s2355_s14 = scalar_lea.vmem [#allocation14], %s1975_s16  ;;  %v1004_v18 = vld [vmem:[#allocation16] sm:$0x3] }
 0x3d0   : > { %vm980_vm10 = vcmp.eq.s32.totalorder %v976_v7, %v973_v6  ;;  %1000 = vst [vmem:[%s2355_s14] sm:$0x3] %v998_v16  ;;  %v1010_v19 = vld [vmem:[#allocation18] sm:$0x3]  ;;  %v961_v20 = vsel %vm960_vm9, %v957_v17, 0.0  ;;  %s969_s29 = smov [#allocation24]  ;;  %s2356_s24 = scalar_lea.vmem [#allocation17], %s1975_s16 }
 0x3d1   : > { %1006 = vst [vmem:[%s2356_s24] sm:$0x3] %v1004_v18  ;;  %s2357_s25 = scalar_lea.vmem [#allocation19], %s1975_s16  ;;  %v962_v21 = vrot.slane %v961_v20, 4  ;;  %v977_v22 = vld [vmem:[%s969_s29] sm:$0x3]  ;;  %s945_s26 = sand.u32 7, %s1808_s11  }
 0x3d2   : > { %1012 = vst [vmem:[%s2357_s25] sm:$0x3] %v1010_v19  ;;  %v981_v23 = vsel %vm980_vm10, %v977_v22, 0.0  ;;  %s2358_s0 = scalar_lea.vmem [#allocation8], %s1977_s27  ;;  %s2359_s20 = scalar_lea.vmem [#allocation9], %s1977_s27 }
 0x3d3   : > { %v963_v24 = vadd.f32 %v962_v21, %v961_v20  ;;  %v982_v25 = vrot.slane %v981_v23, 4  ;;  %s946_s10 = scalar_lea.vmem %s2358_s0, %s945_s26 [#allocation8]  ;;  %s948_s28 = scalar_lea.vmem %s2359_s20, %s945_s26 [#allocation9] }
 0x3d4   : > { %s950_s10 = smov %s946_s10  ;;  %s970_s28 = smov %s948_s28 }
 0x3d5   : > { %v964_v6 = vrot.slane %v963_v24, 2  ;;  %v983_v7 = vadd.f32 %v982_v25, %v981_v23  ;;  %s1022_s22 = scalar_lea.sflag [#allocation12], %s1971_s9  ;;  %s1027_s21 = scalar_lea.sflag [#allocation15], %s1971_s9 }
 0x3d6   : > { %s1037_s19 = scalar_lea.sflag [#allocation20], %s1971_s9  ;;  %s1044_s18 = sshrl.u32 (%p1939_p4), %s1808_s11, 3 }
 0x3d7   : > { %v965_v26 = vadd.f32 %v964_v6, %v963_v24  ;;  %v984_v27 = vrot.slane %v983_v7, 2  ;;  %s1544_s30 = sshll.u32 (%p1939_p4), %s1812_s12, 3  ;;  %s2360_s14 = scalar_lea.vmem (%p1939_p4), [#allocation8], %s1977_s27 }
 0x3d8   : > { %s1046_s17 = sadd.s32 (%p1939_p4), %s1544_s30, %s1044_s18 }
 0x3d9   : > { %v966_v28 = vrot.slane %v965_v26, 1  ;;  %v985_v29 = vadd.f32 %v984_v27, %v983_v7  ;;  %1043 = sbr.rel (!%p1939_p4) target bundleno = 998 (0x3e6), region = 158  ;;  %s1545_s29 = sshll.u32 (%p1939_p4), %s1046_s17, 3 }
 0x3da   : > { %s1048_s26 = scalar_lea.vmem (%p1939_p4), %s2331_s4, %s1545_s29 }
 0x3db   : > { %v967_v30 = vadd.f32 %v966_v28, %v965_v26  ;;  %v986_v31 = vrot.slane %v985_v29, 1 }
 0x3dd   : > { %968 = vst [vmem:[%s950_s10] sm:$0x1] %v967_v30  ;;  %v987_v32 = vadd.f32 %v986_v31, %v985_v29 }
 0x3df   : > { %988 = vst [vmem:[%s970_s28] sm:$0x1] %v987_v32 }
 0x3e4   : > { %v1076_v33 = vld [vmem:[%s2360_s14] sm:$0xff] }
 0x3e5   : > { %1077 = vst [vmem:[%s1048_s26] sm:$0xff] %v1076_v33 }
 0x3e6 PF: > { %1083 = sbr.rel (!%p1939_p4) target bundleno = 1006 (0x3ee), region = 196  ;;  %s1084_s0 = sshrl.u32 (%p1939_p4), %s1808_s11, 3 }
 0x3e7   : > { %s1546_s10 = sshll.u32 (%p1939_p4), %s1812_s12, 3  ;;  %s2361_s28 = scalar_lea.vmem (%p1939_p4), [#allocation9], %s1977_s27 }
 0x3e8   : > { %s1086_s20 = sadd.s32 (%p1939_p4), %s1546_s10, %s1084_s0 }
 0x3e9   : > { %s1547_s18 = sshll.u32 (%p1939_p4), %s1086_s20, 3 }
 0x3ea   : > { %s1088_s14 = scalar_lea.vmem (%p1939_p4), %s2332_s5, %s1547_s18 }
 0x3ec   : > { %v1116_v34 = vld [vmem:[%s2361_s28] sm:$0xff] (%p1939_p4) }
 0x3ed   : > { %1117 = vst [vmem:[%s1088_s14] sm:$0xff] %v1116_v34 }
 0x3ee PF: > { %s1548_s23 = sshll.u32 %s1812_s12, 6  ;;  %s2362_s29 = scalar_lea.vmem [#allocation14], %s1975_s16 }
 0x3ef   : > { %s1141_s24 = sshll.u32 %s2362_s29, 4  ;;  %s1125_s25 = sadd.s32 %s1808_s11, %s1548_s23  ;;  %s1142_s24 = int_to_ptr.vmem [resolvable:$true] %s1141_s24 }
 0x3f0   : > { %s2226_s26 = sshll.u32 %s1125_s25, 5  ;;  %s2363_s27 = scalar_lea.vmem [#allocation11], %s1975_s16 }
 0x3f1   : > { %s1129_s0 = sshll.u32 %s2363_s27, 4  ;;  %s1139_s28 = scalar_lea.hbm %s2334_s7, %s2226_s26  ;;  %s1130_s0 = int_to_ptr.vmem [resolvable:$true] %s1129_s0 }
 0x3f2   : > { %s2238_s17 = scalar_lea.hbm %s2333_s6, %s2226_s26  ;;  %s1654_s12 = scalar_lea.vmem %s1142_s24, 32 }
 0x3f3   : > { %p1655_p1 = scmp.ne.s32.totalorder %s1142_s24, %s1654_s12  ;;  %s1837_s14 = smov [#allocation14]  }
 0x3f4   : > { %s1656_s11 = sshll.u32 %s1837_s14, 4  ;;  %s1657_s11 = int_to_ptr.vmem [resolvable:$false] %s1656_s11 }
 0x3f5   : > { %s1658_s23 = scalar_lea.vmem %s1657_s11, 64  ;;  %p1659_p2 = scmp.lt.s32.totalorder %s1142_s24, %s1657_s11 }
 0x3f6   : > { %p1660_p3 = scmp.lt.s32.totalorder %s1658_s23, %s1654_s12 }
 0x3f8   : > { %p1661_p4 = por %p1660_p3, %p1659_p2 }
 0x3fa   : > { %p1662_p5 = pnand %p1661_p4, %p1655_p1 }
 0x3fc   : > { %1665 = shalt.err (!%p1662_p5)
}
 0x3fd   : > { %s1666_s29 = scalar_lea.hbm %s1139_s28, 32  ;;  %s1668_s10 = scalar_lea.hbm %s2334_s7, 4096 }
 0x3fe   : > { %p1667_p6 = scmp.ne.s32.totalorder %s1139_s28, %s1666_s29  ;;  %p1669_p7 = scmp.lt.u32.totalorder %s1139_s28, %s2334_s7 }
 0x3ff   : > { %p1670_p8 = scmp.lt.u32.totalorder %s1668_s10, %s1666_s29  ;;  %p1672_p10 = scmp.lt.u32.totalorder %s1666_s29, %s1139_s28 }
 0x401   : > { %p1671_p9 = por %p1670_p8, %p1669_p7 }
 0x403   : > { %p1673_p11 = por %p1672_p10, %p1671_p9 }
 0x405   : > { %p1674_p12 = pnand %p1673_p11, %p1667_p6 }
 0x407   : > { %1677 = shalt.err (!%p1674_p12)
}
 0x408   : > { %1144 = dma.vmem_to_hbm [thread:$0]  %s1142_s24, 32, %s1139_s28, %s1027_s21  }
 0x409   : > { %s2252_s14 = scalar_lea.hbm %s2335_s8, %s2226_s26  ;;  %s1678_s11 = scalar_lea.vmem %s1130_s0, 32 }
 0x40a   : > { %p1679_p13 = scmp.ne.s32.totalorder %s1130_s0, %s1678_s11  ;;  %s1838_s23 = smov [#allocation11]  }
 0x40b   : > { %s1680_s25 = sshll.u32 %s1838_s23, 4  ;;  %s1681_s25 = int_to_ptr.vmem [resolvable:$false] %s1680_s25 }
 0x40c   : > { %s1682_s27 = scalar_lea.vmem %s1681_s25, 64  ;;  %p1683_p0 = scmp.lt.s32.totalorder %s1130_s0, %s1681_s25 }
 0x40d   : > { %p1684_p1 = scmp.lt.s32.totalorder %s1682_s27, %s1678_s11 }
 0x40f   : > { %p1685_p2 = por %p1684_p1, %p1683_p0 }
 0x411   : > { %p1686_p3 = pnand %p1685_p2, %p1679_p13 }
 0x413   : > { %1689 = shalt.err (!%p1686_p3)
}
 0x414   : > { %s1690_s24 = scalar_lea.hbm %s2238_s17, 32  ;;  %s1692_s10 = scalar_lea.hbm %s2333_s6, 4096 }
 0x415   : > { %p1691_p4 = scmp.ne.s32.totalorder %s2238_s17, %s1690_s24  ;;  %p1693_p5 = scmp.lt.u32.totalorder %s2238_s17, %s2333_s6 }
 0x416   : > { %p1694_p6 = scmp.lt.u32.totalorder %s1692_s10, %s1690_s24  ;;  %p1696_p8 = scmp.lt.u32.totalorder %s1690_s24, %s2238_s17 }
 0x418   : > { %p1695_p7 = por %p1694_p6, %p1693_p5 }
 0x41a   : > { %p1697_p9 = por %p1696_p8, %p1695_p7 }
 0x41c   : > { %p1698_p10 = pnand %p1697_p9, %p1691_p4 }
 0x41e   : > { %1701 = shalt.err (!%p1698_p10)
}
 0x41f   : > { %1132 = dma.vmem_to_hbm [thread:$0]  %s1130_s0, 32, %s2238_s17, %s1022_s22  }
 0x420   : > { %s2364_s30 = scalar_lea.vmem [#allocation17], %s1975_s16  ;;  %s2365_s25 = sld [smem:[#allocation43_spill]] }
 0x421   : > { %s1153_s12 = sshll.u32 %s2364_s30, 4  ;;  %s2366_s28 = scalar_lea.vmem [#allocation19], %s1975_s16  ;;  %s1154_s12 = int_to_ptr.vmem [resolvable:$true] %s1153_s12 }
 0x422   : > { %s1165_s24 = sshll.u32 %s2366_s28, 4  ;;  %s1702_s29 = scalar_lea.vmem %s1154_s12, 32  ;;  %s1166_s24 = int_to_ptr.vmem [resolvable:$true] %s1165_s24 }
 0x423   : > { %p1703_p11 = scmp.ne.s32.totalorder %s1154_s12, %s1702_s29  ;;  %s1839_s10 = smov [#allocation17]  }
 0x424   : > { %s1704_s20 = sshll.u32 %s1839_s10, 4  ;;  %s1705_s20 = int_to_ptr.vmem [resolvable:$false] %s1704_s20 }
 0x425   : > { %s1706_s18 = scalar_lea.vmem %s1705_s20, 64  ;;  %p1707_p12 = scmp.lt.s32.totalorder %s1154_s12, %s1705_s20 }
 0x426   : > { %s2273_s27 = scalar_lea.hbm %s2365_s25, %s2226_s26  ;;  %p1708_p13 = scmp.lt.s32.totalorder %s1706_s18, %s1702_s29 }
 0x428   : > { %p1709_p0 = por %p1708_p13, %p1707_p12 }
 0x42a   : > { %p1710_p1 = pnand %p1709_p0, %p1703_p11 }
 0x42c   : > { %1713 = shalt.err (!%p1710_p1)
}
 0x42d   : > { %s1714_s22 = scalar_lea.hbm %s2252_s14, 32  ;;  %s1716_s0 = scalar_lea.hbm %s2335_s8, 4096 }
 0x42e   : > { %p1715_p2 = scmp.ne.s32.totalorder %s2252_s14, %s1714_s22  ;;  %p1717_p3 = scmp.lt.u32.totalorder %s2252_s14, %s2335_s8 }
 0x42f   : > { %p1718_p4 = scmp.lt.u32.totalorder %s1716_s0, %s1714_s22  ;;  %p1720_p6 = scmp.lt.u32.totalorder %s1714_s22, %s2252_s14 }
 0x431   : > { %p1719_p5 = por %p1718_p4, %p1717_p3 }
 0x433   : > { %p1721_p7 = por %p1720_p6, %p1719_p5 }
 0x435   : > { %p1722_p8 = pnand %p1721_p7, %p1715_p2 }
 0x437   : > { %1725 = shalt.err (!%p1722_p8)
}
 0x438   : > { %1156 = dma.vmem_to_hbm [thread:$0]  %s1154_s12, 32, %s2252_s14, %s1027_s21  }
 0x439   : > { %s1726_s11 = scalar_lea.vmem %s1166_s24, 32  ;;  %s1840_s23 = smov [#allocation19]  }
 0x43a   : > { %p1727_p9 = scmp.ne.s32.totalorder %s1166_s24, %s1726_s11  ;;  %s1728_s28 = sshll.u32 %s1840_s23, 4  ;;  %s1729_s28 = int_to_ptr.vmem [resolvable:$false] %s1728_s28 }
 0x43b   : > { %s1730_s29 = scalar_lea.vmem %s1729_s28, 64  ;;  %p1731_p10 = scmp.lt.s32.totalorder %s1166_s24, %s1729_s28 }
 0x43c   : > { %p1732_p11 = scmp.lt.s32.totalorder %s1730_s29, %s1726_s11 }
 0x43e   : > { %p1733_p12 = por %p1732_p11, %p1731_p10 }
 0x440   : > { %p1734_p13 = pnand %p1733_p12, %p1727_p9 }
 0x442   : > { %1737 = shalt.err (!%p1734_p13)
}
 0x443   : > { %s1738_s10 = scalar_lea.hbm %s2273_s27, 32  ;;  %s1740_s14 = scalar_lea.hbm %s2365_s25, 4096 }
 0x444   : > { %p1739_p0 = scmp.ne.s32.totalorder %s2273_s27, %s1738_s10  ;;  %p1741_p1 = scmp.lt.u32.totalorder %s2273_s27, %s2365_s25 }
 0x445   : > { %p1742_p2 = scmp.lt.u32.totalorder %s1740_s14, %s1738_s10  ;;  %p1744_p4 = scmp.lt.u32.totalorder %s1738_s10, %s2273_s27 }
 0x447   : > { %p1743_p3 = por %p1742_p2, %p1741_p1 }
 0x449   : > { %p1745_p5 = por %p1744_p4, %p1743_p3 }
 0x44b   : > { %p1746_p6 = pnand %p1745_p5, %p1739_p0 }
 0x44d   : > { %1749 = shalt.err (!%p1746_p6)
}
 0x44e   : > { %1168 = dma.vmem_to_hbm [thread:$0]  %s1166_s24, 32, %s2273_s27, %s1037_s19  }
 0x44f PF: > { %p1570_p7 = scmp.ge.s32.totalorder %s1824_s15, 2  ;;  %s2367_s22 = sadd.s32 4294967294, %s1824_s15  }
 0x450   : > { %s1188_s26 = sand.u32 1, %s2367_s22  }
 0x451   : > { %s1189_s16 = scalar_lea.sflag [#allocation12], %s1188_s26 }
 0x452   : > { %1787 = dma.done.wait (%p1570_p7), %s1189_s16, 32  }
 0x453   : > { %1789 = vsyncadd (%p1570_p7), %s1189_s16, 4294967264  ;;  %s1195_s0 = scalar_lea.sflag [#allocation15], %s1188_s26 }
 0x454   : > { %1791 = dma.done.wait (%p1570_p7), %s1195_s0, 64  }
 0x455   : > { %1793 = vsyncadd (%p1570_p7), %s1195_s0, 4294967232  ;;  %s1207_s17 = scalar_lea.sflag [#allocation20], %s1188_s26 }
 0x456   : > { %1795 = dma.done.wait (%p1570_p7), %s1207_s17, 32  }
 0x457   : > { %1797 = vsyncadd (%p1570_p7), %s1207_s17, 4294967264  ;;  %s25_s15 = sadd.s32 1, %s1824_s15   ;;  %s2368_s30 = sld [smem:[#allocation37_spill]] }
 0x458   : > { %p22_p8 = scmp.ge.s32.totalorder %s25_s15, 130   ;;  %s2369_s10 = sld [smem:[#allocation41_spill]] }
 0x459   : > { %s2370_s12 = sld [smem:[#allocation38_spill]]  ;;  %s2371_s9 = sld [smem:[#allocation39_spill]] }
 0x45a   : > { %s2372_s14 = sld [smem:[#allocation40_spill]]  ;;  %s2373_s11 = smov %s1816_s13 }
 0x45b   :  { %24 = sbr.rel (!%p22_p8) target bundleno = 12 (0xc), region = 374 }
 0x45f   : > { %s2374_s13 = smov %s2371_s9 }
 0x462   :  { %1212 = vsyncpa [#allocation12], 1 }
 0x463   :  { %1214 = vsyncpa [#allocation12 + $0x1], 1 }
 0x464   :  { %1215 = vsyncpa [#allocation15], 1 }
 0x465   :  { %1217 = vsyncpa [#allocation15 + $0x1], 1 }
 0x466   :  { %1218 = vsyncpa [#allocation20], 1 }
 0x467   :  { %1220 = vsyncpa [#allocation20 + $0x1], 1 }

// kernel: forward.5
= control target key start
LH: loop header
LB: loop body
LE: loop exit
PB: predicated region body
PF: predicated region fallthrough
CT: control target
= control target key end

     0   :  { %s3884_s21 = smov 0   ;;  %s3886_s22 = smov 0   ;;  %s5314_s0 = inlined_call_operand.vmem [shape: bf16[2,512,16], index: 0, kind: input, shape index: {}]   ;;  %s5315_s1 = inlined_call_operand.vmem [shape: bf16[16,16], index: 1, kind: input, shape index: {}]   ;;  %s5316_s2 = inlined_call_operand.vmem [shape: bf16[16,16], index: 2, kind: input, shape index: {}]   ;;  %s5317_s3 = inlined_call_operand.vmem [shape: bf16[16,16], index: 3, kind: input, shape index: {}]   ;;  %s5318_s4 = inlined_call_operand.vmem [shape: f32[1,16], index: 4, kind: input, shape index: {}]   ;;  %s5319_s5 = inlined_call_operand.vmem [shape: f32[1,16], index: 5, kind: input, shape index: {}]   ;;  %s5320_s6 = inlined_call_operand.vmem [shape: bf16[2,64,16], index: 6, kind: output, shape index: {}]  }
   0x1   :  { %s3888_s23 = smov 0  }
   0x2 LB: > { %s28_s24 = sadd.s32 1, %s3843_s22  ;;  %p3161_p0 = scmp.ge.s32.totalorder %s3847_s23, 1  ;;  %s3847_s23 = sphi %s3888_s23, %s16_s23   ;;  %s3843_s22 = sphi %s3886_s22, %s5536_s22   ;;  %s3839_s21 = sphi %s3884_s21, %s5535_s21  }
   0x3   : > { %p30_p1 = scmp.ge.s32.totalorder %s28_s24, 2  ;;  %p233_p2 = scmp.lt.s32.totalorder %s3847_s23, 3 }
   0x5   : > { %s5538_s24 = smov (%p30_p1, %s28_s24), 0  ;;  %p234_p3 = pnand %p3161_p0, %p233_p2 }
   0x7   : > { %237 = sbr.rel (%p234_p3) target bundleno = 592 (0x250), region = 44 }
   0xe   : > { %v3786_v0 = vld [vmem:[%s5315_s1] sm:$0xff]   ;;  %p272_p4 = scmp.lt.s32.totalorder %s3839_s21, 1  ;;  %vm588_vm0 = vcmask 130048   ;;  %vm2927_vm1 = vcmask 1041409   ;;  %vm2930_vm2 = vcmask 1042434   ;;  %vm2933_vm3 = vcmask 1043459  }
   0xf   : > { %v3788_v1 = vld [vmem:[%s5316_s2] sm:$0xff]   ;;  %3760 = vmatprep.subr.bf16.mxu1 %v3786_v0  ;;  %3562 = vmatprep.subr.bf16.mxu0 %v3786_v0  ;;  %vm2936_vm4 = vcmask 1044484   ;;  %vm2939_vm5 = vcmask 1045509   ;;  %vm2942_vm6 = vcmask 1046534   ;;  %vm2945_vm7 = vcmask 1047559  }
  0x10   : > { %s5540_s21 = smov (!%p272_p4, %s3839_s21), 1  ;;  %v3792_v2 = vld [vmem:[%s5317_s3] sm:$0xff]   ;;  %3761 = vmatpush3.bf16.msra.mxu1 %v3786_v0  ;;  %3563 = vmatpush3.bf16.msra.mxu0 %v3786_v0  ;;  %vm3061_vm8 = vcmask 125952  }
  0x11   : > { %s3397_s7 = sshll.u32 %s5540_s21, 8  ;;  %3628 = vmatprep.subr.bf16.mxu1 %v3788_v1  ;;  %3694 = vmatprep.subr.bf16.mxu0 %v3792_v2  ;;  %s3398_s15 = sshll.u32 %s5540_s21, 5 }
  0x12   : > { %s3917_s10 = scalar_lea.vmem %s5314_s0, %s3397_s7  ;;  %s4716_s18 = scalar_lea.vmem %s5320_s6, %s3398_s15 }
  0x13   : > { %v324_v3 = vld [vmem:[%s3917_s10 + $0x80] sm:$0xf]  ;;  %v325_v4 = vld [vmem:[%s3917_s10 + $0x84] sm:$0xf]  ;;  %v3930_v10 = vld [vmem:[%s3917_s10 + $0x88] sm:$0xf] }
  0x14   : > { %v3922_v5 = vld [vmem:[%s3917_s10] sm:$0xf]  ;;  %v388_v6 = vmul.bf16 %v324_v3, %v324_v3  ;;  %v389_v7 = vmul.bf16 %v325_v4, %v325_v4  ;;  %v3924_v8 = vcombine.low %v324_v3, %v325_v4  ;;  %v3927_v9 = vld [vmem:[%s3917_s10 + $0x4] sm:$0xf]  ;;  %v3933_v11 = vld [vmem:[%s3917_s10 + $0x8c] sm:$0xf]  ;;  %v390_v54 = vmul.bf16 %v3930_v10, %v3930_v10 }
  0x15   : > { %v3937_v12 = vcombine.low %v3922_v5, %v3927_v9  ;;  %v3941_v13 = vcombine.low %v3930_v10, %v3933_v11  ;;  %v3944_v14 = vld [vmem:[%s3917_s10 + $0x8] sm:$0xf]  ;;  %v3947_v15 = vld [vmem:[%s3917_s10 + $0xc] sm:$0xf]  ;;  %v3950_v16 = vld [vmem:[%s3917_s10 + $0x90] sm:$0xf]  ;;  %v391_v59 = vmul.bf16 %v3933_v11, %v3933_v11 }
  0x16   : > { %3596 = vmatprep.mubr.msk.bf16.mxu1 %vm588_vm0, %v3924_v8  ;;  %v3954_v17 = vcombine.low %v388_v6, %v389_v7  ;;  %v3958_v18 = vcombine.low %v3944_v14, %v3947_v15  ;;  %v3961_v19 = vld [vmem:[%s3917_s10 + $0x94] sm:$0xf]  ;;  %v3964_v20 = vld [vmem:[%s3917_s10 + $0x10] sm:$0xf]  ;;  %v330_v24 = vld [vmem:[%s3917_s10 + $0x98] sm:$0xf]  ;;  %v392_v61 = vmul.bf16 %v3950_v16, %v3950_v16 }
  0x17   : > { %v3967_v21 = vld [vmem:[%s3917_s10 + $0x14] sm:$0xf]  ;;  %3564 = vmatprep.mubr.msk.bf16.mxu0 %vm588_vm0, %v3937_v12  ;;  %3597 = vmatmul.mubr.msk.bf16.vlgmr.msra.gmra.mrb[0].mxu1 %vm588_vm0, %v3941_v13  ;;  %v3975_v22 = vcombine.low %v3950_v16, %v3961_v19  ;;  %v331_v25 = vld [vmem:[%s3917_s10 + $0x9c] sm:$0xf]  ;;  %v3986_v26 = vld [vmem:[%s3917_s10 + $0x18] sm:$0xf]  ;;  %v393_v62 = vmul.bf16 %v3961_v19, %v3961_v19  ;;  %v394_v63 = vmul.bf16 %v330_v24, %v330_v24 }
  0x18   : > { %v3979_v23 = vcombine.low %v3964_v20, %v3967_v21  ;;  %3629 = vmatpush3.bf16.msra.mxu1 %v3788_v1  ;;  %3565 = vmatmul.mubr.msk.bf16.vlgmr.msra.gmra.mrb[0].mxu0 %vm588_vm0, %v3958_v18  ;;  %v3991_v27 = vld [vmem:[%s3917_s10 + $0x1c] sm:$0xf]  ;;  %v332_v28 = vld [vmem:[%s3917_s10 + $0xa0] sm:$0xf]  ;;  %v333_v29 = vld [vmem:[%s3917_s10 + $0xa4] sm:$0xf]  ;;  %v4003_v32 = vcombine.low %v330_v24, %v331_v25  ;;  %v4095_v1 = vcombine.low %v390_v54, %v391_v59 }
  0x19   : > { %5334 = vst [vmem:[#allocation2_spill] sm:$0xff] %v3975_v22  ;;  %3695 = vmatpush3.bf16.msra.mxu0 %v3792_v2  ;;  %3600 = vmatprep.mubr.msk.bf16.mxu1 %vm588_vm0, %v3975_v22  ;;  %v3998_v30 = vld [vmem:[%s3917_s10 + $0x20] sm:$0xf]  ;;  %v4001_v31 = vld [vmem:[%s3917_s10 + $0x24] sm:$0xf]  ;;  %v4007_v33 = vcombine.low %v3986_v26, %v3991_v27  ;;  %v4009_v34 = vcombine.low %v332_v28, %v333_v29 }
  0x1a   : > { %3568 = vmatprep.mubr.msk.bf16.mxu0 %vm588_vm0, %v3979_v23  ;;  %5335 = vst [vmem:[#allocation3_spill] sm:$0xff] %v4003_v32  ;;  %v4013_v35 = vcombine.low %v3998_v30, %v4001_v31  ;;  %v334_v36 = vld [vmem:[%s3917_s10 + $0xa8] sm:$0xf]  ;;  %v335_v37 = vld [vmem:[%s3917_s10 + $0xac] sm:$0xf]  ;;  %5341 = vst [vmem:[#allocation9_spill] sm:$0xff] %v4095_v1  ;;  %v395_v2 = vmul.bf16 %v331_v25, %v331_v25  ;;  %v396_v3 = vmul.bf16 %v332_v28, %v332_v28 }
  0x1b   : > { %5336 = vst [vmem:[#allocation4_spill] sm:$0xff] %v4009_v34  ;;  %v4024_v38 = vld [vmem:[%s3917_s10 + $0x28] sm:$0xf]  ;;  %v4029_v39 = vld [vmem:[%s3917_s10 + $0x2c] sm:$0xf]  ;;  %v4039_v44 = vcombine.low %v334_v36, %v335_v37  ;;  %v4097_v4 = vcombine.low %v392_v61, %v393_v62  ;;  %v397_v6 = vmul.bf16 %v333_v29, %v333_v29  ;;  %v398_v7 = vmul.bf16 %v334_v36, %v334_v36 }
  0x1c   : > { %v336_v40 = vld [vmem:[%s3917_s10 + $0xb0] sm:$0xf]  ;;  %v337_v41 = vld [vmem:[%s3917_s10 + $0xb4] sm:$0xf]  ;;  %v4043_v45 = vcombine.low %v4024_v38, %v4029_v39  ;;  %v338_v48 = vld [vmem:[%s3917_s10 + $0xb8] sm:$0xf]  ;;  %v399_v10 = vmul.bf16 %v335_v37, %v335_v37  ;;  %v4099_v11 = vcombine.low %v394_v63, %v395_v2  ;;  %v358_v1 = vmul.bf16 %v3944_v14, %v3944_v14 }
  0x1d   : > { %v4034_v42 = vld [vmem:[%s3917_s10 + $0x30] sm:$0xf]  ;;  %v4037_v43 = vld [vmem:[%s3917_s10 + $0x34] sm:$0xf]  ;;  %5337 = vst [vmem:[#allocation5_spill] sm:$0xff] %v4039_v44  ;;  %v4045_v46 = vcombine.low %v336_v40, %v337_v41  ;;  %5342 = vst [vmem:[#allocation10_spill] sm:$0xff] %v4097_v4  ;;  %v400_v16 = vmul.bf16 %v336_v40, %v336_v40  ;;  %v401_v19 = vmul.bf16 %v337_v41, %v337_v41 }
  0x1e   : > { %v4049_v47 = vcombine.low %v4034_v42, %v4037_v43  ;;  %v339_v49 = vld [vmem:[%s3917_s10 + $0xbc] sm:$0xf]  ;;  %v4054_v50 = vld [vmem:[%s3917_s10 + $0x38] sm:$0xf]  ;;  %v340_v52 = vld [vmem:[%s3917_s10 + $0xc0] sm:$0xf]  ;;  %v402_v24 = vmul.bf16 %v338_v48, %v338_v48  ;;  %v4101_v54 = vcombine.low %v396_v3, %v397_v6  ;;  %v4103_v25 = vcombine.low %v398_v7, %v399_v10 }
  0x1f   : > { %3601 = vmatmul.mubr.msk.bf16.gmra.mrb[4].mxu1 %vm588_vm0, %v4003_v32  ;;  %5338 = vst [vmem:[#allocation6_spill] sm:$0xff] %v4045_v46  ;;  %v4057_v51 = vld [vmem:[%s3917_s10 + $0x3c] sm:$0xf]  ;;  %v341_v53 = vld [vmem:[%s3917_s10 + $0xc4] sm:$0xf]  ;;  %v4077_v57 = vcombine.low %v338_v48, %v339_v49  ;;  %5343 = vst [vmem:[#allocation11_spill] sm:$0xff] %v4099_v11  ;;  %v403_v28 = vmul.bf16 %v339_v49, %v339_v49  ;;  %v4107_v29 = vcombine.low %v400_v16, %v401_v19 }
  0x20   : > { %3569 = vmatmul.mubr.msk.bf16.gmra.mrb[4].mxu0 %vm588_vm0, %v4007_v33  ;;  %3604 = vmatprep.mubr.msk.bf16.mxu1 %vm588_vm0, %v4009_v34  ;;  %v4070_v55 = vld [vmem:[%s3917_s10 + $0x40] sm:$0xf]  ;;  %v4073_v56 = vld [vmem:[%s3917_s10 + $0x44] sm:$0xf]  ;;  %v4081_v58 = vcombine.low %v4054_v50, %v4057_v51  ;;  %v4085_v60 = vcombine.low %v340_v52, %v341_v53  ;;  %5344 = vst [vmem:[#allocation12_spill] sm:$0xff] %v4101_v54  ;;  %5345 = vst [vmem:[#allocation13_spill] sm:$0xff] %v4103_v25 }
  0x21   : > { %3572 = vmatprep.mubr.msk.bf16.mxu0 %vm588_vm0, %v4013_v35  ;;  %5339 = vst [vmem:[#allocation7_spill] sm:$0xff] %v4077_v57  ;;  %v4093_v0 = vcombine.low %v4070_v55, %v4073_v56  ;;  %5346 = vst [vmem:[#allocation14_spill] sm:$0xff] %v4107_v29  ;;  %v342_v36 = vld [vmem:[%s3917_s10 + $0xc8] sm:$0xf]  ;;  %v343_v37 = vld [vmem:[%s3917_s10 + $0xcc] sm:$0xf]  ;;  %v4118_v41 = vcombine.low %v402_v24, %v403_v28  ;;  %v404_v2 = vmul.bf16 %v340_v52, %v340_v52 }
  0x22   : > { %5340 = vst [vmem:[#allocation8_spill] sm:$0xff] %v4085_v60  ;;  %v4116_v40 = vld [vmem:[%s3917_s10 + $0x48] sm:$0xf]  ;;  %v4123_v48 = vld [vmem:[%s3917_s10 + $0x4c] sm:$0xf]  ;;  %v4133_v63 = vcombine.low %v342_v36, %v343_v37  ;;  %v405_v3 = vmul.bf16 %v341_v53, %v341_v53  ;;  %v406_v10 = vmul.bf16 %v342_v36, %v342_v36  ;;  %v407_v16 = vmul.bf16 %v343_v37, %v343_v37 }
  0x23   : > { %5347 = vst [vmem:[#allocation15_spill] sm:$0xff] %v4118_v41  ;;  %v344_v49 = vld [vmem:[%s3917_s10 + $0xd0] sm:$0xf]  ;;  %v345_v59 = vld [vmem:[%s3917_s10 + $0xd4] sm:$0xf]  ;;  %v4137_v6 = vcombine.low %v4116_v40, %v4123_v48  ;;  %v363_v14 = vmul.bf16 %v3991_v27, %v3991_v27  ;;  %v368_v27 = vmul.bf16 %v4034_v42, %v4034_v42 }
  0x24   : > { %v4128_v61 = vld [vmem:[%s3917_s10 + $0x50] sm:$0xf]  ;;  %v4131_v62 = vld [vmem:[%s3917_s10 + $0x54] sm:$0xf]  ;;  %5348 = vst [vmem:[#allocation16_spill] sm:$0xff] %v4133_v63  ;;  %v4139_v7 = vcombine.low %v344_v49, %v345_v59  ;;  %v4145_v24 = vcombine.low %v404_v2, %v405_v3  ;;  %v4147_v52 = vcombine.low %v406_v10, %v407_v16 }
  0x25   : > { %v4143_v19 = vcombine.low %v4128_v61, %v4131_v62  ;;  %v346_v53 = vld [vmem:[%s3917_s10 + $0xd8] sm:$0xf]  ;;  %v347_v28 = vld [vmem:[%s3917_s10 + $0xdc] sm:$0xf]  ;;  %v348_v2 = vld [vmem:[%s3917_s10 + $0xe0] sm:$0xf] }
  0x26   : > { %5349 = vst [vmem:[#allocation17_spill] sm:$0xff] %v4139_v7  ;;  %5350 = vst [vmem:[#allocation18_spill] sm:$0xff] %v4145_v24  ;;  %v4158_v36 = vld [vmem:[%s3917_s10 + $0x58] sm:$0xf]  ;;  %v4163_v37 = vld [vmem:[%s3917_s10 + $0x5c] sm:$0xf]  ;;  %v410_v41 = vmul.bf16 %v346_v53, %v346_v53 }
  0x27   : > { %3605 = vmatmul.mubr.msk.bf16.gmra.mrb[8].mxu1 %vm588_vm0, %v4039_v44  ;;  %5351 = vst [vmem:[#allocation19_spill] sm:$0xff] %v4147_v52  ;;  %v349_v3 = vld [vmem:[%s3917_s10 + $0xe4] sm:$0xf]  ;;  %v4168_v10 = vld [vmem:[%s3917_s10 + $0x60] sm:$0xf]  ;;  %v4173_v52 = vcombine.low %v346_v53, %v347_v28  ;;  %v4177_v24 = vcombine.low %v4158_v36, %v4163_v37 }
  0x28   : > { %3573 = vmatmul.mubr.msk.bf16.gmra.mrb[8].mxu0 %vm588_vm0, %v4043_v45  ;;  %3608 = vmatprep.mubr.msk.bf16.mxu1 %vm588_vm0, %v4045_v46  ;;  %v4171_v16 = vld [vmem:[%s3917_s10 + $0x64] sm:$0xf]  ;;  %v351_v53 = vld [vmem:[%s3917_s10 + $0xec] sm:$0xf] }
  0x29   : > { %3576 = vmatprep.mubr.msk.bf16.mxu0 %vm588_vm0, %v4049_v47  ;;  %5352 = vst [vmem:[#allocation20_spill] sm:$0xff] %v4173_v52  ;;  %v4183_v29 = vcombine.low %v4168_v10, %v4171_v16  ;;  %v415_v34 = vmul.bf16 %v351_v53, %v351_v53 }
  0x2f   : > { %3609 = vmatmul.mubr.msk.bf16.gmra.mrb[12].mxu1 %vm588_vm0, %v4077_v57  ;;  %v411_v57 = vmul.bf16 %v347_v28, %v347_v28  ;;  %v4198_v28 = vld [vmem:[%s3917_s10 + $0x68] sm:$0xf] }
  0x30   : > { %3577 = vmatmul.mubr.msk.bf16.gmra.mrb[12].mxu0 %vm588_vm0, %v4081_v58  ;;  %3612 = vmatprep.mubr.msk.bf16.mxu1 %vm588_vm0, %v4085_v60  ;;  %v4179_v60 = vcombine.low %v348_v2, %v349_v3 }
  0x31   : > { %3580 = vmatprep.mubr.msk.bf16.mxu0 %vm588_vm0, %v4093_v0 }
  0x32   : > { %5353 = vst [vmem:[#allocation21_spill] sm:$0xff] %v4179_v60 }
  0x37   : > { %3613 = vmatmul.mubr.msk.bf16.gmra.mrb[16].mxu1 %vm588_vm0, %v4133_v63  ;;  %v409_v63 = vmul.bf16 %v345_v59, %v345_v59  ;;  %v350_v59 = vld [vmem:[%s3917_s10 + $0xe8] sm:$0xf] }
  0x38   : > { %3581 = vmatmul.mubr.msk.bf16.gmra.mrb[16].mxu0 %vm588_vm0, %v4137_v6  ;;  %3616 = vmatprep.mubr.msk.bf16.mxu1 %vm588_vm0, %v4139_v7  ;;  %v408_v7 = vmul.bf16 %v344_v49, %v344_v49  ;;  %v4187_v49 = vcombine.low %v410_v41, %v411_v57  ;;  %v352_v57 = vld [vmem:[%s3917_s10 + $0xf0] sm:$0xf]  ;;  %v353_v41 = vld [vmem:[%s3917_s10 + $0xf4] sm:$0xf]  ;;  %v414_v54 = vmul.bf16 %v350_v59, %v350_v59 }
  0x39   : > { %3584 = vmatprep.mubr.msk.bf16.mxu0 %vm588_vm0, %v4143_v19  ;;  %v4219_v44 = vcombine.low %v352_v57, %v353_v41 }
  0x3a   : > { %v4185_v46 = vcombine.low %v408_v7, %v409_v63  ;;  %5355 = vst [vmem:[#allocation23_spill] sm:$0xff] %v4187_v49  ;;  %v4203_v63 = vld [vmem:[%s3917_s10 + $0x6c] sm:$0xf]  ;;  %v4208_v7 = vld [vmem:[%s3917_s10 + $0x70] sm:$0xf]  ;;  %v4227_v4 = vcombine.low %v414_v54, %v415_v34 }
  0x3b   : > { %v4211_v49 = vld [vmem:[%s3917_s10 + $0x74] sm:$0xf]  ;;  %v4217_v25 = vcombine.low %v4198_v28, %v4203_v63  ;;  %5357 = vst [vmem:[#allocation25_spill] sm:$0xff] %v4219_v44  ;;  %v4244_v34 = vld [vmem:[%s3917_s10 + $0x78] sm:$0xf] }
  0x3c   : > { %5354 = vst [vmem:[#allocation22_spill] sm:$0xff] %v4185_v46  ;;  %v413_v46 = vmul.bf16 %v349_v3, %v349_v3  ;;  %v4223_v11 = vcombine.low %v4208_v7, %v4211_v49  ;;  %5359 = vst [vmem:[#allocation27_spill] sm:$0xff] %v4227_v4  ;;  %v355_v3 = vld [vmem:[%s3917_s10 + $0xfc] sm:$0xf]  ;;  %v417_v4 = vmul.bf16 %v353_v41, %v353_v41 }
  0x3f   : > { %3617 = vmatmul.mubr.msk.bf16.gmra.mrb[20].mxu1 %vm588_vm0, %v4173_v52  ;;  %v4213_v52 = vcombine.low %v350_v59, %v351_v53  ;;  %v356_v59 = vmul.bf16 %v3922_v5, %v3922_v5  ;;  %v416_v53 = vmul.bf16 %v352_v57, %v352_v57  ;;  %v419_v5 = vmul.bf16 %v355_v3, %v355_v3 }
  0x40   : > { %3585 = vmatmul.mubr.msk.bf16.gmra.mrb[20].mxu0 %vm588_vm0, %v4177_v24  ;;  %3620 = vmatprep.mubr.msk.bf16.mxu1 %vm588_vm0, %v4179_v60  ;;  %v412_v60 = vmul.bf16 %v348_v2, %v348_v2  ;;  %v354_v2 = vld [vmem:[%s3917_s10 + $0xf8] sm:$0xf]  ;;  %v359_v57 = vmul.bf16 %v3947_v15, %v3947_v15  ;;  %v364_v15 = vmul.bf16 %v3998_v30, %v3998_v30 }
  0x41   : > { %3588 = vmatprep.mubr.msk.bf16.mxu0 %vm588_vm0, %v4183_v29  ;;  %5356 = vst [vmem:[#allocation24_spill] sm:$0xff] %v4213_v52  ;;  %v4249_v54 = vcombine.low %v354_v2, %v355_v3  ;;  %v4255_v22 = vcombine.low %v416_v53, %v417_v4  ;;  %v360_v4 = vmul.bf16 %v3964_v20, %v3964_v20  ;;  %v5370_v3 = vld [vmem:[#allocation14_spill] sm:$0xff]  ;;  %v5375_v53 = vld [vmem:[#allocation16_spill] sm:$0xff] }
  0x42   : > { %v4225_v32 = vcombine.low %v412_v60, %v413_v46  ;;  %v357_v46 = vmul.bf16 %v3927_v9, %v3927_v9  ;;  %v4247_v60 = vld [vmem:[%s3917_s10 + $0x7c] sm:$0xf]  ;;  %v3266_v41 = vcombine.low %v358_v1, %v359_v57  ;;  %v365_v20 = vmul.bf16 %v4001_v31, %v4001_v31 }
  0x43   : > { %v369_v30 = vmul.bf16 %v4037_v43, %v4037_v43  ;;  %v380_v1 = vmul.bf16 %v4168_v10, %v4168_v10  ;;  %v387_v10 = vmul.bf16 %v4247_v60, %v4247_v60  ;;  %v5377_v57 = vld [vmem:[#allocation17_spill] sm:$0xff] }
  0x44   : > { %5358 = vst [vmem:[#allocation26_spill] sm:$0xff] %v4225_v32  ;;  %v3265_v32 = vcombine.low %v356_v59, %v357_v46  ;;  %v5371_v59 = vld [vmem:[#allocation7_spill] sm:$0xff] }
  0x45   : > { %v5372_v46 = vld [vmem:[#allocation15_spill] sm:$0xff] }
  0x47   : > { %3621 = vmatmul.mubr.msk.bf16.gmra.mrb[24].mxu1 %vm588_vm0, %v4213_v52  ;;  %v418_v52 = vmul.bf16 %v354_v2, %v354_v2 }
  0x48   : > { %3589 = vmatmul.mubr.msk.bf16.gmra.mrb[24].mxu0 %vm588_vm0, %v4217_v25  ;;  %3624 = vmatprep.mubr.msk.bf16.mxu1 %vm588_vm0, %v4219_v44  ;;  %v4253_v44 = vcombine.low %v4244_v34, %v4247_v60  ;;  %v5374_v60 = vld [vmem:[#allocation18_spill] sm:$0xff] }
  0x49   : > { %3592 = vmatprep.mubr.msk.bf16.mxu0 %vm588_vm0, %v4223_v11  ;;  %v4257_v9 = vcombine.low %v418_v52, %v419_v5  ;;  %v361_v52 = vmul.bf16 %v3967_v21, %v3967_v21  ;;  %v3269_v21 = vcombine.low %v364_v15, %v365_v20  ;;  %v5376_v5 = vld [vmem:[#allocation19_spill] sm:$0xff]  ;;  %v5385_v20 = vld [vmem:[#allocation25_spill] sm:$0xff] }
  0x4a   : > { %v5384_v15 = vld [vmem:[#allocation27_spill] sm:$0xff] }
  0x4b   : > { %v3267_v2 = vcombine.low %v360_v4, %v361_v52  ;;  %v5378_v4 = vld [vmem:[#allocation22_spill] sm:$0xff]  ;;  %v5379_v52 = vld [vmem:[#allocation20_spill] sm:$0xff] }
  0x4f   : > { %3625 = vmatmul.mubr.msk.bf16.gmra.mrb[28].mxu1 %vm588_vm0, %v4249_v54 }
  0x50   : > { %3593 = vmatmul.mubr.msk.bf16.gmra.mrb[28].mxu0 %vm588_vm0, %v4253_v44  ;;  %3630 = vmatprep.mubr.msk.bf16.mxu1 %vm588_vm0, %v3937_v12  ;;  %v362_v12 = vmul.bf16 %v3986_v26, %v3986_v26  ;;  %v367_v26 = vmul.bf16 %v4029_v39, %v4029_v39  ;;  %v373_v39 = vmul.bf16 %v4073_v56, %v4073_v56 }
  0x51   : > { %3696 = vmatprep.mubr.msk.bf16.mxu0 %vm588_vm0, %v3265_v32  ;;  %v3271_v32 = vcombine.low %v368_v27, %v369_v30 }
  0x57   : > { %3631 = vmatmul.mubr.msk.bf16.vlgmr.msra.gmra.mrb[32].mxu1 %vm588_vm0, %v3958_v18  ;;  %v3268_v18 = vcombine.low %v362_v12, %v363_v14  ;;  %v5382_v12 = vld [vmem:[#allocation26_spill] sm:$0xff]  ;;  %v5383_v14 = vld [vmem:[#allocation24_spill] sm:$0xff] }
  0x58   : > { %3697 = vmatmul.mubr.msk.bf16.vlgmr.msra.gmra.mrb[32].mxu0 %vm588_vm0, %v3266_v41  ;;  %3634 = vmatprep.mubr.msk.bf16.mxu1 %vm588_vm0, %v3979_v23  ;;  %v366_v23 = vmul.bf16 %v4024_v38, %v4024_v38  ;;  %v372_v38 = vmul.bf16 %v4070_v55, %v4070_v55  ;;  %v5380_v41 = vld [vmem:[#allocation23_spill] sm:$0xff] }
  0x59   : > { %3700 = vmatprep.mubr.msk.bf16.mxu0 %vm588_vm0, %v3267_v2  ;;  %v5381_v2 = vld [vmem:[#allocation21_spill] sm:$0xff] }
  0x5a   : > { %v3270_v31 = vcombine.low %v366_v23, %v367_v26  ;;  %v3273_v43 = vcombine.low %v372_v38, %v373_v39 }
  0x5f   : > { %3635 = vmatmul.mubr.msk.bf16.gmra.mrb[36].mxu1 %vm588_vm0, %v4007_v33  ;;  %v370_v33 = vmul.bf16 %v4054_v50, %v4054_v50  ;;  %v376_v50 = vmul.bf16 %v4128_v61, %v4128_v61 }
  0x60   : > { %3701 = vmatmul.mubr.msk.bf16.gmra.mrb[36].mxu0 %vm588_vm0, %v3268_v18  ;;  %3638 = vmatprep.mubr.msk.bf16.mxu1 %vm588_vm0, %v4013_v35  ;;  %v371_v35 = vmul.bf16 %v4057_v51, %v4057_v51  ;;  %v377_v51 = vmul.bf16 %v4131_v62, %v4131_v62  ;;  %v382_v62 = vmul.bf16 %v4198_v28, %v4198_v28  ;;  %v5364_v28 = vld [vmem:[#allocation11_spill] sm:$0xff] }
  0x61   : > { %3704 = vmatprep.mubr.msk.bf16.mxu0 %vm588_vm0, %v3269_v21 }
  0x62   : > { %v3272_v42 = vcombine.low %v370_v33, %v371_v35  ;;  %v3275_v56 = vcombine.low %v376_v50, %v377_v51 }
  0x67   : > { %3639 = vmatmul.mubr.msk.bf16.gmra.mrb[40].mxu1 %vm588_vm0, %v4043_v45  ;;  %v374_v45 = vmul.bf16 %v4116_v40, %v4116_v40  ;;  %v381_v40 = vmul.bf16 %v4171_v16, %v4171_v16 }
  0x68   : > { %3705 = vmatmul.mubr.msk.bf16.gmra.mrb[40].mxu0 %vm588_vm0, %v3270_v31  ;;  %3642 = vmatprep.mubr.msk.bf16.mxu1 %vm588_vm0, %v4049_v47  ;;  %v375_v47 = vmul.bf16 %v4123_v48, %v4123_v48 }
  0x69   : > { %3708 = vmatprep.mubr.msk.bf16.mxu0 %vm588_vm0, %v3271_v32  ;;  %v3277_v61 = vcombine.low %v380_v1, %v381_v40 }
  0x6a   : > { %v3274_v55 = vcombine.low %v374_v45, %v375_v47 }
  0x6f   : > { %3643 = vmatmul.mubr.msk.bf16.gmra.mrb[44].mxu1 %vm588_vm0, %v4081_v58  ;;  %v378_v58 = vmul.bf16 %v4158_v36, %v4158_v36  ;;  %v385_v36 = vmul.bf16 %v4211_v49, %v4211_v49  ;;  %v5362_v49 = vld [vmem:[#allocation10_spill] sm:$0xff] }
  0x70   : > { %3709 = vmatmul.mubr.msk.bf16.gmra.mrb[44].mxu0 %vm588_vm0, %v3272_v42  ;;  %3646 = vmatprep.mubr.msk.bf16.mxu1 %vm588_vm0, %v4093_v0  ;;  %v379_v0 = vmul.bf16 %v4163_v37, %v4163_v37 }
  0x71   : > { %3712 = vmatprep.mubr.msk.bf16.mxu0 %vm588_vm0, %v3273_v43 }
  0x72   : > { %v3276_v48 = vcombine.low %v378_v58, %v379_v0 }
  0x77   : > { %3647 = vmatmul.mubr.msk.bf16.gmra.mrb[48].mxu1 %vm588_vm0, %v4137_v6  ;;  %v383_v6 = vmul.bf16 %v4203_v63, %v4203_v63  ;;  %v5368_v63 = vld [vmem:[#allocation13_spill] sm:$0xff] }
  0x78   : > { %3713 = vmatmul.mubr.msk.bf16.gmra.mrb[48].mxu0 %vm588_vm0, %v3274_v55  ;;  %3650 = vmatprep.mubr.msk.bf16.mxu1 %vm588_vm0, %v4143_v19  ;;  %v384_v19 = vmul.bf16 %v4208_v7, %v4208_v7  ;;  %v5369_v7 = vld [vmem:[#allocation6_spill] sm:$0xff] }
  0x79   : > { %3716 = vmatprep.mubr.msk.bf16.mxu0 %vm588_vm0, %v3275_v56 }
  0x7a   : > { %v3279_v37 = vcombine.low %v384_v19, %v385_v36 }
  0x7f   : > { %3651 = vmatmul.mubr.msk.bf16.gmra.mrb[52].mxu1 %vm588_vm0, %v4177_v24  ;;  %v3278_v24 = vcombine.low %v382_v62, %v383_v6 }
  0x80   : > { %3717 = vmatmul.mubr.msk.bf16.gmra.mrb[52].mxu0 %vm588_vm0, %v3276_v48  ;;  %3654 = vmatprep.mubr.msk.bf16.mxu1 %vm588_vm0, %v4183_v29  ;;  %v386_v29 = vmul.bf16 %v4244_v34, %v4244_v34  ;;  %v5373_v34 = vld [vmem:[#allocation8_spill] sm:$0xff] }
  0x81   : > { %3720 = vmatprep.mubr.msk.bf16.mxu0 %vm588_vm0, %v3277_v61 }
  0x82   : > { %v3280_v16 = vcombine.low %v386_v29, %v387_v10 }
  0x87   : > { %3655 = vmatmul.mubr.msk.bf16.gmra.mrb[56].mxu1 %vm588_vm0, %v4217_v25  ;;  %v5361_v25 = vld [vmem:[#allocation2_spill] sm:$0xff] }
  0x88   : > { %3721 = vmatmul.mubr.msk.bf16.gmra.mrb[56].mxu0 %vm588_vm0, %v3278_v24  ;;  %3658 = vmatprep.mubr.msk.bf16.mxu1 %vm588_vm0, %v4223_v11  ;;  %v5360_v11 = vld [vmem:[#allocation9_spill] sm:$0xff] }
  0x89   : > { %3724 = vmatprep.mubr.msk.bf16.mxu0 %vm588_vm0, %v3279_v37 }
  0x8f   : > { %3659 = vmatmul.mubr.msk.bf16.gmra.mrb[60].mxu1 %vm588_vm0, %v4253_v44  ;;  %v5363_v44 = vld [vmem:[#allocation3_spill] sm:$0xff] }
  0x90   : > { %3725 = vmatmul.mubr.msk.bf16.gmra.mrb[60].mxu0 %vm588_vm0, %v3280_v16  ;;  %3662 = vmatprep.mubr.msk.bf16.mxu1 %vm588_vm0, %v3924_v8  ;;  %v5365_v8 = vld [vmem:[#allocation4_spill] sm:$0xff] }
  0x91   : > { %3728 = vmatprep.mubr.msk.bf16.mxu0 %vm588_vm0, %v3954_v17  ;;  %v5366_v17 = vld [vmem:[#allocation12_spill] sm:$0xff] }
  0x97   : > { %3663 = vmatmul.mubr.msk.bf16.gmra.mrb[64].mxu1 %vm588_vm0, %v3941_v13  ;;  %v5367_v13 = vld [vmem:[#allocation5_spill] sm:$0xff] }
  0x98   : > { %3729 = vmatmul.mubr.msk.bf16.gmra.mrb[64].mxu0 %vm588_vm0, %v5360_v11  ;;  %3666 = vmatprep.mubr.msk.bf16.mxu1 %vm588_vm0, %v5361_v25 }
  0x99   : > { %3732 = vmatprep.mubr.msk.bf16.mxu0 %vm588_vm0, %v5362_v49 }
  0x9f   : > { %3667 = vmatmul.mubr.msk.bf16.gmra.mrb[68].mxu1 %vm588_vm0, %v5363_v44 }
  0xa0   : > { %3733 = vmatmul.mubr.msk.bf16.gmra.mrb[68].mxu0 %vm588_vm0, %v5364_v28  ;;  %3670 = vmatprep.mubr.msk.bf16.mxu1 %vm588_vm0, %v5365_v8 }
  0xa1   : > { %3736 = vmatprep.mubr.msk.bf16.mxu0 %vm588_vm0, %v5366_v17 }
  0xa7   : > { %3671 = vmatmul.mubr.msk.bf16.gmra.mrb[72].mxu1 %vm588_vm0, %v5367_v13 }
  0xa8   : > { %3737 = vmatmul.mubr.msk.bf16.gmra.mrb[72].mxu0 %vm588_vm0, %v5368_v63  ;;  %3674 = vmatprep.mubr.msk.bf16.mxu1 %vm588_vm0, %v5369_v7 }
  0xa9   : > { %3740 = vmatprep.mubr.msk.bf16.mxu0 %vm588_vm0, %v5370_v3 }
  0xaf   : > { %3675 = vmatmul.mubr.msk.bf16.gmra.mrb[76].mxu1 %vm588_vm0, %v5371_v59 }
  0xb0   : > { %3741 = vmatmul.mubr.msk.bf16.gmra.mrb[76].mxu0 %vm588_vm0, %v5372_v46  ;;  %3678 = vmatprep.mubr.msk.bf16.mxu1 %vm588_vm0, %v5373_v34 }
  0xb1   : > { %3744 = vmatprep.mubr.msk.bf16.mxu0 %vm588_vm0, %v5374_v60 }
  0xb7   : > { %3679 = vmatmul.mubr.msk.bf16.gmra.mrb[80].mxu1 %vm588_vm0, %v5375_v53 }
  0xb8   : > { %3745 = vmatmul.mubr.msk.bf16.gmra.mrb[80].mxu0 %vm588_vm0, %v5376_v5  ;;  %3682 = vmatprep.mubr.msk.bf16.mxu1 %vm588_vm0, %v5377_v57 }
  0xb9   : > { %3748 = vmatprep.mubr.msk.bf16.mxu0 %vm588_vm0, %v5378_v4 }
  0xbf   : > { %3683 = vmatmul.mubr.msk.bf16.gmra.mrb[84].mxu1 %vm588_vm0, %v5379_v52 }
  0xc0   : > { %3749 = vmatmul.mubr.msk.bf16.gmra.mrb[84].mxu0 %vm588_vm0, %v5380_v41  ;;  %3686 = vmatprep.mubr.msk.bf16.mxu1 %vm588_vm0, %v5381_v2 }
  0xc1   : > { %3752 = vmatprep.mubr.msk.bf16.mxu0 %vm588_vm0, %v5382_v12 }
  0xc7   : > { %3687 = vmatmul.mubr.msk.bf16.gmra.mrb[88].mxu1 %vm588_vm0, %v5383_v14 }
  0xc8   : > { %3753 = vmatmul.mubr.msk.bf16.gmra.mrb[88].mxu0 %vm588_vm0, %v5384_v15  ;;  %3690 = vmatprep.mubr.msk.bf16.mxu1 %vm588_vm0, %v5385_v20 }
  0xc9   : > { %3756 = vmatprep.mubr.msk.bf16.mxu0 %vm588_vm0, %v4255_v22 }
  0xcf   : > { %3691 = vmatmul.mubr.msk.bf16.gmra.mrb[92].mxu1 %vm588_vm0, %v4249_v54 }
  0xd0   : > { %3757 = vmatmul.mubr.msk.bf16.gmra.mrb[92].mxu0 %vm588_vm0, %v4257_v9 }
  0xea   : > { %v4435_v18 = vpop.f32.mrb[0].mxu1 }
  0xeb   : > { %5386 = vst [vmem:[#allocation9_spill] sm:$0xff] %v4435_v18  ;;  %v4437_v21 = vpop.f32.mrb[0].mxu0  ;;  %v4439_v23 = vpop.f32.mrb[1].mxu1 }
  0xec   : > { %5387 = vst [vmem:[#allocation2_spill] sm:$0xff] %v4439_v23  ;;  %v4441_v26 = vpop.f32.mrb[1].mxu0  ;;  %v4443_v27 = vpop.f32.mrb[2].mxu1 }
  0xed   : > { %5388 = vst [vmem:[#allocation10_spill] sm:$0xff] %v4443_v27  ;;  %v4445_v30 = vpop.f32.mrb[2].mxu0  ;;  %v4447_v31 = vpop.f32.mrb[3].mxu1 }
  0xee   : > { %5389 = vst [vmem:[#allocation3_spill] sm:$0xff] %v4447_v31  ;;  %v4449_v22 = vpop.f32.mrb[3].mxu0 }
  0xf2   : > { %v4451_v54 = vpop.f32.mrb[4].mxu1 }
  0xf3   : > { %5390 = vst [vmem:[#allocation11_spill] sm:$0xff] %v4451_v54  ;;  %v4453_v32 = vpop.f32.mrb[4].mxu0  ;;  %v4455_v9 = vpop.f32.mrb[5].mxu1 }
  0xf4   : > { %5391 = vst [vmem:[#allocation4_spill] sm:$0xff] %v4455_v9  ;;  %v4457_v33 = vpop.f32.mrb[5].mxu0  ;;  %v4459_v35 = vpop.f32.mrb[6].mxu1 }
  0xf5   : > { %5392 = vst [vmem:[#allocation12_spill] sm:$0xff] %v4459_v35  ;;  %v4461_v38 = vpop.f32.mrb[6].mxu0  ;;  %v4463_v39 = vpop.f32.mrb[7].mxu1 }
  0xf6   : > { %5393 = vst [vmem:[#allocation5_spill] sm:$0xff] %v4463_v39  ;;  %v4465_v42 = vpop.f32.mrb[7].mxu0 }
  0xfa   : > { %v4467_v43 = vpop.f32.mrb[8].mxu1 }
  0xfb   : > { %5394 = vst [vmem:[#allocation13_spill] sm:$0xff] %v4467_v43  ;;  %v4469_v45 = vpop.f32.mrb[8].mxu0  ;;  %v4471_v47 = vpop.f32.mrb[9].mxu1 }
  0xfc   : > { %5395 = vst [vmem:[#allocation6_spill] sm:$0xff] %v4471_v47  ;;  %v4473_v50 = vpop.f32.mrb[9].mxu0  ;;  %v4475_v51 = vpop.f32.mrb[10].mxu1 }
  0xfd   : > { %5396 = vst [vmem:[#allocation14_spill] sm:$0xff] %v4475_v51  ;;  %v4477_v55 = vpop.f32.mrb[10].mxu0  ;;  %v4479_v56 = vpop.f32.mrb[11].mxu1 }
  0xfe   : > { %5397 = vst [vmem:[#allocation7_spill] sm:$0xff] %v4479_v56  ;;  %v4481_v58 = vpop.f32.mrb[11].mxu0 }
 0x102   : > { %v4483_v0 = vpop.f32.mrb[12].mxu1 }
 0x103   : > { %5398 = vst [vmem:[#allocation15_spill] sm:$0xff] %v4483_v0  ;;  %v4485_v1 = vpop.f32.mrb[12].mxu0  ;;  %v4487_v40 = vpop.f32.mrb[13].mxu1 }
 0x104   : > { %5399 = vst [vmem:[#allocation8_spill] sm:$0xff] %v4487_v40  ;;  %v4489_v48 = vpop.f32.mrb[13].mxu0  ;;  %v4491_v61 = vpop.f32.mrb[14].mxu1 }
 0x105   : > { %5400 = vst [vmem:[#allocation18_spill] sm:$0xff] %v4491_v61  ;;  %v4493_v62 = vpop.f32.mrb[14].mxu0  ;;  %v4495_v6 = vpop.f32.mrb[15].mxu1 }
 0x106   : > { %5401 = vst [vmem:[#allocation16_spill] sm:$0xff] %v4495_v6  ;;  %v4497_v19 = vpop.f32.mrb[15].mxu0 }
 0x10a   : > { %v4499_v36 = vpop.f32.mrb[16].mxu1 }
 0x10b   : > { %5402 = vst [vmem:[#allocation19_spill] sm:$0xff] %v4499_v36  ;;  %v4501_v24 = vpop.f32.mrb[16].mxu0  ;;  %v4503_v37 = vpop.f32.mrb[17].mxu1 }
 0x10c   : > { %5403 = vst [vmem:[#allocation17_spill] sm:$0xff] %v4503_v37  ;;  %v4505_v29 = vpop.f32.mrb[17].mxu0  ;;  %v4507_v10 = vpop.f32.mrb[18].mxu1 }
 0x10d   : > { %5404 = vst [vmem:[#allocation22_spill] sm:$0xff] %v4507_v10  ;;  %v4509_v16 = vpop.f32.mrb[18].mxu0  ;;  %v4511_v11 = vpop.f32.mrb[19].mxu1 }
 0x10e   : > { %5405 = vst [vmem:[#allocation20_spill] sm:$0xff] %v4511_v11  ;;  %v4513_v25 = vpop.f32.mrb[19].mxu0 }
 0x112   : > { %v4515_v49 = vpop.f32.mrb[20].mxu1 }
 0x113   : > { %5406 = vst [vmem:[#allocation23_spill] sm:$0xff] %v4515_v49  ;;  %v4517_v44 = vpop.f32.mrb[20].mxu0  ;;  %v4519_v28 = vpop.f32.mrb[21].mxu1 }
 0x114   : > { %5407 = vst [vmem:[#allocation21_spill] sm:$0xff] %v4519_v28  ;;  %v4521_v8 = vpop.f32.mrb[21].mxu0  ;;  %v4523_v17 = vpop.f32.mrb[22].mxu1 }
 0x115   : > { %5408 = vst [vmem:[#allocation26_spill] sm:$0xff] %v4523_v17  ;;  %v4525_v13 = vpop.f32.mrb[22].mxu0  ;;  %v4527_v63 = vpop.f32.mrb[23].mxu1 }
 0x116   : > { %5409 = vst [vmem:[#allocation24_spill] sm:$0xff] %v4527_v63  ;;  %v4529_v7 = vpop.f32.mrb[23].mxu0 }
 0x11a   : > { %v4531_v3 = vpop.f32.mrb[24].mxu1 }
 0x11b   : > { %5410 = vst [vmem:[#allocation27_spill] sm:$0xff] %v4531_v3  ;;  %v4533_v59 = vpop.f32.mrb[24].mxu0  ;;  %v4535_v46 = vpop.f32.mrb[25].mxu1 }
 0x11c   : > { %5411 = vst [vmem:[#allocation25_spill] sm:$0xff] %v4535_v46  ;;  %v4537_v34 = vpop.f32.mrb[25].mxu0  ;;  %v4539_v60 = vpop.f32.mrb[26].mxu1 }
 0x11d   : > { %5412 = vst [vmem:[#allocation28_spill] sm:$0xff] %v4539_v60  ;;  %v4541_v53 = vpop.f32.mrb[26].mxu0  ;;  %v4543_v5 = vpop.f32.mrb[27].mxu1 }
 0x11e   : > { %5413 = vst [vmem:[#allocation29_spill] sm:$0xff] %v4541_v53  ;;  %5414 = vst [vmem:[#allocation30_spill] sm:$0xff] %v4543_v5  ;;  %v4545_v57 = vpop.f32.mrb[27].mxu0  ;;  %v4566_v5 = vld [vmem:[%s5318_s4] ss:$0 sm:$0xff] }
 0x11f   : > { %5415 = vst [vmem:[#allocation31_spill] sm:$0xff] %v4545_v57 }
 0x122   : > { %v4547_v4 = vpop.f32.mrb[28].mxu1 }
 0x123   : > { %5416 = vst [vmem:[#allocation32_spill] sm:$0xff] %v4547_v4  ;;  %v4549_v52 = vpop.f32.mrb[28].mxu0  ;;  %v4551_v41 = vpop.f32.mrb[29].mxu1 }
 0x124   : > { %5417 = vst [vmem:[#allocation33_spill] sm:$0xff] %v4549_v52  ;;  %5418 = vst [vmem:[#allocation34_spill] sm:$0xff] %v4551_v41  ;;  %v4553_v2 = vpop.f32.mrb[29].mxu0  ;;  %v4555_v12 = vpop.f32.mrb[30].mxu1 }
 0x125   : > { %5419 = vst [vmem:[#allocation35_spill] sm:$0xff] %v4553_v2  ;;  %5420 = vst [vmem:[#allocation36_spill] sm:$0xff] %v4555_v12  ;;  %v4557_v14 = vpop.f32.mrb[30].mxu0  ;;  %v4559_v15 = vpop.f32.mrb[31].mxu1 }
 0x126   : > { %5421 = vst [vmem:[#allocation37_spill] sm:$0xff] %v4557_v14  ;;  %5422 = vst [vmem:[#allocation38_spill] sm:$0xff] %v4559_v15  ;;  %v4561_v20 = vpop.f32.mrb[31].mxu0 }
 0x127   : > { %5423 = vst [vmem:[#allocation39_spill] sm:$0xff] %v4561_v20 }
 0x12a   : > { %v3632_v4 = vpop.f32.mrb[32].mxu1 }
 0x12b   : > { %v1032_v60 = vadd.f32 %v3632_v4, %v4566_v5  ;;  %v1023_v46 = vpop.f32.mrb[33].mxu1  ;;  %v3698_v41 = vpop.f32.mrb[32].mxu0 }
 0x12c   : > { %v1024_v3 = vadd.f32 %v4566_v5, %v1023_v46  ;;  %v3633_v63 = vpop.f32.mrb[34].mxu1  ;;  %v1576_v12 = vpop.f32.mrb[33].mxu0 }
 0x12d   : > { %v1833_v17 = vmul.f32 %v4437_v21, %v1032_v60  ;;  %v1035_v15 = vadd.f32 %v3633_v63, %v4566_v5  ;;  %v1026_v28 = vpop.f32.mrb[35].mxu1  ;;  %v3699_v49 = vpop.f32.mrb[34].mxu0 }
 0x12e   : > { %v1831_v11 = vmul.f32 %v1024_v3, %v4441_v26  ;;  %v1027_v10 = vadd.f32 %v4566_v5, %v1026_v28  ;;  %v1579_v37 = vpop.f32.mrb[35].mxu0 }
 0x12f   : > { %v1897_v36 = vadd.f32 %v3698_v41, %v1833_v17  ;;  %v1834_v4 = vmul.f32 %v4445_v30, %v1035_v15 }
 0x130   : > { %v1895_v6 = vadd.f32 %v1831_v11, %v1576_v12  ;;  %v1832_v61 = vmul.f32 %v1027_v10, %v4449_v22 }
 0x131   : > { %v1973_v46 = vsel %vm588_vm0, %v1897_v36, -inf  ;;  %v1898_v40 = vadd.f32 %v3699_v49, %v1834_v4 }
 0x132   : > { %v1974_v0 = vrot.slane %v1973_v46, 4  ;;  %v1959_v21 = vsel %vm588_vm0, %v1895_v6, -inf  ;;  %v1896_v63 = vadd.f32 %v1832_v61, %v1579_v37  ;;  %v3636_v60 = vpop.f32.mrb[36].mxu1 }
 0x133   : > { %v1960_v56 = vrot.slane %v1959_v21, 4  ;;  %v1980_v26 = vsel %vm588_vm0, %v1898_v40, -inf  ;;  %v1048_v28 = vadd.f32 %v3636_v60, %v4566_v5  ;;  %v1039_v3 = vpop.f32.mrb[37].mxu1  ;;  %v3702_v17 = vpop.f32.mrb[36].mxu0 }
 0x134   : > { %v1975_v41 = vmax.f32 %v1973_v46, %v1974_v0  ;;  %v1981_v30 = vrot.slane %v1980_v26, 4  ;;  %v1966_v11 = vsel %vm588_vm0, %v1896_v63, -inf  ;;  %v1040_v22 = vadd.f32 %v4566_v5, %v1039_v3  ;;  %v3637_v36 = vpop.f32.mrb[38].mxu1  ;;  %v1592_v10 = vpop.f32.mrb[37].mxu0 }
 0x135   : > { %v1961_v49 = vmax.f32 %v1959_v21, %v1960_v56  ;;  %v1967_v12 = vrot.slane %v1966_v11, 4  ;;  %v1837_v61 = vmul.f32 %v4453_v32, %v1048_v28  ;;  %v1051_v6 = vadd.f32 %v3637_v36, %v4566_v5  ;;  %v1042_v37 = vpop.f32.mrb[39].mxu1  ;;  %v3703_v40 = vpop.f32.mrb[38].mxu0 }
 0x136   : > { %v1976_v15 = vrot.slane %v1975_v41, 2  ;;  %v1982_v4 = vmax.f32 %v1980_v26, %v1981_v30  ;;  %v1835_v60 = vmul.f32 %v1040_v22, %v4457_v33  ;;  %v1043_v0 = vadd.f32 %v4566_v5, %v1042_v37  ;;  %v1595_v46 = vpop.f32.mrb[39].mxu0  ;;  %v4592_v33 = vld [vmem:[%s5319_s5] ss:$0 sm:$0xff] }
 0x137   : > { %v1962_v63 = vrot.slane %v1961_v49, 2  ;;  %v1968_v51 = vmax.f32 %v1966_v11, %v1967_v12  ;;  %v1901_v3 = vadd.f32 %v3702_v17, %v1837_v61  ;;  %v1838_v47 = vmul.f32 %v4461_v38, %v1051_v6 }
 0x138   : > { %v1977_v56 = vmax.f32 %v1975_v41, %v1976_v15  ;;  %v1983_v21 = vrot.slane %v1982_v4, 2  ;;  %v1899_v43 = vadd.f32 %v1835_v60, %v1592_v10  ;;  %v1836_v32 = vmul.f32 %v1043_v0, %v4465_v42 }
 0x139   : > { %v1963_v28 = vmax.f32 %v1961_v49, %v1962_v63  ;;  %v1969_v36 = vrot.slane %v1968_v51, 2  ;;  %v2001_v39 = vsel %vm588_vm0, %v1901_v3, -inf  ;;  %v1902_v26 = vadd.f32 %v3703_v40, %v1838_v47 }
 0x13a   : > { %v1978_v30 = vrot.slane %v1977_v56, 1  ;;  %v1984_v11 = vmax.f32 %v1982_v4, %v1983_v21  ;;  %v2002_v17 = vrot.slane %v2001_v39, 4  ;;  %v1987_v38 = vsel %vm588_vm0, %v1899_v43, -inf  ;;  %v4595_v41 = vpop.f32.mrb[40].mxu1 }
 0x13b   : > { %v1964_v22 = vrot.slane %v1963_v28, 1  ;;  %v1970_v10 = vmax.f32 %v1968_v51, %v1969_v36  ;;  %v1988_v42 = vrot.slane %v1987_v38, 4  ;;  %v2008_v49 = vsel %vm588_vm0, %v1902_v26, -inf  ;;  %v4598_v12 = vpop.f32.mrb[41].mxu1  ;;  %v4600_v47 = vpop.f32.mrb[40].mxu0 }
 0x13c   : > { %v1979_v61 = vmax.f32 %v1977_v56, %v1978_v30  ;;  %v1985_v6 = vrot.slane %v1984_v11, 1  ;;  %v2003_v37 = vmax.f32 %v2001_v39, %v2002_v17  ;;  %v2009_v40 = vrot.slane %v2008_v49, 4  ;;  %v4602_v15 = vpop.f32.mrb[42].mxu1  ;;  %v4604_v4 = vpop.f32.mrb[41].mxu0 }
 0x13d   : > { %v1965_v43 = vmax.f32 %v1963_v28, %v1964_v22  ;;  %v1971_v60 = vrot.slane %v1970_v10, 1  ;;  %v1989_v0 = vmax.f32 %v1987_v38, %v1988_v42  ;;  %v1900_v63 = vadd.f32 %v1836_v32, %v1595_v46  ;;  %v4606_v51 = vpop.f32.mrb[43].mxu1  ;;  %v4608_v3 = vpop.f32.mrb[42].mxu0 }
 0x13e   : > { %v2416_v21 = vadd.f32 %v4592_v33, %v1979_v61  ;;  %v1986_v36 = vmax.f32 %v1984_v11, %v1985_v6  ;;  %v2004_v26 = vrot.slane %v2003_v37, 2  ;;  %v2010_v56 = vmax.f32 %v2008_v49, %v2009_v40  ;;  %v4611_v30 = vpop.f32.mrb[43].mxu0 }
 0x13f   : > { %v2414_v39 = vadd.f32 %v4592_v33, %v1965_v43  ;;  %v1972_v17 = vmax.f32 %v1970_v10, %v1971_v60  ;;  %v1990_v35 = vrot.slane %v1989_v0, 2  ;;  %v1994_v28 = vsel %vm588_vm0, %v1900_v63, -inf }
 0x140   : > { %v2480_v22 = vmul.f32 0.2, %v2416_v21  ;;  %v2417_v46 = vadd.f32 %v4592_v33, %v1986_v36  ;;  %v2005_v32 = vmax.f32 %v2003_v37, %v2004_v26  ;;  %v2011_v38 = vrot.slane %v2010_v56, 2 }
 0x141   : > { %v2478_v42 = vmul.f32 0.2, %v2414_v39  ;;  %v2415_v9 = vadd.f32 %v4592_v33, %v1972_v17  ;;  %v1991_v61 = vmax.f32 %v1989_v0, %v1990_v35  ;;  %v1995_v11 = vrot.slane %v1994_v28, 4 }
 0x142   : > { %v2544_v6 = vmax.f32 %v2416_v21, %v2480_v22  ;;  %v2481_v49 = vmul.f32 0.2, %v2417_v46  ;;  %v2006_v40 = vrot.slane %v2005_v32, 1  ;;  %v2012_v54 = vmax.f32 %v2010_v56, %v2011_v38  ;;  %v4617_v43 = vpop.f32.mrb[44].mxu1 }
 0x143   : > { %v2542_v10 = vmax.f32 %v2414_v39, %v2478_v42  ;;  %v2479_v60 = vmul.f32 0.2, %v2415_v9  ;;  %v1992_v63 = vrot.slane %v1991_v61, 1  ;;  %v1996_v31 = vmax.f32 %v1994_v28, %v1995_v11  ;;  %v4619_v36 = vpop.f32.mrb[45].mxu1  ;;  %v4621_v37 = vpop.f32.mrb[44].mxu0 }
 0x144   : > { %v3401_v26 = vpack.c.bf16 %v2544_v6, %v2544_v6  ;;  %v2545_v17 = vmax.f32 %v2417_v46, %v2481_v49  ;;  %v2007_v35 = vmax.f32 %v2005_v32, %v2006_v40  ;;  %v2013_v0 = vrot.slane %v2012_v54, 1  ;;  %v4623_v21 = vpop.f32.mrb[46].mxu1  ;;  %v4625_v22 = vpop.f32.mrb[45].mxu0 }
 0x145   : > { %v3399_v56 = vpack.c.bf16 %v2542_v10, %v2542_v10  ;;  %v2543_v38 = vmax.f32 %v2415_v9, %v2479_v60  ;;  %v1993_v39 = vmax.f32 %v1991_v61, %v1992_v63  ;;  %v1997_v42 = vrot.slane %v1996_v31, 2  ;;  %v4627_v27 = vpop.f32.mrb[47].mxu1  ;;  %v4629_v28 = vpop.f32.mrb[46].mxu0 }
 0x146   : > { %v2864_v11 = vunpack.c.l.b16 %v3401_v26  ;;  %v3402_v23 = vpack.c.bf16 %v2545_v17, %v2545_v17  ;;  %v2420_v6 = vadd.f32 %v4592_v33, %v2007_v35  ;;  %v2014_v46 = vmax.f32 %v2012_v54, %v2013_v0  ;;  %v4632_v32 = vpop.f32.mrb[47].mxu0 }
 0x147   : > { %v2862_v49 = vunpack.c.l.b16 %v3399_v56  ;;  %v3400_v40 = vpack.c.bf16 %v2543_v38, %v2543_v38  ;;  %v2418_v18 = vadd.f32 %v4592_v33, %v1993_v39  ;;  %v1998_v20 = vmax.f32 %v1996_v31, %v1997_v42 }
 0x148   : > { %v2929_v10 = vrot.slane %v2864_v11, 6  ;;  %v2865_v9 = vunpack.c.l.b16 %v3402_v23  ;;  %v2484_v61 = vmul.f32 0.2, %v2420_v6  ;;  %v2421_v60 = vadd.f32 %v4592_v33, %v2014_v46 }
 0x149   : > { %v2863_v63 = vunpack.c.l.b16 %v3400_v40  ;;  %v2482_v14 = vmul.f32 0.2, %v2418_v18  ;;  %v1999_v26 = vrot.slane %v1998_v20, 1  ;;  %v1064_v17 = vadd.f32 %v4595_v41, %v4566_v5 }
 0x14a   : > { %v2932_v54 = vrot.slane %v2865_v9, 5  ;;  %v2548_v35 = vmax.f32 %v2420_v6, %v2484_v61  ;;  %v2485_v0 = vmul.f32 0.2, %v2421_v60  ;;  %v1056_v56 = vadd.f32 %v4566_v5, %v4598_v12  ;;  %v4640_v38 = vpop.f32.mrb[48].mxu1 }
 0x14b   : > { %v2926_v31 = vrot.slane %v2863_v63, 7  ;;  %v2546_v23 = vmax.f32 %v2418_v18, %v2482_v14  ;;  %v2000_v39 = vmax.f32 %v1998_v20, %v1999_v26  ;;  %v1841_v42 = vmul.f32 %v4469_v45, %v1064_v17  ;;  %v4643_v11 = vpop.f32.mrb[49].mxu1  ;;  %v4645_v46 = vpop.f32.mrb[48].mxu0 }
 0x14c   : > { %v3405_v40 = vpack.c.bf16 %v2548_v35, %v2548_v35  ;;  %v2549_v2 = vmax.f32 %v2421_v60, %v2485_v0  ;;  %v1067_v41 = vadd.f32 %v4602_v15, %v4566_v5  ;;  %v1839_v6 = vmul.f32 %v1056_v56, %v4473_v50  ;;  %v4650_v9 = vpop.f32.mrb[50].mxu1  ;;  %v4652_v12 = vpop.f32.mrb[49].mxu0 }
 0x14d   : > { %v2928_v18 = vsel %vm2927_vm1, %v2926_v31, %v2862_v49  ;;  %v3403_v14 = vpack.c.bf16 %v2546_v23, %v2546_v23  ;;  %v2419_v45 = vadd.f32 %v4592_v33, %v2000_v39  ;;  %v1905_v20 = vadd.f32 %v4600_v47, %v1841_v42  ;;  %v4657_v61 = vpop.f32.mrb[51].mxu1  ;;  %v4659_v63 = vpop.f32.mrb[50].mxu0 }
 0x14e   : > { %v2931_v60 = vsel %vm2930_vm2, %v2929_v10, %v2928_v18  ;;  %v4662_v15 = vunpack.c.l.b16 %v3405_v40  ;;  %v3406_v50 = vpack.c.bf16 %v2549_v2, %v2549_v2  ;;  %v1903_v26 = vadd.f32 %v1839_v6, %v4604_v4  ;;  %v4665_v17 = vpop.f32.mrb[51].mxu0 }
 0x14f   : > { %v2866_v49 = vunpack.c.l.b16 %v3403_v14  ;;  %v2934_v35 = vsel %vm2933_vm3, %v2932_v54, %v2931_v60  ;;  %v2483_v0 = vmul.f32 0.2, %v2419_v45  ;;  %v2029_v47 = vsel %vm588_vm0, %v1905_v20, -inf }
 0x150   : > { %v2941_v56 = vrot.slane %v4662_v15, 2  ;;  %v2869_v31 = vunpack.c.l.b16 %v3406_v50  ;;  %v2030_v10 = vrot.slane %v2029_v47, 4  ;;  %v2015_v23 = vsel %vm588_vm0, %v1903_v26, -inf }
 0x151   : > { %v2935_v2 = vrot.slane %v2866_v49, 4  ;;  %v2547_v39 = vmax.f32 %v2419_v45, %v2483_v0  ;;  %v2016_v42 = vrot.slane %v2015_v23, 4  ;;  %v1059_v4 = vadd.f32 %v4566_v5, %v4606_v51 }
 0x152   : > { %v2944_v40 = vrot.slane %v2869_v31, 1  ;;  %v2031_v6 = vmax.f32 %v2029_v47, %v2030_v10  ;;  %v1842_v54 = vmul.f32 %v4477_v55, %v1067_v41  ;;  %v1080_v18 = vadd.f32 %v4617_v43, %v4566_v5  ;;  %v4676_v14 = vpop.f32.mrb[52].mxu1 }
 0x153   : > { %v2937_v20 = vsel %vm2936_vm4, %v2935_v2, %v2934_v35  ;;  %v3404_v60 = vpack.c.bf16 %v2547_v39, %v2547_v39  ;;  %v2017_v15 = vmax.f32 %v2015_v23, %v2016_v42  ;;  %v1840_v45 = vmul.f32 %v1059_v4, %v4481_v58  ;;  %v4680_v50 = vpop.f32.mrb[53].mxu1  ;;  %v4682_v26 = vpop.f32.mrb[52].mxu0 }
 0x154   : > { %v2032_v51 = vrot.slane %v2031_v6, 2  ;;  %v1906_v49 = vadd.f32 %v4608_v3, %v1842_v54  ;;  %v1072_v55 = vadd.f32 %v4566_v5, %v4619_v36  ;;  %v1845_v43 = vmul.f32 %v4485_v1, %v1080_v18  ;;  %v4688_v41 = vpop.f32.mrb[54].mxu1  ;;  %v4690_v35 = vpop.f32.mrb[53].mxu0 }
 0x155   : > { %v2867_v0 = vunpack.c.l.b16 %v3404_v60  ;;  %v2018_v47 = vrot.slane %v2017_v15, 2  ;;  %v1904_v58 = vadd.f32 %v1840_v45, %v4611_v30  ;;  %v1083_v31 = vadd.f32 %v4623_v21, %v4566_v5  ;;  %v4695_v10 = vpop.f32.mrb[55].mxu1  ;;  %v4697_v3 = vpop.f32.mrb[54].mxu0 }
 0x156   : > { %v2033_v23 = vmax.f32 %v2031_v6, %v2032_v51  ;;  %v2036_v36 = vsel %vm588_vm0, %v1906_v49, -inf  ;;  %v1909_v1 = vadd.f32 %v4621_v37, %v1845_v43  ;;  %v1843_v2 = vmul.f32 %v1072_v55, %v4489_v48  ;;  %v4702_v39 = vpop.f32.mrb[55].mxu0 }
 0x157   : > { %v2938_v42 = vrot.slane %v2867_v0, 3  ;;  %v2019_v4 = vmax.f32 %v2017_v15, %v2018_v47  ;;  %v2037_v54 = vrot.slane %v2036_v36, 4  ;;  %v2022_v30 = vsel %vm588_vm0, %v1904_v58, -inf }
 0x158   : > { %v2034_v21 = vrot.slane %v2033_v23, 1  ;;  %v2023_v18 = vrot.slane %v2022_v30, 4  ;;  %v2057_v60 = vsel %vm588_vm0, %v1909_v1, -inf  ;;  %v1907_v6 = vadd.f32 %v1843_v2, %v4625_v22 }
 0x159   : > { %v2940_v45 = vsel %vm2939_vm5, %v2938_v42, %v2937_v20  ;;  %v2020_v51 = vrot.slane %v2019_v4, 1  ;;  %v2038_v37 = vmax.f32 %v2036_v36, %v2037_v54  ;;  %v2058_v49 = vrot.slane %v2057_v60, 4 }
 0x15a   : > { %v2943_v48 = vsel %vm2942_vm6, %v2941_v56, %v2940_v45  ;;  %v2035_v55 = vmax.f32 %v2033_v23, %v2034_v21  ;;  %v2024_v43 = vmax.f32 %v2022_v30, %v2023_v18  ;;  %v2043_v15 = vsel %vm588_vm0, %v1907_v6, -inf  ;;  %v4711_v0 = vpop.f32.mrb[56].mxu1 }
 0x15b   : > { %v2946_v22 = vsel %vm2945_vm7, %v2944_v40, %v2943_v48  ;;  %v2021_v47 = vmax.f32 %v2019_v4, %v2020_v51  ;;  %v2039_v20 = vrot.slane %v2038_v37, 2  ;;  %v2059_v58 = vmax.f32 %v2057_v60, %v2058_v49  ;;  %v4719_v36 = vpop.f32.mrb[57].mxu1  ;;  %v4721_v56 = vpop.f32.mrb[56].mxu0 }
 0x15c   : > { %v3045_v23 = vpack.c.b16 %v2946_v22, %v2946_v22  ;;  %v2424_v1 = vadd.f32 %v4592_v33, %v2035_v55  ;;  %v2025_v2 = vrot.slane %v2024_v43, 2  ;;  %v2044_v42 = vrot.slane %v2043_v15, 4  ;;  %v4724_v54 = vpop.f32.mrb[58].mxu1  ;;  %v4726_v30 = vpop.f32.mrb[57].mxu0 }
 0x15d   : > { %v2422_v21 = vadd.f32 %v4592_v33, %v2021_v47  ;;  %v2040_v40 = vmax.f32 %v2038_v37, %v2039_v20  ;;  %v2060_v4 = vrot.slane %v2059_v58, 2  ;;  %v1075_v18 = vadd.f32 %v4566_v5, %v4627_v27  ;;  %v4731_v60 = vpop.f32.mrb[59].mxu1  ;;  %v4733_v6 = vpop.f32.mrb[58].mxu0 }
 0x15e   : > { %5424 = vst [vmem:[#allocation40_spill] sm:$0xff] %v4731_v60  ;;  %5425 = vst [vmem:[#allocation41_spill] sm:$0xff] %v4733_v6  ;;  %v2488_v45 = vmul.f32 0.2, %v2424_v1  ;;  %v2026_v51 = vmax.f32 %v2024_v43, %v2025_v2  ;;  %v2045_v49 = vmax.f32 %v2043_v15, %v2044_v42  ;;  %v1846_v48 = vmul.f32 %v4493_v62, %v1083_v31  ;;  %v4738_v55 = vpop.f32.mrb[59].mxu0 }
 0x15f   : > { %3062 = vst.msk [vmem:[%s4716_s18] sm:$0xf] %vm3061_vm8, %v3045_v23  ;;  %v2486_v22 = vmul.f32 0.2, %v2422_v21  ;;  %v2041_v47 = vrot.slane %v2040_v40, 1  ;;  %v2061_v37 = vmax.f32 %v2059_v58, %v2060_v4  ;;  %v1844_v20 = vmul.f32 %v1075_v18, %v4497_v19 }
 0x160   : > { %v2552_v52 = vmax.f32 %v2424_v1, %v2488_v45  ;;  %v2027_v27 = vrot.slane %v2026_v51, 1  ;;  %v2046_v57 = vrot.slane %v2045_v49, 2  ;;  %v1910_v53 = vadd.f32 %v4629_v28, %v1846_v48 }
 0x161   : > { %v2550_v6 = vmax.f32 %v2422_v21, %v2486_v22  ;;  %v2042_v60 = vmax.f32 %v2040_v40, %v2041_v47  ;;  %v2062_v23 = vrot.slane %v2061_v37, 1  ;;  %v1908_v43 = vadd.f32 %v1844_v20, %v4632_v32 }
 0x162   : > { %v3409_v15 = vpack.c.bf16 %v2552_v52, %v2552_v52  ;;  %v2028_v2 = vmax.f32 %v2026_v51, %v2027_v27  ;;  %v2047_v62 = vmax.f32 %v2045_v49, %v2046_v57  ;;  %v2064_v31 = vsel %vm588_vm0, %v1910_v53, -inf  ;;  %v4744_v42 = vpop.f32.mrb[60].mxu1 }
 0x163   : > { %v3407_v58 = vpack.c.bf16 %v2550_v6, %v2550_v6  ;;  %v2425_v19 = vadd.f32 %v4592_v33, %v2042_v60  ;;  %v2063_v1 = vmax.f32 %v2061_v37, %v2062_v23  ;;  %v2065_v4 = vrot.slane %v2064_v31, 4  ;;  %v4747_v18 = vpop.f32.mrb[61].mxu1  ;;  %v4749_v28 = vpop.f32.mrb[60].mxu0 }
 0x164   : > { %v4751_v21 = vunpack.c.l.b16 %v3409_v15  ;;  %v2423_v32 = vadd.f32 %v4592_v33, %v2028_v2  ;;  %v2048_v52 = vrot.slane %v2047_v62, 1  ;;  %v2050_v57 = vsel %vm588_vm0, %v1908_v43, -inf  ;;  %v4755_v40 = vpop.f32.mrb[62].mxu1  ;;  %v4757_v53 = vpop.f32.mrb[61].mxu0 }
 0x165   : > { %5426 = vst [vmem:[#allocation42_spill] sm:$0xff] %v4757_v53  ;;  %v2870_v6 = vunpack.c.l.b16 %v3407_v58  ;;  %v2489_v45 = vmul.f32 0.2, %v2425_v19  ;;  %v2428_v60 = vadd.f32 %v4592_v33, %v2063_v1  ;;  %v2066_v51 = vmax.f32 %v2064_v31, %v2065_v4  ;;  %v4760_v49 = vpop.f32.mrb[63].mxu1  ;;  %v4762_v48 = vpop.f32.mrb[62].mxu0 }
 0x166   : > { %5427 = vst [vmem:[#allocation43_spill] sm:$0xff] %v4760_v49  ;;  %5428 = vst [vmem:[#allocation44_spill] sm:$0xff] %v4762_v48  ;;  %v2949_v22 = vrot.slane %v4751_v21, 6  ;;  %v2487_v47 = vmul.f32 0.2, %v2423_v32  ;;  %v2049_v37 = vmax.f32 %v2047_v62, %v2048_v52  ;;  %v2051_v20 = vrot.slane %v2050_v57, 4 }
 0x167   : > { %v4765_v27 = vpop.f32.mrb[63].mxu0  ;;  %v2553_v23 = vmax.f32 %v2425_v19, %v2489_v45  ;;  %v2492_v43 = vmul.f32 0.2, %v2428_v60  ;;  %v2067_v15 = vrot.slane %v2066_v51, 2  ;;  %v1096_v2 = vadd.f32 %v4640_v38, %v4566_v5 }
 0x168   : > { %5429 = vst [vmem:[#allocation45_spill] sm:$0xff] %v4765_v27  ;;  %v2551_v58 = vmax.f32 %v2423_v32, %v2487_v47  ;;  %v2426_v31 = vadd.f32 %v4592_v33, %v2049_v37  ;;  %v2052_v1 = vmax.f32 %v2050_v57, %v2051_v20  ;;  %v1088_v4 = vadd.f32 %v4566_v5, %v4643_v11 }
 0x169   : > { %v3410_v48 = vpack.c.bf16 %v2553_v23, %v2553_v23  ;;  %v2556_v21 = vmax.f32 %v2428_v60, %v2492_v43  ;;  %v2068_v53 = vmax.f32 %v2066_v51, %v2067_v15  ;;  %v1849_v62 = vmul.f32 %v4501_v24, %v1096_v2 }
 0x16a   : > { %v3408_v52 = vpack.c.bf16 %v2551_v58, %v2551_v58  ;;  %v2490_v27 = vmul.f32 0.2, %v2426_v31  ;;  %v2053_v19 = vrot.slane %v2052_v1, 2  ;;  %v1099_v45 = vadd.f32 %v4650_v9, %v4566_v5  ;;  %v4775_v49 = vpop.f32.mrb[64].mxu1 }
 0x16b   : > { %v2873_v38 = vunpack.c.l.b16 %v3410_v48  ;;  %v3413_v32 = vpack.c.bf16 %v2556_v21, %v2556_v21  ;;  %v2069_v47 = vrot.slane %v2068_v53, 1  ;;  %v1913_v57 = vadd.f32 %v4645_v46, %v1849_v62  ;;  %v4778_v37 = vpop.f32.mrb[65].mxu1  ;;  %v4780_v11 = vpop.f32.mrb[64].mxu0 }
 0x16c   : > { %v2871_v60 = vunpack.c.l.b16 %v3408_v52  ;;  %v2554_v51 = vmax.f32 %v2426_v31, %v2490_v27  ;;  %v2054_v24 = vmax.f32 %v2052_v1, %v2053_v19  ;;  %v1847_v20 = vmul.f32 %v1088_v4, %v4505_v29  ;;  %v4783_v23 = vpop.f32.mrb[66].mxu1  ;;  %v4785_v43 = vpop.f32.mrb[65].mxu0 }
 0x16d   : > { %v2951_v9 = vrot.slane %v2873_v38, 5  ;;  %v4787_v15 = vunpack.c.l.b16 %v3413_v32  ;;  %v2070_v48 = vmax.f32 %v2068_v53, %v2069_v47  ;;  %v2085_v2 = vsel %vm588_vm0, %v1913_v57, -inf  ;;  %v4790_v46 = vpop.f32.mrb[67].mxu1  ;;  %v4792_v58 = vpop.f32.mrb[66].mxu0 }
 0x16e   : > { %5430 = vst [vmem:[#allocation46_spill] sm:$0xff] %v4792_v58  ;;  %v2947_v21 = vrot.slane %v2871_v60, 7  ;;  %v3411_v62 = vpack.c.bf16 %v2554_v51, %v2554_v51  ;;  %v2055_v27 = vrot.slane %v2054_v24, 1  ;;  %v2086_v31 = vrot.slane %v2085_v2, 4  ;;  %v4794_v1 = vpop.f32.mrb[67].mxu0 }
 0x16f   : > { %5431 = vst [vmem:[#allocation47_spill] sm:$0xff] %v4794_v1  ;;  %v2429_v4 = vadd.f32 %v4592_v33, %v2070_v48  ;;  %v1911_v52 = vadd.f32 %v1847_v20, %v4652_v12  ;;  %v1091_v53 = vadd.f32 %v4566_v5, %v4657_v61  ;;  %v1850_v1 = vmul.f32 %v4509_v16, %v1099_v45 }
 0x170   : > { %v2948_v19 = vsel %vm2927_vm1, %v2947_v21, %v2870_v6  ;;  %v2874_v38 = vunpack.c.l.b16 %v3411_v62  ;;  %v2056_v32 = vmax.f32 %v2054_v24, %v2055_v27  ;;  %v2087_v47 = vmax.f32 %v2085_v2, %v2086_v31 }
 0x171   : > { %v2950_v57 = vsel %vm2930_vm2, %v2949_v22, %v2948_v19  ;;  %v2493_v60 = vmul.f32 0.2, %v2429_v4  ;;  %v2071_v51 = vsel %vm588_vm0, %v1911_v52, -inf  ;;  %v1914_v24 = vadd.f32 %v4659_v63, %v1850_v1 }
 0x172   : > { %v2952_v29 = vsel %vm2933_vm3, %v2951_v9, %v2950_v57  ;;  %v2953_v48 = vrot.slane %v2874_v38, 4  ;;  %v2427_v12 = vadd.f32 %v4592_v33, %v2056_v32  ;;  %v2088_v20 = vrot.slane %v2087_v47, 2  ;;  %v4807_v58 = vpop.f32.mrb[68].mxu1 }
 0x173   : > { %v2557_v61 = vmax.f32 %v2429_v4, %v2493_v60  ;;  %v2072_v6 = vrot.slane %v2071_v51, 4  ;;  %v1848_v2 = vmul.f32 %v1091_v53, %v4513_v25  ;;  %v4811_v22 = vpop.f32.mrb[69].mxu1  ;;  %v4813_v21 = vpop.f32.mrb[68].mxu0  ;;  %v1112_v62 = vadd.f32 %v4676_v14, %v4566_v5 }
 0x174   : > { %v2954_v16 = vsel %vm2936_vm4, %v2953_v48, %v2952_v29  ;;  %v2491_v45 = vmul.f32 0.2, %v2427_v12  ;;  %v2089_v9 = vmax.f32 %v2087_v47, %v2088_v20  ;;  %v4818_v27 = vpop.f32.mrb[70].mxu1  ;;  %v4820_v31 = vpop.f32.mrb[69].mxu0  ;;  %v2092_v63 = vsel %vm588_vm0, %v1914_v24, -inf }
 0x175   : > { %v3414_v4 = vpack.c.bf16 %v2557_v61, %v2557_v61  ;;  %v2073_v52 = vmax.f32 %v2071_v51, %v2072_v6  ;;  %v1912_v25 = vadd.f32 %v1848_v2, %v4665_v17  ;;  %v4824_v1 = vpop.f32.mrb[71].mxu1  ;;  %v4826_v53 = vpop.f32.mrb[70].mxu0  ;;  %v2093_v38 = vrot.slane %v2092_v63, 4 }
 0x176   : > { %5432 = vst [vmem:[#allocation48_spill] sm:$0xff] %v4826_v53  ;;  %v2555_v29 = vmax.f32 %v2427_v12, %v2491_v45  ;;  %v2090_v19 = vrot.slane %v2089_v9, 1  ;;  %v1104_v14 = vadd.f32 %v4566_v5, %v4680_v50  ;;  %v4830_v32 = vpop.f32.mrb[71].mxu0  ;;  %v1853_v51 = vmul.f32 %v4517_v44, %v1112_v62 }
 0x177   : > { %5433 = vst [vmem:[#allocation49_spill] sm:$0xff] %v4830_v32  ;;  %v2877_v47 = vunpack.c.l.b16 %v3414_v4  ;;  %v2074_v57 = vrot.slane %v2073_v52, 2  ;;  %v2078_v60 = vsel %vm588_vm0, %v1912_v25, -inf  ;;  %v2094_v20 = vmax.f32 %v2092_v63, %v2093_v38 }
 0x178   : > { %v3412_v48 = vpack.c.bf16 %v2555_v29, %v2555_v29  ;;  %v2091_v17 = vmax.f32 %v2089_v9, %v2090_v19  ;;  %v2079_v61 = vrot.slane %v2078_v60, 4  ;;  %v1917_v12 = vadd.f32 %v4682_v26, %v1853_v51 }
 0x179   : > { %v2959_v6 = vrot.slane %v2877_v47, 1  ;;  %v2075_v24 = vmax.f32 %v2073_v52, %v2074_v57  ;;  %v1115_v2 = vadd.f32 %v4688_v41, %v4566_v5  ;;  %v2095_v4 = vrot.slane %v2094_v20, 2 }
 0x17a   : > { %v2875_v50 = vunpack.c.l.b16 %v3412_v48  ;;  %v2432_v45 = vadd.f32 %v4592_v33, %v2091_v17  ;;  %v2080_v32 = vmax.f32 %v2078_v60, %v2079_v61  ;;  %v4838_v53 = vpop.f32.mrb[72].mxu1  ;;  %v2113_v44 = vsel %vm588_vm0, %v1917_v12, -inf }
 0x17b   : > { %v2076_v25 = vrot.slane %v2075_v24, 1  ;;  %v1851_v9 = vmul.f32 %v1104_v14, %v4521_v8  ;;  %v1107_v62 = vadd.f32 %v4566_v5, %v4695_v10  ;;  %v4844_v52 = vpop.f32.mrb[73].mxu1  ;;  %v4846_v26 = vpop.f32.mrb[72].mxu0  ;;  %v2096_v29 = vmax.f32 %v2094_v20, %v2095_v4 }
 0x17c   : > { %v2955_v41 = vrot.slane %v2875_v50, 3  ;;  %v2496_v63 = vmul.f32 0.2, %v2432_v45  ;;  %v2081_v19 = vrot.slane %v2080_v32, 2  ;;  %v4848_v38 = vpop.f32.mrb[74].mxu1  ;;  %v4850_v47 = vpop.f32.mrb[73].mxu0  ;;  %v1854_v8 = vmul.f32 %v4525_v13, %v1115_v2 }
 0x17d   : > { %v2077_v57 = vmax.f32 %v2075_v24, %v2076_v25  ;;  %v2114_v60 = vrot.slane %v2113_v44, 4  ;;  %v1915_v51 = vadd.f32 %v1851_v9, %v4690_v35  ;;  %v4854_v14 = vpop.f32.mrb[75].mxu1  ;;  %v4856_v10 = vpop.f32.mrb[74].mxu0  ;;  %v2097_v61 = vrot.slane %v2096_v29, 1 }
 0x17e   : > { %v2956_v48 = vsel %vm2939_vm5, %v2955_v41, %v2954_v16  ;;  %v2560_v17 = vmax.f32 %v2432_v45, %v2496_v63  ;;  %v2082_v20 = vmax.f32 %v2080_v32, %v2081_v19  ;;  %v4859_v12 = vpop.f32.mrb[75].mxu0  ;;  %v5434_v50 = vrot.slane %v4787_v15, 2 }
 0x17f   : > { %v2430_v4 = vadd.f32 %v4592_v33, %v2077_v57  ;;  %v2115_v35 = vmax.f32 %v2113_v44, %v2114_v60  ;;  %v2099_v13 = vsel %vm588_vm0, %v1915_v51, -inf  ;;  %v2098_v9 = vmax.f32 %v2096_v29, %v2097_v61 }
 0x180   : > { %v2958_v24 = vsel %vm2942_vm6, %v5434_v50, %v2956_v48  ;;  %v3417_v25 = vpack.c.bf16 %v2560_v17, %v2560_v17  ;;  %v2083_v16 = vrot.slane %v2082_v20, 1  ;;  %v2100_v63 = vrot.slane %v2099_v13, 4 }
 0x181   : > { %v2960_v2 = vsel %vm2945_vm7, %v2959_v6, %v2958_v24  ;;  %v2494_v41 = vmul.f32 0.2, %v2430_v4  ;;  %v2116_v32 = vrot.slane %v2115_v35, 2  ;;  %v2433_v15 = vadd.f32 %v4592_v33, %v2098_v9 }
 0x182   : > { %v3046_v45 = vpack.c.b16 %v2960_v2, %v2960_v2  ;;  %v4867_v19 = vunpack.c.l.b16 %v3417_v25  ;;  %v2084_v48 = vmax.f32 %v2082_v20, %v2083_v16  ;;  %v1918_v57 = vadd.f32 %v4697_v3, %v1854_v8  ;;  %v4871_v50 = vpop.f32.mrb[76].mxu1 }
 0x183   : > { %v2558_v44 = vmax.f32 %v2430_v4, %v2494_v41  ;;  %v2117_v6 = vmax.f32 %v2115_v35, %v2116_v32  ;;  %v2101_v60 = vmax.f32 %v2099_v13, %v2100_v63  ;;  %v1852_v29 = vmul.f32 %v1107_v62, %v4529_v7  ;;  %v4876_v51 = vpop.f32.mrb[77].mxu1  ;;  %v4878_v17 = vpop.f32.mrb[76].mxu0 }
 0x184   : > { %3063 = vst.msk [vmem:[%s4716_s18 + $0x4] sm:$0xf] %vm3061_vm8, %v3046_v45  ;;  %5435 = vst [vmem:[#allocation50_spill] sm:$0xff] %v4878_v17  ;;  %v2497_v24 = vmul.f32 0.2, %v2433_v15  ;;  %v2431_v20 = vadd.f32 %v4592_v33, %v2084_v48  ;;  %v2120_v3 = vsel %vm588_vm0, %v1918_v57, -inf  ;;  %v1128_v41 = vadd.f32 %v4711_v0, %v4566_v5 }
 0x185   : > { %v4883_v8 = vpop.f32.mrb[78].mxu1  ;;  %v4885_v2 = vpop.f32.mrb[77].mxu0  ;;  %v3415_v4 = vpack.c.bf16 %v2558_v44, %v2558_v44  ;;  %v2118_v35 = vrot.slane %v2117_v6, 1  ;;  %v2102_v13 = vrot.slane %v2101_v60, 2  ;;  %v2121_v25 = vrot.slane %v2120_v3, 4 }
 0x186   : > { %5436 = vst [vmem:[#allocation51_spill] sm:$0xff] %v4885_v2  ;;  %v4887_v7 = vpop.f32.mrb[79].mxu1  ;;  %v4889_v62 = vpop.f32.mrb[78].mxu0  ;;  %v2561_v9 = vmax.f32 %v2433_v15, %v2497_v24  ;;  %v2495_v16 = vmul.f32 0.2, %v2431_v20  ;;  %v1916_v45 = vadd.f32 %v1852_v29, %v4702_v39 }
 0x187   : > { %5437 = vst [vmem:[#allocation52_spill] sm:$0xff] %v4887_v7  ;;  %5438 = vst [vmem:[#allocation53_spill] sm:$0xff] %v4889_v62  ;;  %v4894_v32 = vpop.f32.mrb[79].mxu0  ;;  %v2878_v63 = vunpack.c.l.b16 %v3415_v4  ;;  %v2119_v48 = vmax.f32 %v2117_v6, %v2118_v35  ;;  %v2103_v57 = vmax.f32 %v2101_v60, %v2102_v13  ;;  %v2122_v44 = vmax.f32 %v2120_v3, %v2121_v25 }
 0x188   : > { %5439 = vst [vmem:[#allocation54_spill] sm:$0xff] %v4894_v32  ;;  %v3418_v61 = vpack.c.bf16 %v2561_v9, %v2561_v9  ;;  %v2559_v2 = vmax.f32 %v2431_v20, %v2495_v16  ;;  %v2106_v17 = vsel %vm588_vm0, %v1916_v45, -inf  ;;  %v1120_v62 = vadd.f32 %v4566_v5, %v4719_v36 }
 0x189   : > { %v2436_v15 = vadd.f32 %v4592_v33, %v2119_v48  ;;  %v2104_v24 = vrot.slane %v2103_v57, 1  ;;  %v2123_v39 = vrot.slane %v2122_v44, 2  ;;  %v2107_v29 = vrot.slane %v2106_v17, 4 }
 0x18a   : > { %v2881_v7 = vunpack.c.l.b16 %v3418_v61  ;;  %v3416_v0 = vpack.c.bf16 %v2559_v2, %v2559_v2  ;;  %v1857_v32 = vmul.f32 %v4533_v59, %v1128_v41  ;;  %v1131_v6 = vadd.f32 %v4724_v54, %v4566_v5  ;;  %v4903_v60 = vpop.f32.mrb[80].mxu1 }
 0x18b   : > { %v2500_v20 = vmul.f32 0.2, %v2436_v15  ;;  %v2105_v3 = vmax.f32 %v2103_v57, %v2104_v24  ;;  %v2124_v4 = vmax.f32 %v2122_v44, %v2123_v39  ;;  %v2108_v35 = vmax.f32 %v2106_v17, %v2107_v29  ;;  %v4905_v13 = vpop.f32.mrb[81].mxu1  ;;  %v4907_v36 = vpop.f32.mrb[80].mxu0 }
 0x18c   : > { %v2965_v25 = vrot.slane %v2881_v7, 5  ;;  %v2879_v9 = vunpack.c.l.b16 %v3416_v0  ;;  %v1921_v61 = vadd.f32 %v4721_v56, %v1857_v32  ;;  %v1855_v2 = vmul.f32 %v1120_v62, %v4537_v34  ;;  %v4911_v59 = vpop.f32.mrb[82].mxu1  ;;  %v4913_v16 = vpop.f32.mrb[81].mxu0  ;;  %v5442_v32 = vld [vmem:[#allocation40_spill] sm:$0xff] }
 0x18d   : > { %5440 = vst [vmem:[#allocation55_spill] sm:$0xff] %v4913_v16  ;;  %v2564_v54 = vmax.f32 %v2436_v15, %v2500_v20  ;;  %v2434_v45 = vadd.f32 %v4592_v33, %v2105_v3  ;;  %v2125_v41 = vrot.slane %v2124_v4, 1  ;;  %v2109_v48 = vrot.slane %v2108_v35, 2  ;;  %v4916_v17 = vpop.f32.mrb[83].mxu1  ;;  %v4918_v57 = vpop.f32.mrb[82].mxu0 }
 0x18e   : > { %5441 = vst [vmem:[#allocation56_spill] sm:$0xff] %v4918_v57  ;;  %v2961_v44 = vrot.slane %v2879_v9, 7  ;;  %v2141_v7 = vsel %vm588_vm0, %v1921_v61, -inf  ;;  %v1919_v56 = vadd.f32 %v1855_v2, %v4726_v30  ;;  %v1123_v34 = vadd.f32 %v4566_v5, %v5442_v32  ;;  %v4924_v62 = vpop.f32.mrb[83].mxu0  ;;  %v5444_v57 = vld [vmem:[#allocation29_spill] sm:$0xff] }
 0x18f   : > { %5443 = vst [vmem:[#allocation40_spill] sm:$0xff] %v4924_v62  ;;  %v3421_v24 = vpack.c.bf16 %v2564_v54, %v2564_v54  ;;  %v2498_v15 = vmul.f32 0.2, %v2434_v45  ;;  %v2126_v39 = vmax.f32 %v2124_v4, %v2125_v41  ;;  %v2110_v29 = vmax.f32 %v2108_v35, %v2109_v48 }
 0x190   : > { %v2962_v0 = vsel %vm2927_vm1, %v2961_v44, %v2878_v63  ;;  %v2142_v20 = vrot.slane %v2141_v7, 4  ;;  %v2127_v3 = vsel %vm588_vm0, %v1919_v56, -inf  ;;  %v1858_v9 = vmul.f32 %v5444_v57, %v1131_v6  ;;  %v5447_v57 = vld [vmem:[#allocation41_spill] sm:$0xff] }
 0x191   : > { %v5445_v61 = vrot.slane %v4867_v19, 6  ;;  %v4932_v2 = vunpack.c.l.b16 %v3421_v24  ;;  %v2562_v5 = vmax.f32 %v2434_v45, %v2498_v15  ;;  %v2437_v32 = vadd.f32 %v4592_v33, %v2126_v39 }
 0x192   : > { %v2111_v4 = vrot.slane %v2110_v29, 1  ;;  %v2143_v35 = vmax.f32 %v2141_v7, %v2142_v20  ;;  %v2128_v41 = vrot.slane %v2127_v3, 4  ;;  %v4936_v63 = vpop.f32.mrb[84].mxu1  ;;  %v1922_v19 = vadd.f32 %v5447_v57, %v1858_v9  ;;  %v4953_v9 = vld [vmem:[%s5318_s4] ss:$0 sm:$0xff] }
 0x193   : > { %v2964_v30 = vsel %vm2930_vm2, %v5445_v61, %v2962_v0  ;;  %5446 = vst [vmem:[#allocation29_spill] sm:$0xff] %v4936_v63  ;;  %v3419_v44 = vpack.c.bf16 %v2562_v5, %v2562_v5  ;;  %v2501_v6 = vmul.f32 0.2, %v2437_v32  ;;  %v4940_v56 = vpop.f32.mrb[85].mxu1  ;;  %v4942_v24 = vpop.f32.mrb[84].mxu0  ;;  %v5450_v0 = vld [vmem:[#allocation31_spill] sm:$0xff]  ;;  %v1136_v48 = vadd.f32 %v4953_v9, %v4747_v18 }
 0x194   : > { %v2966_v54 = vsel %vm2933_vm3, %v2965_v25, %v2964_v30  ;;  %5448 = vst [vmem:[#allocation41_spill] sm:$0xff] %v4940_v56  ;;  %5449 = vst [vmem:[#allocation57_spill] sm:$0xff] %v4942_v24  ;;  %v2112_v45 = vmax.f32 %v2110_v29, %v2111_v4  ;;  %v2144_v15 = vrot.slane %v2143_v35, 2  ;;  %v2129_v39 = vmax.f32 %v2127_v3, %v2128_v41  ;;  %v4945_v61 = vpop.f32.mrb[86].mxu1  ;;  %v4947_v7 = vpop.f32.mrb[85].mxu0 }
 0x195   : > { %v1856_v25 = vmul.f32 %v1123_v34, %v5450_v0  ;;  %5451 = vst [vmem:[#allocation31_spill] sm:$0xff] %v4945_v61  ;;  %5452 = vst [vmem:[#allocation58_spill] sm:$0xff] %v4947_v7  ;;  %v2882_v20 = vunpack.c.l.b16 %v3419_v44  ;;  %v2565_v30 = vmax.f32 %v2437_v32, %v2501_v6  ;;  %v2148_v5 = vsel %vm588_vm0, %v1922_v19, -inf  ;;  %v4957_v4 = vpop.f32.mrb[87].mxu1  ;;  %v4959_v3 = vpop.f32.mrb[86].mxu0 }
 0x196   : > { %v1144_v29 = vadd.f32 %v4953_v9, %v4744_v42  ;;  %5453 = vst [vmem:[#allocation59_spill] sm:$0xff] %v4957_v4  ;;  %5454 = vst [vmem:[#allocation60_spill] sm:$0xff] %v4959_v3  ;;  %v2435_v34 = vadd.f32 %v4592_v33, %v2112_v45  ;;  %v2145_v41 = vmax.f32 %v2143_v35, %v2144_v15  ;;  %v2130_v57 = vrot.slane %v2129_v39, 2  ;;  %v4962_v32 = vpop.f32.mrb[87].mxu0  ;;  %v5456_v45 = vld [vmem:[#allocation33_spill] sm:$0xff] }
 0x197   : > { %v2149_v44 = vrot.slane %v2148_v5, 4  ;;  %5455 = vst [vmem:[#allocation61_spill] sm:$0xff] %v4962_v32  ;;  %v2967_v6 = vrot.slane %v2882_v20, 4  ;;  %v3422_v19 = vpack.c.bf16 %v2565_v30, %v2565_v30  ;;  %v1920_v0 = vadd.f32 %v1856_v25, %v4738_v55 }
 0x198   : > { %v2499_v7 = vmul.f32 0.2, %v2435_v34  ;;  %v2146_v42 = vrot.slane %v2145_v41, 1  ;;  %v2131_v24 = vmax.f32 %v2129_v39, %v2130_v57  ;;  %v1861_v15 = vmul.f32 %v5456_v45, %v1144_v29 }
 0x199   : > { %v2150_v4 = vmax.f32 %v2148_v5, %v2149_v44  ;;  %v2968_v3 = vsel %vm2936_vm4, %v2967_v6, %v2966_v54  ;;  %v2885_v61 = vunpack.c.l.b16 %v3422_v19  ;;  %v2134_v35 = vsel %vm588_vm0, %v1920_v0, -inf  ;;  %v5463_v0 = vld [vmem:[#allocation43_spill] sm:$0xff] }
 0x19a   : > { %v2563_v56 = vmax.f32 %v2435_v34, %v2499_v7  ;;  %v2147_v32 = vmax.f32 %v2145_v41, %v2146_v42  ;;  %v2132_v20 = vrot.slane %v2131_v24, 1  ;;  %v4970_v63 = vpop.f32.mrb[88].mxu1  ;;  %v2135_v25 = vrot.slane %v2134_v35, 4 }
 0x19b   : > { %v2151_v30 = vrot.slane %v2150_v4, 2  ;;  %5457 = vst [vmem:[#allocation33_spill] sm:$0xff] %v4970_v63  ;;  %v2973_v55 = vrot.slane %v2885_v61, 1  ;;  %v1925_v18 = vadd.f32 %v4749_v28, %v1861_v15  ;;  %v1147_v39 = vadd.f32 %v4953_v9, %v4755_v40  ;;  %v4975_v5 = vpop.f32.mrb[89].mxu1  ;;  %v4977_v54 = vpop.f32.mrb[88].mxu0  ;;  %v5462_v28 = vld [vmem:[#allocation35_spill] sm:$0xff] }
 0x19c   : > { %5458 = vst [vmem:[#allocation62_spill] sm:$0xff] %v4975_v5  ;;  %5459 = vst [vmem:[#allocation63_spill] sm:$0xff] %v4977_v54  ;;  %v3420_v57 = vpack.c.bf16 %v2563_v56, %v2563_v56  ;;  %v2440_v29 = vadd.f32 %v4592_v33, %v2147_v32  ;;  %v2133_v7 = vmax.f32 %v2131_v24, %v2132_v20  ;;  %v4980_v41 = vpop.f32.mrb[90].mxu1  ;;  %v4982_v44 = vpop.f32.mrb[89].mxu0  ;;  %v4995_v24 = vld [vmem:[%s5319_s5] ss:$0 sm:$0xff] }
 0x19d   : > { %v2152_v34 = vmax.f32 %v2150_v4, %v2151_v30  ;;  %5460 = vst [vmem:[#allocation64_spill] sm:$0xff] %v4980_v41  ;;  %5461 = vst [vmem:[#allocation65_spill] sm:$0xff] %v4982_v44  ;;  %v2136_v61 = vmax.f32 %v2134_v35, %v2135_v25  ;;  %v2169_v6 = vsel %vm588_vm0, %v1925_v18, -inf  ;;  %v1859_v19 = vmul.f32 %v1136_v48, %v5462_v28  ;;  %v4988_v42 = vpop.f32.mrb[91].mxu1  ;;  %v4990_v45 = vpop.f32.mrb[90].mxu0  ;;  %v5467_v20 = vld [vmem:[#allocation42_spill] sm:$0xff] }
 0x19e   : > { %v1139_v40 = vadd.f32 %v4953_v9, %v5463_v0  ;;  %5464 = vst [vmem:[#allocation35_spill] sm:$0xff] %v4988_v42  ;;  %5465 = vst [vmem:[#allocation43_spill] sm:$0xff] %v4990_v45  ;;  %v2883_v56 = vunpack.c.l.b16 %v3420_v57  ;;  %v2504_v33 = vmul.f32 0.2, %v2440_v29  ;;  %v2438_v4 = vadd.f32 %v4995_v24, %v2133_v7  ;;  %v4998_v35 = vpop.f32.mrb[91].mxu0  ;;  %v5468_v25 = vld [vmem:[#allocation37_spill] sm:$0xff] }
 0x19f   : > { %v2153_v32 = vrot.slane %v2152_v34, 1  ;;  %5466 = vst [vmem:[#allocation66_spill] sm:$0xff] %v4998_v35  ;;  %v2137_v48 = vrot.slane %v2136_v61, 2  ;;  %v2170_v15 = vrot.slane %v2169_v6, 4  ;;  %v1923_v30 = vadd.f32 %v1859_v19, %v5467_v20  ;;  %v5469_v54 = vld [vmem:[#allocation44_spill] sm:$0xff] }
 0x1a0   : > { %v1862_v18 = vmul.f32 %v5468_v25, %v1147_v39  ;;  %v2969_v28 = vrot.slane %v2883_v56, 3  ;;  %v2568_v0 = vmax.f32 %v2440_v29, %v2504_v33  ;;  %v2502_v57 = vmul.f32 0.2, %v2438_v4 }
 0x1a1   : > { %v2154_v42 = vmax.f32 %v2152_v34, %v2153_v32  ;;  %v2138_v45 = vmax.f32 %v2136_v61, %v2137_v48  ;;  %v2171_v44 = vmax.f32 %v2169_v6, %v2170_v15  ;;  %v2155_v41 = vsel %vm588_vm0, %v1923_v30, -inf }
 0x1a2   : > { %v1926_v5 = vadd.f32 %v5469_v54, %v1862_v18  ;;  %v2970_v7 = vsel %vm2939_vm5, %v2969_v28, %v2968_v3  ;;  %v3425_v63 = vpack.c.bf16 %v2568_v0, %v2568_v0  ;;  %v2566_v35 = vmax.f32 %v2438_v4, %v2502_v57  ;;  %v5006_v16 = vpop.f32.mrb[92].mxu1 }
 0x1a3   : > { %v2441_v62 = vadd.f32 %v4995_v24, %v2154_v42  ;;  %v5470_v39 = vrot.slane %v4932_v2, 2  ;;  %v2139_v19 = vrot.slane %v2138_v45, 1  ;;  %v2172_v34 = vrot.slane %v2171_v44, 2  ;;  %v5011_v6 = vpop.f32.mrb[93].mxu1  ;;  %v5013_v56 = vpop.f32.mrb[92].mxu0 }
 0x1a4   : > { %v2156_v61 = vrot.slane %v2155_v41, 4  ;;  %v5016_v3 = vunpack.c.l.b16 %v3425_v63  ;;  %v3423_v33 = vpack.c.bf16 %v2566_v35, %v2566_v35  ;;  %v5018_v4 = vpop.f32.mrb[94].mxu1  ;;  %v5020_v32 = vpop.f32.mrb[93].mxu0  ;;  %v2176_v63 = vsel %vm588_vm0, %v1926_v5, -inf }
 0x1a5   : > { %v2972_v29 = vsel %vm2942_vm6, %v5470_v39, %v2970_v7  ;;  %v2505_v42 = vmul.f32 0.2, %v2441_v62  ;;  %v2140_v48 = vmax.f32 %v2138_v45, %v2139_v19  ;;  %v2173_v15 = vmax.f32 %v2171_v44, %v2172_v34  ;;  %v5022_v30 = vpop.f32.mrb[95].mxu1  ;;  %v5024_v25 = vpop.f32.mrb[94].mxu0  ;;  %v5472_v44 = vld [vmem:[#allocation39_spill] sm:$0xff] }
 0x1a6   : > { %v2974_v54 = vsel %vm2945_vm7, %v2973_v55, %v2972_v29  ;;  %v2157_v20 = vmax.f32 %v2155_v41, %v2156_v61  ;;  %v2977_v18 = vrot.slane %v5016_v3, 6  ;;  %v2886_v55 = vunpack.c.l.b16 %v3423_v33  ;;  %v5031_v45 = vpop.f32.mrb[95].mxu0  ;;  %v5473_v3 = vld [vmem:[#allocation45_spill] sm:$0xff] }
 0x1a7   : > { %v3047_v2 = vpack.c.b16 %v2974_v54, %v2974_v54  ;;  %v2569_v28 = vmax.f32 %v2441_v62, %v2505_v42  ;;  %v2439_v35 = vadd.f32 %v4995_v24, %v2140_v48  ;;  %v2174_v0 = vrot.slane %v2173_v15, 1  ;;  %5471 = vst [vmem:[#allocation42_spill] sm:$0xff] %v5031_v45  ;;  %v5474_v42 = vld [vmem:[#allocation9_spill] sm:$0xff] }
 0x1a8   : > { %v2158_v57 = vrot.slane %v2157_v20, 2  ;;  %v2177_v7 = vrot.slane %v2176_v63, 4  ;;  %v1860_v39 = vmul.f32 %v1139_v40, %v5472_v44  ;;  %v1160_v29 = vadd.f32 %v4953_v9, %v4775_v49 }
 0x1a9   : > { %3064 = vst.msk [vmem:[%s4716_s18 + $0x8] sm:$0xf] %vm3061_vm8, %v3047_v2  ;;  %v3426_v41 = vpack.c.bf16 %v2569_v28, %v2569_v28  ;;  %v1152_v62 = vadd.f32 %v4953_v9, %v4778_v37  ;;  %v2503_v19 = vmul.f32 0.2, %v2439_v35  ;;  %v2175_v5 = vmax.f32 %v2173_v15, %v2174_v0 }
 0x1aa   : > { %v2159_v34 = vmax.f32 %v2157_v20, %v2158_v57  ;;  %v2178_v61 = vmax.f32 %v2176_v63, %v2177_v7  ;;  %v1924_v33 = vadd.f32 %v1860_v39, %v5473_v3  ;;  %v1865_v2 = vmul.f32 %v5474_v42, %v1160_v29  ;;  %v5475_v20 = vld [vmem:[#allocation2_spill] sm:$0xff] }
 0x1ab   : > { %v2889_v54 = vunpack.c.l.b16 %v3426_v41  ;;  %v1163_v48 = vadd.f32 %v4953_v9, %v4783_v23  ;;  %v2567_v28 = vmax.f32 %v2439_v35, %v2503_v19  ;;  %v2444_v40 = vadd.f32 %v4995_v24, %v2175_v5  ;;  %v5476_v42 = vld [vmem:[#allocation10_spill] sm:$0xff] }
 0x1ac   : > { %v2160_v44 = vrot.slane %v2159_v34, 1  ;;  %v2179_v49 = vrot.slane %v2178_v61, 2  ;;  %v2162_v37 = vsel %vm588_vm0, %v1924_v33, -inf  ;;  %v1929_v15 = vadd.f32 %v4780_v11, %v1865_v2 }
 0x1ad   : > { %v2979_v45 = vrot.slane %v2889_v54, 5  ;;  %v1863_v63 = vmul.f32 %v1152_v62, %v5475_v20  ;;  %v3424_v0 = vpack.c.bf16 %v2567_v28, %v2567_v28  ;;  %v2508_v57 = vmul.f32 0.2, %v2444_v40  ;;  %v5477_v20 = vld [vmem:[#allocation46_spill] sm:$0xff] }
 0x1ae   : > { %v2161_v7 = vmax.f32 %v2159_v34, %v2160_v44  ;;  %v2180_v41 = vmax.f32 %v2178_v61, %v2179_v49  ;;  %v2163_v39 = vrot.slane %v2162_v37, 4  ;;  %v2197_v29 = vsel %vm588_vm0, %v1929_v15, -inf }
 0x1af   : > { %v1927_v23 = vadd.f32 %v1863_v63, %v4785_v43  ;;  %v1155_v35 = vadd.f32 %v4953_v9, %v4790_v46  ;;  %v2887_v19 = vunpack.c.l.b16 %v3424_v0  ;;  %v2572_v5 = vmax.f32 %v2444_v40, %v2508_v57 }
 0x1b0   : > { %v2442_v54 = vadd.f32 %v4995_v24, %v2161_v7  ;;  %v2181_v3 = vrot.slane %v2180_v41, 1  ;;  %v2164_v11 = vmax.f32 %v2162_v37, %v2163_v39  ;;  %v2198_v33 = vrot.slane %v2197_v29, 4 }
 0x1b1   : > { %v2183_v62 = vsel %vm588_vm0, %v1927_v23, -inf  ;;  %v1866_v34 = vmul.f32 %v5476_v42, %v1163_v48  ;;  %v2975_v61 = vrot.slane %v2887_v19, 7  ;;  %v3429_v2 = vpack.c.bf16 %v2572_v5, %v2572_v5 }
 0x1b2   : > { %v2506_v28 = vmul.f32 0.2, %v2442_v54  ;;  %v2182_v44 = vmax.f32 %v2180_v41, %v2181_v3  ;;  %v2165_v49 = vrot.slane %v2164_v11, 2  ;;  %v2199_v43 = vmax.f32 %v2197_v29, %v2198_v33 }
 0x1b3   : > { %v2184_v15 = vrot.slane %v2183_v62, 4  ;;  %v1930_v46 = vadd.f32 %v5477_v20, %v1866_v34  ;;  %v2976_v40 = vsel %vm2927_vm1, %v2975_v61, %v2886_v55  ;;  %v5055_v63 = vunpack.c.l.b16 %v3429_v2  ;;  %v5478_v61 = vld [vmem:[#allocation3_spill] sm:$0xff] }
 0x1b4   : > { %v2570_v0 = vmax.f32 %v2442_v54, %v2506_v28  ;;  %v2445_v37 = vadd.f32 %v4995_v24, %v2182_v44  ;;  %v2978_v57 = vsel %vm2930_vm2, %v2977_v18, %v2976_v40  ;;  %v2166_v7 = vmax.f32 %v2164_v11, %v2165_v49 }
 0x1b5   : > { %v2200_v48 = vrot.slane %v2199_v43, 2  ;;  %v2185_v39 = vmax.f32 %v2183_v62, %v2184_v15  ;;  %v2985_v23 = vrot.slane %v5055_v63, 2  ;;  %v2980_v29 = vsel %vm2933_vm3, %v2979_v45, %v2978_v57  ;;  %v5479_v15 = vld [vmem:[#allocation47_spill] sm:$0xff]  ;;  %v5485_v63 = vld [vmem:[#allocation49_spill] sm:$0xff] }
 0x1b6   : > { %v3427_v41 = vpack.c.bf16 %v2570_v0, %v2570_v0  ;;  %v2509_v19 = vmul.f32 0.2, %v2445_v37  ;;  %v2167_v5 = vrot.slane %v2166_v7, 1  ;;  %v2204_v55 = vsel %vm588_vm0, %v1930_v46, -inf }
 0x1b7   : > { %v2201_v3 = vmax.f32 %v2199_v43, %v2200_v48  ;;  %v2186_v33 = vrot.slane %v2185_v39, 2  ;;  %v2205_v34 = vrot.slane %v2204_v55, 4  ;;  %v1864_v2 = vmul.f32 %v1155_v35, %v5478_v61 }
 0x1b8   : > { %v2890_v42 = vunpack.c.l.b16 %v3427_v41  ;;  %v2573_v54 = vmax.f32 %v2445_v37, %v2509_v19  ;;  %v2168_v18 = vmax.f32 %v2166_v7, %v2167_v5  ;;  %v1176_v62 = vadd.f32 %v4953_v9, %v4807_v58 }
 0x1b9   : > { %v2202_v11 = vrot.slane %v2201_v3, 1  ;;  %v2187_v28 = vmax.f32 %v2185_v39, %v2186_v33  ;;  %v2206_v45 = vmax.f32 %v2204_v55, %v2205_v34  ;;  %v1928_v20 = vadd.f32 %v1864_v2, %v5479_v15  ;;  %v5480_v33 = vld [vmem:[#allocation11_spill] sm:$0xff]  ;;  %v5481_v2 = vld [vmem:[#allocation4_spill] sm:$0xff] }
 0x1ba   : > { %v2981_v44 = vrot.slane %v2890_v42, 4  ;;  %v3430_v49 = vpack.c.bf16 %v2573_v54, %v2573_v54  ;;  %v2443_v43 = vadd.f32 %v4995_v24, %v2168_v18  ;;  %v1168_v0 = vadd.f32 %v4953_v9, %v4811_v22 }
 0x1bb   : > { %v2203_v40 = vmax.f32 %v2201_v3, %v2202_v11  ;;  %v2188_v46 = vrot.slane %v2187_v28, 1  ;;  %v2207_v57 = vrot.slane %v2206_v45, 2  ;;  %v2190_v7 = vsel %vm588_vm0, %v1928_v20, -inf  ;;  %v5482_v20 = vld [vmem:[#allocation12_spill] sm:$0xff] }
 0x1bc   : > { %v2982_v35 = vsel %vm2936_vm4, %v2981_v44, %v2980_v29  ;;  %v2893_v37 = vunpack.c.l.b16 %v3430_v49  ;;  %v2507_v48 = vmul.f32 0.2, %v2443_v43  ;;  %v2191_v41 = vrot.slane %v2190_v7, 4 }
 0x1bd   : > { %v2448_v58 = vadd.f32 %v4995_v24, %v2203_v40  ;;  %v2189_v39 = vmax.f32 %v2187_v28, %v2188_v46  ;;  %v2208_v5 = vmax.f32 %v2206_v45, %v2207_v57  ;;  %v1869_v55 = vmul.f32 %v5480_v33, %v1176_v62 }
 0x1be   : > { %v2987_v19 = vrot.slane %v2893_v37, 1  ;;  %v1179_v3 = vadd.f32 %v4953_v9, %v4818_v27  ;;  %v2571_v42 = vmax.f32 %v2443_v43, %v2507_v48  ;;  %v2192_v54 = vmax.f32 %v2190_v7, %v2191_v41  ;;  %v5483_v7 = vld [vmem:[#allocation48_spill] sm:$0xff] }
 0x1bf   : > { %v2512_v22 = vmul.f32 0.2, %v2448_v58  ;;  %v2446_v29 = vadd.f32 %v4995_v24, %v2189_v39  ;;  %v2209_v34 = vrot.slane %v2208_v5, 1  ;;  %v1933_v61 = vadd.f32 %v4813_v21, %v1869_v55 }
 0x1c0   : > { %v1867_v18 = vmul.f32 %v1168_v0, %v5481_v2  ;;  %v1171_v11 = vadd.f32 %v4953_v9, %v4824_v1  ;;  %v3428_v28 = vpack.c.bf16 %v2571_v42, %v2571_v42  ;;  %v2193_v62 = vrot.slane %v2192_v54, 2 }
 0x1c1   : > { %v2576_v44 = vmax.f32 %v2448_v58, %v2512_v22  ;;  %v2510_v49 = vmul.f32 0.2, %v2446_v29  ;;  %v2210_v45 = vmax.f32 %v2208_v5, %v2209_v34  ;;  %v2225_v27 = vsel %vm588_vm0, %v1933_v61, -inf }
 0x1c2   : > { %v1931_v15 = vadd.f32 %v1867_v18, %v4820_v31  ;;  %v1870_v43 = vmul.f32 %v5482_v20, %v1179_v3  ;;  %v2891_v40 = vunpack.c.l.b16 %v3428_v28  ;;  %v2194_v21 = vmax.f32 %v2192_v54, %v2193_v62  ;;  %v5484_v62 = vld [vmem:[#allocation5_spill] sm:$0xff] }
 0x1c3   : > { %v3433_v46 = vpack.c.bf16 %v2576_v44, %v2576_v44  ;;  %v2574_v37 = vmax.f32 %v2446_v29, %v2510_v49  ;;  %v2449_v0 = vadd.f32 %v4995_v24, %v2210_v45  ;;  %v2226_v57 = vrot.slane %v2225_v27, 4 }
 0x1c4   : > { %v2211_v1 = vsel %vm588_vm0, %v1931_v15, -inf  ;;  %v1934_v48 = vadd.f32 %v5483_v7, %v1870_v43  ;;  %v2983_v58 = vrot.slane %v2891_v40, 3  ;;  %v2195_v5 = vrot.slane %v2194_v21, 1  ;;  %v5486_v7 = vld [vmem:[#allocation13_spill] sm:$0xff] }
 0x1c5   : > { %v5086_v39 = vunpack.c.l.b16 %v3433_v46  ;;  %v3431_v41 = vpack.c.bf16 %v2574_v37, %v2574_v37  ;;  %v2513_v33 = vmul.f32 0.2, %v2449_v0  ;;  %v2227_v31 = vmax.f32 %v2225_v27, %v2226_v57 }
 0x1c6   : > { %v2212_v55 = vrot.slane %v2211_v1, 4  ;;  %v2232_v3 = vsel %vm588_vm0, %v1934_v48, -inf  ;;  %v2984_v42 = vsel %vm2939_vm5, %v2983_v58, %v2982_v35  ;;  %v2196_v54 = vmax.f32 %v2194_v21, %v2195_v5 }
 0x1c7   : > { %v2991_v22 = vrot.slane %v5086_v39, 6  ;;  %v2894_v29 = vunpack.c.l.b16 %v3431_v41  ;;  %v2986_v34 = vsel %vm2942_vm6, %v2985_v23, %v2984_v42  ;;  %v2577_v61 = vmax.f32 %v2449_v0, %v2513_v33 }
 0x1c8   : > { %v2228_v2 = vrot.slane %v2227_v31, 2  ;;  %v2213_v18 = vmax.f32 %v2211_v1, %v2212_v55  ;;  %v2988_v28 = vsel %vm2945_vm7, %v2987_v19, %v2986_v34  ;;  %v2447_v44 = vadd.f32 %v4995_v24, %v2196_v54  ;;  %v5487_v54 = vld [vmem:[#allocation6_spill] sm:$0xff] }
 0x1c9   : > { %v2233_v49 = vrot.slane %v2232_v3, 4  ;;  %v1868_v45 = vmul.f32 %v1171_v11, %v5484_v62  ;;  %v3048_v35 = vpack.c.b16 %v2988_v28, %v2988_v28  ;;  %v3434_v27 = vpack.c.bf16 %v2577_v61, %v2577_v61 }
 0x1ca   : > { %v2229_v15 = vmax.f32 %v2227_v31, %v2228_v2  ;;  %v2214_v20 = vrot.slane %v2213_v18, 2  ;;  %v2511_v43 = vmul.f32 0.2, %v2447_v44  ;;  %v1192_v23 = vadd.f32 %v4953_v9, %v4838_v53 }
 0x1cb   : > { %v2234_v40 = vmax.f32 %v2232_v3, %v2233_v49  ;;  %v1932_v46 = vadd.f32 %v1868_v45, %v5485_v63  ;;  %3065 = vst.msk [vmem:[%s4716_s18 + $0xc] sm:$0xf] %vm3061_vm8, %v3048_v35  ;;  %v2897_v37 = vunpack.c.l.b16 %v3434_v27  ;;  %v1184_v0 = vadd.f32 %v4953_v9, %v4844_v52  ;;  %v5488_v27 = vld [vmem:[#allocation14_spill] sm:$0xff] }
 0x1cc   : > { %v2230_v19 = vrot.slane %v2229_v15, 1  ;;  %v2215_v21 = vmax.f32 %v2213_v18, %v2214_v20  ;;  %v2575_v11 = vmax.f32 %v2447_v44, %v2511_v43  ;;  %v1873_v48 = vmul.f32 %v5486_v7, %v1192_v23 }
 0x1cd   : > { %v2235_v57 = vrot.slane %v2234_v40, 2  ;;  %v2218_v1 = vsel %vm588_vm0, %v1932_v46, -inf  ;;  %v2993_v58 = vrot.slane %v2897_v37, 5  ;;  %v1195_v55 = vadd.f32 %v4953_v9, %v4848_v38 }
 0x1ce   : > { %v2231_v39 = vmax.f32 %v2229_v15, %v2230_v19  ;;  %v2216_v41 = vrot.slane %v2215_v21, 1  ;;  %v2219_v5 = vrot.slane %v2218_v1, 4  ;;  %v3432_v33 = vpack.c.bf16 %v2575_v11, %v2575_v11 }
 0x1cf   : > { %v2236_v53 = vmax.f32 %v2234_v40, %v2235_v57  ;;  %v1937_v31 = vadd.f32 %v4846_v26, %v1873_v48  ;;  %v1871_v34 = vmul.f32 %v1184_v0, %v5487_v54  ;;  %v1187_v28 = vadd.f32 %v4953_v9, %v4854_v14 }
 0x1d0   : > { %v2452_v3 = vadd.f32 %v4995_v24, %v2231_v39  ;;  %v2217_v52 = vmax.f32 %v2215_v21, %v2216_v41  ;;  %v2220_v42 = vmax.f32 %v2218_v1, %v2219_v5  ;;  %v2895_v61 = vunpack.c.l.b16 %v3432_v33 }
 0x1d1   : > { %v2237_v2 = vrot.slane %v2236_v53, 1  ;;  %v2253_v18 = vsel %vm588_vm0, %v1937_v31, -inf  ;;  %v1935_v35 = vadd.f32 %v1871_v34, %v4850_v47  ;;  %v1874_v15 = vmul.f32 %v5488_v27, %v1195_v55 }
 0x1d2   : > { %v2516_v44 = vmul.f32 0.2, %v2452_v3  ;;  %v2450_v49 = vadd.f32 %v4995_v24, %v2217_v52  ;;  %v2221_v26 = vrot.slane %v2220_v42, 2  ;;  %v2254_v62 = vrot.slane %v2253_v18, 4 }
 0x1d3   : > { %v2989_v45 = vrot.slane %v2895_v61, 7  ;;  %v2238_v38 = vmax.f32 %v2236_v53, %v2237_v2  ;;  %v2239_v14 = vsel %vm588_vm0, %v1935_v35, -inf  ;;  %v1938_v37 = vadd.f32 %v4856_v10, %v1874_v15 }
 0x1d4   : > { %v2580_v20 = vmax.f32 %v2452_v3, %v2516_v44  ;;  %v2514_v43 = vmul.f32 0.2, %v2450_v49  ;;  %v2222_v40 = vmax.f32 %v2220_v42, %v2221_v26  ;;  %v2255_v63 = vmax.f32 %v2253_v18, %v2254_v62  ;;  %v5489_v3 = vld [vmem:[#allocation7_spill] sm:$0xff] }
 0x1d5   : > { %v2990_v46 = vsel %vm2927_vm1, %v2989_v45, %v2894_v29  ;;  %v2453_v23 = vadd.f32 %v4995_v24, %v2238_v38  ;;  %v2240_v7 = vrot.slane %v2239_v14, 4  ;;  %v2260_v29 = vsel %vm588_vm0, %v1938_v37, -inf }
 0x1d6   : > { %v2992_v19 = vsel %vm2930_vm2, %v2991_v22, %v2990_v46  ;;  %v3437_v21 = vpack.c.bf16 %v2580_v20, %v2580_v20  ;;  %v2578_v0 = vmax.f32 %v2450_v49, %v2514_v43  ;;  %v2223_v11 = vrot.slane %v2222_v40, 1 }
 0x1d7   : > { %v2994_v47 = vsel %vm2933_vm3, %v2993_v58, %v2992_v19  ;;  %v2517_v57 = vmul.f32 0.2, %v2453_v23  ;;  %v2256_v1 = vrot.slane %v2255_v63, 2  ;;  %v2241_v53 = vmax.f32 %v2239_v14, %v2240_v7 }
 0x1d8   : > { %v2900_v48 = vunpack.c.l.b16 %v3437_v21  ;;  %v3435_v39 = vpack.c.bf16 %v2578_v0, %v2578_v0  ;;  %v2224_v41 = vmax.f32 %v2222_v40, %v2223_v11  ;;  %v2261_v31 = vrot.slane %v2260_v29, 4  ;;  %v5491_v21 = vld [vmem:[#allocation8_spill] sm:$0xff] }
 0x1d9   : > { %v2581_v5 = vmax.f32 %v2453_v23, %v2517_v57  ;;  %v2257_v33 = vmax.f32 %v2255_v63, %v2256_v1  ;;  %v1872_v52 = vmul.f32 %v1187_v28, %v5489_v3  ;;  %v2242_v54 = vrot.slane %v2241_v53, 2  ;;  %v5493_v1 = vld [vmem:[#allocation52_spill] sm:$0xff] }
 0x1da   : > { %v2999_v10 = vrot.slane %v2900_v48, 2  ;;  %v2898_v55 = vunpack.c.l.b16 %v3435_v39  ;;  %v2451_v22 = vadd.f32 %v4995_v24, %v2224_v41  ;;  %v2262_v34 = vmax.f32 %v2260_v29, %v2261_v31  ;;  %v5494_v29 = vld [vmem:[#allocation51_spill] sm:$0xff]  ;;  %v5495_v31 = vld [vmem:[#allocation18_spill] sm:$0xff] }
 0x1db   : > { %v3438_v42 = vpack.c.bf16 %v2581_v5, %v2581_v5  ;;  %v2258_v58 = vrot.slane %v2257_v33, 1  ;;  %v1936_v18 = vadd.f32 %v1872_v52, %v4859_v12  ;;  %v1208_v44 = vadd.f32 %v4953_v9, %v4871_v50  ;;  %v5490_v50 = vld [vmem:[#allocation15_spill] sm:$0xff] }
 0x1dc   : > { %v2995_v61 = vrot.slane %v2898_v55, 4  ;;  %v2515_v2 = vmul.f32 0.2, %v2451_v22  ;;  %v2243_v62 = vmax.f32 %v2241_v53, %v2242_v54  ;;  %v2263_v45 = vrot.slane %v2262_v34, 2 }
 0x1dd   : > { %v2901_v49 = vunpack.c.l.b16 %v3438_v42  ;;  %v2259_v26 = vmax.f32 %v2257_v33, %v2258_v58  ;;  %v2246_v28 = vsel %vm588_vm0, %v1936_v18, -inf  ;;  %v1200_v27 = vadd.f32 %v4953_v9, %v4876_v51  ;;  %v5492_v51 = vld [vmem:[#allocation50_spill] sm:$0xff] }
 0x1de   : > { %v2996_v38 = vsel %vm2936_vm4, %v2995_v61, %v2994_v47  ;;  %v2579_v35 = vmax.f32 %v2451_v22, %v2515_v2  ;;  %v2244_v43 = vrot.slane %v2243_v62, 1  ;;  %v2264_v12 = vmax.f32 %v2262_v34, %v2263_v45  ;;  %v5496_v61 = vld [vmem:[#allocation53_spill] sm:$0xff] }
 0x1df   : > { %v3001_v15 = vrot.slane %v2901_v49, 1  ;;  %v2456_v20 = vadd.f32 %v4995_v24, %v2259_v26  ;;  %v2247_v63 = vrot.slane %v2246_v28, 4  ;;  %v1877_v46 = vmul.f32 %v5490_v50, %v1208_v44 }
 0x1e0   : > { %v3436_v40 = vpack.c.bf16 %v2579_v35, %v2579_v35  ;;  %v1211_v23 = vadd.f32 %v4953_v9, %v4883_v8  ;;  %v2245_v37 = vmax.f32 %v2243_v62, %v2244_v43  ;;  %v2265_v19 = vrot.slane %v2264_v12, 1 }
 0x1e1   : > { %v2520_v14 = vmul.f32 0.2, %v2456_v20  ;;  %v1875_v0 = vmul.f32 %v1200_v27, %v5491_v21  ;;  %v2248_v47 = vmax.f32 %v2246_v28, %v2247_v63  ;;  %v1941_v57 = vadd.f32 %v5492_v51, %v1877_v46  ;;  %v5498_v51 = vld [vmem:[#allocation54_spill] sm:$0xff] }
 0x1e2   : > { %v2899_v11 = vunpack.c.l.b16 %v3436_v40  ;;  %v1203_v7 = vadd.f32 %v4953_v9, %v5493_v1  ;;  %v2454_v39 = vadd.f32 %v4995_v24, %v2245_v37  ;;  %v2266_v41 = vmax.f32 %v2264_v12, %v2265_v19 }
 0x1e3   : > { %v2584_v48 = vmax.f32 %v2456_v20, %v2520_v14  ;;  %v1939_v5 = vadd.f32 %v1875_v0, %v5494_v29  ;;  %v2249_v8 = vrot.slane %v2248_v47, 2  ;;  %v2281_v53 = vsel %vm588_vm0, %v1941_v57, -inf  ;;  %v5497_v14 = vld [vmem:[#allocation16_spill] sm:$0xff]  ;;  %v5499_v29 = vld [vmem:[#allocation19_spill] sm:$0xff] }
 0x1e4   : > { %v2997_v33 = vrot.slane %v2899_v11, 3  ;;  %v1878_v55 = vmul.f32 %v5495_v31, %v1211_v23  ;;  %v2518_v3 = vmul.f32 0.2, %v2454_v39  ;;  %v2457_v52 = vadd.f32 %v4995_v24, %v2266_v41 }
 0x1e5   : > { %v3441_v22 = vpack.c.bf16 %v2584_v48, %v2584_v48  ;;  %v2282_v42 = vrot.slane %v2281_v53, 4  ;;  %v2250_v54 = vmax.f32 %v2248_v47, %v2249_v8  ;;  %v2267_v34 = vsel %vm588_vm0, %v1939_v5, -inf }
 0x1e6   : > { %v2998_v58 = vsel %vm2939_vm5, %v2997_v33, %v2996_v38  ;;  %v1942_v2 = vadd.f32 %v5496_v61, %v1878_v55  ;;  %v2582_v49 = vmax.f32 %v2454_v39, %v2518_v3  ;;  %v2521_v26 = vmul.f32 0.2, %v2457_v52 }
 0x1e7   : > { %v3000_v18 = vsel %vm2942_vm6, %v2999_v10, %v2998_v58  ;;  %v5150_v44 = vunpack.c.l.b16 %v3441_v22  ;;  %v2251_v45 = vrot.slane %v2250_v54, 1  ;;  %v2283_v35 = vmax.f32 %v2281_v53, %v2282_v42 }
 0x1e8   : > { %v3002_v62 = vsel %vm2945_vm7, %v3001_v15, %v3000_v18  ;;  %v2268_v28 = vrot.slane %v2267_v34, 4  ;;  %v3439_v20 = vpack.c.bf16 %v2582_v49, %v2582_v49  ;;  %v2585_v43 = vmax.f32 %v2457_v52, %v2521_v26  ;;  %v5501_v49 = vld [vmem:[#allocation55_spill] sm:$0xff] }
 0x1e9   : > { %v3049_v27 = vpack.c.b16 %v3002_v62, %v3002_v62  ;;  %v3005_v38 = vrot.slane %v5150_v44, 6  ;;  %v2252_v12 = vmax.f32 %v2250_v54, %v2251_v45  ;;  %v2284_v40 = vrot.slane %v2283_v35, 2  ;;  %v5502_v62 = vld [vmem:[#allocation22_spill] sm:$0xff] }
 0x1ea   : > { %v2269_v63 = vmax.f32 %v2267_v34, %v2268_v28  ;;  %v2288_v10 = vsel %vm588_vm0, %v1942_v2, -inf  ;;  %v2902_v50 = vunpack.c.l.b16 %v3439_v20  ;;  %v3442_v46 = vpack.c.bf16 %v2585_v43, %v2585_v43 }
 0x1eb   : > { %3066 = vst.msk [vmem:[%s4716_s18 + $0x10] sm:$0xf] %vm3061_vm8, %v3049_v27  ;;  %v2289_v23 = vrot.slane %v2288_v10, 4  ;;  %v1876_v15 = vmul.f32 %v1203_v7, %v5497_v14  ;;  %v2455_v37 = vadd.f32 %v4995_v24, %v2252_v12  ;;  %v2285_v19 = vmax.f32 %v2283_v35, %v2284_v40  ;;  %v5503_v12 = vld [vmem:[#allocation56_spill] sm:$0xff] }
 0x1ec   : > { %v2270_v21 = vrot.slane %v2269_v63, 2  ;;  %v1224_v0 = vadd.f32 %v4953_v9, %v4903_v60  ;;  %v2905_v11 = vunpack.c.l.b16 %v3442_v46  ;;  %v1216_v1 = vadd.f32 %v4953_v9, %v4905_v13  ;;  %v5500_v13 = vld [vmem:[#allocation17_spill] sm:$0xff] }
 0x1ed   : > { %v2290_v47 = vmax.f32 %v2288_v10, %v2289_v23  ;;  %v1940_v57 = vadd.f32 %v1876_v15, %v5498_v51  ;;  %v2519_v48 = vmul.f32 0.2, %v2455_v37  ;;  %v2286_v39 = vrot.slane %v2285_v19, 1 }
 0x1ee   : > { %v2271_v41 = vmax.f32 %v2269_v63, %v2270_v21  ;;  %v1881_v5 = vmul.f32 %v5499_v29, %v1224_v0  ;;  %v3007_v7 = vrot.slane %v2905_v11, 5  ;;  %v1227_v53 = vadd.f32 %v4953_v9, %v4911_v59 }
 0x1ef   : > { %v2291_v33 = vrot.slane %v2290_v47, 2  ;;  %v2274_v8 = vsel %vm588_vm0, %v1940_v57, -inf  ;;  %v2583_v60 = vmax.f32 %v2455_v37, %v2519_v48  ;;  %v2287_v31 = vmax.f32 %v2285_v19, %v2286_v39 }
 0x1f0   : > { %v2272_v55 = vrot.slane %v2271_v41, 1  ;;  %v2275_v22 = vrot.slane %v2274_v8, 4  ;;  %v1945_v52 = vadd.f32 %v4907_v36, %v1881_v5  ;;  %v1879_v42 = vmul.f32 %v1216_v1, %v5500_v13 }
 0x1f1   : > { %v2292_v3 = vmax.f32 %v2290_v47, %v2291_v33  ;;  %v1219_v58 = vadd.f32 %v4953_v9, %v4916_v17  ;;  %v3440_v54 = vpack.c.bf16 %v2583_v60, %v2583_v60  ;;  %v2460_v34 = vadd.f32 %v4995_v24, %v2287_v31 }
 0x1f2   : > { %v2273_v61 = vmax.f32 %v2271_v41, %v2272_v55  ;;  %v2276_v2 = vmax.f32 %v2274_v8, %v2275_v22  ;;  %v2309_v59 = vsel %vm588_vm0, %v1945_v52, -inf  ;;  %v1943_v26 = vadd.f32 %v1879_v42, %v5501_v49  ;;  %v5504_v55 = vld [vmem:[#allocation20_spill] sm:$0xff] }
 0x1f3   : > { %v2293_v18 = vrot.slane %v2292_v3, 1  ;;  %v1882_v45 = vmul.f32 %v5502_v62, %v1227_v53  ;;  %v2903_v35 = vunpack.c.l.b16 %v3440_v54  ;;  %v2524_v28 = vmul.f32 0.2, %v2460_v34  ;;  %v5505_v54 = vld [vmem:[#allocation40_spill] sm:$0xff] }
 0x1f4   : > { %v2458_v36 = vadd.f32 %v4995_v24, %v2273_v61  ;;  %v2277_v27 = vrot.slane %v2276_v2, 2  ;;  %v2310_v43 = vrot.slane %v2309_v59, 4  ;;  %v2295_v17 = vsel %vm588_vm0, %v1943_v26, -inf }
 0x1f5   : > { %v2294_v20 = vmax.f32 %v2292_v3, %v2293_v18  ;;  %v1946_v40 = vadd.f32 %v5503_v12, %v1882_v45  ;;  %v3003_v63 = vrot.slane %v2903_v35, 7  ;;  %v2588_v10 = vmax.f32 %v2460_v34, %v2524_v28  ;;  %v5507_v45 = vld [vmem:[#allocation41_spill] sm:$0xff]  ;;  %v5508_v12 = vld [vmem:[#allocation23_spill] sm:$0xff] }
 0x1f6   : > { %v2522_v46 = vmul.f32 0.2, %v2458_v36  ;;  %v2278_v23 = vmax.f32 %v2276_v2, %v2277_v27  ;;  %v2311_v15 = vmax.f32 %v2309_v59, %v2310_v43  ;;  %v2296_v37 = vrot.slane %v2295_v17, 4 }
 0x1f7   : > { %v2461_v14 = vadd.f32 %v4995_v24, %v2294_v20  ;;  %v2316_v19 = vsel %vm588_vm0, %v1946_v40, -inf  ;;  %v3004_v21 = vsel %vm2927_vm1, %v3003_v63, %v2902_v50  ;;  %v3445_v0 = vpack.c.bf16 %v2588_v10, %v2588_v10  ;;  %v5509_v63 = vld [vmem:[#allocation31_spill] sm:$0xff] }
 0x1f8   : > { %v2586_v11 = vmax.f32 %v2458_v36, %v2522_v46  ;;  %v2279_v47 = vrot.slane %v2278_v23, 1  ;;  %v3006_v51 = vsel %vm2930_vm2, %v3005_v38, %v3004_v21  ;;  %v2312_v1 = vrot.slane %v2311_v15, 2 }
 0x1f9   : > { %v2525_v57 = vmul.f32 0.2, %v2461_v14  ;;  %v2297_v48 = vmax.f32 %v2295_v17, %v2296_v37  ;;  %v3008_v41 = vsel %vm2933_vm3, %v3007_v7, %v3006_v51  ;;  %v2317_v53 = vrot.slane %v2316_v19, 4  ;;  %v5506_v7 = vld [vmem:[#allocation29_spill] sm:$0xff] }
 0x1fa   : > { %v3443_v39 = vpack.c.bf16 %v2586_v11, %v2586_v11  ;;  %v2280_v29 = vmax.f32 %v2278_v23, %v2279_v47  ;;  %v2313_v33 = vmax.f32 %v2311_v15, %v2312_v1  ;;  %v2908_v60 = vunpack.c.l.b16 %v3445_v0  ;;  %v5510_v15 = vld [vmem:[#allocation21_spill] sm:$0xff] }
 0x1fb   : > { %v2589_v5 = vmax.f32 %v2461_v14, %v2525_v57  ;;  %v2298_v8 = vrot.slane %v2297_v48, 2  ;;  %v1880_v22 = vmul.f32 %v1219_v58, %v5504_v55  ;;  %v2318_v52 = vmax.f32 %v2316_v19, %v2317_v53  ;;  %v5511_v11 = vld [vmem:[#allocation57_spill] sm:$0xff] }
 0x1fc   : > { %v2906_v50 = vunpack.c.l.b16 %v3443_v39  ;;  %v2459_v31 = vadd.f32 %v4995_v24, %v2280_v29  ;;  %v2314_v3 = vrot.slane %v2313_v33, 1  ;;  %v1240_v61 = vadd.f32 %v4953_v9, %v5506_v7 }
 0x1fd   : > { %v3446_v44 = vpack.c.bf16 %v2589_v5, %v2589_v5  ;;  %v2299_v38 = vmax.f32 %v2297_v48, %v2298_v8  ;;  %v1944_v34 = vadd.f32 %v1880_v22, %v5505_v54  ;;  %v2319_v49 = vrot.slane %v2318_v52, 2  ;;  %v5512_v48 = vld [vmem:[#allocation58_spill] sm:$0xff]  ;;  %v5515_v54 = vld [vmem:[#allocation59_spill] sm:$0xff] }
 0x1fe   : > { %v3009_v13 = vrot.slane %v2906_v50, 4  ;;  %v2523_v42 = vmul.f32 0.2, %v2459_v31  ;;  %v2315_v18 = vmax.f32 %v2313_v33, %v2314_v3  ;;  %v1232_v35 = vadd.f32 %v4953_v9, %v5507_v45  ;;  %v5513_v33 = vld [vmem:[#allocation26_spill] sm:$0xff]  ;;  %v5514_v3 = vld [vmem:[#allocation60_spill] sm:$0xff] }
 0x1ff   : > { %v2909_v2 = vunpack.c.l.b16 %v3446_v44  ;;  %v2300_v59 = vrot.slane %v2299_v38, 1  ;;  %v2302_v58 = vsel %vm588_vm0, %v1944_v34, -inf  ;;  %v3013_v28 = vrot.slane %v2908_v60, 2 }
 0x200   : > { %v3010_v26 = vsel %vm2936_vm4, %v3009_v13, %v3008_v41  ;;  %v2587_v62 = vmax.f32 %v2459_v31, %v2523_v42  ;;  %v2464_v36 = vadd.f32 %v4995_v24, %v2315_v18  ;;  %v2320_v20 = vmax.f32 %v2318_v52, %v2319_v49 }
 0x201   : > { %v2301_v27 = vmax.f32 %v2299_v38, %v2300_v59  ;;  %v2303_v17 = vrot.slane %v2302_v58, 4  ;;  %v1885_v40 = vmul.f32 %v5508_v12, %v1240_v61  ;;  %v1243_v10 = vadd.f32 %v4953_v9, %v5509_v63 }
 0x202   : > { %v3444_v43 = vpack.c.bf16 %v2587_v62, %v2587_v62  ;;  %v2528_v46 = vmul.f32 0.2, %v2464_v36  ;;  %v2321_v14 = vrot.slane %v2320_v20, 1  ;;  %v1883_v37 = vmul.f32 %v1232_v35, %v5510_v15 }
 0x203   : > { %v2462_v23 = vadd.f32 %v4995_v24, %v2301_v27  ;;  %v3015_v19 = vrot.slane %v2909_v2, 1  ;;  %v2304_v0 = vmax.f32 %v2302_v58, %v2303_v17  ;;  %v1949_v47 = vadd.f32 %v5511_v11, %v1885_v40  ;;  %v5517_v17 = vld [vmem:[#allocation33_spill] sm:$0xff] }
 0x204   : > { %v2907_v21 = vunpack.c.l.b16 %v3444_v43  ;;  %v2592_v51 = vmax.f32 %v2464_v36, %v2528_v46  ;;  %v2322_v1 = vmax.f32 %v2320_v20, %v2321_v14  ;;  %v1947_v39 = vadd.f32 %v1883_v37, %v5512_v48  ;;  %v5516_v20 = vld [vmem:[#allocation24_spill] sm:$0xff]  ;;  %v5518_v46 = vld [vmem:[#allocation62_spill] sm:$0xff]  ;;  %v5519_v37 = vld [vmem:[#allocation61_spill] sm:$0xff] }
 0x205   : > { %v2526_v57 = vmul.f32 0.2, %v2462_v23  ;;  %v2305_v29 = vrot.slane %v2304_v0, 2  ;;  %v2337_v5 = vsel %vm588_vm0, %v1949_v47, -inf  ;;  %v1886_v8 = vmul.f32 %v5513_v33, %v1243_v10 }
 0x206   : > { %v3011_v41 = vrot.slane %v2907_v21, 3  ;;  %v3449_v53 = vpack.c.bf16 %v2592_v51, %v2592_v51  ;;  %v2465_v50 = vadd.f32 %v4995_v24, %v2322_v1  ;;  %v2338_v31 = vrot.slane %v2337_v5, 4  ;;  %v5520_v21 = vld [vmem:[#allocation27_spill] sm:$0xff] }
 0x207   : > { %v2590_v60 = vmax.f32 %v2462_v23, %v2526_v57  ;;  %v2306_v22 = vmax.f32 %v2304_v0, %v2305_v29  ;;  %v2323_v44 = vsel %vm588_vm0, %v1947_v39, -inf  ;;  %v1950_v38 = vadd.f32 %v5514_v3, %v1886_v8  ;;  %v5521_v39 = vld [vmem:[#allocation63_spill] sm:$0xff]  ;;  %v5232_v29 = vld [vmem:[%s5318_s4] ss:$0 sm:$0xff] }
 0x208   : > { %v3012_v55 = vsel %vm2939_vm5, %v3011_v41, %v3010_v26  ;;  %v5210_v13 = vunpack.c.l.b16 %v3449_v53  ;;  %v2529_v42 = vmul.f32 0.2, %v2465_v50  ;;  %v1235_v34 = vadd.f32 %v4953_v9, %v5515_v54 }
 0x209   : > { %v3014_v52 = vsel %vm2942_vm6, %v3013_v28, %v3012_v55  ;;  %v2307_v61 = vrot.slane %v2306_v22, 1  ;;  %v2339_v2 = vmax.f32 %v2337_v5, %v2338_v31  ;;  %v2324_v18 = vrot.slane %v2323_v44, 4 }
 0x20a   : > { %v3016_v7 = vsel %vm2945_vm7, %v3015_v19, %v3014_v52  ;;  %v3019_v49 = vrot.slane %v5210_v13, 6  ;;  %v3447_v26 = vpack.c.bf16 %v2590_v60, %v2590_v60  ;;  %v2593_v62 = vmax.f32 %v2465_v50, %v2529_v42 }
 0x20b   : > { %v3050_v59 = vpack.c.b16 %v3016_v7, %v3016_v7  ;;  %v2308_v58 = vmax.f32 %v2306_v22, %v2307_v61  ;;  %v2340_v45 = vrot.slane %v2339_v2, 2  ;;  %v2325_v35 = vmax.f32 %v2323_v44, %v2324_v18  ;;  %v5523_v22 = vld [vmem:[#allocation25_spill] sm:$0xff] }
 0x20c   : > { %v2344_v28 = vsel %vm588_vm0, %v1950_v38, -inf  ;;  %v3450_v36 = vpack.c.bf16 %v2593_v62, %v2593_v62  ;;  %v1884_v43 = vmul.f32 %v1235_v34, %v5516_v20  ;;  %v1256_v12 = vadd.f32 %v4953_v9, %v5517_v17  ;;  %v5524_v7 = vld [vmem:[#allocation65_spill] sm:$0xff] }
 0x20d   : > { %3067 = vst.msk [vmem:[%s4716_s18 + $0x14] sm:$0xf] %vm3061_vm8, %v3050_v59  ;;  %v2345_v27 = vrot.slane %v2344_v28, 4  ;;  %v2463_v40 = vadd.f32 %v4995_v24, %v2308_v58  ;;  %v2341_v63 = vmax.f32 %v2339_v2, %v2340_v45  ;;  %v2326_v10 = vrot.slane %v2325_v35, 2  ;;  %v5525_v2 = vld [vmem:[#allocation28_spill] sm:$0xff] }
 0x20e   : > { %v1248_v23 = vadd.f32 %v4953_v9, %v5518_v46  ;;  %v2913_v14 = vunpack.c.l.b16 %v3450_v36  ;;  %v1948_v19 = vadd.f32 %v1884_v43, %v5519_v37  ;;  %v1889_v0 = vmul.f32 %v5520_v21, %v1256_v12  ;;  %v5522_v9 = vld [vmem:[#allocation64_spill] sm:$0xff]  ;;  %v5526_v36 = vld [vmem:[#allocation43_spill] sm:$0xff] }
 0x20f   : > { %v2346_v15 = vmax.f32 %v2344_v28, %v2345_v27  ;;  %v2910_v11 = vunpack.c.l.b16 %v3447_v26  ;;  %v2527_v47 = vmul.f32 0.2, %v2463_v40  ;;  %v2342_v51 = vrot.slane %v2341_v63, 1  ;;  %v5527_v12 = vld [vmem:[#allocation35_spill] sm:$0xff] }
 0x210   : > { %v2327_v57 = vmax.f32 %v2325_v35, %v2326_v10  ;;  %v2330_v48 = vsel %vm588_vm0, %v1948_v19, -inf  ;;  %v1953_v41 = vadd.f32 %v5521_v39, %v1889_v0  ;;  %v1259_v5 = vadd.f32 %v5232_v29, %v5522_v9 }
 0x211   : > { %v2347_v1 = vrot.slane %v2346_v15, 2  ;;  %v2591_v33 = vmax.f32 %v2463_v40, %v2527_v47  ;;  %v2343_v8 = vmax.f32 %v2341_v63, %v2342_v51  ;;  %v2331_v60 = vrot.slane %v2330_v48, 4 }
 0x212   : > { %v2328_v53 = vrot.slane %v2327_v57, 1  ;;  %v3021_v50 = vrot.slane %v2913_v14, 5  ;;  %v2365_v55 = vsel %vm588_vm0, %v1953_v41, -inf  ;;  %v1887_v44 = vmul.f32 %v1248_v23, %v5523_v22 }
 0x213   : > { %v2348_v31 = vmax.f32 %v2346_v15, %v2347_v1  ;;  %v3448_v3 = vpack.c.bf16 %v2591_v33, %v2591_v33  ;;  %v2468_v38 = vadd.f32 %v4995_v24, %v2343_v8  ;;  %v2332_v42 = vmax.f32 %v2330_v48, %v2331_v60 }
 0x214   : > { %v2329_v52 = vmax.f32 %v2327_v57, %v2328_v53  ;;  %v2366_v34 = vrot.slane %v2365_v55, 4  ;;  %v1951_v61 = vadd.f32 %v1887_v44, %v5524_v7  ;;  %v1890_v18 = vmul.f32 %v5525_v2, %v1259_v5  ;;  %v5528_v5 = vld [vmem:[#allocation30_spill] sm:$0xff] }
 0x215   : > { %v2349_v54 = vrot.slane %v2348_v31, 1  ;;  %v2911_v59 = vunpack.c.l.b16 %v3448_v3  ;;  %v2532_v26 = vmul.f32 0.2, %v2468_v38  ;;  %v2333_v58 = vrot.slane %v2332_v42, 2 }
 0x216   : > { %v2466_v62 = vadd.f32 %v4995_v24, %v2329_v52  ;;  %v2367_v35 = vmax.f32 %v2365_v55, %v2366_v34  ;;  %v2351_v28 = vsel %vm588_vm0, %v1951_v61, -inf  ;;  %v1954_v27 = vadd.f32 %v5526_v36, %v1890_v18  ;;  %v5529_v55 = vld [vmem:[#allocation66_spill] sm:$0xff] }
 0x217   : > { %v2350_v45 = vmax.f32 %v2348_v31, %v2349_v54  ;;  %v3017_v20 = vrot.slane %v2911_v59, 7  ;;  %v2334_v17 = vmax.f32 %v2332_v42, %v2333_v58  ;;  %v1251_v40 = vadd.f32 %v5232_v29, %v5527_v12  ;;  %v5531_v36 = vld [vmem:[#allocation34_spill] sm:$0xff] }
 0x218   : > { %v2530_v43 = vmul.f32 0.2, %v2466_v62  ;;  %v2596_v63 = vmax.f32 %v2468_v38, %v2532_v26  ;;  %v2368_v46 = vrot.slane %v2367_v35, 2  ;;  %v2352_v23 = vrot.slane %v2351_v28, 4 }
 0x219   : > { %v2469_v10 = vadd.f32 %v4995_v24, %v2350_v45  ;;  %v3018_v14 = vsel %vm2927_vm1, %v3017_v20, %v2910_v11  ;;  %v2335_v37 = vrot.slane %v2334_v17, 1  ;;  %v2372_v19 = vsel %vm588_vm0, %v1954_v27, -inf  ;;  %v5256_v11 = vld [vmem:[%s5319_s5] ss:$0 sm:$0xff] }
 0x21a   : > { %v2594_v15 = vmax.f32 %v2466_v62, %v2530_v43  ;;  %v3020_v21 = vsel %vm2930_vm2, %v3019_v49, %v3018_v14  ;;  %v2369_v47 = vmax.f32 %v2367_v35, %v2368_v46  ;;  %v2353_v51 = vmax.f32 %v2351_v28, %v2352_v23  ;;  %v5530_v62 = vld [vmem:[#allocation32_spill] sm:$0xff] }
 0x21b   : > { %v2533_v0 = vmul.f32 0.2, %v2469_v10  ;;  %v3022_v1 = vsel %vm2933_vm3, %v3021_v50, %v3020_v21  ;;  %v2336_v48 = vmax.f32 %v2334_v17, %v2335_v37  ;;  %v2373_v41 = vrot.slane %v2372_v19, 4 }
 0x21c   : > { %v3451_v57 = vpack.c.bf16 %v2594_v15, %v2594_v15  ;;  %v2354_v39 = vrot.slane %v2353_v51, 2  ;;  %v1888_v49 = vmul.f32 %v1251_v40, %v5528_v5  ;;  %v3453_v33 = vpack.c.bf16 %v2596_v63, %v2596_v63 }
 0x21d   : > { %v2597_v24 = vmax.f32 %v2469_v10, %v2533_v0  ;;  %v2467_v13 = vadd.f32 %v5256_v11, %v2336_v48  ;;  %v2370_v8 = vrot.slane %v2369_v47, 1  ;;  %v2374_v60 = vmax.f32 %v2372_v19, %v2373_v41 }
 0x21e   : > { %v2914_v9 = vunpack.c.l.b16 %v3451_v57  ;;  %v2355_v53 = vmax.f32 %v2353_v51, %v2354_v39  ;;  %v1952_v22 = vadd.f32 %v1888_v49, %v5529_v55  ;;  %v1272_v44 = vadd.f32 %v5232_v29, %v5006_v16 }
 0x21f   : > { %v2531_v50 = vmul.f32 0.2, %v2467_v13  ;;  %v3454_v3 = vpack.c.bf16 %v2597_v24, %v2597_v24  ;;  %v2375_v52 = vrot.slane %v2374_v60, 2  ;;  %v1264_v7 = vadd.f32 %v5232_v29, %v5011_v6 }
 0x220   : > { %v3023_v31 = vrot.slane %v2914_v9, 4  ;;  %v2356_v38 = vrot.slane %v2355_v53, 1  ;;  %v2358_v34 = vsel %vm588_vm0, %v1952_v22, -inf  ;;  %v2916_v61 = vunpack.c.l.b16 %v3453_v33 }
 0x221   : > { %v2595_v54 = vmax.f32 %v2467_v13, %v2531_v50  ;;  %v2371_v2 = vmax.f32 %v2369_v47, %v2370_v8  ;;  %v2376_v18 = vmax.f32 %v2374_v60, %v2375_v52  ;;  %v2359_v26 = vrot.slane %v2358_v34, 4  ;;  %v5533_v50 = vld [vmem:[#allocation38_spill] sm:$0xff] }
 0x222   : > { %v3024_v42 = vsel %vm2936_vm4, %v3023_v31, %v3022_v1  ;;  %v1893_v58 = vmul.f32 %v5530_v62, %v1272_v44  ;;  %v1275_v16 = vadd.f32 %v5232_v29, %v5018_v4  ;;  %v2917_v45 = vunpack.c.l.b16 %v3454_v3  ;;  %v5532_v4 = vld [vmem:[#allocation36_spill] sm:$0xff] }
 0x223   : > { %v3452_v59 = vpack.c.bf16 %v2595_v54, %v2595_v54  ;;  %v2357_v35 = vmax.f32 %v2355_v53, %v2356_v38  ;;  %v2377_v28 = vrot.slane %v2376_v18, 1  ;;  %v1891_v27 = vmul.f32 %v1264_v7, %v5531_v36  ;;  %v5534_v38 = vld [vmem:[#allocation42_spill] sm:$0xff] }
 0x224   : > { %v2360_v43 = vmax.f32 %v2358_v34, %v2359_v26  ;;  %v1957_v17 = vadd.f32 %v5013_v56, %v1893_v58  ;;  %v3027_v6 = vrot.slane %v2916_v61, 2  ;;  %v2472_v12 = vadd.f32 %v5256_v11, %v2371_v2 }
 0x225   : > { %v2915_v20 = vunpack.c.l.b16 %v3452_v59  ;;  %v2378_v40 = vmax.f32 %v2376_v18, %v2377_v28  ;;  %v1955_v63 = vadd.f32 %v1891_v27, %v5020_v32  ;;  %v1894_v14 = vmul.f32 %v5532_v4, %v1275_v16 }
 0x226   : > { %v2361_v46 = vrot.slane %v2360_v43, 2  ;;  %v2393_v23 = vsel %vm588_vm0, %v1957_v17, -inf  ;;  %v3029_v15 = vrot.slane %v2917_v45, 1  ;;  %v2470_v37 = vadd.f32 %v5256_v11, %v2357_v35 }
 0x227   : > { %v3025_v10 = vrot.slane %v2915_v20, 3  ;;  %v2473_v19 = vadd.f32 %v5256_v11, %v2378_v40  ;;  %v2394_v21 = vrot.slane %v2393_v23, 4  ;;  %v2379_v47 = vsel %vm588_vm0, %v1955_v63, -inf }
 0x228   : > { %v2362_v0 = vmax.f32 %v2360_v43, %v2361_v46  ;;  %v1958_v51 = vadd.f32 %v5024_v25, %v1894_v14  ;;  %v2536_v57 = vmul.f32 0.2, %v2472_v12  ;;  %v1267_v48 = vadd.f32 %v5232_v29, %v5022_v30 }
 0x229   : > { %v3026_v56 = vsel %vm2939_vm5, %v3025_v10, %v3024_v42  ;;  %v2537_v1 = vmul.f32 0.2, %v2473_v19  ;;  %v2395_v41 = vmax.f32 %v2393_v23, %v2394_v21  ;;  %v2380_v9 = vrot.slane %v2379_v47, 4 }
 0x22a   : > { %v3028_v32 = vsel %vm2942_vm6, %v3027_v6, %v3026_v56  ;;  %v2363_v39 = vrot.slane %v2362_v0, 1  ;;  %v2534_v5 = vmul.f32 0.2, %v2470_v37  ;;  %v2400_v49 = vsel %vm588_vm0, %v1958_v51, -inf }
 0x22b   : > { %v3030_v24 = vsel %vm2945_vm7, %v3029_v15, %v3028_v32  ;;  %v2396_v8 = vrot.slane %v2395_v41, 2  ;;  %v2381_v25 = vmax.f32 %v2379_v47, %v2380_v9  ;;  %v2401_v53 = vrot.slane %v2400_v49, 4 }
 0x22c   : > { %v3051_v13 = vpack.c.b16 %v3030_v24, %v3030_v24  ;;  %v2364_v33 = vmax.f32 %v2362_v0, %v2363_v39  ;;  %v2600_v60 = vmax.f32 %v2472_v12, %v2536_v57  ;;  %v2601_v31 = vmax.f32 %v2473_v19, %v2537_v1 }
 0x22d   : > { %v1892_v55 = vmul.f32 %v1267_v48, %v5533_v50  ;;  %v2397_v29 = vmax.f32 %v2395_v41, %v2396_v8  ;;  %v2382_v22 = vrot.slane %v2381_v25, 2  ;;  %v2402_v44 = vmax.f32 %v2400_v49, %v2401_v53 }
 0x22e   : > { %3068 = vst.msk [vmem:[%s4716_s18 + $0x18] sm:$0xf] %vm3061_vm8, %v3051_v13  ;;  %v2471_v30 = vadd.f32 %v5256_v11, %v2364_v33  ;;  %v2598_v3 = vmax.f32 %v2470_v37, %v2534_v5  ;;  %v3457_v61 = vpack.c.bf16 %v2600_v60, %v2600_v60  ;;  %v3458_v2 = vpack.c.bf16 %v2601_v31, %v2601_v31 }
 0x22f   : > { %v1956_v52 = vadd.f32 %v1892_v55, %v5534_v38  ;;  %v2398_v54 = vrot.slane %v2397_v29, 1  ;;  %v2383_v34 = vmax.f32 %v2381_v25, %v2382_v22  ;;  %v2403_v7 = vrot.slane %v2402_v44, 2 }
 0x230   : > { %v2535_v42 = vmul.f32 0.2, %v2471_v30  ;;  %v3455_v45 = vpack.c.bf16 %v2598_v3, %v2598_v3  ;;  %v2920_v27 = vunpack.c.l.b16 %v3457_v61  ;;  %v2921_v20 = vunpack.c.l.b16 %v3458_v2 }
 0x231   : > { %v2386_v18 = vsel %vm588_vm0, %v1956_v52, -inf  ;;  %v2399_v26 = vmax.f32 %v2397_v29, %v2398_v54  ;;  %v2384_v62 = vrot.slane %v2383_v34, 1  ;;  %v2404_v58 = vmax.f32 %v2402_v44, %v2403_v7 }
 0x232   : > { %v2599_v59 = vmax.f32 %v2471_v30, %v2535_v42  ;;  %v2387_v16 = vrot.slane %v2386_v18, 4  ;;  %v2918_v10 = vunpack.c.l.b16 %v3455_v45  ;;  %v3033_v14 = vrot.slane %v2920_v27, 6 }
 0x233   : > { %v2385_v28 = vmax.f32 %v2383_v34, %v2384_v62  ;;  %v2405_v36 = vrot.slane %v2404_v58, 1  ;;  %v2476_v6 = vadd.f32 %v5256_v11, %v2399_v26  ;;  %v3035_v37 = vrot.slane %v2921_v20, 5 }
 0x234   : > { %v3456_v35 = vpack.c.bf16 %v2599_v59, %v2599_v59  ;;  %v2388_v43 = vmax.f32 %v2386_v18, %v2387_v16 }
 0x235   : > { %v2474_v12 = vadd.f32 %v5256_v11, %v2385_v28  ;;  %v2406_v40 = vmax.f32 %v2404_v58, %v2405_v36  ;;  %v2540_v21 = vmul.f32 0.2, %v2476_v6 }
 0x236   : > { %v2919_v17 = vunpack.c.l.b16 %v3456_v35  ;;  %v2389_v63 = vrot.slane %v2388_v43, 2 }
 0x237   : > { %v2538_v23 = vmul.f32 0.2, %v2474_v12  ;;  %v2477_v4 = vadd.f32 %v5256_v11, %v2406_v40  ;;  %v2604_v48 = vmax.f32 %v2476_v6, %v2540_v21 }
 0x238   : > { %v3031_v46 = vrot.slane %v2919_v17, 7  ;;  %v2390_v15 = vmax.f32 %v2388_v43, %v2389_v63 }
 0x239   : > { %v2602_v56 = vmax.f32 %v2474_v12, %v2538_v23  ;;  %v2541_v47 = vmul.f32 0.2, %v2477_v4  ;;  %v3461_v5 = vpack.c.bf16 %v2604_v48, %v2604_v48 }
 0x23a   : > { %v3032_v19 = vsel %vm2927_vm1, %v3031_v46, %v2918_v10  ;;  %v2391_v51 = vrot.slane %v2390_v15, 1 }
 0x23b   : > { %v3034_v0 = vsel %vm2930_vm2, %v3033_v14, %v3032_v19  ;;  %v3459_v32 = vpack.c.bf16 %v2602_v56, %v2602_v56  ;;  %v2605_v39 = vmax.f32 %v2477_v4, %v2541_v47  ;;  %v2924_v53 = vunpack.c.l.b16 %v3461_v5 }
 0x23c   : > { %v3036_v57 = vsel %vm2933_vm3, %v3035_v37, %v3034_v0  ;;  %v2392_v1 = vmax.f32 %v2390_v15, %v2391_v51 }
 0x23d   : > { %v2922_v24 = vunpack.c.l.b16 %v3459_v32  ;;  %v3462_v33 = vpack.c.bf16 %v2605_v39, %v2605_v39  ;;  %v3041_v55 = vrot.slane %v2924_v53, 2 }
 0x23e   : > { %v2475_v41 = vadd.f32 %v5256_v11, %v2392_v1 }
 0x23f   : > { %v3037_v9 = vrot.slane %v2922_v24, 4  ;;  %v2925_v60 = vunpack.c.l.b16 %v3462_v33 }
 0x240   : > { %v2539_v13 = vmul.f32 0.2, %v2475_v41 }
 0x241   : > { %v3038_v49 = vsel %vm2936_vm4, %v3037_v9, %v3036_v57  ;;  %v3043_v30 = vrot.slane %v2925_v60, 1 }
 0x242   : > { %v2603_v8 = vmax.f32 %v2475_v41, %v2539_v13 }
 0x244   : > { %v3460_v25 = vpack.c.bf16 %v2603_v8, %v2603_v8 }
 0x246   : > { %v2923_v31 = vunpack.c.l.b16 %v3460_v25 }
 0x248   : > { %v3039_v50 = vrot.slane %v2923_v31, 3 }
 0x24a   : > { %v3040_v29 = vsel %vm2939_vm5, %v3039_v50, %v3038_v49 }
 0x24b   : > { %v3042_v22 = vsel %vm2942_vm6, %v3041_v55, %v3040_v29 }
 0x24c   : > { %v3044_v11 = vsel %vm2945_vm7, %v3043_v30, %v3042_v22 }
 0x24d   : > { %v3052_v44 = vpack.c.b16 %v3044_v11, %v3044_v11 }
 0x24f   : > { %3069 = vst.msk [vmem:[%s4716_s18 + $0x1c] sm:$0xf] %vm3061_vm8, %v3052_v44 }
 0x250 PF: > { %s16_s23 = sadd.s32 1, %s3847_s23   ;;  %s5535_s21 = smov %s3843_s22 }
 0x251   : > { %p13_p5 = scmp.ge.s32.totalorder %s16_s23, 4   ;;  %s5536_s22 = smov %s5538_s24 }
 0x253   :  { %15 = sbr.rel (!%p13_p5) target bundleno = 2 (0x2), region = 74 }

// kernel: forward.6
= control target key start
LH: loop header
LB: loop body
LE: loop exit
PB: predicated region body
PF: predicated region fallthrough
CT: control target
= control target key end

     0   :  { %s2385_s21 = smov 0   ;;  %s2387_s22 = smov 0   ;;  %s3088_s0 = inlined_call_operand.vmem [shape: bf16[2,256,64], index: 0, kind: input, shape index: {}]   ;;  %s3089_s1 = inlined_call_operand.vmem [shape: bf16[64,64], index: 1, kind: input, shape index: {}]   ;;  %s3090_s2 = inlined_call_operand.vmem [shape: bf16[64,64], index: 2, kind: input, shape index: {}]   ;;  %s3091_s3 = inlined_call_operand.vmem [shape: bf16[64,64], index: 3, kind: input, shape index: {}]   ;;  %s3092_s4 = inlined_call_operand.vmem [shape: f32[1,64], index: 4, kind: input, shape index: {}]   ;;  %s3093_s5 = inlined_call_operand.vmem [shape: f32[1,64], index: 5, kind: input, shape index: {}]   ;;  %s3094_s6 = inlined_call_operand.vmem [shape: bf16[2,32,64], index: 6, kind: output, shape index: {}]  }
   0x1   :  { %s2389_s23 = smov 0  }
   0x2 LB: > { %s28_s24 = sadd.s32 1, %s2344_s22  ;;  %p1917_p0 = scmp.ge.s32.totalorder %s2348_s23, 1  ;;  %s2348_s23 = sphi %s2389_s23, %s16_s23   ;;  %s2344_s22 = sphi %s2387_s22, %s3122_s22   ;;  %s2340_s21 = sphi %s2385_s21, %s3121_s21  }
   0x3   : > { %p30_p1 = scmp.ge.s32.totalorder %s28_s24, 2  ;;  %p233_p2 = scmp.lt.s32.totalorder %s2348_s23, 3 }
   0x5   : > { %s3124_s24 = smov (%p30_p1, %s28_s24), 0  ;;  %p234_p3 = pnand %p1917_p0, %p233_p2 }
   0x7   : > { %237 = sbr.rel (%p234_p3) target bundleno = 432 (0x1b0), region = 44 }
   0xe   : > { %v2296_v0 = vld [vmem:[%s3089_s1] sm:$0xff]   ;;  %p272_p4 = scmp.lt.s32.totalorder %s2340_s21, 1  ;;  %v2297_v1 = vld [vmem:[%s3089_s1 + $0x8] sm:$0xff]   ;;  %v2298_v2 = vld [vmem:[%s3089_s1 + $0x10] sm:$0xff]   ;;  %vm468_vm0 = vcmask 523264   ;;  %vm1751_vm1 = vcmask 1041409  }
   0xf   : > { %2264 = vmatprep.subr.bf16.mxu1 %v2296_v0  ;;  %2144 = vmatprep.subr.bf16.mxu0 %v2296_v0  ;;  %v2299_v10 = vld [vmem:[%s3089_s1 + $0x18] sm:$0xff]   ;;  %v2302_v14 = vld [vmem:[%s3090_s2] sm:$0xff]   ;;  %v2308_v26 = vld [vmem:[%s3090_s2 + $0x8] sm:$0xff]   ;;  %vm1754_vm2 = vcmask 1042434   ;;  %vm1757_vm3 = vcmask 1043459   ;;  %vm1760_vm4 = vcmask 1044484  }
  0x10   : > { %s3126_s21 = smov (!%p272_p4, %s2340_s21), 1  ;;  %2268 = vmatpush3.bf16.msra.mxu1 %v2296_v0  ;;  %2145 = vmatpush3.bf16.msra.mxu0 %v2296_v0  ;;  %v2305_v18 = vld [vmem:[%s3091_s3] sm:$0xff]   ;;  %v2311_v31 = vld [vmem:[%s3091_s3 + $0x8] sm:$0xff]   ;;  %v2314_v35 = vld [vmem:[%s3090_s2 + $0x10] sm:$0xff]   ;;  %vm1763_vm5 = vcmask 1045509   ;;  %vm1766_vm6 = vcmask 1046534  }
  0x11   : > { %2265 = vmatprep.subr.bf16.mxu1 %v2297_v1  ;;  %2146 = vmatprep.subr.bf16.mxu0 %v2297_v1  ;;  %s2050_s7 = sshll.u32 %s3126_s21, 7  ;;  %v2317_v38 = vld [vmem:[%s3091_s3 + $0x10] sm:$0xff]   ;;  %v2320_v43 = vld [vmem:[%s3090_s2 + $0x18] sm:$0xff]   ;;  %vm1769_vm7 = vcmask 1047559   ;;  %vm1821_vm8 = vcmask 519168   ;;  %s2051_s13 = sshll.u32 %s3126_s21, 4 }
  0x12   : > { %s2418_s10 = scalar_lea.vmem %s3088_s0, %s2050_s7  ;;  %v2323_v44 = vld [vmem:[%s3091_s3 + $0x18] sm:$0xff]   ;;  %s2908_s15 = scalar_lea.vmem %s3094_s6, %s2051_s13 }
  0x13   : > { %v308_v3 = vld [vmem:[%s2418_s10 + $0x40] sm:$0xf]  ;;  %v309_v4 = vld [vmem:[%s2418_s10 + $0x44] sm:$0xf]  ;;  %v2442_v13 = vld [vmem:[%s2418_s10 + $0x48] sm:$0xf] }
  0x14   : > { %2269 = vmatpush3.bf16.msra.mxu1 %v2297_v1  ;;  %2147 = vmatpush3.bf16.msra.mxu0 %v2297_v1  ;;  %v340_v5 = vmul.bf16 %v308_v3, %v308_v3  ;;  %v341_v6 = vmul.bf16 %v309_v4, %v309_v4  ;;  %v2422_v7 = vcombine.low %v308_v3, %v309_v4  ;;  %v2425_v8 = vld [vmem:[%s2418_s10] sm:$0xf]  ;;  %v2428_v9 = vld [vmem:[%s2418_s10 + $0x4] sm:$0xf]  ;;  %v2448_v15 = vld [vmem:[%s2418_s10 + $0x4c] sm:$0xf] }
  0x15   : > { %2266 = vmatprep.subr.bf16.mxu1 %v2298_v2  ;;  %2148 = vmatprep.subr.bf16.mxu0 %v2298_v2  ;;  %v2439_v12 = vcombine.low %v2425_v8, %v2428_v9  ;;  %v2451_v16 = vld [vmem:[%s2418_s10 + $0x8] sm:$0xf]  ;;  %v2454_v17 = vld [vmem:[%s2418_s10 + $0xc] sm:$0xf]  ;;  %v2462_v19 = vld [vmem:[%s2418_s10 + $0x50] sm:$0xf]  ;;  %v2469_v21 = vcombine.low %v2442_v13, %v2448_v15  ;;  %v324_v58 = vmul.bf16 %v2425_v8, %v2425_v8 }
  0x16   : > { %2168 = vmatprep.mubr.msk.bf16.mxu1 %vm468_vm0, %v2422_v7  ;;  %v2435_v11 = vcombine.low %v340_v5, %v341_v6  ;;  %v2465_v20 = vld [vmem:[%s2418_s10 + $0x54] sm:$0xf]  ;;  %v2473_v22 = vcombine.low %v2451_v16, %v2454_v17  ;;  %v2476_v23 = vld [vmem:[%s2418_s10 + $0x10] sm:$0xf]  ;;  %v2489_v27 = vld [vmem:[%s2418_s10 + $0x58] sm:$0xf]  ;;  %v325_v59 = vmul.bf16 %v2428_v9, %v2428_v9  ;;  %v327_v3 = vmul.bf16 %v2454_v17, %v2454_v17 }
  0x17   : > { %2152 = vmatprep.mubr.msk.bf16.mxu0 %vm468_vm0, %v2439_v12  ;;  %v2479_v24 = vld [vmem:[%s2418_s10 + $0x14] sm:$0xf]  ;;  %v2483_v25 = vcombine.low %v2462_v19, %v2465_v20  ;;  %v2492_v28 = vld [vmem:[%s2418_s10 + $0x5c] sm:$0xf]  ;;  %v2499_v30 = vld [vmem:[%s2418_s10 + $0x18] sm:$0xf]  ;;  %v328_v4 = vmul.bf16 %v2476_v23, %v2476_v23 }
  0x18   : > { %2270 = vmatpush3.bf16.msra.mxu1 %v2298_v2  ;;  %2149 = vmatpush3.bf16.msra.mxu0 %v2298_v2  ;;  %v2496_v29 = vcombine.low %v2476_v23, %v2479_v24  ;;  %v2509_v32 = vld [vmem:[%s2418_s10 + $0x1c] sm:$0xf]  ;;  %v2512_v33 = vld [vmem:[%s2418_s10 + $0x60] sm:$0xf]  ;;  %v2515_v34 = vld [vmem:[%s2418_s10 + $0x64] sm:$0xf]  ;;  %v2535_v39 = vcombine.low %v2489_v27, %v2492_v28  ;;  %v1979_v1 = vcombine.low %v324_v58, %v325_v59 }
  0x19   : > { %2267 = vmatprep.subr.bf16.mxu1 %v2299_v10  ;;  %2150 = vmatprep.subr.bf16.mxu0 %v2299_v10  ;;  %v2523_v36 = vld [vmem:[%s2418_s10 + $0x20] sm:$0xf]  ;;  %v2526_v37 = vld [vmem:[%s2418_s10 + $0x24] sm:$0xf]  ;;  %v2539_v40 = vcombine.low %v2499_v30, %v2509_v32  ;;  %v2543_v41 = vcombine.low %v2512_v33, %v2515_v34  ;;  %v2560_v45 = vld [vmem:[%s2418_s10 + $0x68] sm:$0xf]  ;;  %v326_v2 = vmul.bf16 %v2451_v16, %v2451_v16 }
  0x1a   : > { %v2547_v42 = vcombine.low %v2523_v36, %v2526_v37  ;;  %v2563_v46 = vld [vmem:[%s2418_s10 + $0x6c] sm:$0xf]  ;;  %v302_v47 = vld [vmem:[%s2418_s10 + $0x28] sm:$0xf]  ;;  %v2572_v49 = vld [vmem:[%s2418_s10 + $0x70] sm:$0xf]  ;;  %v329_v5 = vmul.bf16 %v2479_v24, %v2479_v24  ;;  %v330_v9 = vmul.bf16 %v2499_v30, %v2499_v30 }
  0x1b   : > { %v303_v48 = vld [vmem:[%s2418_s10 + $0x2c] sm:$0xf]  ;;  %v2575_v50 = vld [vmem:[%s2418_s10 + $0x74] sm:$0xf]  ;;  %v304_v51 = vld [vmem:[%s2418_s10 + $0x30] sm:$0xf]  ;;  %v2581_v53 = vcombine.low %v2560_v45, %v2563_v46  ;;  %v1980_v6 = vcombine.low %v326_v2, %v327_v3 }
  0x1c   : > { %2271 = vmatpush3.bf16.msra.mxu1 %v2299_v10  ;;  %2151 = vmatpush3.bf16.msra.mxu0 %v2299_v10  ;;  %v305_v52 = vld [vmem:[%s2418_s10 + $0x34] sm:$0xf]  ;;  %v1927_v54 = vcombine.low %v302_v47, %v303_v48  ;;  %v2585_v55 = vcombine.low %v2572_v49, %v2575_v50  ;;  %v2591_v57 = vld [vmem:[%s2418_s10 + $0x78] sm:$0xf]  ;;  %v2600_v60 = vld [vmem:[%s2418_s10 + $0x7c] sm:$0xf]  ;;  %v1981_v8 = vcombine.low %v328_v4, %v329_v5 }
  0x1d   : > { %2184 = vmatprep.subr.bf16.mxu1 %v2302_v14  ;;  %2224 = vmatprep.subr.bf16.mxu0 %v2305_v18  ;;  %v1928_v56 = vcombine.low %v304_v51, %v305_v52  ;;  %v306_v61 = vld [vmem:[%s2418_s10 + $0x38] sm:$0xf]  ;;  %v307_v62 = vld [vmem:[%s2418_s10 + $0x3c] sm:$0xf]  ;;  %v2607_v63 = vcombine.low %v2591_v57, %v2600_v60  ;;  %v331_v10 = vmul.bf16 %v2509_v32, %v2509_v32 }
  0x1e   : > { %v1929_v0 = vcombine.low %v306_v61, %v307_v62  ;;  %v336_v23 = vmul.bf16 %v304_v51, %v304_v51  ;;  %v337_v24 = vmul.bf16 %v305_v52, %v305_v52  ;;  %v338_v30 = vmul.bf16 %v306_v61, %v306_v61 }
  0x1f   : > { %2169 = vmatmul.mubr.msk.bf16.vlgmr.msra.gmra.mrb[0].mxu1 %vm468_vm0, %v2469_v21  ;;  %2153 = vmatmul.mubr.msk.bf16.vlgmr.msra.gmra.mrb[0].mxu0 %vm468_vm0, %v2473_v22  ;;  %v1982_v16 = vcombine.low %v330_v9, %v331_v10 }
  0x20   : > { %2185 = vmatpush3.bf16.msra.mxu1 %v2302_v14  ;;  %2225 = vmatpush3.bf16.msra.mxu0 %v2305_v18  ;;  %v333_v14 = vmul.bf16 %v2526_v37, %v2526_v37  ;;  %v334_v18 = vmul.bf16 %v302_v47, %v302_v47  ;;  %v344_v37 = vmul.bf16 %v2462_v19, %v2462_v19 }
  0x21   : > { %2172 = vmatprep.mubr.msk.bf16.mxu1 %vm468_vm0, %v2483_v25  ;;  %2186 = vmatprep.subr.bf16.mxu1 %v2308_v26 }
  0x22   : > { %2156 = vmatprep.mubr.msk.bf16.mxu0 %vm468_vm0, %v2496_v29  ;;  %2226 = vmatprep.subr.bf16.mxu0 %v2311_v31 }
  0x24   : > { %2187 = vmatpush3.bf16.msra.mxu1 %v2308_v26  ;;  %2227 = vmatpush3.bf16.msra.mxu0 %v2311_v31  ;;  %v339_v31 = vmul.bf16 %v307_v62, %v307_v62 }
  0x25   : > { %2188 = vmatprep.subr.bf16.mxu1 %v2314_v35  ;;  %2228 = vmatprep.subr.bf16.mxu0 %v2317_v38 }
  0x26   : > { %v1986_v32 = vcombine.low %v338_v30, %v339_v31 }
  0x27   : > { %2173 = vmatmul.mubr.msk.bf16.gmra.mrb[4].mxu1 %vm468_vm0, %v2535_v39  ;;  %2157 = vmatmul.mubr.msk.bf16.gmra.mrb[4].mxu0 %vm468_vm0, %v2539_v40 }
  0x28   : > { %2176 = vmatprep.mubr.msk.bf16.mxu1 %vm468_vm0, %v2543_v41  ;;  %2160 = vmatprep.mubr.msk.bf16.mxu0 %vm468_vm0, %v2547_v42 }
  0x29   : > { %2189 = vmatpush3.bf16.msra.mxu1 %v2314_v35  ;;  %2229 = vmatpush3.bf16.msra.mxu0 %v2317_v38  ;;  %v342_v35 = vmul.bf16 %v2442_v13, %v2442_v13  ;;  %v345_v38 = vmul.bf16 %v2465_v20, %v2465_v20  ;;  %v346_v13 = vmul.bf16 %v2489_v27, %v2489_v27 }
  0x2a   : > { %2190 = vmatprep.subr.bf16.mxu1 %v2320_v43  ;;  %2230 = vmatprep.subr.bf16.mxu0 %v2323_v44  ;;  %v352_v27 = vmul.bf16 %v2572_v49, %v2572_v49 }
  0x2d   : > { %2191 = vmatpush3.bf16.msra.mxu1 %v2320_v43  ;;  %2231 = vmatpush3.bf16.msra.mxu0 %v2323_v44 }
  0x2f   : > { %2177 = vmatmul.mubr.msk.bf16.gmra.mrb[8].mxu1 %vm468_vm0, %v2581_v53  ;;  %2161 = vmatmul.mubr.msk.bf16.gmra.mrb[8].mxu0 %vm468_vm0, %v1927_v54 }
  0x30   : > { %2180 = vmatprep.mubr.msk.bf16.mxu1 %vm468_vm0, %v2585_v55  ;;  %2164 = vmatprep.mubr.msk.bf16.mxu0 %vm468_vm0, %v1928_v56 }
  0x37   : > { %2181 = vmatmul.mubr.msk.bf16.gmra.mrb[12].mxu1 %vm468_vm0, %v2607_v63  ;;  %2165 = vmatmul.mubr.msk.bf16.gmra.mrb[12].mxu0 %vm468_vm0, %v1929_v0 }
  0x38   : > { %2192 = vmatprep.mubr.msk.bf16.mxu1 %vm468_vm0, %v2439_v12  ;;  %2232 = vmatprep.mubr.msk.bf16.mxu0 %vm468_vm0, %v1979_v1  ;;  %v332_v12 = vmul.bf16 %v2523_v36, %v2523_v36  ;;  %v343_v36 = vmul.bf16 %v2448_v15, %v2448_v15  ;;  %v349_v15 = vmul.bf16 %v2515_v34, %v2515_v34 }
  0x3a   : > { %v1983_v17 = vcombine.low %v332_v12, %v333_v14 }
  0x3f   : > { %2193 = vmatmul.mubr.msk.bf16.vlgmr.msra.gmra.mrb[16].mxu1 %vm468_vm0, %v2473_v22  ;;  %2233 = vmatmul.mubr.msk.bf16.vlgmr.msra.gmra.mrb[16].mxu0 %vm468_vm0, %v1980_v6  ;;  %v335_v22 = vmul.bf16 %v303_v48, %v303_v48 }
  0x40   : > { %2196 = vmatprep.mubr.msk.bf16.mxu1 %vm468_vm0, %v2496_v29  ;;  %2236 = vmatprep.mubr.msk.bf16.mxu0 %vm468_vm0, %v1981_v8  ;;  %v1985_v29 = vcombine.low %v336_v23, %v337_v24 }
  0x41   : > { %v1984_v26 = vcombine.low %v334_v18, %v335_v22 }
  0x47   : > { %2197 = vmatmul.mubr.msk.bf16.gmra.mrb[20].mxu1 %vm468_vm0, %v2539_v40  ;;  %2237 = vmatmul.mubr.msk.bf16.gmra.mrb[20].mxu0 %vm468_vm0, %v1982_v16  ;;  %v1988_v40 = vcombine.low %v342_v35, %v343_v36  ;;  %v2761_v16 = vld [vmem:[%s3092_s4] ss:$0 sm:$0xff] }
  0x48   : > { %2200 = vmatprep.mubr.msk.bf16.mxu1 %vm468_vm0, %v2547_v42  ;;  %2240 = vmatprep.mubr.msk.bf16.mxu0 %vm468_vm0, %v1983_v17  ;;  %v1989_v42 = vcombine.low %v344_v37, %v345_v38 }
  0x4f   : > { %2201 = vmatmul.mubr.msk.bf16.gmra.mrb[24].mxu1 %vm468_vm0, %v1927_v54  ;;  %2241 = vmatmul.mubr.msk.bf16.gmra.mrb[24].mxu0 %vm468_vm0, %v1984_v26 }
  0x50   : > { %2204 = vmatprep.mubr.msk.bf16.mxu1 %vm468_vm0, %v1928_v56  ;;  %2244 = vmatprep.mubr.msk.bf16.mxu0 %vm468_vm0, %v1985_v29 }
  0x57   : > { %2205 = vmatmul.mubr.msk.bf16.gmra.mrb[28].mxu1 %vm468_vm0, %v1929_v0  ;;  %2245 = vmatmul.mubr.msk.bf16.gmra.mrb[28].mxu0 %vm468_vm0, %v1986_v32 }
  0x58   : > { %2208 = vmatprep.mubr.msk.bf16.mxu1 %vm468_vm0, %v2422_v7  ;;  %2248 = vmatprep.mubr.msk.bf16.mxu0 %vm468_vm0, %v2435_v11  ;;  %v347_v7 = vmul.bf16 %v2492_v28, %v2492_v28  ;;  %v348_v11 = vmul.bf16 %v2512_v33, %v2512_v33  ;;  %v353_v28 = vmul.bf16 %v2575_v50, %v2575_v50 }
  0x5a   : > { %v1990_v19 = vcombine.low %v346_v13, %v347_v7  ;;  %v1991_v20 = vcombine.low %v348_v11, %v349_v15  ;;  %v1993_v34 = vcombine.low %v352_v27, %v353_v28 }
  0x5f   : > { %2209 = vmatmul.mubr.msk.bf16.gmra.mrb[32].mxu1 %vm468_vm0, %v2469_v21  ;;  %2249 = vmatmul.mubr.msk.bf16.gmra.mrb[32].mxu0 %vm468_vm0, %v1988_v40  ;;  %v350_v21 = vmul.bf16 %v2560_v45, %v2560_v45 }
  0x60   : > { %2212 = vmatprep.mubr.msk.bf16.mxu1 %vm468_vm0, %v2483_v25  ;;  %2252 = vmatprep.mubr.msk.bf16.mxu0 %vm468_vm0, %v1989_v42  ;;  %v351_v25 = vmul.bf16 %v2563_v46, %v2563_v46 }
  0x62   : > { %v1992_v33 = vcombine.low %v350_v21, %v351_v25 }
  0x67   : > { %2213 = vmatmul.mubr.msk.bf16.gmra.mrb[36].mxu1 %vm468_vm0, %v2535_v39  ;;  %2253 = vmatmul.mubr.msk.bf16.gmra.mrb[36].mxu0 %vm468_vm0, %v1990_v19  ;;  %v354_v39 = vmul.bf16 %v2591_v57, %v2591_v57 }
  0x68   : > { %2216 = vmatprep.mubr.msk.bf16.mxu1 %vm468_vm0, %v2543_v41  ;;  %2256 = vmatprep.mubr.msk.bf16.mxu0 %vm468_vm0, %v1991_v20  ;;  %v355_v41 = vmul.bf16 %v2600_v60, %v2600_v60 }
  0x6a   : > { %v1994_v43 = vcombine.low %v354_v39, %v355_v41 }
  0x6f   : > { %2217 = vmatmul.mubr.msk.bf16.gmra.mrb[40].mxu1 %vm468_vm0, %v2581_v53  ;;  %2257 = vmatmul.mubr.msk.bf16.gmra.mrb[40].mxu0 %vm468_vm0, %v1992_v33 }
  0x70   : > { %2220 = vmatprep.mubr.msk.bf16.mxu1 %vm468_vm0, %v2585_v55  ;;  %2260 = vmatprep.mubr.msk.bf16.mxu0 %vm468_vm0, %v1993_v34 }
  0x77   : > { %2221 = vmatmul.mubr.msk.bf16.gmra.mrb[44].mxu1 %vm468_vm0, %v2607_v63  ;;  %2261 = vmatmul.mubr.msk.bf16.gmra.mrb[44].mxu0 %vm468_vm0, %v1994_v43 }
  0xf2   : > { %v2702_v44 = vpop.f32.mrb[0].mxu1  ;;  %v2154_v45 = vpop.f32.mrb[0].mxu0 }
  0xf3   : > { %v2704_v46 = vpop.f32.mrb[1].mxu1  ;;  %v551_v47 = vpop.f32.mrb[1].mxu0 }
  0xf4   : > { %v2706_v48 = vpop.f32.mrb[2].mxu1  ;;  %v2155_v49 = vpop.f32.mrb[2].mxu0 }
  0xf5   : > { %v2708_v50 = vpop.f32.mrb[3].mxu1  ;;  %v554_v51 = vpop.f32.mrb[3].mxu0 }
  0xfa   : > { %v2710_v52 = vpop.f32.mrb[4].mxu1  ;;  %v2712_v53 = vpop.f32.mrb[4].mxu0 }
  0xfb   : > { %v2714_v54 = vpop.f32.mrb[5].mxu1  ;;  %v2716_v55 = vpop.f32.mrb[5].mxu0 }
  0xfc   : > { %v2718_v56 = vpop.f32.mrb[6].mxu1  ;;  %v2720_v57 = vpop.f32.mrb[6].mxu0 }
  0xfd   : > { %v2722_v58 = vpop.f32.mrb[7].mxu1  ;;  %v2724_v59 = vpop.f32.mrb[7].mxu0 }
 0x102   : > { %v2726_v60 = vpop.f32.mrb[8].mxu1  ;;  %v2728_v61 = vpop.f32.mrb[8].mxu0 }
 0x103   : > { %v2730_v62 = vpop.f32.mrb[9].mxu1  ;;  %v2732_v63 = vpop.f32.mrb[9].mxu0 }
 0x104   : > { %v2734_v0 = vpop.f32.mrb[10].mxu1  ;;  %v2736_v1 = vpop.f32.mrb[10].mxu0 }
 0x105   : > { %3095 = vst [vmem:[#allocation2_spill] sm:$0xff] %v2734_v0  ;;  %v2738_v2 = vpop.f32.mrb[11].mxu1  ;;  %v2740_v3 = vpop.f32.mrb[11].mxu0 }
 0x106   : > { %3096 = vst [vmem:[#allocation3_spill] sm:$0xff] %v2738_v2 }
 0x10a   : > { %v2742_v4 = vpop.f32.mrb[12].mxu1  ;;  %v2744_v5 = vpop.f32.mrb[12].mxu0 }
 0x10b   : > { %3097 = vst [vmem:[#allocation4_spill] sm:$0xff] %v2742_v4  ;;  %v2746_v6 = vpop.f32.mrb[13].mxu1  ;;  %v2748_v8 = vpop.f32.mrb[13].mxu0 }
 0x10c   : > { %3098 = vst [vmem:[#allocation5_spill] sm:$0xff] %v2746_v6  ;;  %v2750_v9 = vpop.f32.mrb[14].mxu1  ;;  %v2752_v10 = vpop.f32.mrb[14].mxu0 }
 0x10d   : > { %3099 = vst [vmem:[#allocation6_spill] sm:$0xff] %v2750_v9  ;;  %v2754_v12 = vpop.f32.mrb[15].mxu1  ;;  %v2756_v14 = vpop.f32.mrb[15].mxu0 }
 0x10e   : > { %3100 = vst [vmem:[#allocation7_spill] sm:$0xff] %v2754_v12 }
 0x112   : > { %v2194_v17 = vpop.f32.mrb[16].mxu1  ;;  %v2234_v18 = vpop.f32.mrb[16].mxu0 }
 0x113   : > { %v760_v22 = vadd.f32 %v2194_v17, %v2761_v16  ;;  %v751_v23 = vpop.f32.mrb[17].mxu1  ;;  %v1072_v24 = vpop.f32.mrb[17].mxu0 }
 0x114   : > { %v752_v26 = vadd.f32 %v2761_v16, %v751_v23  ;;  %v2195_v29 = vpop.f32.mrb[18].mxu1  ;;  %v2235_v30 = vpop.f32.mrb[18].mxu0 }
 0x115   : > { %v763_v31 = vadd.f32 %v2195_v29, %v2761_v16  ;;  %v1201_v32 = vmul.f32 %v2154_v45, %v760_v22  ;;  %v754_v35 = vpop.f32.mrb[19].mxu1  ;;  %v1075_v36 = vpop.f32.mrb[19].mxu0 }
 0x116   : > { %v755_v37 = vadd.f32 %v2761_v16, %v754_v35  ;;  %v1199_v38 = vmul.f32 %v752_v26, %v551_v47 }
 0x117   : > { %v1233_v40 = vadd.f32 %v2234_v18, %v1201_v32  ;;  %v1202_v42 = vmul.f32 %v2155_v49, %v763_v31 }
 0x118   : > { %v1231_v13 = vadd.f32 %v1199_v38, %v1072_v24  ;;  %v1200_v7 = vmul.f32 %v755_v37, %v554_v51 }
 0x119   : > { %v1277_v11 = vsel %vm468_vm0, %v1233_v40, -inf  ;;  %v1234_v15 = vadd.f32 %v2235_v30, %v1202_v42 }
 0x11a   : > { %v1278_v19 = vrot.slane %v1277_v11, 4  ;;  %v1263_v20 = vsel %vm468_vm0, %v1231_v13, -inf  ;;  %v1232_v21 = vadd.f32 %v1200_v7, %v1075_v36  ;;  %v2198_v25 = vpop.f32.mrb[20].mxu1  ;;  %v2238_v27 = vpop.f32.mrb[20].mxu0 }
 0x11b   : > { %v1264_v28 = vrot.slane %v1263_v20, 4  ;;  %v1284_v33 = vsel %vm468_vm0, %v1234_v15, -inf  ;;  %v776_v34 = vadd.f32 %v2198_v25, %v2761_v16  ;;  %v767_v39 = vpop.f32.mrb[21].mxu1  ;;  %v1088_v41 = vpop.f32.mrb[21].mxu0 }
 0x11c   : > { %v1279_v43 = vmax.f32 %v1277_v11, %v1278_v19  ;;  %v1285_v45 = vrot.slane %v1284_v33, 4  ;;  %v1270_v47 = vsel %vm468_vm0, %v1232_v21, -inf  ;;  %v768_v49 = vadd.f32 %v2761_v16, %v767_v39  ;;  %v2199_v51 = vpop.f32.mrb[22].mxu1  ;;  %v2239_v17 = vpop.f32.mrb[22].mxu0 }
 0x11d   : > { %v1265_v18 = vmax.f32 %v1263_v20, %v1264_v28  ;;  %v1271_v22 = vrot.slane %v1270_v47, 4  ;;  %v779_v23 = vadd.f32 %v2199_v51, %v2761_v16  ;;  %v1205_v24 = vmul.f32 %v2712_v53, %v776_v34  ;;  %v770_v26 = vpop.f32.mrb[23].mxu1  ;;  %v1091_v29 = vpop.f32.mrb[23].mxu0  ;;  %v2782_v53 = vld [vmem:[%s3093_s5] ss:$0 sm:$0xff] }
 0x11e   : > { %v1280_v30 = vrot.slane %v1279_v43, 2  ;;  %v1286_v31 = vmax.f32 %v1284_v33, %v1285_v45  ;;  %v771_v32 = vadd.f32 %v2761_v16, %v770_v26  ;;  %v1203_v35 = vmul.f32 %v768_v49, %v2716_v55 }
 0x11f   : > { %v1266_v36 = vrot.slane %v1265_v18, 2  ;;  %v1272_v37 = vmax.f32 %v1270_v47, %v1271_v22  ;;  %v1237_v38 = vadd.f32 %v2238_v27, %v1205_v24  ;;  %v1206_v40 = vmul.f32 %v2720_v57, %v779_v23 }
 0x120   : > { %v1281_v42 = vmax.f32 %v1279_v43, %v1280_v30  ;;  %v1287_v13 = vrot.slane %v1286_v31, 2  ;;  %v1235_v7 = vadd.f32 %v1203_v35, %v1088_v41  ;;  %v1204_v11 = vmul.f32 %v771_v32, %v2724_v59 }
 0x121   : > { %v1267_v15 = vmax.f32 %v1265_v18, %v1266_v36  ;;  %v1273_v19 = vrot.slane %v1272_v37, 2  ;;  %v1305_v20 = vsel %vm468_vm0, %v1237_v38, -inf  ;;  %v1238_v55 = vadd.f32 %v2239_v17, %v1206_v40 }
 0x122   : > { %v1282_v21 = vrot.slane %v1281_v42, 1  ;;  %v1288_v25 = vmax.f32 %v1286_v31, %v1287_v13  ;;  %v1306_v27 = vrot.slane %v1305_v20, 4  ;;  %v1291_v57 = vsel %vm468_vm0, %v1235_v7, -inf  ;;  %v2786_v28 = vpop.f32.mrb[24].mxu1  ;;  %v2788_v33 = vpop.f32.mrb[24].mxu0 }
 0x123   : > { %v1268_v59 = vrot.slane %v1267_v15, 1  ;;  %v1274_v34 = vmax.f32 %v1272_v37, %v1273_v19  ;;  %v1292_v39 = vrot.slane %v1291_v57, 4  ;;  %v1312_v41 = vsel %vm468_vm0, %v1238_v55, -inf  ;;  %v2791_v43 = vpop.f32.mrb[25].mxu1  ;;  %v2793_v45 = vpop.f32.mrb[25].mxu0 }
 0x124   : > { %v1283_v47 = vmax.f32 %v1281_v42, %v1282_v21  ;;  %v1289_v49 = vrot.slane %v1288_v25, 1  ;;  %v1307_v51 = vmax.f32 %v1305_v20, %v1306_v27  ;;  %v1313_v17 = vrot.slane %v1312_v41, 4  ;;  %v2795_v18 = vpop.f32.mrb[26].mxu1  ;;  %v2797_v22 = vpop.f32.mrb[26].mxu0 }
 0x125   : > { %v1269_v23 = vmax.f32 %v1267_v15, %v1268_v59  ;;  %v1275_v24 = vrot.slane %v1274_v34, 1  ;;  %v1293_v26 = vmax.f32 %v1291_v57, %v1292_v39  ;;  %v1236_v30 = vadd.f32 %v1204_v11, %v1091_v29  ;;  %v2799_v31 = vpop.f32.mrb[27].mxu1  ;;  %v2801_v32 = vpop.f32.mrb[27].mxu0 }
 0x126   : > { %v1496_v35 = vadd.f32 %v2782_v53, %v1283_v47  ;;  %v1290_v36 = vmax.f32 %v1288_v25, %v1289_v49  ;;  %v1308_v37 = vrot.slane %v1307_v51, 2  ;;  %v1314_v38 = vmax.f32 %v1312_v41, %v1313_v17 }
 0x127   : > { %v1494_v40 = vadd.f32 %v2782_v53, %v1269_v23  ;;  %v1276_v42 = vmax.f32 %v1274_v34, %v1275_v24  ;;  %v1294_v13 = vrot.slane %v1293_v26, 2  ;;  %v1298_v7 = vsel %vm468_vm0, %v1236_v30, -inf }
 0x128   : > { %v1528_v19 = vmul.f32 0.2, %v1496_v35  ;;  %v1497_v15 = vadd.f32 %v2782_v53, %v1290_v36  ;;  %v1309_v20 = vmax.f32 %v1307_v51, %v1308_v37  ;;  %v1315_v29 = vrot.slane %v1314_v38, 2 }
 0x129   : > { %v1526_v11 = vmul.f32 0.2, %v1494_v40  ;;  %v1495_v55 = vadd.f32 %v2782_v53, %v1276_v42  ;;  %v1295_v21 = vmax.f32 %v1293_v26, %v1294_v13  ;;  %v1299_v27 = vrot.slane %v1298_v7, 4 }
 0x12a   : > { %v1560_v57 = vmax.f32 %v1496_v35, %v1528_v19  ;;  %v1529_v25 = vmul.f32 0.2, %v1497_v15  ;;  %v1310_v59 = vrot.slane %v1309_v20, 1  ;;  %v1316_v39 = vmax.f32 %v1314_v38, %v1315_v29  ;;  %v2808_v41 = vpop.f32.mrb[28].mxu1  ;;  %v2810_v34 = vpop.f32.mrb[28].mxu0 }
 0x12b   : > { %v1558_v47 = vmax.f32 %v1494_v40, %v1526_v11  ;;  %v1527_v49 = vmul.f32 0.2, %v1495_v55  ;;  %v1296_v17 = vrot.slane %v1295_v21, 1  ;;  %v1300_v51 = vmax.f32 %v1298_v7, %v1299_v27  ;;  %v2812_v23 = vpop.f32.mrb[29].mxu1  ;;  %v2814_v24 = vpop.f32.mrb[29].mxu0 }
 0x12c   : > { %v2054_v26 = vpack.c.bf16 %v1560_v57, %v1560_v57  ;;  %v1561_v30 = vmax.f32 %v1497_v15, %v1529_v25  ;;  %v1311_v35 = vmax.f32 %v1309_v20, %v1310_v59  ;;  %v1317_v36 = vrot.slane %v1316_v39, 1  ;;  %v2816_v37 = vpop.f32.mrb[30].mxu1  ;;  %v2818_v38 = vpop.f32.mrb[30].mxu0 }
 0x12d   : > { %v2052_v42 = vpack.c.bf16 %v1558_v47, %v1558_v47  ;;  %v1559_v13 = vmax.f32 %v1495_v55, %v1527_v49  ;;  %v1297_v40 = vmax.f32 %v1295_v21, %v1296_v17  ;;  %v1301_v19 = vrot.slane %v1300_v51, 2  ;;  %v2820_v29 = vpop.f32.mrb[31].mxu1  ;;  %v2822_v7 = vpop.f32.mrb[31].mxu0 }
 0x12e   : > { %v1720_v11 = vunpack.c.l.b16 %v2054_v26  ;;  %v2055_v27 = vpack.c.bf16 %v1561_v30, %v1561_v30  ;;  %v1500_v57 = vadd.f32 %v2782_v53, %v1311_v35  ;;  %v1318_v15 = vmax.f32 %v1316_v39, %v1317_v36 }
 0x12f   : > { %v1718_v20 = vunpack.c.l.b16 %v2052_v42  ;;  %v2053_v25 = vpack.c.bf16 %v1559_v13, %v1559_v13  ;;  %v1498_v59 = vadd.f32 %v2782_v53, %v1297_v40  ;;  %v1302_v12 = vmax.f32 %v1300_v51, %v1301_v19 }
 0x130   : > { %v1753_v9 = vrot.slane %v1720_v11, 6  ;;  %v1721_v6 = vunpack.c.l.b16 %v2055_v27  ;;  %v1532_v47 = vmul.f32 0.2, %v1500_v57  ;;  %v1501_v55 = vadd.f32 %v2782_v53, %v1318_v15 }
 0x131   : > { %v1719_v21 = vunpack.c.l.b16 %v2053_v25  ;;  %v1530_v49 = vmul.f32 0.2, %v1498_v59  ;;  %v1303_v17 = vrot.slane %v1302_v12, 1  ;;  %v792_v26 = vadd.f32 %v2786_v28, %v2761_v16 }
 0x132   : > { %v1756_v30 = vrot.slane %v1721_v6, 5  ;;  %v1564_v35 = vmax.f32 %v1500_v57, %v1532_v47  ;;  %v1533_v39 = vmul.f32 0.2, %v1501_v55  ;;  %v784_v36 = vadd.f32 %v2761_v16, %v2791_v43  ;;  %v2831_v42 = vpop.f32.mrb[32].mxu1  ;;  %v2833_v51 = vpop.f32.mrb[32].mxu0 }
 0x133   : > { %v1750_v13 = vrot.slane %v1719_v21, 7  ;;  %v1562_v40 = vmax.f32 %v1498_v59, %v1530_v49  ;;  %v1304_v19 = vmax.f32 %v1302_v12, %v1303_v17  ;;  %v795_v11 = vadd.f32 %v2795_v18, %v2761_v16  ;;  %v2837_v27 = vpop.f32.mrb[33].mxu1  ;;  %v2839_v15 = vpop.f32.mrb[33].mxu0 }
 0x134   : > { %v2058_v6 = vpack.c.bf16 %v1564_v35, %v1564_v35  ;;  %v1565_v28 = vmax.f32 %v1501_v55, %v1533_v39  ;;  %v1209_v57 = vmul.f32 %v2728_v61, %v792_v26  ;;  %v787_v43 = vadd.f32 %v2761_v16, %v2799_v31  ;;  %v2844_v25 = vpop.f32.mrb[34].mxu1  ;;  %v2846_v47 = vpop.f32.mrb[34].mxu0 }
 0x135   : > { %v1752_v12 = vsel %vm1751_vm1, %v1750_v13, %v1718_v20  ;;  %v2056_v59 = vpack.c.bf16 %v1562_v40, %v1562_v40  ;;  %v1499_v18 = vadd.f32 %v2782_v53, %v1304_v19  ;;  %v1207_v21 = vmul.f32 %v784_v36, %v2732_v63  ;;  %v2851_v49 = vpop.f32.mrb[35].mxu1  ;;  %v2853_v17 = vpop.f32.mrb[35].mxu0 }
 0x136   : > { %v1755_v61 = vsel %vm1754_vm2, %v1753_v9, %v1752_v12  ;;  %v1724_v55 = vunpack.c.l.b16 %v2058_v6  ;;  %v2059_v26 = vpack.c.bf16 %v1565_v28, %v1565_v28  ;;  %v1241_v31 = vadd.f32 %v2788_v33, %v1209_v57 }
 0x137   : > { %v1722_v35 = vunpack.c.l.b16 %v2056_v59  ;;  %v1758_v39 = vsel %vm1757_vm3, %v1756_v30, %v1755_v61  ;;  %v1531_v20 = vmul.f32 0.2, %v1499_v18  ;;  %v1239_v13 = vadd.f32 %v1207_v21, %v2793_v45 }
 0x138   : > { %v1765_v40 = vrot.slane %v1724_v55, 2  ;;  %v1725_v63 = vunpack.c.l.b16 %v2059_v26  ;;  %v1333_v36 = vsel %vm468_vm0, %v1241_v31, -inf  ;;  %v1210_v19 = vmul.f32 %v2736_v1, %v795_v11 }
 0x139   : > { %v1759_v9 = vrot.slane %v1722_v35, 4  ;;  %v1563_v6 = vmax.f32 %v1499_v18, %v1531_v20  ;;  %v1334_v28 = vrot.slane %v1333_v36, 4  ;;  %v1319_v12 = vsel %vm468_vm0, %v1239_v13, -inf }
 0x13a   : > { %v1768_v33 = vrot.slane %v1725_v63, 1  ;;  %v1320_v57 = vrot.slane %v1319_v12, 4  ;;  %v1242_v30 = vadd.f32 %v2797_v22, %v1210_v19  ;;  %v1208_v59 = vmul.f32 %v787_v43, %v2740_v3  ;;  %v2864_v61 = vpop.f32.mrb[36].mxu1  ;;  %v2866_v45 = vpop.f32.mrb[36].mxu0 }
 0x13b   : > { %v1761_v21 = vsel %vm1760_vm4, %v1759_v9, %v1758_v39  ;;  %v2057_v55 = vpack.c.bf16 %v1563_v6, %v1563_v6  ;;  %v1335_v1 = vmax.f32 %v1333_v36, %v1334_v28  ;;  %v808_v11 = vadd.f32 %v2808_v41, %v2761_v16  ;;  %v2871_v18 = vpop.f32.mrb[37].mxu1  ;;  %v2873_v26 = vpop.f32.mrb[37].mxu0 }
 0x13c   : > { %v1321_v31 = vmax.f32 %v1319_v12, %v1320_v57  ;;  %v1340_v22 = vsel %vm468_vm0, %v1242_v30, -inf  ;;  %v1240_v3 = vadd.f32 %v1208_v59, %v2801_v32  ;;  %v800_v43 = vadd.f32 %v2761_v16, %v2812_v23  ;;  %v2879_v35 = vpop.f32.mrb[38].mxu1  ;;  %v2881_v39 = vpop.f32.mrb[38].mxu0 }
 0x13d   : > { %v1723_v20 = vunpack.c.l.b16 %v2057_v55  ;;  %v1336_v13 = vrot.slane %v1335_v1, 2  ;;  %v1341_v41 = vrot.slane %v1340_v22, 4  ;;  %v811_v63 = vadd.f32 %v2816_v37, %v2761_v16  ;;  %v2885_v36 = vpop.f32.mrb[39].mxu1  ;;  %v2887_v19 = vpop.f32.mrb[39].mxu0 }
 0x13e   : > { %v1322_v9 = vrot.slane %v1321_v31, 2  ;;  %v1326_v32 = vsel %vm468_vm0, %v1240_v3, -inf  ;;  %v1213_v23 = vmul.f32 %v2744_v5, %v808_v11  ;;  %v803_v6 = vadd.f32 %v2761_v16, %v2820_v29 }
 0x13f   : > { %v1762_v28 = vrot.slane %v1723_v20, 3  ;;  %v1337_v12 = vmax.f32 %v1335_v1, %v1336_v13  ;;  %v1342_v57 = vmax.f32 %v1340_v22, %v1341_v41  ;;  %v1327_v30 = vrot.slane %v1326_v32, 4 }
 0x140   : > { %v1323_v59 = vmax.f32 %v1321_v31, %v1322_v9  ;;  %v1245_v37 = vadd.f32 %v2810_v34, %v1213_v23  ;;  %v1211_v55 = vmul.f32 %v800_v43, %v2748_v8  ;;  %v1214_v4 = vmul.f32 %v2752_v10, %v811_v63 }
 0x141   : > { %v1764_v2 = vsel %vm1763_vm5, %v1762_v28, %v1761_v21  ;;  %v1338_v3 = vrot.slane %v1337_v12, 1  ;;  %v1343_v0 = vrot.slane %v1342_v57, 2  ;;  %v1328_v5 = vmax.f32 %v1326_v32, %v1327_v30 }
 0x142   : > { %v1767_v11 = vsel %vm1766_vm6, %v1765_v40, %v1764_v2  ;;  %v1324_v29 = vrot.slane %v1323_v59, 1  ;;  %v1361_v1 = vsel %vm468_vm0, %v1245_v37, -inf  ;;  %v1243_v22 = vadd.f32 %v1211_v55, %v2814_v24  ;;  %v2901_v20 = vpop.f32.mrb[40].mxu1  ;;  %v2903_v31 = vpop.f32.mrb[40].mxu0 }
 0x143   : > { %v1770_v8 = vsel %vm1769_vm7, %v1768_v33, %v1767_v11  ;;  %v1339_v10 = vmax.f32 %v1337_v12, %v1338_v3  ;;  %v1344_v34 = vmax.f32 %v1342_v57, %v1343_v0  ;;  %v1329_v2 = vrot.slane %v1328_v5, 2  ;;  %v2911_v40 = vpop.f32.mrb[41].mxu1  ;;  %v2913_v21 = vpop.f32.mrb[41].mxu0 }
 0x144   : > { %v1813_v24 = vpack.c.b16 %v1770_v8, %v1770_v8  ;;  %v1325_v43 = vmax.f32 %v1323_v59, %v1324_v29  ;;  %v1362_v13 = vrot.slane %v1361_v1, 4  ;;  %v1347_v41 = vsel %vm468_vm0, %v1243_v22, -inf  ;;  %v2916_v63 = vpop.f32.mrb[42].mxu1  ;;  %v2918_v9 = vpop.f32.mrb[42].mxu0 }
 0x145   : > { %v1504_v32 = vadd.f32 %v2782_v53, %v1339_v10  ;;  %v1345_v33 = vrot.slane %v1344_v34, 1  ;;  %v1330_v23 = vmax.f32 %v1328_v5, %v1329_v2  ;;  %v1348_v0 = vrot.slane %v1347_v41, 4  ;;  %v2921_v28 = vpop.f32.mrb[43].mxu1  ;;  %v2923_v12 = vpop.f32.mrb[43].mxu0 }
 0x146   : > { %3101 = vst [vmem:[#allocation8_spill] sm:$0xff] %v2923_v12  ;;  %1822 = vst.msk [vmem:[%s2908_s15] sm:$0xf] %vm1821_vm8, %v1813_v24  ;;  %v1502_v57 = vadd.f32 %v2782_v53, %v1325_v43  ;;  %v1363_v30 = vmax.f32 %v1361_v1, %v1362_v13  ;;  %v1246_v59 = vadd.f32 %v2818_v38, %v1214_v4 }
 0x147   : > { %v1212_v37 = vmul.f32 %v803_v6, %v2756_v14  ;;  %v1536_v55 = vmul.f32 0.2, %v1504_v32  ;;  %v1346_v3 = vmax.f32 %v1344_v34, %v1345_v33  ;;  %v1331_v11 = vrot.slane %v1330_v23, 1 }
 0x148   : > { %v1349_v29 = vmax.f32 %v1347_v41, %v1348_v0  ;;  %v1534_v22 = vmul.f32 0.2, %v1502_v57  ;;  %v1364_v5 = vrot.slane %v1363_v30, 2  ;;  %v1368_v8 = vsel %vm468_vm0, %v1246_v59, -inf }
 0x149   : > { %v1244_v10 = vadd.f32 %v1212_v37, %v2822_v7  ;;  %v1568_v2 = vmax.f32 %v1504_v32, %v1536_v55  ;;  %v1505_v24 = vadd.f32 %v2782_v53, %v1346_v3  ;;  %v1332_v12 = vmax.f32 %v1330_v23, %v1331_v11 }
 0x14a   : > { %v1350_v43 = vrot.slane %v1349_v29, 2  ;;  %v1566_v1 = vmax.f32 %v1502_v57, %v1534_v22  ;;  %v1365_v13 = vmax.f32 %v1363_v30, %v1364_v5  ;;  %v1369_v4 = vrot.slane %v1368_v8, 4  ;;  %v2934_v38 = vpop.f32.mrb[44].mxu1  ;;  %v2936_v6 = vpop.f32.mrb[44].mxu0 }
 0x14b   : > { %v1354_v14 = vsel %vm468_vm0, %v1244_v10, -inf  ;;  %3102 = vst [vmem:[#allocation9_spill] sm:$0xff] %v2936_v6  ;;  %v2062_v34 = vpack.c.bf16 %v1568_v2, %v1568_v2  ;;  %v1537_v41 = vmul.f32 0.2, %v1505_v24  ;;  %v1503_v33 = vadd.f32 %v2782_v53, %v1332_v12  ;;  %v2939_v7 = vpop.f32.mrb[45].mxu1  ;;  %v2941_v32 = vpop.f32.mrb[45].mxu0 }
 0x14c   : > { %v1351_v0 = vmax.f32 %v1349_v29, %v1350_v43  ;;  %3103 = vst [vmem:[#allocation10_spill] sm:$0xff] %v2939_v7  ;;  %3104 = vst [vmem:[#allocation11_spill] sm:$0xff] %v2941_v32  ;;  %v2060_v23 = vpack.c.bf16 %v1566_v1, %v1566_v1  ;;  %v1366_v59 = vrot.slane %v1365_v13, 1  ;;  %v1370_v57 = vmax.f32 %v1368_v8, %v1369_v4  ;;  %v2943_v37 = vpop.f32.mrb[46].mxu1  ;;  %v2945_v55 = vpop.f32.mrb[46].mxu0 }
 0x14d   : > { %v1355_v30 = vrot.slane %v1354_v14, 4  ;;  %3105 = vst [vmem:[#allocation12_spill] sm:$0xff] %v2943_v37  ;;  %3106 = vst [vmem:[#allocation13_spill] sm:$0xff] %v2945_v55  ;;  %v1728_v3 = vunpack.c.l.b16 %v2062_v34  ;;  %v1569_v11 = vmax.f32 %v1505_v24, %v1537_v41  ;;  %v1535_v22 = vmul.f32 0.2, %v1503_v33  ;;  %v2947_v10 = vpop.f32.mrb[47].mxu1 }
 0x14e   : > { %v1352_v5 = vrot.slane %v1351_v0, 1  ;;  %3107 = vst [vmem:[#allocation14_spill] sm:$0xff] %v2947_v10  ;;  %v2949_v12 = vpop.f32.mrb[47].mxu0  ;;  %v1726_v29 = vunpack.c.l.b16 %v2060_v23  ;;  %v1367_v2 = vmax.f32 %v1365_v13, %v1366_v59  ;;  %v1371_v43 = vrot.slane %v1370_v57, 2 }
 0x14f   : > { %v1356_v32 = vmax.f32 %v1354_v14, %v1355_v30  ;;  %v1773_v1 = vrot.slane %v1728_v3, 6  ;;  %v2063_v6 = vpack.c.bf16 %v1569_v11, %v1569_v11  ;;  %v1567_v8 = vmax.f32 %v1503_v33, %v1535_v22 }
 0x150   : > { %v1353_v4 = vmax.f32 %v1351_v0, %v1352_v5  ;;  %v1508_v37 = vadd.f32 %v2782_v53, %v1367_v2  ;;  %v1372_v7 = vmax.f32 %v1370_v57, %v1371_v43  ;;  %v824_v24 = vadd.f32 %v2831_v42, %v2761_v16 }
 0x151   : > { %v1357_v55 = vrot.slane %v1356_v32, 2  ;;  %v1729_v34 = vunpack.c.l.b16 %v2063_v6  ;;  %v2061_v41 = vpack.c.bf16 %v1567_v8, %v1567_v8  ;;  %v816_v13 = vadd.f32 %v2761_v16, %v2837_v27 }
 0x152   : > { %v1506_v10 = vadd.f32 %v2782_v53, %v1353_v4  ;;  %v1540_v23 = vmul.f32 0.2, %v1508_v37  ;;  %v1373_v14 = vrot.slane %v1372_v7, 1  ;;  %v827_v33 = vadd.f32 %v2844_v25, %v2761_v16 }
 0x153   : > { %v1358_v59 = vmax.f32 %v1356_v32, %v1357_v55  ;;  %v1775_v0 = vrot.slane %v1729_v34, 5  ;;  %v1727_v30 = vunpack.c.l.b16 %v2061_v41  ;;  %v1217_v3 = vmul.f32 %v2702_v44, %v824_v24 }
 0x154   : > { %v1538_v57 = vmul.f32 0.2, %v1506_v10  ;;  %v1572_v11 = vmax.f32 %v1508_v37, %v1540_v23  ;;  %v1374_v42 = vmax.f32 %v1372_v7, %v1373_v14  ;;  %v819_v22 = vadd.f32 %v2761_v16, %v2851_v49 }
 0x155   : > { %v1359_v6 = vrot.slane %v1358_v59, 1  ;;  %v1771_v5 = vrot.slane %v1727_v30, 7  ;;  %v1249_v27 = vadd.f32 %v2833_v51, %v1217_v3  ;;  %v1215_v32 = vmul.f32 %v816_v13, %v2704_v46 }
 0x156   : > { %v1570_v2 = vmax.f32 %v1506_v10, %v1538_v57  ;;  %v2066_v55 = vpack.c.bf16 %v1572_v11, %v1572_v11  ;;  %v1509_v25 = vadd.f32 %v2782_v53, %v1374_v42  ;;  %v1218_v8 = vmul.f32 %v2706_v48, %v827_v33 }
 0x157   : > { %v1360_v43 = vmax.f32 %v1358_v59, %v1359_v6  ;;  %v1772_v44 = vsel %vm1751_vm1, %v1771_v5, %v1726_v29  ;;  %v1389_v7 = vsel %vm468_vm0, %v1249_v27, -inf  ;;  %v1247_v4 = vadd.f32 %v1215_v32, %v2839_v15 }
 0x158   : > { %v2064_v37 = vpack.c.bf16 %v1570_v2, %v1570_v2  ;;  %v1774_v49 = vsel %vm1754_vm2, %v1773_v1, %v1772_v44  ;;  %v1732_v10 = vunpack.c.l.b16 %v2066_v55  ;;  %v1541_v24 = vmul.f32 0.2, %v1509_v25 }
 0x159   : > { %v1507_v51 = vadd.f32 %v2782_v53, %v1360_v43  ;;  %v1776_v34 = vsel %vm1757_vm3, %v1775_v0, %v1774_v49  ;;  %v1390_v41 = vrot.slane %v1389_v7, 4  ;;  %v1375_v13 = vsel %vm468_vm0, %v1247_v4, -inf }
 0x15a   : > { %v1730_v46 = vunpack.c.l.b16 %v2064_v37  ;;  %v1781_v48 = vrot.slane %v1732_v10, 2  ;;  %v1573_v23 = vmax.f32 %v1509_v25, %v1541_v24  ;;  %v1376_v14 = vrot.slane %v1375_v13, 4 }
 0x15b   : > { %v1539_v29 = vmul.f32 0.2, %v1507_v51  ;;  %v1391_v33 = vmax.f32 %v1389_v7, %v1390_v41  ;;  %v1250_v15 = vadd.f32 %v2846_v47, %v1218_v8  ;;  %v1216_v1 = vmul.f32 %v819_v22, %v2708_v50 }
 0x15c   : > { %v1777_v59 = vrot.slane %v1730_v46, 4  ;;  %v2067_v30 = vpack.c.bf16 %v1573_v23, %v1573_v23  ;;  %v1377_v3 = vmax.f32 %v1375_v13, %v1376_v14  ;;  %v840_v11 = vadd.f32 %v2864_v61, %v2761_v16 }
 0x15d   : > { %v1571_v57 = vmax.f32 %v1507_v51, %v1539_v29  ;;  %v1392_v42 = vrot.slane %v1391_v33, 2  ;;  %v1396_v6 = vsel %vm468_vm0, %v1250_v15, -inf  ;;  %v1248_v5 = vadd.f32 %v1216_v1, %v2853_v17 }
 0x15e   : > { %v1778_v0 = vsel %vm1760_vm4, %v1777_v59, %v1776_v34  ;;  %v1733_v2 = vunpack.c.l.b16 %v2067_v30  ;;  %v1378_v32 = vrot.slane %v1377_v3, 2  ;;  %v1397_v55 = vrot.slane %v1396_v6, 4 }
 0x15f   : > { %v2065_v27 = vpack.c.bf16 %v1571_v57, %v1571_v57  ;;  %v1393_v47 = vmax.f32 %v1391_v33, %v1392_v42  ;;  %v1382_v50 = vsel %vm468_vm0, %v1248_v5, -inf  ;;  %v832_v22 = vadd.f32 %v2761_v16, %v2871_v18 }
 0x160   : > { %v843_v61 = vadd.f32 %v2879_v35, %v2761_v16  ;;  %v1783_v25 = vrot.slane %v1733_v2, 1  ;;  %v1379_v8 = vmax.f32 %v1377_v3, %v1378_v32  ;;  %v1398_v44 = vmax.f32 %v1396_v6, %v1397_v55 }
 0x161   : > { %v1731_v43 = vunpack.c.l.b16 %v2065_v27  ;;  %v1394_v37 = vrot.slane %v1393_v47, 1  ;;  %v1383_v7 = vrot.slane %v1382_v50, 4  ;;  %v1221_v17 = vmul.f32 %v2710_v52, %v840_v11 }
 0x162   : > { %v835_v4 = vadd.f32 %v2761_v16, %v2885_v36  ;;  %v1380_v10 = vrot.slane %v1379_v8, 1  ;;  %v1399_v24 = vrot.slane %v1398_v44, 2  ;;  %v1219_v51 = vmul.f32 %v832_v22, %v2714_v54 }
 0x163   : > { %v1779_v49 = vrot.slane %v1731_v43, 3  ;;  %v1395_v18 = vmax.f32 %v1393_v47, %v1394_v37  ;;  %v1384_v46 = vmax.f32 %v1382_v50, %v1383_v7  ;;  %v1253_v35 = vadd.f32 %v2866_v45, %v1221_v17 }
 0x164   : > { %v1222_v34 = vmul.f32 %v2718_v56, %v843_v61  ;;  %v1381_v13 = vmax.f32 %v1379_v8, %v1380_v10  ;;  %v1400_v23 = vmax.f32 %v1398_v44, %v1399_v24  ;;  %v1251_v52 = vadd.f32 %v1219_v51, %v2873_v26 }
 0x165   : > { %v1780_v41 = vsel %vm1763_vm5, %v1779_v49, %v1778_v0  ;;  %v1512_v36 = vadd.f32 %v2782_v53, %v1395_v18  ;;  %v1385_v14 = vrot.slane %v1384_v46, 2  ;;  %v1417_v54 = vsel %vm468_vm0, %v1253_v35, -inf }
 0x166   : > { %v1782_v29 = vsel %vm1766_vm6, %v1781_v48, %v1780_v41  ;;  %v1510_v45 = vadd.f32 %v2782_v53, %v1381_v13  ;;  %v1401_v33 = vrot.slane %v1400_v23, 1  ;;  %v1418_v56 = vrot.slane %v1417_v54, 4 }
 0x167   : > { %v1784_v59 = vsel %vm1769_vm7, %v1783_v25, %v1782_v29  ;;  %v1544_v1 = vmul.f32 0.2, %v1512_v36  ;;  %v1386_v30 = vmax.f32 %v1384_v46, %v1385_v14  ;;  %v1403_v57 = vsel %vm468_vm0, %v1251_v52, -inf }
 0x168   : > { %v1814_v15 = vpack.c.b16 %v1784_v59, %v1784_v59  ;;  %v1542_v26 = vmul.f32 0.2, %v1510_v45  ;;  %v1402_v3 = vmax.f32 %v1400_v23, %v1401_v33  ;;  %v1419_v48 = vmax.f32 %v1417_v54, %v1418_v56 }
 0x169   : > { %v1404_v11 = vrot.slane %v1403_v57, 4  ;;  %v1576_v0 = vmax.f32 %v1512_v36, %v1544_v1  ;;  %v1387_v42 = vrot.slane %v1386_v30, 1  ;;  %v1254_v6 = vadd.f32 %v2881_v39, %v1222_v34 }
 0x16a   : > { %1823 = vst.msk [vmem:[%s2908_s15 + $0x4] sm:$0xf] %vm1821_vm8, %v1814_v15  ;;  %v1220_v5 = vmul.f32 %v835_v4, %v2722_v58  ;;  %v1574_v2 = vmax.f32 %v1510_v45, %v1542_v26  ;;  %v1513_v27 = vadd.f32 %v2782_v53, %v1402_v3  ;;  %v1420_v32 = vrot.slane %v1419_v48, 2 }
 0x16b   : > { %v1405_v55 = vmax.f32 %v1403_v57, %v1404_v11  ;;  %v2070_v47 = vpack.c.bf16 %v1576_v0, %v1576_v0  ;;  %v1388_v50 = vmax.f32 %v1386_v30, %v1387_v42  ;;  %v1424_v22 = vsel %vm468_vm0, %v1254_v6, -inf  ;;  %v3108_v42 = vld [vmem:[#allocation2_spill] sm:$0xff] }
 0x16c   : > { %v1252_v61 = vadd.f32 %v1220_v5, %v2887_v19  ;;  %v2068_v25 = vpack.c.bf16 %v1574_v2, %v1574_v2  ;;  %v1545_v43 = vmul.f32 0.2, %v1513_v27  ;;  %v1421_v8 = vmax.f32 %v1419_v48, %v1420_v32 }
 0x16d   : > { %v1406_v44 = vrot.slane %v1405_v55, 2  ;;  %v1736_v37 = vunpack.c.l.b16 %v2070_v47  ;;  %v1511_v39 = vadd.f32 %v2782_v53, %v1388_v50  ;;  %v1425_v7 = vrot.slane %v1424_v22, 4 }
 0x16e   : > { %v1410_v58 = vsel %vm468_vm0, %v1252_v61, -inf  ;;  %v1734_v17 = vunpack.c.l.b16 %v2068_v25  ;;  %v1577_v4 = vmax.f32 %v1513_v27, %v1545_v43  ;;  %v1422_v49 = vrot.slane %v1421_v8, 1 }
 0x16f   : > { %v1407_v10 = vmax.f32 %v1405_v55, %v1406_v44  ;;  %v1787_v24 = vrot.slane %v1736_v37, 6  ;;  %v1543_v51 = vmul.f32 0.2, %v1511_v39  ;;  %v1426_v18 = vmax.f32 %v1424_v22, %v1425_v7 }
 0x170   : > { %v1411_v46 = vrot.slane %v1410_v58, 4  ;;  %v2071_v35 = vpack.c.bf16 %v1577_v4, %v1577_v4  ;;  %v1423_v19 = vmax.f32 %v1421_v8, %v1422_v49  ;;  %v856_v41 = vadd.f32 %v2901_v20, %v2761_v16 }
 0x171   : > { %v1408_v34 = vrot.slane %v1407_v10, 1  ;;  %v1575_v13 = vmax.f32 %v1511_v39, %v1543_v51  ;;  %v1427_v23 = vrot.slane %v1426_v18, 2  ;;  %v848_v29 = vadd.f32 %v2761_v16, %v2911_v40 }
 0x172   : > { %v1412_v52 = vmax.f32 %v1410_v58, %v1411_v46  ;;  %v1737_v36 = vunpack.c.l.b16 %v2071_v35  ;;  %v1516_v14 = vadd.f32 %v2782_v53, %v1423_v19  ;;  %v859_v59 = vadd.f32 %v2916_v63, %v2761_v16 }
 0x173   : > { %v1409_v54 = vmax.f32 %v1407_v10, %v1408_v34  ;;  %v2069_v45 = vpack.c.bf16 %v1575_v13, %v1575_v13  ;;  %v1428_v33 = vmax.f32 %v1426_v18, %v1427_v23  ;;  %v1225_v15 = vmul.f32 %v2726_v60, %v856_v41  ;;  %v3110_v41 = vld [vmem:[#allocation8_spill] sm:$0xff] }
 0x174   : > { %v1413_v56 = vrot.slane %v1412_v52, 2  ;;  %v1789_v1 = vrot.slane %v1737_v36, 5  ;;  %v1548_v20 = vmul.f32 0.2, %v1516_v14  ;;  %v851_v57 = vadd.f32 %v2761_v16, %v2921_v28 }
 0x175   : > { %v1514_v30 = vadd.f32 %v2782_v53, %v1409_v54  ;;  %v1735_v40 = vunpack.c.l.b16 %v2069_v45  ;;  %v1429_v26 = vrot.slane %v1428_v33, 1  ;;  %v1257_v48 = vadd.f32 %v2903_v31, %v1225_v15 }
 0x176   : > { %v1414_v3 = vmax.f32 %v1412_v52, %v1413_v56  ;;  %v1580_v11 = vmax.f32 %v1516_v14, %v1548_v20  ;;  %v1223_v63 = vmul.f32 %v848_v29, %v2730_v62  ;;  %v1226_v6 = vmul.f32 %v3108_v42, %v859_v59 }
 0x177   : > { %v1546_v0 = vmul.f32 0.2, %v1514_v30  ;;  %v1785_v5 = vrot.slane %v1735_v40, 7  ;;  %v1430_v60 = vmax.f32 %v1428_v33, %v1429_v26  ;;  %v1445_v27 = vsel %vm468_vm0, %v1257_v48, -inf  ;;  %v3111_v33 = vld [vmem:[#allocation10_spill] sm:$0xff]  ;;  %v3112_v40 = vld [vmem:[#allocation12_spill] sm:$0xff] }
 0x178   : > { %v1415_v2 = vrot.slane %v1414_v3, 1  ;;  %v2074_v32 = vpack.c.bf16 %v1580_v11, %v1580_v11  ;;  %v1446_v47 = vrot.slane %v1445_v27, 4  ;;  %v1255_v28 = vadd.f32 %v1223_v63, %v2913_v21  ;;  %v3113_v26 = vld [vmem:[#allocation4_spill] sm:$0xff] }
 0x179   : > { %v1578_v55 = vmax.f32 %v1514_v30, %v1546_v0  ;;  %v1786_v50 = vsel %vm1751_vm1, %v1785_v5, %v1734_v17  ;;  %v1517_v31 = vadd.f32 %v2782_v53, %v1430_v60  ;;  %v1258_v61 = vadd.f32 %v2918_v9, %v1226_v6  ;;  %v3109_v9 = vld [vmem:[#allocation3_spill] sm:$0xff]  ;;  %v3114_v5 = vld [vmem:[#allocation9_spill] sm:$0xff] }
 0x17a   : > { %v1416_v22 = vmax.f32 %v1414_v3, %v1415_v2  ;;  %v1788_v62 = vsel %vm1754_vm2, %v1787_v24, %v1786_v50  ;;  %v1447_v43 = vmax.f32 %v1445_v27, %v1446_v47  ;;  %v1431_v39 = vsel %vm468_vm0, %v1255_v28, -inf  ;;  %v3115_v2 = vld [vmem:[#allocation5_spill] sm:$0xff] }
 0x17b   : > { %v2072_v25 = vpack.c.bf16 %v1578_v55, %v1578_v55  ;;  %v1790_v8 = vsel %vm1757_vm3, %v1789_v1, %v1788_v62  ;;  %v1549_v44 = vmul.f32 0.2, %v1517_v31  ;;  %v1740_v7 = vunpack.c.l.b16 %v2074_v32 }
 0x17c   : > { %v1515_v37 = vadd.f32 %v2782_v53, %v1416_v22  ;;  %v1448_v58 = vrot.slane %v1447_v43, 2  ;;  %v1432_v17 = vrot.slane %v1431_v39, 4  ;;  %v1452_v10 = vsel %vm468_vm0, %v1258_v61, -inf  ;;  %v3117_v61 = vld [vmem:[#allocation6_spill] sm:$0xff] }
 0x17d   : > { %v1738_v21 = vunpack.c.l.b16 %v2072_v25  ;;  %v1581_v4 = vmax.f32 %v1517_v31, %v1549_v44  ;;  %v1224_v51 = vmul.f32 %v851_v57, %v3109_v9  ;;  %v1453_v35 = vrot.slane %v1452_v10, 4  ;;  %v3116_v31 = vld [vmem:[#allocation11_spill] sm:$0xff]  ;;  %v2324_v44 = vld [vmem:[%s3092_s4] ss:$0 sm:$0xff] }
 0x17e   : > { %v1547_v49 = vmul.f32 0.2, %v1515_v37  ;;  %v1449_v18 = vmax.f32 %v1447_v43, %v1448_v58  ;;  %v1433_v46 = vmax.f32 %v1431_v39, %v1432_v17  ;;  %v872_v23 = vadd.f32 %v2934_v38, %v2761_v16 }
 0x17f   : > { %v1791_v24 = vrot.slane %v1738_v21, 4  ;;  %v2075_v19 = vpack.c.bf16 %v1581_v4, %v1581_v4  ;;  %v1256_v13 = vadd.f32 %v1224_v51, %v3110_v41  ;;  %v1454_v14 = vmax.f32 %v1452_v10, %v1453_v35 }
 0x180   : > { %v1579_v34 = vmax.f32 %v1515_v37, %v1547_v49  ;;  %v1450_v29 = vrot.slane %v1449_v18, 1  ;;  %v1434_v36 = vrot.slane %v1433_v46, 2  ;;  %v864_v56 = vadd.f32 %v2761_v16, %v3111_v33  ;;  %v3118_v37 = vld [vmem:[#allocation14_spill] sm:$0xff] }
 0x181   : > { %v1792_v52 = vsel %vm1760_vm4, %v1791_v24, %v1790_v8  ;;  %v1741_v54 = vunpack.c.l.b16 %v2075_v19  ;;  %v1438_v45 = vsel %vm468_vm0, %v1256_v13, -inf  ;;  %v1455_v20 = vrot.slane %v1454_v14, 2 }
 0x182   : > { %v2073_v59 = vpack.c.bf16 %v1579_v34, %v1579_v34  ;;  %v1451_v15 = vmax.f32 %v1449_v18, %v1450_v29  ;;  %v1435_v1 = vmax.f32 %v1433_v46, %v1434_v36  ;;  %v1439_v30 = vrot.slane %v1438_v45, 4  ;;  %v3119_v18 = vld [vmem:[#allocation13_spill] sm:$0xff]  ;;  %v3120_v34 = vld [vmem:[#allocation7_spill] sm:$0xff] }
 0x183   : > { %v875_v38 = vadd.f32 %v3112_v40, %v2761_v16  ;;  %v1229_v3 = vmul.f32 %v3113_v26, %v872_v23  ;;  %v1795_v48 = vrot.slane %v1740_v7, 2  ;;  %v1456_v0 = vmax.f32 %v1454_v14, %v1455_v20 }
 0x184   : > { %v1739_v57 = vunpack.c.l.b16 %v2073_v59  ;;  %v1436_v11 = vrot.slane %v1435_v1, 1  ;;  %v1440_v63 = vmax.f32 %v1438_v45, %v1439_v30  ;;  %v1797_v42 = vrot.slane %v1741_v54, 1 }
 0x185   : > { %v1261_v60 = vadd.f32 %v3114_v5, %v1229_v3  ;;  %v1227_v27 = vmul.f32 %v864_v56, %v3115_v2  ;;  %v1520_v32 = vadd.f32 %v2782_v53, %v1451_v15  ;;  %v1457_v47 = vrot.slane %v1456_v0, 1 }
 0x186   : > { %v1793_v6 = vrot.slane %v1739_v57, 3  ;;  %v1437_v55 = vmax.f32 %v1435_v1, %v1436_v11  ;;  %v1441_v28 = vrot.slane %v1440_v63, 2  ;;  %v1230_v62 = vmul.f32 %v3117_v61, %v875_v38 }
 0x187   : > { %v1473_v16 = vsel %vm468_vm0, %v1261_v60, -inf  ;;  %v1259_v22 = vadd.f32 %v1227_v27, %v3116_v31  ;;  %v1458_v8 = vmax.f32 %v1456_v0, %v1457_v47  ;;  %v867_v39 = vadd.f32 %v2324_v44, %v3118_v37 }
 0x188   : > { %v1794_v50 = vsel %vm1763_vm5, %v1793_v6, %v1792_v52  ;;  %v1518_v43 = vadd.f32 %v2782_v53, %v1437_v55  ;;  %v1442_v21 = vmax.f32 %v1440_v63, %v1441_v28  ;;  %v1474_v58 = vrot.slane %v1473_v16, 4 }
 0x189   : > { %v1796_v25 = vsel %vm1766_vm6, %v1795_v48, %v1794_v50  ;;  %v1459_v17 = vsel %vm468_vm0, %v1259_v22, -inf  ;;  %v1552_v49 = vmul.f32 0.2, %v1520_v32  ;;  %v1521_v10 = vadd.f32 %v2782_v53, %v1458_v8 }
 0x18a   : > { %v1798_v7 = vsel %vm1769_vm7, %v1797_v42, %v1796_v25  ;;  %v1443_v9 = vrot.slane %v1442_v21, 1  ;;  %v1475_v51 = vmax.f32 %v1473_v16, %v1474_v58  ;;  %v1460_v24 = vrot.slane %v1459_v17, 4 }
 0x18b   : > { %v1815_v4 = vpack.c.b16 %v1798_v7, %v1798_v7  ;;  %v1262_v46 = vadd.f32 %v3119_v18, %v1230_v62  ;;  %v1550_v35 = vmul.f32 0.2, %v1518_v43  ;;  %v1553_v19 = vmul.f32 0.2, %v1521_v10 }
 0x18c   : > { %v1228_v41 = vmul.f32 %v867_v39, %v3120_v34  ;;  %v1444_v13 = vmax.f32 %v1442_v21, %v1443_v9  ;;  %v1476_v23 = vrot.slane %v1475_v51, 2  ;;  %v1461_v52 = vmax.f32 %v1459_v17, %v1460_v24 }
 0x18d   : > { %1824 = vst.msk [vmem:[%s2908_s15 + $0x8] sm:$0xf] %vm1821_vm8, %v1815_v4  ;;  %v1480_v29 = vsel %vm468_vm0, %v1262_v46, -inf  ;;  %v1584_v36 = vmax.f32 %v1520_v32, %v1552_v49  ;;  %v1585_v14 = vmax.f32 %v1521_v10, %v1553_v19  ;;  %v1582_v15 = vmax.f32 %v1518_v43, %v1550_v35 }
 0x18e   : > { %v1481_v54 = vrot.slane %v1480_v29, 4  ;;  %v1519_v59 = vadd.f32 %v2782_v53, %v1444_v13  ;;  %v1477_v45 = vmax.f32 %v1475_v51, %v1476_v23  ;;  %v1462_v33 = vrot.slane %v1461_v52, 2 }
 0x18f   : > { %v1260_v56 = vadd.f32 %v1228_v41, %v2949_v12  ;;  %v2078_v38 = vpack.c.bf16 %v1584_v36, %v1584_v36  ;;  %v2079_v48 = vpack.c.bf16 %v1585_v14, %v1585_v14  ;;  %v2076_v6 = vpack.c.bf16 %v1582_v15, %v1582_v15  ;;  %v2325_v12 = vld [vmem:[%s3093_s5] ss:$0 sm:$0xff] }
 0x190   : > { %v1482_v1 = vmax.f32 %v1480_v29, %v1481_v54  ;;  %v1551_v20 = vmul.f32 0.2, %v1519_v59  ;;  %v1478_v30 = vrot.slane %v1477_v45, 1  ;;  %v1463_v57 = vmax.f32 %v1461_v52, %v1462_v33 }
 0x191   : > { %v1466_v40 = vsel %vm468_vm0, %v1260_v56, -inf  ;;  %v1744_v27 = vunpack.c.l.b16 %v2078_v38  ;;  %v1745_v47 = vunpack.c.l.b16 %v2079_v48  ;;  %v1742_v22 = vunpack.c.l.b16 %v2076_v6 }
 0x192   : > { %v1483_v26 = vrot.slane %v1482_v1, 2  ;;  %v1467_v3 = vrot.slane %v1466_v40, 4  ;;  %v1583_v11 = vmax.f32 %v1519_v59, %v1551_v20  ;;  %v1479_v0 = vmax.f32 %v1477_v45, %v1478_v30 }
 0x193   : > { %v1464_v63 = vrot.slane %v1463_v57, 1  ;;  %v1801_v43 = vrot.slane %v1744_v27, 6  ;;  %v1803_v37 = vrot.slane %v1745_v47, 5 }
 0x194   : > { %v1484_v42 = vmax.f32 %v1482_v1, %v1483_v26  ;;  %v1468_v53 = vmax.f32 %v1466_v40, %v1467_v3  ;;  %v2077_v5 = vpack.c.bf16 %v1583_v11, %v1583_v11  ;;  %v1524_v60 = vadd.f32 %v2325_v12, %v1479_v0 }
 0x195   : > { %v1465_v2 = vmax.f32 %v1463_v57, %v1464_v63 }
 0x196   : > { %v1485_v32 = vrot.slane %v1484_v42, 1  ;;  %v1469_v55 = vrot.slane %v1468_v53, 2  ;;  %v1743_v28 = vunpack.c.l.b16 %v2077_v5  ;;  %v1556_v62 = vmul.f32 0.2, %v1524_v60 }
 0x197   : > { %v1522_v50 = vadd.f32 %v2325_v12, %v1465_v2 }
 0x198   : > { %v1486_v16 = vmax.f32 %v1484_v42, %v1485_v32  ;;  %v1470_v31 = vmax.f32 %v1468_v53, %v1469_v55  ;;  %v1799_v61 = vrot.slane %v1743_v28, 7  ;;  %v1588_v4 = vmax.f32 %v1524_v60, %v1556_v62 }
 0x199   : > { %v1554_v25 = vmul.f32 0.2, %v1522_v50 }
 0x19a   : > { %v1525_v8 = vadd.f32 %v2325_v12, %v1486_v16  ;;  %v1471_v44 = vrot.slane %v1470_v31, 1  ;;  %v1800_v39 = vsel %vm1751_vm1, %v1799_v61, %v1742_v22  ;;  %v2082_v46 = vpack.c.bf16 %v1588_v4, %v1588_v4 }
 0x19b   : > { %v1586_v7 = vmax.f32 %v1522_v50, %v1554_v25  ;;  %v1802_v21 = vsel %vm1754_vm2, %v1801_v43, %v1800_v39 }
 0x19c   : > { %v1557_v58 = vmul.f32 0.2, %v1525_v8  ;;  %v1472_v17 = vmax.f32 %v1470_v31, %v1471_v44  ;;  %v1804_v10 = vsel %vm1757_vm3, %v1803_v37, %v1802_v21  ;;  %v1748_v23 = vunpack.c.l.b16 %v2082_v46 }
 0x19d   : > { %v2080_v49 = vpack.c.bf16 %v1586_v7, %v1586_v7 }
 0x19e   : > { %v1589_v9 = vmax.f32 %v1525_v8, %v1557_v58  ;;  %v1523_v51 = vadd.f32 %v2325_v12, %v1472_v17  ;;  %v1809_v14 = vrot.slane %v1748_v23, 2 }
 0x19f   : > { %v1746_v24 = vunpack.c.l.b16 %v2080_v49 }
 0x1a0   : > { %v1555_v18 = vmul.f32 0.2, %v1523_v51  ;;  %v2083_v19 = vpack.c.bf16 %v1589_v9, %v1589_v9 }
 0x1a1   : > { %v1805_v35 = vrot.slane %v1746_v24, 4 }
 0x1a2   : > { %v1587_v34 = vmax.f32 %v1523_v51, %v1555_v18  ;;  %v1749_v52 = vunpack.c.l.b16 %v2083_v19 }
 0x1a3   : > { %v1806_v41 = vsel %vm1760_vm4, %v1805_v35, %v1804_v10 }
 0x1a4   : > { %v2081_v13 = vpack.c.bf16 %v1587_v34, %v1587_v34  ;;  %v1811_v54 = vrot.slane %v1749_v52, 1 }
 0x1a6   : > { %v1747_v29 = vunpack.c.l.b16 %v2081_v13 }
 0x1a8   : > { %v1807_v36 = vrot.slane %v1747_v29, 3 }
 0x1aa   : > { %v1808_v59 = vsel %vm1763_vm5, %v1807_v36, %v1806_v41 }
 0x1ab   : > { %v1810_v45 = vsel %vm1766_vm6, %v1809_v14, %v1808_v59 }
 0x1ac   : > { %v1812_v33 = vsel %vm1769_vm7, %v1811_v54, %v1810_v45 }
 0x1ad   : > { %v1816_v56 = vpack.c.b16 %v1812_v33, %v1812_v33 }
 0x1af   : > { %1825 = vst.msk [vmem:[%s2908_s15 + $0xc] sm:$0xf] %vm1821_vm8, %v1816_v56 }
 0x1b0 PF: > { %s16_s23 = sadd.s32 1, %s2348_s23   ;;  %s3121_s21 = smov %s2344_s22 }
 0x1b1   : > { %p13_p5 = scmp.ge.s32.totalorder %s16_s23, 4   ;;  %s3122_s22 = smov %s3124_s24 }
 0x1b3   :  { %15 = sbr.rel (!%p13_p5) target bundleno = 2 (0x2), region = 74 }

// kernel: neg.16
= control target key start
LH: loop header
LB: loop body
LE: loop exit
PB: predicated region body
PF: predicated region fallthrough
CT: control target
= control target key end

     0   :  { %s72_s0 = inlined_call_operand.vmem [shape: f32[2,32,16], index: 0, kind: input, shape index: {}]   ;;  %s73_s1 = inlined_call_operand.vmem [shape: f32[2,32,16], index: 1, kind: output, shape index: {}]  }
   0x1   :  { %v2_v0 = vld [vmem:[%s72_s0] sm:$0xff]  ;;  %v32_v1 = vld [vmem:[%s72_s0 + $0x10] sm:$0xff]  ;;  %v34_v2 = vld [vmem:[%s72_s0 + $0x8] sm:$0xff] }
   0x2   :  { %v5_v3 = vxor.u32 2147483648, %v2_v0  ;;  %v12_v4 = vxor.u32 2147483648, %v32_v1  ;;  %v20_v5 = vxor.u32 2147483648, %v34_v2  ;;  %v36_v6 = vld [vmem:[%s72_s0 + $0x18] sm:$0xff] }
   0x3   :  { %v28_v7 = vxor.u32 2147483648, %v36_v6 }
   0x4   :  { %7 = vst [vmem:[%s73_s1] sm:$0xff] %v5_v3  ;;  %33 = vst [vmem:[%s73_s1 + $0x10] sm:$0xff] %v12_v4 }
   0x5   :  { %35 = vst [vmem:[%s73_s1 + $0x8] sm:$0xff] %v20_v5  ;;  %37 = vst [vmem:[%s73_s1 + $0x18] sm:$0xff] %v28_v7 }

// kernel: forward.7
= control target key start
LH: loop header
LB: loop body
LE: loop exit
PB: predicated region body
PF: predicated region fallthrough
CT: control target
= control target key end

     0   :  { %s2536_s18 = smov 0   ;;  %s2538_s19 = smov 0   ;;  %s3289_s0 = inlined_call_operand.vmem [shape: bf16[2,128,256], index: 0, kind: input, shape index: {}]   ;;  %s3290_s1 = inlined_call_operand.vmem [shape: bf16[256,512], index: 1, kind: input, shape index: {}]   ;;  %s3291_s2 = inlined_call_operand.vmem [shape: bf16[256,256], index: 2, kind: input, shape index: {}]   ;;  %s3292_s3 = inlined_call_operand.vmem [shape: f32[1,256], index: 3, kind: input, shape index: {}]   ;;  %s3293_s4 = inlined_call_operand.vmem [shape: f32[1,256], index: 4, kind: input, shape index: {}]   ;;  %s3294_s5 = inlined_call_operand.vmem [shape: bf16[2,16,256], index: 5, kind: output, shape index: {}]  }
   0x1   :  { %s2540_s20 = smov 0  }
   0x2 LB: > { %s27_s21 = sadd.s32 1, %s2500_s19  ;;  %p2097_p0 = scmp.ge.s32.totalorder %s2504_s20, 1  ;;  %s2504_s20 = sphi %s2540_s20, %s15_s20   ;;  %s2500_s19 = sphi %s2538_s19, %s3306_s19   ;;  %s2496_s18 = sphi %s2536_s18, %s3305_s18  }
   0x3   : > { %p29_p1 = scmp.ge.s32.totalorder %s27_s21, 2  ;;  %p209_p2 = scmp.lt.s32.totalorder %s2504_s20, 3 }
   0x5   : > { %s3308_s21 = smov (%p29_p1, %s27_s21), 0  ;;  %p210_p3 = pnand %p2097_p0, %p209_p2 }
   0x7   : > { %213 = sbr.rel (%p210_p3) target bundleno = 473 (0x1d9), region = 40 }
   0xe   : > { %v2322_v0 = vld [vmem:[%s3290_s1 + $0x4] ss:$16 sps:$4 sm:$0xff]   ;;  %v2324_v1 = vld [vmem:[%s3290_s1 + $0xc] ss:$16 sps:$4 sm:$0xff]   ;;  %v2326_v2 = vld [vmem:[%s3290_s1] ss:$16 sps:$4 sm:$0xff]  }
   0xf   : > { %765 = vmatprep.subr.bf16.mxu0 %v2322_v0  ;;  %v2327_v3 = vld [vmem:[%s3290_s1 + $0x8] ss:$16 sps:$4 sm:$0xff]   ;;  %878 = vmatprep.subr.bf16.mxu1 %v2324_v1  ;;  %v2328_v4 = vld [vmem:[%s3290_s1 + $0x24] ss:$16 sps:$4 sm:$0xff]   ;;  %v2330_v5 = vld [vmem:[%s3290_s1 + $0x2c] ss:$16 sps:$4 sm:$0xff]  }
  0x10   : > { %766 = vmatpush1.bf16.msra.mxu0 %v2326_v2  ;;  %879 = vmatpush1.bf16.msra.mxu1 %v2327_v3  ;;  %v2332_v6 = vld [vmem:[%s3290_s1 + $0x20] ss:$16 sps:$4 sm:$0xff]   ;;  %v2333_v7 = vld [vmem:[%s3290_s1 + $0x28] ss:$16 sps:$4 sm:$0xff]   ;;  %v2334_v8 = vld [vmem:[%s3290_s1 + $0x44] ss:$16 sps:$4 sm:$0xff]  }
  0x11   : > { %767 = vmatprep.subr.bf16.mxu0 %v2328_v4  ;;  %880 = vmatprep.subr.bf16.mxu1 %v2330_v5  ;;  %v2336_v9 = vld [vmem:[%s3290_s1 + $0x4c] ss:$16 sps:$4 sm:$0xff]   ;;  %v2338_v10 = vld [vmem:[%s3290_s1 + $0x40] ss:$16 sps:$4 sm:$0xff]   ;;  %v2339_v11 = vld [vmem:[%s3290_s1 + $0x48] ss:$16 sps:$4 sm:$0xff]  }
  0x12   : > { %v2340_v12 = vld [vmem:[%s3290_s1 + $0x64] ss:$16 sps:$4 sm:$0xff]   ;;  %v2342_v13 = vld [vmem:[%s3290_s1 + $0x6c] ss:$16 sps:$4 sm:$0xff]   ;;  %v2344_v14 = vld [vmem:[%s3290_s1 + $0x60] ss:$16 sps:$4 sm:$0xff]  }
  0x13   : > { %v2345_v15 = vld [vmem:[%s3290_s1 + $0x68] ss:$16 sps:$4 sm:$0xff]   ;;  %v2346_v16 = vld [vmem:[%s3290_s1 + $0x84] ss:$16 sps:$4 sm:$0xff]   ;;  %v2348_v17 = vld [vmem:[%s3290_s1 + $0x8c] ss:$16 sps:$4 sm:$0xff]  }
  0x14   : > { %768 = vmatpush1.bf16.msra.mxu0 %v2332_v6  ;;  %881 = vmatpush1.bf16.msra.mxu1 %v2333_v7  ;;  %v2350_v18 = vld [vmem:[%s3290_s1 + $0x80] ss:$16 sps:$4 sm:$0xff]   ;;  %v2351_v19 = vld [vmem:[%s3290_s1 + $0x88] ss:$16 sps:$4 sm:$0xff]   ;;  %v2352_v20 = vld [vmem:[%s3290_s1 + $0xa4] ss:$16 sps:$4 sm:$0xff]  }
  0x15   : > { %769 = vmatprep.subr.bf16.mxu0 %v2334_v8  ;;  %882 = vmatprep.subr.bf16.mxu1 %v2336_v9  ;;  %v2354_v21 = vld [vmem:[%s3290_s1 + $0xac] ss:$16 sps:$4 sm:$0xff]   ;;  %v2356_v22 = vld [vmem:[%s3290_s1 + $0xa0] ss:$16 sps:$4 sm:$0xff]   ;;  %v2357_v23 = vld [vmem:[%s3290_s1 + $0xa8] ss:$16 sps:$4 sm:$0xff]  }
  0x16   : > { %v2358_v24 = vld [vmem:[%s3290_s1 + $0xc4] ss:$16 sps:$4 sm:$0xff]   ;;  %v2360_v25 = vld [vmem:[%s3290_s1 + $0xcc] ss:$16 sps:$4 sm:$0xff]   ;;  %v2362_v26 = vld [vmem:[%s3290_s1 + $0xc0] ss:$16 sps:$4 sm:$0xff]  }
  0x17   : > { %v2363_v27 = vld [vmem:[%s3290_s1 + $0xc8] ss:$16 sps:$4 sm:$0xff]   ;;  %v2364_v28 = vld [vmem:[%s3290_s1 + $0xe4] ss:$16 sps:$4 sm:$0xff]   ;;  %v2366_v29 = vld [vmem:[%s3290_s1 + $0xec] ss:$16 sps:$4 sm:$0xff]  }
  0x18   : > { %770 = vmatpush1.bf16.msra.mxu0 %v2338_v10  ;;  %883 = vmatpush1.bf16.msra.mxu1 %v2339_v11  ;;  %v2368_v30 = vld [vmem:[%s3290_s1 + $0xe0] ss:$16 sps:$4 sm:$0xff]   ;;  %v2369_v31 = vld [vmem:[%s3290_s1 + $0xe8] ss:$16 sps:$4 sm:$0xff]   ;;  %v2370_v32 = vld [vmem:[%s3290_s1 + $0x104] ss:$16 sps:$4 sm:$0xff]  }
  0x19   : > { %771 = vmatprep.subr.bf16.mxu0 %v2340_v12  ;;  %884 = vmatprep.subr.bf16.mxu1 %v2342_v13  ;;  %p248_p4 = scmp.lt.s32.totalorder %s2496_s18, 1  ;;  %v2372_v33 = vld [vmem:[%s3290_s1 + $0x10c] ss:$16 sps:$4 sm:$0xff]   ;;  %v2374_v34 = vld [vmem:[%s3290_s1 + $0x100] ss:$16 sps:$4 sm:$0xff]   ;;  %vm1929_vm0 = vcmask 1041409  }
  0x1a   : > { %v2375_v35 = vld [vmem:[%s3290_s1 + $0x108] ss:$16 sps:$4 sm:$0xff]   ;;  %v2376_v36 = vld [vmem:[%s3290_s1 + $0x124] ss:$16 sps:$4 sm:$0xff]   ;;  %v2378_v37 = vld [vmem:[%s3290_s1 + $0x12c] ss:$16 sps:$4 sm:$0xff]  }
  0x1b   : > { %s3310_s18 = smov (!%p248_p4, %s2496_s18), 1  ;;  %v2380_v38 = vld [vmem:[%s3290_s1 + $0x120] ss:$16 sps:$4 sm:$0xff]   ;;  %v2381_v39 = vld [vmem:[%s3290_s1 + $0x128] ss:$16 sps:$4 sm:$0xff]   ;;  %vm1932_vm1 = vcmask 1042434  }
  0x1c   : > { %772 = vmatpush1.bf16.msra.mxu0 %v2344_v14  ;;  %885 = vmatpush1.bf16.msra.mxu1 %v2345_v15  ;;  %v2382_v40 = vld [vmem:[%s3290_s1 + $0x144] ss:$16 sps:$4 sm:$0xff]   ;;  %s2248_s16 = sshll.u32 %s3310_s18, 7  ;;  %v2384_v41 = vld [vmem:[%s3290_s1 + $0x14c] ss:$16 sps:$4 sm:$0xff]   ;;  %vm1935_vm2 = vcmask 1043459  }
  0x1d   : > { %773 = vmatprep.subr.bf16.mxu0 %v2346_v16  ;;  %886 = vmatprep.subr.bf16.mxu1 %v2348_v17  ;;  %v2386_v42 = vld [vmem:[%s3290_s1 + $0x140] ss:$16 sps:$4 sm:$0xff]   ;;  %v2387_v43 = vld [vmem:[%s3290_s1 + $0x148] ss:$16 sps:$4 sm:$0xff]   ;;  %s2696_s29 = scalar_lea.vmem %s3289_s0, %s2248_s16  ;;  %v2388_v44 = vld [vmem:[%s3290_s1 + $0x164] ss:$16 sps:$4 sm:$0xff]  }
  0x1e   : > { %v2390_v45 = vld [vmem:[%s3290_s1 + $0x16c] ss:$16 sps:$4 sm:$0xff]   ;;  %v269_v46 = vld [vmem:[%s2696_s29] sm:$0xff]  ;;  %v2393_v50 = vld [vmem:[%s3290_s1 + $0x168] ss:$16 sps:$4 sm:$0xff]   ;;  %vm1938_vm3 = vcmask 1044484  }
  0x1f   : > { %v270_v47 = vld [vmem:[%s2696_s29 + $0x8] sm:$0xff]  ;;  %v2706_v48 = vmul.bf16 %v269_v46, %v269_v46  ;;  %v2392_v49 = vld [vmem:[%s3290_s1 + $0x160] ss:$16 sps:$4 sm:$0xff]   ;;  %v2394_v53 = vld [vmem:[%s3290_s1 + $0x184] ss:$16 sps:$4 sm:$0xff]   ;;  %vm1941_vm4 = vcmask 1045509  }
  0x20   : > { %774 = vmatpush1.bf16.msra.mxu0 %v2350_v18  ;;  %887 = vmatpush1.bf16.msra.mxu1 %v2351_v19  ;;  %v2103_v51 = vcombine.high %v269_v46, %v270_v47  ;;  %v2714_v52 = vmul.bf16 %v270_v47, %v270_v47  ;;  %v2396_v54 = vld [vmem:[%s3290_s1 + $0x18c] ss:$16 sps:$4 sm:$0xff]   ;;  %v2398_v57 = vld [vmem:[%s3290_s1 + $0x180] ss:$16 sps:$4 sm:$0xff]   ;;  %v2399_v58 = vld [vmem:[%s3290_s1 + $0x188] ss:$16 sps:$4 sm:$0xff]   ;;  %v2102_v9 = vcombine.low %v269_v46, %v270_v47 }
  0x21   : > { %775 = vmatprep.subr.bf16.mxu0 %v2352_v20  ;;  %888 = vmatprep.subr.bf16.mxu1 %v2354_v21  ;;  %v2400_v59 = vld [vmem:[%s3290_s1 + $0x1a4] ss:$16 sps:$4 sm:$0xff]   ;;  %v2402_v60 = vld [vmem:[%s3290_s1 + $0x1ac] ss:$16 sps:$4 sm:$0xff]   ;;  %v2404_v61 = vld [vmem:[%s3290_s1 + $0x1a0] ss:$16 sps:$4 sm:$0xff]  }
  0x22   : > { %797 = vmatprep.mubr.bf16.mxu0 %v2103_v51  ;;  %910 = vmatprep.mubr.bf16.mxu1 %v2103_v51  ;;  %v2182_v55 = vcombine.low %v2706_v48, %v2714_v52  ;;  %v2183_v56 = vcombine.high %v2706_v48, %v2714_v52  ;;  %v2405_v62 = vld [vmem:[%s3290_s1 + $0x1a8] ss:$16 sps:$4 sm:$0xff]   ;;  %v2406_v63 = vld [vmem:[%s3290_s1 + $0x1c4] ss:$16 sps:$4 sm:$0xff]   ;;  %v2408_v0 = vld [vmem:[%s3290_s1 + $0x1cc] ss:$16 sps:$4 sm:$0xff]  }
  0x23   : > { %v2410_v1 = vld [vmem:[%s3290_s1 + $0x1c0] ss:$16 sps:$4 sm:$0xff]   ;;  %v2411_v2 = vld [vmem:[%s3290_s1 + $0x1c8] ss:$16 sps:$4 sm:$0xff]   ;;  %v2412_v3 = vld [vmem:[%s3290_s1 + $0x1e4] ss:$16 sps:$4 sm:$0xff]  }
  0x24   : > { %776 = vmatpush1.bf16.msra.mxu0 %v2356_v22  ;;  %889 = vmatpush1.bf16.msra.mxu1 %v2357_v23  ;;  %v2414_v4 = vld [vmem:[%s3290_s1 + $0x1ec] ss:$16 sps:$4 sm:$0xff]   ;;  %v2416_v5 = vld [vmem:[%s3290_s1 + $0x1e0] ss:$16 sps:$4 sm:$0xff]   ;;  %v2417_v6 = vld [vmem:[%s3290_s1 + $0x1e8] ss:$16 sps:$4 sm:$0xff]  }
  0x25   : > { %777 = vmatprep.subr.bf16.mxu0 %v2358_v24  ;;  %890 = vmatprep.subr.bf16.mxu1 %v2360_v25  ;;  %v2422_v7 = vld [vmem:[%s3291_s2 + $0x4] ss:$8 sps:$4 sm:$0xff]   ;;  %v2772_v8 = vld [vmem:[%s2696_s29 + $0x10] sm:$0xff]  ;;  %v2775_v10 = vld [vmem:[%s2696_s29 + $0x18] sm:$0xff]  ;;  %vm1944_vm5 = vcmask 1046534   ;;  %s2249_s12 = sshll.u32 %s3310_s18, 4 }
  0x26   : > { %v2420_v11 = vld [vmem:[%s3291_s2] ss:$8 sps:$4 sm:$0xff]   ;;  %v2425_v12 = vld [vmem:[%s3291_s2 + $0x14] ss:$8 sps:$4 sm:$0xff]   ;;  %v2105_v13 = vcombine.high %v2772_v8, %v2775_v10  ;;  %v2423_v14 = vld [vmem:[%s3291_s2 + $0x10] ss:$8 sps:$4 sm:$0xff]   ;;  %v2104_v16 = vcombine.low %v2772_v8, %v2775_v10  ;;  %s267_s15 = scalar_lea.vmem %s3294_s5, %s2249_s12 }
  0x27   : > { %v2430_v15 = vld [vmem:[%s3291_s2 + $0x24] ss:$8 sps:$4 sm:$0xff]   ;;  %v2428_v19 = vld [vmem:[%s3291_s2 + $0x20] ss:$8 sps:$4 sm:$0xff]   ;;  %v2433_v20 = vld [vmem:[%s3291_s2 + $0x34] ss:$8 sps:$4 sm:$0xff]  }
  0x28   : > { %778 = vmatpush1.bf16.msra.mxu0 %v2362_v26  ;;  %891 = vmatpush1.bf16.msra.mxu1 %v2363_v27  ;;  %v2794_v17 = vld [vmem:[%s2696_s29 + $0x20] sm:$0xff]  ;;  %v2797_v18 = vld [vmem:[%s2696_s29 + $0x28] sm:$0xff]  ;;  %v2431_v22 = vld [vmem:[%s3291_s2 + $0x30] ss:$8 sps:$4 sm:$0xff]   ;;  %vm1947_vm6 = vcmask 1047559  }
  0x29   : > { %779 = vmatprep.subr.bf16.mxu0 %v2364_v28  ;;  %892 = vmatprep.subr.bf16.mxu1 %v2366_v29  ;;  %v2107_v21 = vcombine.high %v2794_v17, %v2797_v18  ;;  %v2438_v23 = vld [vmem:[%s3291_s2 + $0x44] ss:$8 sps:$4 sm:$0xff]   ;;  %v2106_v24 = vcombine.low %v2794_v17, %v2797_v18  ;;  %v2816_v25 = vld [vmem:[%s2696_s29 + $0x30] sm:$0xff]  ;;  %v2819_v26 = vld [vmem:[%s2696_s29 + $0x38] sm:$0xff] }
  0x2a   : > { %v2436_v27 = vld [vmem:[%s3291_s2 + $0x40] ss:$8 sps:$4 sm:$0xff]   ;;  %v2441_v28 = vld [vmem:[%s3291_s2 + $0x54] ss:$8 sps:$4 sm:$0xff]   ;;  %v2109_v29 = vcombine.high %v2816_v25, %v2819_v26  ;;  %v2455_v46 = vld [vmem:[%s3291_s2 + $0x90] ss:$8 sps:$4 sm:$0xff]   ;;  %v291_v52 = vmul.bf16 %v2816_v25, %v2816_v25 }
  0x2b   : > { %v2462_v47 = vld [vmem:[%s3291_s2 + $0xa4] ss:$8 sps:$4 sm:$0xff]  }
  0x2c   : > { %780 = vmatpush1.bf16.msra.mxu0 %v2368_v30  ;;  %893 = vmatpush1.bf16.msra.mxu1 %v2369_v31  ;;  %v2439_v30 = vld [vmem:[%s3291_s2 + $0x50] ss:$8 sps:$4 sm:$0xff]   ;;  %v2446_v31 = vld [vmem:[%s3291_s2 + $0x64] ss:$8 sps:$4 sm:$0xff]  }
  0x2d   : > { %781 = vmatprep.subr.bf16.mxu0 %v2370_v32  ;;  %894 = vmatprep.subr.bf16.mxu1 %v2372_v33  ;;  %v2108_v32 = vcombine.low %v2816_v25, %v2819_v26  ;;  %v2838_v33 = vld [vmem:[%s2696_s29 + $0x40] sm:$0xff]  ;;  %v2885_v51 = vld [vmem:[%s2696_s29 + $0x68] sm:$0xff] }
  0x30   : > { %782 = vmatpush1.bf16.msra.mxu0 %v2374_v34  ;;  %895 = vmatpush1.bf16.msra.mxu1 %v2375_v35  ;;  %v2841_v34 = vld [vmem:[%s2696_s29 + $0x48] sm:$0xff] }
  0x31   : > { %783 = vmatprep.subr.bf16.mxu0 %v2376_v36  ;;  %896 = vmatprep.subr.bf16.mxu1 %v2378_v37  ;;  %v2444_v35 = vld [vmem:[%s3291_s2 + $0x60] ss:$8 sps:$4 sm:$0xff]   ;;  %v2449_v36 = vld [vmem:[%s3291_s2 + $0x74] ss:$8 sps:$4 sm:$0xff]   ;;  %v2111_v37 = vcombine.high %v2838_v33, %v2841_v34 }
  0x34   : > { %784 = vmatpush1.bf16.msra.mxu0 %v2380_v38  ;;  %897 = vmatpush1.bf16.msra.mxu1 %v2381_v39  ;;  %v2447_v38 = vld [vmem:[%s3291_s2 + $0x70] ss:$8 sps:$4 sm:$0xff]   ;;  %v2454_v39 = vld [vmem:[%s3291_s2 + $0x84] ss:$8 sps:$4 sm:$0xff]  }
  0x35   : > { %785 = vmatprep.subr.bf16.mxu0 %v2382_v40  ;;  %898 = vmatprep.subr.bf16.mxu1 %v2384_v41  ;;  %v2110_v40 = vcombine.low %v2838_v33, %v2841_v34  ;;  %v2860_v41 = vld [vmem:[%s2696_s29 + $0x50] sm:$0xff] }
  0x38   : > { %786 = vmatpush1.bf16.msra.mxu0 %v2386_v42  ;;  %899 = vmatpush1.bf16.msra.mxu1 %v2387_v43  ;;  %v2863_v42 = vld [vmem:[%s2696_s29 + $0x58] sm:$0xff]  ;;  %v2452_v43 = vld [vmem:[%s3291_s2 + $0x80] ss:$8 sps:$4 sm:$0xff]  }
  0x39   : > { %787 = vmatprep.subr.bf16.mxu0 %v2388_v44  ;;  %900 = vmatprep.subr.bf16.mxu1 %v2390_v45  ;;  %v2457_v44 = vld [vmem:[%s3291_s2 + $0x94] ss:$8 sps:$4 sm:$0xff]   ;;  %v2113_v45 = vcombine.high %v2860_v41, %v2863_v42 }
  0x3c   : > { %788 = vmatpush1.bf16.msra.mxu0 %v2392_v49  ;;  %901 = vmatpush1.bf16.msra.mxu1 %v2393_v50  ;;  %v2112_v49 = vcombine.low %v2860_v41, %v2863_v42  ;;  %v2882_v50 = vld [vmem:[%s2696_s29 + $0x60] sm:$0xff] }
  0x3d   : > { %789 = vmatprep.subr.bf16.mxu0 %v2394_v53  ;;  %902 = vmatprep.subr.bf16.mxu1 %v2396_v54  ;;  %v2460_v53 = vld [vmem:[%s3291_s2 + $0xa0] ss:$8 sps:$4 sm:$0xff]   ;;  %v2465_v54 = vld [vmem:[%s3291_s2 + $0xb4] ss:$8 sps:$4 sm:$0xff]  }
  0x40   : > { %790 = vmatpush1.bf16.msra.mxu0 %v2398_v57  ;;  %903 = vmatpush1.bf16.msra.mxu1 %v2399_v58  ;;  %v2115_v57 = vcombine.high %v2882_v50, %v2885_v51  ;;  %v2463_v58 = vld [vmem:[%s3291_s2 + $0xb0] ss:$8 sps:$4 sm:$0xff]  }
  0x41   : > { %791 = vmatprep.subr.bf16.mxu0 %v2400_v59  ;;  %904 = vmatprep.subr.bf16.mxu1 %v2402_v60  ;;  %v2470_v59 = vld [vmem:[%s3291_s2 + $0xc4] ss:$8 sps:$4 sm:$0xff]   ;;  %v2114_v60 = vcombine.low %v2882_v50, %v2885_v51 }
  0x44   : > { %792 = vmatpush1.bf16.msra.mxu0 %v2404_v61  ;;  %905 = vmatpush1.bf16.msra.mxu1 %v2405_v62  ;;  %v2904_v61 = vld [vmem:[%s2696_s29 + $0x70] sm:$0xff]  ;;  %v2907_v62 = vld [vmem:[%s2696_s29 + $0x78] sm:$0xff] }
  0x45   : > { %793 = vmatprep.subr.bf16.mxu0 %v2406_v63  ;;  %906 = vmatprep.subr.bf16.mxu1 %v2408_v0  ;;  %v2468_v63 = vld [vmem:[%s3291_s2 + $0xc0] ss:$8 sps:$4 sm:$0xff]   ;;  %v2473_v0 = vld [vmem:[%s3291_s2 + $0xd4] ss:$8 sps:$4 sm:$0xff]  }
  0x48   : > { %794 = vmatpush1.bf16.msra.mxu0 %v2410_v1  ;;  %907 = vmatpush1.bf16.msra.mxu1 %v2411_v2  ;;  %v2117_v1 = vcombine.high %v2904_v61, %v2907_v62  ;;  %v2471_v2 = vld [vmem:[%s3291_s2 + $0xd0] ss:$8 sps:$4 sm:$0xff]  }
  0x49   : > { %795 = vmatprep.subr.bf16.mxu0 %v2412_v3  ;;  %908 = vmatprep.subr.bf16.mxu1 %v2414_v4  ;;  %v2478_v3 = vld [vmem:[%s3291_s2 + $0xe4] ss:$8 sps:$4 sm:$0xff]   ;;  %v293_v4 = vmul.bf16 %v2838_v33, %v2838_v33  ;;  %v993_v33 = vlaneseq }
  0x4c   : > { %796 = vmatpush1.bf16.msra.mxu0 %v2416_v5  ;;  %909 = vmatpush1.bf16.msra.mxu1 %v2417_v6  ;;  %v294_v5 = vmul.bf16 %v2841_v34, %v2841_v34  ;;  %v2116_v6 = vcombine.low %v2904_v61, %v2907_v62 }
  0x4d   : > { %1307 = vmatprep.subr.bf16.mxu0 %v2422_v7  ;;  %2266 = vmatprep.subr.bf16.mxu1 %v2422_v7  ;;  %v2476_v7 = vld [vmem:[%s3291_s2 + $0xe0] ss:$8 sps:$4 sm:$0xff]  }
  0x4f   : > { %798 = vmatmul.mubr.bf16.vlgmr.msra.gmra.mrb[0].mxu0 %v2102_v9  ;;  %911 = vmatmul.mubr.bf16.vlgmr.msra.gmra.mrb[0].mxu1 %v2102_v9  ;;  %v2481_v9 = vld [vmem:[%s3291_s2 + $0xf4] ss:$8 sps:$4 sm:$0xff]  }
  0x50   : > { %1308 = vmatpush1.bf16.msra.mxu0 %v2420_v11  ;;  %2282 = vmatpush1.bf16.msra.mxu1 %v2420_v11  ;;  %v2191_v11 = vcombine.high %v293_v4, %v294_v5 }
  0x51   : > { %1309 = vmatprep.subr.bf16.mxu0 %v2425_v12  ;;  %2267 = vmatprep.subr.bf16.mxu1 %v2425_v12  ;;  %v287_v12 = vmul.bf16 %v2772_v8, %v2772_v8  ;;  %v2190_v8 = vcombine.low %v293_v4, %v294_v5 }
  0x52   : > { %807 = vmatprep.mubr.bf16.mxu0 %v2105_v13  ;;  %920 = vmatprep.mubr.bf16.mxu1 %v2105_v13  ;;  %v2479_v13 = vld [vmem:[%s3291_s2 + $0xf0] ss:$8 sps:$4 sm:$0xff]  }
  0x54   : > { %1310 = vmatpush1.bf16.msra.mxu0 %v2423_v14  ;;  %2283 = vmatpush1.bf16.msra.mxu1 %v2423_v14  ;;  %v288_v14 = vmul.bf16 %v2775_v10, %v2775_v10  ;;  %v289_v10 = vmul.bf16 %v2794_v17, %v2794_v17  ;;  %v299_v17 = vmul.bf16 %v2904_v61, %v2904_v61 }
  0x55   : > { %1311 = vmatprep.subr.bf16.mxu0 %v2430_v15  ;;  %2268 = vmatprep.subr.bf16.mxu1 %v2430_v15  ;;  %v295_v15 = vmul.bf16 %v2860_v41, %v2860_v41 }
  0x57   : > { %808 = vmatmul.mubr.bf16.gmra.mrb[4].mxu0 %v2104_v16  ;;  %921 = vmatmul.mubr.bf16.gmra.mrb[4].mxu1 %v2104_v16  ;;  %v296_v16 = vmul.bf16 %v2863_v42, %v2863_v42 }
  0x58   : > { %1312 = vmatpush1.bf16.msra.mxu0 %v2428_v19  ;;  %2284 = vmatpush1.bf16.msra.mxu1 %v2428_v19  ;;  %v2185_v19 = vcombine.high %v287_v12, %v288_v14 }
  0x59   : > { %1313 = vmatprep.subr.bf16.mxu0 %v2433_v20  ;;  %2269 = vmatprep.subr.bf16.mxu1 %v2433_v20  ;;  %v2193_v20 = vcombine.high %v295_v15, %v296_v16 }
  0x5a   : > { %817 = vmatprep.mubr.bf16.mxu0 %v2107_v21  ;;  %930 = vmatprep.mubr.bf16.mxu1 %v2107_v21  ;;  %v290_v21 = vmul.bf16 %v2797_v18, %v2797_v18  ;;  %v300_v18 = vmul.bf16 %v2907_v62, %v2907_v62 }
  0x5c   : > { %1314 = vmatpush1.bf16.msra.mxu0 %v2431_v22  ;;  %2285 = vmatpush1.bf16.msra.mxu1 %v2431_v22  ;;  %v298_v22 = vmul.bf16 %v2885_v51, %v2885_v51 }
  0x5d   : > { %1315 = vmatprep.subr.bf16.mxu0 %v2438_v23  ;;  %2270 = vmatprep.subr.bf16.mxu1 %v2438_v23  ;;  %v2184_v23 = vcombine.low %v287_v12, %v288_v14 }
  0x5f   : > { %818 = vmatmul.mubr.bf16.gmra.mrb[8].mxu0 %v2106_v24  ;;  %931 = vmatmul.mubr.bf16.gmra.mrb[8].mxu1 %v2106_v24  ;;  %v2192_v24 = vcombine.low %v295_v15, %v296_v16 }
  0x60   : > { %1316 = vmatpush1.bf16.msra.mxu0 %v2436_v27  ;;  %2286 = vmatpush1.bf16.msra.mxu1 %v2436_v27  ;;  %v2187_v27 = vcombine.high %v289_v10, %v290_v21 }
  0x61   : > { %1317 = vmatprep.subr.bf16.mxu0 %v2441_v28  ;;  %2271 = vmatprep.subr.bf16.mxu1 %v2441_v28  ;;  %v2186_v28 = vcombine.low %v289_v10, %v290_v21 }
  0x62   : > { %827 = vmatprep.mubr.bf16.mxu0 %v2109_v29  ;;  %940 = vmatprep.mubr.bf16.mxu1 %v2109_v29 }
  0x64   : > { %1318 = vmatpush1.bf16.msra.mxu0 %v2439_v30  ;;  %2287 = vmatpush1.bf16.msra.mxu1 %v2439_v30 }
  0x65   : > { %1319 = vmatprep.subr.bf16.mxu0 %v2446_v31  ;;  %2272 = vmatprep.subr.bf16.mxu1 %v2446_v31  ;;  %v2197_v31 = vcombine.high %v299_v17, %v300_v18 }
  0x67   : > { %828 = vmatmul.mubr.bf16.gmra.mrb[12].mxu0 %v2108_v32  ;;  %941 = vmatmul.mubr.bf16.gmra.mrb[12].mxu1 %v2108_v32  ;;  %v2196_v32 = vcombine.low %v299_v17, %v300_v18 }
  0x68   : > { %1320 = vmatpush1.bf16.msra.mxu0 %v2444_v35  ;;  %2288 = vmatpush1.bf16.msra.mxu1 %v2444_v35  ;;  %v991_v35 = vld [vmem:[%s3292_s3] sm:$0x3] }
  0x69   : > { %1321 = vmatprep.subr.bf16.mxu0 %v2449_v36  ;;  %2273 = vmatprep.subr.bf16.mxu1 %v2449_v36 }
  0x6a   : > { %837 = vmatprep.mubr.bf16.mxu0 %v2111_v37  ;;  %950 = vmatprep.mubr.bf16.mxu1 %v2111_v37 }
  0x6c   : > { %1322 = vmatpush1.bf16.msra.mxu0 %v2447_v38  ;;  %2289 = vmatpush1.bf16.msra.mxu1 %v2447_v38 }
  0x6d   : > { %1323 = vmatprep.subr.bf16.mxu0 %v2454_v39  ;;  %2274 = vmatprep.subr.bf16.mxu1 %v2454_v39 }
  0x6f   : > { %838 = vmatmul.mubr.bf16.gmra.mrb[16].mxu0 %v2110_v40  ;;  %951 = vmatmul.mubr.bf16.gmra.mrb[16].mxu1 %v2110_v40 }
  0x70   : > { %1324 = vmatpush1.bf16.msra.mxu0 %v2452_v43  ;;  %2290 = vmatpush1.bf16.msra.mxu1 %v2452_v43 }
  0x71   : > { %1325 = vmatprep.subr.bf16.mxu0 %v2457_v44  ;;  %2275 = vmatprep.subr.bf16.mxu1 %v2457_v44 }
  0x72   : > { %847 = vmatprep.mubr.bf16.mxu0 %v2113_v45  ;;  %960 = vmatprep.mubr.bf16.mxu1 %v2113_v45 }
  0x74   : > { %1326 = vmatpush1.bf16.msra.mxu0 %v2455_v46  ;;  %2291 = vmatpush1.bf16.msra.mxu1 %v2455_v46 }
  0x75   : > { %1327 = vmatprep.subr.bf16.mxu0 %v2462_v47  ;;  %2276 = vmatprep.subr.bf16.mxu1 %v2462_v47 }
  0x77   : > { %848 = vmatmul.mubr.bf16.gmra.mrb[20].mxu0 %v2112_v49  ;;  %961 = vmatmul.mubr.bf16.gmra.mrb[20].mxu1 %v2112_v49 }
  0x78   : > { %1328 = vmatpush1.bf16.msra.mxu0 %v2460_v53  ;;  %2292 = vmatpush1.bf16.msra.mxu1 %v2460_v53 }
  0x79   : > { %1329 = vmatprep.subr.bf16.mxu0 %v2465_v54  ;;  %2277 = vmatprep.subr.bf16.mxu1 %v2465_v54 }
  0x7a   : > { %857 = vmatprep.mubr.bf16.mxu0 %v2115_v57  ;;  %970 = vmatprep.mubr.bf16.mxu1 %v2115_v57 }
  0x7c   : > { %1330 = vmatpush1.bf16.msra.mxu0 %v2463_v58  ;;  %2293 = vmatpush1.bf16.msra.mxu1 %v2463_v58 }
  0x7d   : > { %1331 = vmatprep.subr.bf16.mxu0 %v2470_v59  ;;  %2278 = vmatprep.subr.bf16.mxu1 %v2470_v59 }
  0x7f   : > { %858 = vmatmul.mubr.bf16.gmra.mrb[24].mxu0 %v2114_v60  ;;  %971 = vmatmul.mubr.bf16.gmra.mrb[24].mxu1 %v2114_v60 }
  0x80   : > { %1332 = vmatpush1.bf16.msra.mxu0 %v2468_v63  ;;  %2294 = vmatpush1.bf16.msra.mxu1 %v2468_v63 }
  0x81   : > { %1333 = vmatprep.subr.bf16.mxu0 %v2473_v0  ;;  %2279 = vmatprep.subr.bf16.mxu1 %v2473_v0 }
  0x82   : > { %867 = vmatprep.mubr.bf16.mxu0 %v2117_v1  ;;  %980 = vmatprep.mubr.bf16.mxu1 %v2117_v1 }
  0x84   : > { %1334 = vmatpush1.bf16.msra.mxu0 %v2471_v2  ;;  %2295 = vmatpush1.bf16.msra.mxu1 %v2471_v2 }
  0x85   : > { %1335 = vmatprep.subr.bf16.mxu0 %v2478_v3  ;;  %2280 = vmatprep.subr.bf16.mxu1 %v2478_v3 }
  0x87   : > { %868 = vmatmul.mubr.bf16.gmra.mrb[28].mxu0 %v2116_v6  ;;  %981 = vmatmul.mubr.bf16.gmra.mrb[28].mxu1 %v2116_v6 }
  0x88   : > { %1336 = vmatpush1.bf16.msra.mxu0 %v2476_v7  ;;  %2296 = vmatpush1.bf16.msra.mxu1 %v2476_v7 }
  0x89   : > { %1337 = vmatprep.subr.bf16.mxu0 %v2481_v9  ;;  %2281 = vmatprep.subr.bf16.mxu1 %v2481_v9 }
  0x8a   : > { %1339 = vmatprep.mubr.bf16.mxu0 %v2183_v56  ;;  %1379 = vmatprep.mubr.bf16.mxu1 %v2191_v11  ;;  %v297_v56 = vmul.bf16 %v2882_v50, %v2882_v50 }
  0x8c   : > { %1338 = vmatpush1.bf16.msra.mxu0 %v2479_v13  ;;  %2297 = vmatpush1.bf16.msra.mxu1 %v2479_v13  ;;  %v2195_v48 = vcombine.high %v297_v56, %v298_v22  ;;  %v2194_v29 = vcombine.low %v297_v56, %v298_v22 }
  0x8f   : > { %1340 = vmatmul.mubr.bf16.vlgmr.msra.gmra.mrb[32].mxu0 %v2182_v55  ;;  %1380 = vmatmul.mubr.bf16.vlgmr.msra.gmra.mrb[32].mxu1 %v2190_v8  ;;  %v292_v55 = vmul.bf16 %v2819_v26, %v2819_v26  ;;  %v2968_v26 = vshrl.u32 %v993_v33, 7 }
  0x90   : > { %1349 = vmatprep.mubr.bf16.mxu0 %v2185_v19  ;;  %1389 = vmatprep.mubr.bf16.mxu1 %v2193_v20 }
  0x91   : > { %v2189_v30 = vcombine.high %v291_v52, %v292_v55  ;;  %v2188_v25 = vcombine.low %v291_v52, %v292_v55  ;;  %v995_v34 = vsub.s32 0, %v2968_v26  ;;  %v999_v36 = vsub.s32 1, %v2968_v26 }
  0x93   : > { %v2977_v37 = vrot.slane %v991_v35, %v995_v34  ;;  %v2981_v38 = vrot.slane %v991_v35, %v999_v36 }
  0x97   : > { %1350 = vmatmul.mubr.bf16.gmra.mrb[36].mxu0 %v2184_v23  ;;  %1390 = vmatmul.mubr.bf16.gmra.mrb[36].mxu1 %v2192_v24 }
  0x98   : > { %1359 = vmatprep.mubr.bf16.mxu0 %v2187_v27  ;;  %1399 = vmatprep.mubr.bf16.mxu1 %v2195_v48 }
  0x9f   : > { %1360 = vmatmul.mubr.bf16.gmra.mrb[40].mxu0 %v2186_v28  ;;  %1400 = vmatmul.mubr.bf16.gmra.mrb[40].mxu1 %v2194_v29 }
  0xa0   : > { %1369 = vmatprep.mubr.bf16.mxu0 %v2189_v30  ;;  %1409 = vmatprep.mubr.bf16.mxu1 %v2197_v31 }
  0xa7   : > { %1370 = vmatmul.mubr.bf16.gmra.mrb[44].mxu0 %v2188_v25  ;;  %1410 = vmatmul.mubr.bf16.gmra.mrb[44].mxu1 %v2196_v32 }
 0x122   : > { %v799_v39 = vpop.f32.mrb[0].mxu0  ;;  %v912_v40 = vpop.f32.mrb[0].mxu1 }
 0x123   : > { %v1003_v41 = vadd.f32 %v2977_v37, %v912_v40  ;;  %v801_v42 = vpop.f32.mrb[1].mxu0  ;;  %v914_v43 = vpop.f32.mrb[1].mxu1 }
 0x124   : > { %v1004_v44 = vadd.f32 %v2981_v38, %v914_v43  ;;  %v803_v45 = vpop.f32.mrb[2].mxu0  ;;  %v916_v46 = vpop.f32.mrb[2].mxu1 }
 0x125   : > { %v1005_v47 = vadd.f32 %v2977_v37, %v916_v46  ;;  %v805_v49 = vpop.f32.mrb[3].mxu0  ;;  %v918_v50 = vpop.f32.mrb[3].mxu1  ;;  %v2986_v51 = vmul.f32 %v1003_v41, %v799_v39 }
 0x126   : > { %v1006_v53 = vadd.f32 %v2981_v38, %v918_v50  ;;  %v2989_v54 = vmul.f32 %v1004_v44, %v801_v42 }
 0x127   : > { %v2991_v57 = vmul.f32 %v1005_v47, %v803_v45 }
 0x128   : > { %v2993_v58 = vmul.f32 %v1006_v53, %v805_v49 }
 0x12a   : > { %v809_v59 = vpop.f32.mrb[4].mxu0  ;;  %v922_v60 = vpop.f32.mrb[4].mxu1 }
 0x12b   : > { %v1007_v61 = vadd.f32 %v2977_v37, %v922_v60  ;;  %v811_v62 = vpop.f32.mrb[5].mxu0  ;;  %v924_v63 = vpop.f32.mrb[5].mxu1 }
 0x12c   : > { %v1008_v0 = vadd.f32 %v2981_v38, %v924_v63  ;;  %v813_v1 = vpop.f32.mrb[6].mxu0  ;;  %v926_v2 = vpop.f32.mrb[6].mxu1 }
 0x12d   : > { %v1009_v3 = vadd.f32 %v2977_v37, %v926_v2  ;;  %v815_v4 = vpop.f32.mrb[7].mxu0  ;;  %v928_v5 = vpop.f32.mrb[7].mxu1  ;;  %v2998_v6 = vmul.f32 %v1007_v61, %v809_v59 }
 0x12e   : > { %v1010_v7 = vadd.f32 %v2981_v38, %v928_v5  ;;  %v3001_v9 = vmul.f32 %v1008_v0, %v811_v62 }
 0x12f   : > { %v3003_v11 = vmul.f32 %v1009_v3, %v813_v1 }
 0x130   : > { %v3005_v12 = vmul.f32 %v1010_v7, %v815_v4 }
 0x132   : > { %v819_v13 = vpop.f32.mrb[8].mxu0  ;;  %v932_v14 = vpop.f32.mrb[8].mxu1 }
 0x133   : > { %v1011_v15 = vadd.f32 %v2977_v37, %v932_v14  ;;  %v821_v16 = vpop.f32.mrb[9].mxu0  ;;  %v934_v8 = vpop.f32.mrb[9].mxu1 }
 0x134   : > { %v1012_v19 = vadd.f32 %v2981_v38, %v934_v8  ;;  %v823_v20 = vpop.f32.mrb[10].mxu0  ;;  %v936_v10 = vpop.f32.mrb[10].mxu1 }
 0x135   : > { %v1013_v21 = vadd.f32 %v2977_v37, %v936_v10  ;;  %v825_v56 = vpop.f32.mrb[11].mxu0  ;;  %v938_v22 = vpop.f32.mrb[11].mxu1  ;;  %v3010_v23 = vmul.f32 %v1011_v15, %v819_v13 }
 0x136   : > { %v1014_v24 = vadd.f32 %v2981_v38, %v938_v22  ;;  %v3013_v27 = vmul.f32 %v1012_v19, %v821_v16 }
 0x137   : > { %v3015_v48 = vmul.f32 %v1013_v21, %v823_v20 }
 0x138   : > { %v3017_v52 = vmul.f32 %v1014_v24, %v825_v56 }
 0x13a   : > { %v829_v55 = vpop.f32.mrb[12].mxu0  ;;  %v942_v17 = vpop.f32.mrb[12].mxu1 }
 0x13b   : > { %v1015_v18 = vadd.f32 %v2977_v37, %v942_v17  ;;  %v831_v28 = vpop.f32.mrb[13].mxu0  ;;  %v944_v29 = vpop.f32.mrb[13].mxu1 }
 0x13c   : > { %v1016_v30 = vadd.f32 %v2981_v38, %v944_v29  ;;  %v833_v31 = vpop.f32.mrb[14].mxu0  ;;  %v946_v25 = vpop.f32.mrb[14].mxu1 }
 0x13d   : > { %v1017_v32 = vadd.f32 %v2977_v37, %v946_v25  ;;  %v835_v33 = vpop.f32.mrb[15].mxu0  ;;  %v948_v35 = vpop.f32.mrb[15].mxu1  ;;  %v3022_v39 = vmul.f32 %v1015_v18, %v829_v55 }
 0x13e   : > { %v1018_v40 = vadd.f32 %v2981_v38, %v948_v35  ;;  %v3025_v41 = vmul.f32 %v1016_v30, %v831_v28 }
 0x13f   : > { %v3027_v42 = vmul.f32 %v1017_v32, %v833_v31 }
 0x140   : > { %v3029_v43 = vmul.f32 %v1018_v40, %v835_v33 }
 0x141   : > { %3295 = vst [vmem:[#allocation2_spill] sm:$0xff] %v3027_v42 }
 0x142   : > { %3296 = vst [vmem:[#allocation3_spill] sm:$0xff] %v3029_v43  ;;  %v839_v44 = vpop.f32.mrb[16].mxu0  ;;  %v952_v45 = vpop.f32.mrb[16].mxu1 }
 0x143   : > { %v1019_v46 = vadd.f32 %v2977_v37, %v952_v45  ;;  %v841_v47 = vpop.f32.mrb[17].mxu0  ;;  %v954_v49 = vpop.f32.mrb[17].mxu1 }
 0x144   : > { %v1020_v50 = vadd.f32 %v2981_v38, %v954_v49  ;;  %v843_v53 = vpop.f32.mrb[18].mxu0  ;;  %v956_v59 = vpop.f32.mrb[18].mxu1 }
 0x145   : > { %v1021_v60 = vadd.f32 %v2977_v37, %v956_v59  ;;  %v845_v61 = vpop.f32.mrb[19].mxu0  ;;  %v958_v62 = vpop.f32.mrb[19].mxu1  ;;  %v1436_v63 = vmul.f32 %v1019_v46, %v839_v44 }
 0x146   : > { %v1022_v0 = vadd.f32 %v2981_v38, %v958_v62  ;;  %v1437_v1 = vmul.f32 %v1020_v50, %v841_v47 }
 0x147   : > { %v3035_v2 = vmul.f32 %v1021_v60, %v843_v53 }
 0x148   : > { %v3037_v3 = vmul.f32 %v1022_v0, %v845_v61 }
 0x14a   : > { %v849_v4 = vpop.f32.mrb[20].mxu0  ;;  %v962_v5 = vpop.f32.mrb[20].mxu1 }
 0x14b   : > { %v1023_v7 = vadd.f32 %v2977_v37, %v962_v5  ;;  %v851_v13 = vpop.f32.mrb[21].mxu0  ;;  %v964_v14 = vpop.f32.mrb[21].mxu1 }
 0x14c   : > { %v1024_v15 = vadd.f32 %v2981_v38, %v964_v14  ;;  %v853_v16 = vpop.f32.mrb[22].mxu0  ;;  %v966_v8 = vpop.f32.mrb[22].mxu1 }
 0x14d   : > { %v1025_v19 = vadd.f32 %v2977_v37, %v966_v8  ;;  %v855_v20 = vpop.f32.mrb[23].mxu0  ;;  %v968_v10 = vpop.f32.mrb[23].mxu1  ;;  %v3042_v21 = vmul.f32 %v1023_v7, %v849_v4 }
 0x14e   : > { %v1026_v56 = vadd.f32 %v2981_v38, %v968_v10  ;;  %v3045_v22 = vmul.f32 %v1024_v15, %v851_v13 }
 0x14f   : > { %v3047_v24 = vmul.f32 %v1025_v19, %v853_v16 }
 0x150   : > { %v3049_v55 = vmul.f32 %v1026_v56, %v855_v20  ;;  %v1676_v20 = vld [vmem:[%s3293_s4] sm:$0x3] }
 0x152   : > { %v859_v17 = vpop.f32.mrb[24].mxu0  ;;  %v972_v18 = vpop.f32.mrb[24].mxu1 }
 0x153   : > { %v1027_v28 = vadd.f32 %v2977_v37, %v972_v18  ;;  %v861_v29 = vpop.f32.mrb[25].mxu0  ;;  %v974_v30 = vpop.f32.mrb[25].mxu1 }
 0x154   : > { %v1028_v31 = vadd.f32 %v2981_v38, %v974_v30  ;;  %v863_v25 = vpop.f32.mrb[26].mxu0  ;;  %v976_v32 = vpop.f32.mrb[26].mxu1  ;;  %v3086_v30 = vrot.slane %v1676_v20, %v999_v36 }
 0x155   : > { %v1029_v33 = vadd.f32 %v2977_v37, %v976_v32  ;;  %v865_v35 = vpop.f32.mrb[27].mxu0  ;;  %v978_v40 = vpop.f32.mrb[27].mxu1  ;;  %v3054_v44 = vmul.f32 %v1027_v28, %v859_v17 }
 0x156   : > { %v1030_v45 = vadd.f32 %v2981_v38, %v978_v40  ;;  %v3057_v46 = vmul.f32 %v1028_v31, %v861_v29 }
 0x157   : > { %v3059_v47 = vmul.f32 %v1029_v33, %v863_v25 }
 0x158   : > { %v3061_v49 = vmul.f32 %v1030_v45, %v865_v35 }
 0x15a   : > { %v869_v50 = vpop.f32.mrb[28].mxu0  ;;  %v982_v53 = vpop.f32.mrb[28].mxu1 }
 0x15b   : > { %v1031_v59 = vadd.f32 %v2977_v37, %v982_v53  ;;  %v871_v60 = vpop.f32.mrb[29].mxu0  ;;  %v984_v61 = vpop.f32.mrb[29].mxu1 }
 0x15c   : > { %v1032_v62 = vadd.f32 %v2981_v38, %v984_v61  ;;  %v873_v0 = vpop.f32.mrb[30].mxu0  ;;  %v986_v4 = vpop.f32.mrb[30].mxu1 }
 0x15d   : > { %v1033_v5 = vadd.f32 %v2977_v37, %v986_v4  ;;  %v875_v7 = vpop.f32.mrb[31].mxu0  ;;  %v988_v13 = vpop.f32.mrb[31].mxu1  ;;  %v3066_v14 = vmul.f32 %v1031_v59, %v869_v50 }
 0x15e   : > { %v1034_v15 = vadd.f32 %v2981_v38, %v988_v13  ;;  %v3069_v16 = vmul.f32 %v1032_v62, %v871_v60  ;;  %v3081_v38 = vrot.slane %v1676_v20, %v995_v34 }
 0x15f   : > { %v3071_v8 = vmul.f32 %v1033_v5, %v873_v0 }
 0x160   : > { %v3073_v19 = vmul.f32 %v1034_v15, %v875_v7 }
 0x161   : > { %3297 = vst [vmem:[#allocation4_spill] sm:$0xff] %v3071_v8 }
 0x162   : > { %3298 = vst [vmem:[#allocation5_spill] sm:$0xff] %v3073_v19  ;;  %v1341_v10 = vpop.f32.mrb[32].mxu0  ;;  %v1381_v56 = vpop.f32.mrb[32].mxu1 }
 0x163   : > { %v1452_v37 = vadd.f32 %v2986_v51, %v1341_v10  ;;  %v1468_v17 = vadd.f32 %v1436_v63, %v1381_v56  ;;  %v1343_v18 = vpop.f32.mrb[33].mxu0  ;;  %v1383_v28 = vpop.f32.mrb[33].mxu1 }
 0x164   : > { %v1453_v29 = vadd.f32 %v2989_v54, %v1343_v18  ;;  %v1469_v31 = vadd.f32 %v1437_v1, %v1383_v28  ;;  %v1345_v25 = vpop.f32.mrb[34].mxu0  ;;  %v1385_v32 = vpop.f32.mrb[34].mxu1 }
 0x165   : > { %v1484_v33 = vrot.slane %v1452_v37, 4  ;;  %v1580_v35 = vrot.slane %v1468_v17, 4  ;;  %v1454_v51 = vadd.f32 %v2991_v57, %v1345_v25  ;;  %v1470_v63 = vadd.f32 %v3035_v2, %v1385_v32  ;;  %v1347_v40 = vpop.f32.mrb[35].mxu0  ;;  %v1387_v45 = vpop.f32.mrb[35].mxu1 }
 0x166   : > { %v1490_v50 = vrot.slane %v1453_v29, 4  ;;  %v1586_v34 = vrot.slane %v1469_v31, 4  ;;  %v1455_v53 = vadd.f32 %v2993_v58, %v1347_v40  ;;  %v1471_v54 = vadd.f32 %v3037_v3, %v1387_v45 }
 0x167   : > { %v1485_v26 = vmax.f32 %v1452_v37, %v1484_v33  ;;  %v1581_v36 = vmax.f32 %v1468_v17, %v1580_v35  ;;  %v1496_v59 = vrot.slane %v1454_v51, 4  ;;  %v1592_v1 = vrot.slane %v1470_v63, 4 }
 0x168   : > { %v1491_v60 = vmax.f32 %v1453_v29, %v1490_v50  ;;  %v1587_v61 = vmax.f32 %v1469_v31, %v1586_v34  ;;  %v1502_v62 = vrot.slane %v1455_v53, 4  ;;  %v1598_v0 = vrot.slane %v1471_v54, 4 }
 0x169   : > { %v1486_v4 = vrot.slane %v1485_v26, 2  ;;  %v1582_v57 = vrot.slane %v1581_v36, 2  ;;  %v1497_v5 = vmax.f32 %v1454_v51, %v1496_v59  ;;  %v1593_v2 = vmax.f32 %v1470_v63, %v1592_v1 }
 0x16a   : > { %v1492_v7 = vrot.slane %v1491_v60, 2  ;;  %v1588_v13 = vrot.slane %v1587_v61, 2  ;;  %v1503_v15 = vmax.f32 %v1455_v53, %v1502_v62  ;;  %v1599_v20 = vmax.f32 %v1471_v54, %v1598_v0  ;;  %v3092_v10 = vpop.f32.mrb[36].mxu0  ;;  %v3094_v58 = vpop.f32.mrb[36].mxu1 }
 0x16b   : > { %v1487_v3 = vmax.f32 %v1485_v26, %v1486_v4  ;;  %v1583_v56 = vmax.f32 %v1581_v36, %v1582_v57  ;;  %v1498_v37 = vrot.slane %v1497_v5, 2  ;;  %v1594_v17 = vrot.slane %v1593_v2, 2  ;;  %v3096_v18 = vpop.f32.mrb[37].mxu0  ;;  %v3098_v28 = vpop.f32.mrb[37].mxu1 }
 0x16c   : > { %v1493_v29 = vmax.f32 %v1491_v60, %v1492_v7  ;;  %v1589_v31 = vmax.f32 %v1587_v61, %v1588_v13  ;;  %v1504_v25 = vrot.slane %v1503_v15, 2  ;;  %v1600_v32 = vrot.slane %v1599_v20, 2  ;;  %v3100_v33 = vpop.f32.mrb[38].mxu0  ;;  %v3102_v35 = vpop.f32.mrb[38].mxu1 }
 0x16d   : > { %v1488_v51 = vrot.slane %v1487_v3, 1  ;;  %v1584_v63 = vrot.slane %v1583_v56, 1  ;;  %v1499_v40 = vmax.f32 %v1497_v5, %v1498_v37  ;;  %v1595_v45 = vmax.f32 %v1593_v2, %v1594_v17  ;;  %v3104_v50 = vpop.f32.mrb[39].mxu0  ;;  %v3106_v34 = vpop.f32.mrb[39].mxu1 }
 0x16e   : > { %v1494_v53 = vrot.slane %v1493_v29, 1  ;;  %v1590_v54 = vrot.slane %v1589_v31, 1  ;;  %v1505_v26 = vmax.f32 %v1503_v15, %v1504_v25  ;;  %v1601_v36 = vmax.f32 %v1599_v20, %v1600_v32 }
 0x16f   : > { %v1489_v59 = vmax.f32 %v1487_v3, %v1488_v51  ;;  %v1585_v1 = vmax.f32 %v1583_v56, %v1584_v63  ;;  %v1500_v60 = vrot.slane %v1499_v40, 1  ;;  %v1596_v61 = vrot.slane %v1595_v45, 1 }
 0x170   : > { %v1495_v62 = vmax.f32 %v1493_v29, %v1494_v53  ;;  %v1591_v0 = vmax.f32 %v1589_v31, %v1590_v54  ;;  %v1506_v4 = vrot.slane %v1505_v26, 1  ;;  %v1602_v57 = vrot.slane %v1601_v36, 1 }
 0x171   : > { %v1688_v7 = vadd.f32 %v3081_v38, %v1489_v59  ;;  %v1704_v5 = vadd.f32 %v3081_v38, %v1585_v1  ;;  %v1501_v2 = vmax.f32 %v1499_v40, %v1500_v60  ;;  %v1597_v13 = vmax.f32 %v1595_v45, %v1596_v61 }
 0x172   : > { %v1689_v37 = vadd.f32 %v3086_v30, %v1495_v62  ;;  %v1705_v17 = vadd.f32 %v3086_v30, %v1591_v0  ;;  %v1507_v15 = vmax.f32 %v1505_v26, %v1506_v4  ;;  %v1603_v20 = vmax.f32 %v1601_v36, %v1602_v57  ;;  %v3112_v3 = vpop.f32.mrb[40].mxu0  ;;  %v3114_v56 = vpop.f32.mrb[40].mxu1 }
 0x173   : > { %v1720_v29 = vmul.f32 0.2, %v1688_v7  ;;  %v1736_v31 = vmul.f32 0.2, %v1704_v5  ;;  %v1690_v25 = vadd.f32 %v3081_v38, %v1501_v2  ;;  %v1706_v32 = vadd.f32 %v3081_v38, %v1597_v13  ;;  %v3118_v51 = vpop.f32.mrb[41].mxu0  ;;  %v3120_v63 = vpop.f32.mrb[41].mxu1 }
 0x174   : > { %v1721_v40 = vmul.f32 0.2, %v1689_v37  ;;  %v1737_v45 = vmul.f32 0.2, %v1705_v17  ;;  %v1691_v53 = vadd.f32 %v3086_v30, %v1507_v15  ;;  %v1707_v54 = vadd.f32 %v3086_v30, %v1603_v20  ;;  %v3124_v26 = vpop.f32.mrb[42].mxu0  ;;  %v3126_v36 = vpop.f32.mrb[42].mxu1 }
 0x175   : > { %v1752_v59 = vmax.f32 %v1688_v7, %v1720_v29  ;;  %v1768_v1 = vmax.f32 %v1704_v5, %v1736_v31  ;;  %v1722_v60 = vmul.f32 0.2, %v1690_v25  ;;  %v1738_v61 = vmul.f32 0.2, %v1706_v32  ;;  %v3128_v62 = vpop.f32.mrb[43].mxu0  ;;  %v3130_v0 = vpop.f32.mrb[43].mxu1 }
 0x176   : > { %v1753_v4 = vmax.f32 %v1689_v37, %v1721_v40  ;;  %v1769_v57 = vmax.f32 %v1705_v17, %v1737_v45  ;;  %v1723_v2 = vmul.f32 0.2, %v1691_v53  ;;  %v1739_v13 = vmul.f32 0.2, %v1707_v54 }
 0x177   : > { %v1754_v15 = vmax.f32 %v1690_v25, %v1722_v60  ;;  %v1770_v19 = vmax.f32 %v1706_v32, %v1738_v61  ;;  %v1456_v20 = vadd.f32 %v2998_v6, %v3092_v10  ;;  %v1472_v7 = vadd.f32 %v3042_v21, %v3094_v58 }
 0x178   : > { %v2250_v5 = vpack.c.bf16 %v1753_v4, %v1752_v59  ;;  %v2258_v29 = vpack.c.bf16 %v1769_v57, %v1768_v1  ;;  %v1755_v31 = vmax.f32 %v1691_v53, %v1723_v2  ;;  %v1771_v43 = vmax.f32 %v1707_v54, %v1739_v13 }
 0x179   : > { %v1508_v8 = vrot.slane %v1456_v20, 4  ;;  %v1604_v42 = vrot.slane %v1472_v7, 4  ;;  %v1457_v37 = vadd.f32 %v3001_v9, %v3096_v18  ;;  %v1473_v17 = vadd.f32 %v3045_v22, %v3098_v28 }
 0x17a   : > { %v1896_v25 = vunpack.c.l.b16 %v2250_v5  ;;  %v1897_v32 = vunpack.c.h.b16 %v2250_v5  ;;  %v1912_v40 = vunpack.c.l.b16 %v2258_v29  ;;  %v1913_v45 = vunpack.c.h.b16 %v2258_v29  ;;  %v3140_v6 = vpop.f32.mrb[44].mxu0  ;;  %v3142_v10 = vpop.f32.mrb[44].mxu1 }
 0x17b   : > { %v2251_v21 = vpack.c.bf16 %v1755_v31, %v1754_v15  ;;  %v2259_v58 = vpack.c.bf16 %v1771_v43, %v1770_v19  ;;  %v1509_v53 = vmax.f32 %v1456_v20, %v1508_v8  ;;  %v1605_v54 = vmax.f32 %v1472_v7, %v1604_v42  ;;  %v3144_v59 = vpop.f32.mrb[45].mxu0  ;;  %v3146_v1 = vpop.f32.mrb[45].mxu1 }
 0x17c   : > { %v1514_v9 = vrot.slane %v1457_v37, 4  ;;  %v1610_v18 = vrot.slane %v1473_v17, 4  ;;  %v1458_v22 = vadd.f32 %v3003_v11, %v3100_v33  ;;  %v1474_v28 = vadd.f32 %v3047_v24, %v3102_v35  ;;  %v3152_v60 = vpop.f32.mrb[46].mxu0  ;;  %v3154_v61 = vpop.f32.mrb[46].mxu1 }
 0x17d   : > { %v1898_v4 = vunpack.c.l.b16 %v2251_v21  ;;  %v1899_v43 = vunpack.c.h.b16 %v2251_v21  ;;  %v1914_v8 = vunpack.c.l.b16 %v2259_v58  ;;  %v1915_v42 = vunpack.c.h.b16 %v2259_v58  ;;  %v3156_v19 = vpop.f32.mrb[47].mxu0  ;;  %v3158_v57 = vpop.f32.mrb[47].mxu1 }
 0x17e   : > { %3299 = vst [vmem:[#allocation6_spill] sm:$0xff] %v3158_v57  ;;  %v1510_v2 = vrot.slane %v1509_v53, 2  ;;  %v1606_v13 = vrot.slane %v1605_v54, 2  ;;  %v1515_v15 = vmax.f32 %v1457_v37, %v1514_v9  ;;  %v1611_v20 = vmax.f32 %v1473_v17, %v1610_v18 }
 0x17f   : > { %v1928_v11 = vrot.slane %v1898_v4, 7  ;;  %v1949_v33 = vrot.slane %v1899_v43, 7  ;;  %v1963_v7 = vrot.slane %v1914_v8, 7  ;;  %v1977_v24 = vrot.slane %v1915_v42, 7 }
 0x180   : > { %v1511_v35 = vmax.f32 %v1509_v53, %v1510_v2  ;;  %v1607_v5 = vmax.f32 %v1605_v54, %v1606_v13  ;;  %v1516_v29 = vrot.slane %v1515_v15, 2  ;;  %v1612_v31 = vrot.slane %v1611_v20, 2 }
 0x181   : > { %v3161_v21 = vsel %vm1929_vm0, %v1928_v11, %v1896_v25  ;;  %v3164_v58 = vsel %vm1929_vm0, %v1949_v33, %v1897_v32  ;;  %v3167_v57 = vsel %vm1929_vm0, %v1963_v7, %v1912_v40  ;;  %v3170_v37 = vsel %vm1929_vm0, %v1977_v24, %v1913_v45 }
 0x182   : > { %v1512_v17 = vrot.slane %v1511_v35, 1  ;;  %v1608_v9 = vrot.slane %v1607_v5, 1  ;;  %v1517_v18 = vmax.f32 %v1515_v15, %v1516_v29  ;;  %v1613_v4 = vmax.f32 %v1611_v20, %v1612_v31 }
 0x183   : > { %v1520_v53 = vrot.slane %v1458_v22, 4  ;;  %v1616_v54 = vrot.slane %v1474_v28, 4  ;;  %v1459_v43 = vadd.f32 %v3005_v12, %v3104_v50  ;;  %v1475_v25 = vadd.f32 %v3049_v55, %v3106_v34 }
 0x184   : > { %v1513_v32 = vmax.f32 %v1511_v35, %v1512_v17  ;;  %v1609_v8 = vmax.f32 %v1607_v5, %v1608_v9  ;;  %v1518_v42 = vrot.slane %v1517_v18, 1  ;;  %v1614_v40 = vrot.slane %v1613_v4, 1 }
 0x185   : > { %v1521_v2 = vmax.f32 %v1458_v22, %v1520_v53  ;;  %v1617_v13 = vmax.f32 %v1474_v28, %v1616_v54  ;;  %v1526_v45 = vrot.slane %v1459_v43, 4  ;;  %v1622_v11 = vrot.slane %v1475_v25, 4 }
 0x186   : > { %v1692_v33 = vadd.f32 %v3081_v38, %v1513_v32  ;;  %v1708_v15 = vadd.f32 %v3081_v38, %v1609_v8  ;;  %v1519_v20 = vmax.f32 %v1517_v18, %v1518_v42  ;;  %v1615_v7 = vmax.f32 %v1613_v4, %v1614_v40 }
 0x187   : > { %v1522_v24 = vrot.slane %v1521_v2, 2  ;;  %v1618_v29 = vrot.slane %v1617_v13, 2  ;;  %v1527_v12 = vmax.f32 %v1459_v43, %v1526_v45  ;;  %v1623_v50 = vmax.f32 %v1475_v25, %v1622_v11 }
 0x188   : > { %v1724_v31 = vmul.f32 0.2, %v1692_v33  ;;  %v1740_v55 = vmul.f32 0.2, %v1708_v15  ;;  %v1693_v34 = vadd.f32 %v3086_v30, %v1519_v20  ;;  %v1709_v35 = vadd.f32 %v3086_v30, %v1615_v7 }
 0x189   : > { %v1523_v22 = vmax.f32 %v1521_v2, %v1522_v24  ;;  %v1619_v28 = vmax.f32 %v1617_v13, %v1618_v29  ;;  %v1528_v5 = vrot.slane %v1527_v12, 2  ;;  %v1624_v17 = vrot.slane %v1623_v50, 2 }
 0x18a   : > { %v1756_v9 = vmax.f32 %v1692_v33, %v1724_v31  ;;  %v1772_v53 = vmax.f32 %v1708_v15, %v1740_v55  ;;  %v1725_v54 = vmul.f32 0.2, %v1693_v34  ;;  %v1741_v18 = vmul.f32 0.2, %v1709_v35 }
 0x18b   : > { %v1524_v4 = vrot.slane %v1523_v22, 1  ;;  %v1620_v32 = vrot.slane %v1619_v28, 1  ;;  %v1529_v8 = vmax.f32 %v1527_v12, %v1528_v5  ;;  %v1625_v43 = vmax.f32 %v1623_v50, %v1624_v17 }
 0x18c   : > { %v1757_v25 = vmax.f32 %v1693_v34, %v1725_v54  ;;  %v1773_v42 = vmax.f32 %v1709_v35, %v1741_v18  ;;  %v1460_v40 = vadd.f32 %v3010_v23, %v3112_v3  ;;  %v1476_v45 = vadd.f32 %v3054_v44, %v3114_v56 }
 0x18d   : > { %v1525_v2 = vmax.f32 %v1523_v22, %v1524_v4  ;;  %v1621_v13 = vmax.f32 %v1619_v28, %v1620_v32  ;;  %v1530_v11 = vrot.slane %v1529_v8, 1  ;;  %v1626_v20 = vrot.slane %v1625_v43, 1 }
 0x18e   : > { %v2252_v33 = vpack.c.bf16 %v1757_v25, %v1756_v9  ;;  %v2260_v15 = vpack.c.bf16 %v1773_v42, %v1772_v53  ;;  %v1532_v7 = vrot.slane %v1460_v40, 4  ;;  %v1628_v24 = vrot.slane %v1476_v45, 4 }
 0x18f   : > { %v1694_v29 = vadd.f32 %v3081_v38, %v1525_v2  ;;  %v1710_v12 = vadd.f32 %v3081_v38, %v1621_v13  ;;  %v1531_v50 = vmax.f32 %v1529_v8, %v1530_v11  ;;  %v1627_v31 = vmax.f32 %v1625_v43, %v1626_v20 }
 0x190   : > { %v1900_v55 = vunpack.c.l.b16 %v2252_v33  ;;  %v1901_v34 = vunpack.c.h.b16 %v2252_v33  ;;  %v1916_v23 = vunpack.c.l.b16 %v2260_v15  ;;  %v1917_v3 = vunpack.c.h.b16 %v2260_v15 }
 0x191   : > { %v1726_v35 = vmul.f32 0.2, %v1694_v29  ;;  %v1742_v44 = vmul.f32 0.2, %v1710_v12  ;;  %v1695_v56 = vadd.f32 %v3086_v30, %v1531_v50  ;;  %v1711_v22 = vadd.f32 %v3086_v30, %v1627_v31 }
 0x192   : > { %v1931_v28 = vrot.slane %v1900_v55, 6  ;;  %v1951_v5 = vrot.slane %v1901_v34, 6  ;;  %v1965_v17 = vrot.slane %v1916_v23, 6  ;;  %v1979_v9 = vrot.slane %v1917_v3, 6 }
 0x193   : > { %v1758_v53 = vmax.f32 %v1694_v29, %v1726_v35  ;;  %v1774_v54 = vmax.f32 %v1710_v12, %v1742_v44  ;;  %v1727_v18 = vmul.f32 0.2, %v1695_v56  ;;  %v1743_v4 = vmul.f32 0.2, %v1711_v22 }
 0x194   : > { %v1933_v32 = vsel %vm1932_vm1, %v1931_v28, %v3161_v21  ;;  %v1952_v8 = vsel %vm1932_vm1, %v1951_v5, %v3164_v58  ;;  %v1966_v43 = vsel %vm1932_vm1, %v1965_v17, %v3167_v57  ;;  %v1980_v25 = vsel %vm1932_vm1, %v1979_v9, %v3170_v37 }
 0x195   : > { %v1759_v42 = vmax.f32 %v1695_v56, %v1727_v18  ;;  %v1775_v2 = vmax.f32 %v1711_v22, %v1743_v4  ;;  %v1533_v13 = vmax.f32 %v1460_v40, %v1532_v7  ;;  %v1629_v11 = vmax.f32 %v1476_v45, %v1628_v24 }
 0x196   : > { %v1461_v20 = vadd.f32 %v3013_v27, %v3118_v51  ;;  %v1477_v33 = vadd.f32 %v3057_v46, %v3120_v63  ;;  %v1462_v21 = vadd.f32 %v3015_v48, %v3124_v26  ;;  %v1478_v58 = vadd.f32 %v3059_v47, %v3126_v36 }
 0x197   : > { %v2253_v57 = vpack.c.bf16 %v1759_v42, %v1758_v53  ;;  %v2261_v15 = vpack.c.bf16 %v1775_v2, %v1774_v54  ;;  %v1534_v29 = vrot.slane %v1533_v13, 2  ;;  %v1630_v37 = vrot.slane %v1629_v11, 2 }
 0x198   : > { %v1538_v12 = vrot.slane %v1461_v20, 4  ;;  %v1634_v50 = vrot.slane %v1477_v33, 4  ;;  %v1544_v40 = vrot.slane %v1462_v21, 4  ;;  %v1640_v45 = vrot.slane %v1478_v58, 4 }
 0x199   : > { %v1902_v7 = vunpack.c.l.b16 %v2253_v57  ;;  %v1903_v24 = vunpack.c.h.b16 %v2253_v57  ;;  %v1918_v27 = vunpack.c.l.b16 %v2261_v15  ;;  %v1919_v51 = vunpack.c.h.b16 %v2261_v15 }
 0x19a   : > { %v1535_v31 = vmax.f32 %v1533_v13, %v1534_v29  ;;  %v1631_v46 = vmax.f32 %v1629_v11, %v1630_v37  ;;  %v1539_v63 = vmax.f32 %v1461_v20, %v1538_v12  ;;  %v1635_v55 = vmax.f32 %v1477_v33, %v1634_v50 }
 0x19b   : > { %v1934_v48 = vrot.slane %v1902_v7, 5  ;;  %v1953_v26 = vrot.slane %v1903_v24, 5  ;;  %v1967_v34 = vrot.slane %v1918_v27, 5  ;;  %v1981_v47 = vrot.slane %v1919_v51, 5 }
 0x19c   : > { %v1536_v36 = vrot.slane %v1535_v31, 1  ;;  %v1632_v23 = vrot.slane %v1631_v46, 1  ;;  %v1540_v3 = vrot.slane %v1539_v63, 2  ;;  %v1636_v35 = vrot.slane %v1635_v55, 2 }
 0x19d   : > { %v3205_v44 = vsel %vm1935_vm2, %v1934_v48, %v1933_v32  ;;  %v3208_v56 = vsel %vm1935_vm2, %v1953_v26, %v1952_v8  ;;  %v3211_v22 = vsel %vm1935_vm2, %v1967_v34, %v1966_v43  ;;  %v3214_v28 = vsel %vm1935_vm2, %v1981_v47, %v1980_v25 }
 0x19e   : > { %v1537_v5 = vmax.f32 %v1535_v31, %v1536_v36  ;;  %v1633_v17 = vmax.f32 %v1631_v46, %v1632_v23  ;;  %v1541_v9 = vmax.f32 %v1539_v63, %v1540_v3  ;;  %v1637_v53 = vmax.f32 %v1635_v55, %v1636_v35 }
 0x19f   : > { %v1545_v54 = vmax.f32 %v1462_v21, %v1544_v40  ;;  %v1641_v18 = vmax.f32 %v1478_v58, %v1640_v45  ;;  %v1463_v4 = vadd.f32 %v3017_v52, %v3128_v62  ;;  %v1479_v32 = vadd.f32 %v3061_v49, %v3130_v0 }
 0x1a0   : > { %v1696_v8 = vadd.f32 %v3081_v38, %v1537_v5  ;;  %v1712_v43 = vadd.f32 %v3081_v38, %v1633_v17  ;;  %v1542_v42 = vrot.slane %v1541_v9, 1  ;;  %v1638_v2 = vrot.slane %v1637_v53, 1 }
 0x1a1   : > { %v1546_v25 = vrot.slane %v1545_v54, 2  ;;  %v1642_v13 = vrot.slane %v1641_v18, 2  ;;  %v1550_v11 = vrot.slane %v1463_v4, 4  ;;  %v1646_v20 = vrot.slane %v1479_v32, 4 }
 0x1a2   : > { %v1728_v33 = vmul.f32 0.2, %v1696_v8  ;;  %v1744_v57 = vmul.f32 0.2, %v1712_v43  ;;  %v1543_v21 = vmax.f32 %v1541_v9, %v1542_v42  ;;  %v1639_v58 = vmax.f32 %v1637_v53, %v1638_v2 }
 0x1a3   : > { %v1547_v15 = vmax.f32 %v1545_v54, %v1546_v25  ;;  %v1643_v29 = vmax.f32 %v1641_v18, %v1642_v13  ;;  %v1551_v52 = vmax.f32 %v1463_v4, %v1550_v11  ;;  %v1647_v62 = vmax.f32 %v1479_v32, %v1646_v20 }
 0x1a4   : > { %v1760_v37 = vmax.f32 %v1696_v8, %v1728_v33  ;;  %v1776_v49 = vmax.f32 %v1712_v43, %v1744_v57  ;;  %v1697_v0 = vadd.f32 %v3086_v30, %v1543_v21  ;;  %v1713_v12 = vadd.f32 %v3086_v30, %v1639_v58 }
 0x1a5   : > { %v1548_v50 = vrot.slane %v1547_v15, 1  ;;  %v1644_v40 = vrot.slane %v1643_v29, 1  ;;  %v1552_v45 = vrot.slane %v1551_v52, 2  ;;  %v1648_v7 = vrot.slane %v1647_v62, 2 }
 0x1a6   : > { %v1729_v24 = vmul.f32 0.2, %v1697_v0  ;;  %v1745_v27 = vmul.f32 0.2, %v1713_v12  ;;  %v1464_v51 = vadd.f32 %v3022_v39, %v3140_v6  ;;  %v1480_v31 = vadd.f32 %v3066_v14, %v3142_v10 }
 0x1a7   : > { %v1549_v46 = vmax.f32 %v1547_v15, %v1548_v50  ;;  %v1645_v63 = vmax.f32 %v1643_v29, %v1644_v40  ;;  %v1553_v55 = vmax.f32 %v1551_v52, %v1552_v45  ;;  %v1649_v48 = vmax.f32 %v1647_v62, %v1648_v7 }
 0x1a8   : > { %v1761_v26 = vmax.f32 %v1697_v0, %v1729_v24  ;;  %v1777_v34 = vmax.f32 %v1713_v12, %v1745_v27  ;;  %v1556_v47 = vrot.slane %v1464_v51, 4  ;;  %v1652_v36 = vrot.slane %v1480_v31, 4 }
 0x1a9   : > { %v1698_v23 = vadd.f32 %v3081_v38, %v1549_v46  ;;  %v1714_v3 = vadd.f32 %v3081_v38, %v1645_v63  ;;  %v1554_v35 = vrot.slane %v1553_v55, 1  ;;  %v1650_v5 = vrot.slane %v1649_v48, 1 }
 0x1aa   : > { %v2254_v17 = vpack.c.bf16 %v1761_v26, %v1760_v37  ;;  %v2262_v9 = vpack.c.bf16 %v1777_v34, %v1776_v49  ;;  %v1557_v39 = vmax.f32 %v1464_v51, %v1556_v47  ;;  %v1653_v6 = vmax.f32 %v1480_v31, %v1652_v36 }
 0x1ab   : > { %v1730_v53 = vmul.f32 0.2, %v1698_v23  ;;  %v1746_v14 = vmul.f32 0.2, %v1714_v3  ;;  %v1555_v10 = vmax.f32 %v1553_v55, %v1554_v35  ;;  %v1651_v54 = vmax.f32 %v1649_v48, %v1650_v5 }
 0x1ac   : > { %v1904_v18 = vunpack.c.l.b16 %v2254_v17  ;;  %v1905_v4 = vunpack.c.h.b16 %v2254_v17  ;;  %v1920_v32 = vunpack.c.l.b16 %v2262_v9  ;;  %v1921_v8 = vunpack.c.h.b16 %v2262_v9 }
 0x1ad   : > { %v1762_v43 = vmax.f32 %v1698_v23, %v1730_v53  ;;  %v1778_v42 = vmax.f32 %v1714_v3, %v1746_v14  ;;  %v1699_v2 = vadd.f32 %v3086_v30, %v1555_v10  ;;  %v1715_v25 = vadd.f32 %v3086_v30, %v1651_v54 }
 0x1ae   : > { %v1937_v13 = vrot.slane %v1904_v18, 4  ;;  %v1955_v11 = vrot.slane %v1905_v4, 4  ;;  %v1969_v20 = vrot.slane %v1920_v32, 4  ;;  %v1983_v33 = vrot.slane %v1921_v8, 4  ;;  %v3302_v4 = vld [vmem:[#allocation3_spill] sm:$0xff]  ;;  %v3303_v8 = vld [vmem:[#allocation6_spill] sm:$0xff] }
 0x1af   : > { %v1731_v57 = vmul.f32 0.2, %v1699_v2  ;;  %v1747_v21 = vmul.f32 0.2, %v1715_v25  ;;  %v1558_v58 = vrot.slane %v1557_v39, 2  ;;  %v1654_v15 = vrot.slane %v1653_v6, 2 }
 0x1b0   : > { %v1939_v29 = vsel %vm1938_vm3, %v1937_v13, %v3205_v44  ;;  %v1956_v52 = vsel %vm1938_vm3, %v1955_v11, %v3208_v56  ;;  %v1970_v62 = vsel %vm1938_vm3, %v1969_v20, %v3211_v22  ;;  %v1984_v37 = vsel %vm1938_vm3, %v1983_v33, %v3214_v28  ;;  %v3300_v44 = vld [vmem:[#allocation2_spill] sm:$0xff]  ;;  %v3301_v56 = vld [vmem:[#allocation4_spill] sm:$0xff] }
 0x1b1   : > { %v1763_v49 = vmax.f32 %v1699_v2, %v1731_v57  ;;  %v1779_v0 = vmax.f32 %v1715_v25, %v1747_v21  ;;  %v1559_v12 = vmax.f32 %v1557_v39, %v1558_v58  ;;  %v1655_v50 = vmax.f32 %v1653_v6, %v1654_v15 }
 0x1b2   : > { %v1465_v40 = vadd.f32 %v3025_v41, %v3144_v59  ;;  %v1481_v45 = vadd.f32 %v3069_v16, %v3146_v1  ;;  %v1466_v7 = vadd.f32 %v3300_v44, %v3152_v60  ;;  %v1482_v24 = vadd.f32 %v3301_v56, %v3154_v61 }
 0x1b3   : > { %v2255_v22 = vpack.c.bf16 %v1763_v49, %v1762_v43  ;;  %v2263_v27 = vpack.c.bf16 %v1779_v0, %v1778_v42  ;;  %v1560_v51 = vrot.slane %v1559_v12, 1  ;;  %v1656_v28 = vrot.slane %v1655_v50, 1  ;;  %v3304_v43 = vld [vmem:[#allocation5_spill] sm:$0xff] }
 0x1b4   : > { %v1562_v31 = vrot.slane %v1465_v40, 4  ;;  %v1658_v46 = vrot.slane %v1481_v45, 4  ;;  %v1568_v63 = vrot.slane %v1466_v7, 4  ;;  %v1664_v55 = vrot.slane %v1482_v24, 4 }
 0x1b5   : > { %v1906_v48 = vunpack.c.l.b16 %v2255_v22  ;;  %v1907_v26 = vunpack.c.h.b16 %v2255_v22  ;;  %v1922_v41 = vunpack.c.l.b16 %v2263_v27  ;;  %v1923_v59 = vunpack.c.h.b16 %v2263_v27 }
 0x1b6   : > { %v1561_v34 = vmax.f32 %v1559_v12, %v1560_v51  ;;  %v1657_v16 = vmax.f32 %v1655_v50, %v1656_v28  ;;  %v1563_v1 = vmax.f32 %v1465_v40, %v1562_v31  ;;  %v1659_v47 = vmax.f32 %v1481_v45, %v1658_v46 }
 0x1b7   : > { %v1940_v60 = vrot.slane %v1906_v48, 3  ;;  %v1957_v36 = vrot.slane %v1907_v26, 3  ;;  %v1971_v23 = vrot.slane %v1922_v41, 3  ;;  %v1985_v61 = vrot.slane %v1923_v59, 3 }
 0x1b8   : > { %v1564_v3 = vrot.slane %v1563_v1, 2  ;;  %v1660_v35 = vrot.slane %v1659_v47, 2  ;;  %v1700_v6 = vadd.f32 %v3081_v38, %v1561_v34  ;;  %v1716_v53 = vadd.f32 %v3081_v38, %v1657_v16 }
 0x1b9   : > { %v3249_v5 = vsel %vm1941_vm4, %v1940_v60, %v1939_v29  ;;  %v3252_v17 = vsel %vm1941_vm4, %v1957_v36, %v1956_v52  ;;  %v3255_v9 = vsel %vm1941_vm4, %v1971_v23, %v1970_v62  ;;  %v3258_v39 = vsel %vm1941_vm4, %v1985_v61, %v1984_v37 }
 0x1ba   : > { %v1565_v14 = vmax.f32 %v1563_v1, %v1564_v3  ;;  %v1661_v10 = vmax.f32 %v1659_v47, %v1660_v35  ;;  %v1569_v54 = vmax.f32 %v1466_v7, %v1568_v63  ;;  %v1665_v18 = vmax.f32 %v1482_v24, %v1664_v55 }
 0x1bb   : > { %v1467_v32 = vadd.f32 %v3302_v4, %v3156_v19  ;;  %v1483_v42 = vadd.f32 %v3304_v43, %v3303_v8  ;;  %v1732_v57 = vmul.f32 0.2, %v1700_v6  ;;  %v1748_v21 = vmul.f32 0.2, %v1716_v53 }
 0x1bc   : > { %v1566_v2 = vrot.slane %v1565_v14, 1  ;;  %v1662_v25 = vrot.slane %v1661_v10, 1  ;;  %v1570_v13 = vrot.slane %v1569_v54, 2  ;;  %v1666_v11 = vrot.slane %v1665_v18, 2 }
 0x1bd   : > { %v1574_v20 = vrot.slane %v1467_v32, 4  ;;  %v1670_v33 = vrot.slane %v1483_v42, 4  ;;  %v1764_v45 = vmax.f32 %v1700_v6, %v1732_v57  ;;  %v1780_v44 = vmax.f32 %v1716_v53, %v1748_v21 }
 0x1be   : > { %v1567_v58 = vmax.f32 %v1565_v14, %v1566_v2  ;;  %v1663_v15 = vmax.f32 %v1661_v10, %v1662_v25  ;;  %v1571_v29 = vmax.f32 %v1569_v54, %v1570_v13  ;;  %v1667_v52 = vmax.f32 %v1665_v18, %v1666_v11 }
 0x1bf   : > { %v1575_v62 = vmax.f32 %v1467_v32, %v1574_v20  ;;  %v1671_v37 = vmax.f32 %v1483_v42, %v1670_v33 }
 0x1c0   : > { %v1701_v49 = vadd.f32 %v3086_v30, %v1567_v58  ;;  %v1717_v19 = vadd.f32 %v3086_v30, %v1663_v15  ;;  %v1572_v0 = vrot.slane %v1571_v29, 1  ;;  %v1668_v12 = vrot.slane %v1667_v52, 1 }
 0x1c1   : > { %v1576_v50 = vrot.slane %v1575_v62, 2  ;;  %v1672_v40 = vrot.slane %v1671_v37, 2 }
 0x1c2   : > { %v1733_v7 = vmul.f32 0.2, %v1701_v49  ;;  %v1749_v56 = vmul.f32 0.2, %v1717_v19  ;;  %v1573_v24 = vmax.f32 %v1571_v29, %v1572_v0  ;;  %v1669_v22 = vmax.f32 %v1667_v52, %v1668_v12 }
 0x1c3   : > { %v1577_v27 = vmax.f32 %v1575_v62, %v1576_v50  ;;  %v1673_v51 = vmax.f32 %v1671_v37, %v1672_v40 }
 0x1c4   : > { %v1765_v28 = vmax.f32 %v1701_v49, %v1733_v7  ;;  %v1781_v31 = vmax.f32 %v1717_v19, %v1749_v56  ;;  %v1702_v46 = vadd.f32 %v3081_v38, %v1573_v24  ;;  %v1718_v63 = vadd.f32 %v3081_v38, %v1669_v22 }
 0x1c5   : > { %v1578_v55 = vrot.slane %v1577_v27, 1  ;;  %v1674_v48 = vrot.slane %v1673_v51, 1 }
 0x1c6   : > { %v2256_v26 = vpack.c.bf16 %v1765_v28, %v1764_v45  ;;  %v2264_v41 = vpack.c.bf16 %v1781_v31, %v1780_v44  ;;  %v1734_v59 = vmul.f32 0.2, %v1702_v46  ;;  %v1750_v34 = vmul.f32 0.2, %v1718_v63 }
 0x1c7   : > { %v1579_v16 = vmax.f32 %v1577_v27, %v1578_v55  ;;  %v1675_v1 = vmax.f32 %v1673_v51, %v1674_v48 }
 0x1c8   : > { %v1908_v47 = vunpack.c.l.b16 %v2256_v26  ;;  %v1909_v60 = vunpack.c.h.b16 %v2256_v26  ;;  %v1924_v36 = vunpack.c.l.b16 %v2264_v41  ;;  %v1925_v23 = vunpack.c.h.b16 %v2264_v41 }
 0x1c9   : > { %v1703_v61 = vadd.f32 %v3086_v30, %v1579_v16  ;;  %v1719_v3 = vadd.f32 %v3086_v30, %v1675_v1  ;;  %v1766_v14 = vmax.f32 %v1702_v46, %v1734_v59  ;;  %v1782_v10 = vmax.f32 %v1718_v63, %v1750_v34 }
 0x1ca   : > { %v1943_v35 = vrot.slane %v1908_v47, 2  ;;  %v1959_v6 = vrot.slane %v1909_v60, 2  ;;  %v1973_v38 = vrot.slane %v1924_v36, 2  ;;  %v1987_v53 = vrot.slane %v1925_v23, 2 }
 0x1cb   : > { %v1735_v54 = vmul.f32 0.2, %v1703_v61  ;;  %v1751_v18 = vmul.f32 0.2, %v1719_v3 }
 0x1cc   : > { %v1945_v4 = vsel %vm1944_vm5, %v1943_v35, %v3249_v5  ;;  %v1960_v32 = vsel %vm1944_vm5, %v1959_v6, %v3252_v17  ;;  %v1974_v8 = vsel %vm1944_vm5, %v1973_v38, %v3255_v9  ;;  %v1988_v43 = vsel %vm1944_vm5, %v1987_v53, %v3258_v39 }
 0x1cd   : > { %v1767_v42 = vmax.f32 %v1703_v61, %v1735_v54  ;;  %v1783_v2 = vmax.f32 %v1719_v3, %v1751_v18 }
 0x1cf   : > { %v2257_v30 = vpack.c.bf16 %v1767_v42, %v1766_v14  ;;  %v2265_v25 = vpack.c.bf16 %v1783_v2, %v1782_v10 }
 0x1d1   : > { %v1910_v13 = vunpack.c.l.b16 %v2257_v30  ;;  %v1911_v11 = vunpack.c.h.b16 %v2257_v30  ;;  %v1926_v20 = vunpack.c.l.b16 %v2265_v25  ;;  %v1927_v33 = vunpack.c.h.b16 %v2265_v25 }
 0x1d3   : > { %v1946_v57 = vrot.slane %v1910_v13, 1  ;;  %v1961_v21 = vrot.slane %v1911_v11, 1  ;;  %v1975_v58 = vrot.slane %v1926_v20, 1  ;;  %v1989_v5 = vrot.slane %v1927_v33, 1 }
 0x1d5   : > { %v1948_v17 = vsel %vm1947_vm6, %v1946_v57, %v1945_v4  ;;  %v1962_v9 = vsel %vm1947_vm6, %v1961_v21, %v1960_v32  ;;  %v1976_v39 = vsel %vm1947_vm6, %v1975_v58, %v1974_v8  ;;  %v1990_v15 = vsel %vm1947_vm6, %v1989_v5, %v1988_v43 }
 0x1d6   : > { %v1991_v29 = vpack.c.b16 %v1962_v9, %v1948_v17  ;;  %v1992_v52 = vpack.c.b16 %v1990_v15, %v1976_v39 }
 0x1d8   : > { %1995 = vst [vmem:[%s267_s15] sm:$0xff] %v1991_v29  ;;  %1996 = vst [vmem:[%s267_s15 + $0x8] sm:$0xff] %v1992_v52 }
 0x1d9 PF: > { %s15_s20 = sadd.s32 1, %s2504_s20   ;;  %s3305_s18 = smov %s2500_s19 }
 0x1da   : > { %p12_p5 = scmp.ge.s32.totalorder %s15_s20, 4   ;;  %s3306_s19 = smov %s3308_s21 }
 0x1dc   :  { %14 = sbr.rel (!%p12_p5) target bundleno = 2 (0x2), region = 70 }

// kernel: forward.8
= control target key start
LH: loop header
LB: loop body
LE: loop exit
PB: predicated region body
PF: predicated region fallthrough
CT: control target
= control target key end

     0   :  { %s780_s12 = smov 0   ;;  %s782_s13 = smov 0   ;;  %s887_s0 = inlined_call_operand.vmem [shape: bf16[2,16,336], index: 0, kind: input, shape index: {}]   ;;  %s888_s1 = inlined_call_operand.vmem [shape: bf16[336,64], index: 1, kind: input, shape index: {}]   ;;  %s889_s2 = inlined_call_operand.vmem [shape: f32[1,64], index: 2, kind: input, shape index: {}]   ;;  %s890_s3 = inlined_call_operand.vmem [shape: bf16[2,16,64], index: 3, kind: output, shape index: {}]  }
   0x1   :  { %s784_s14 = smov 0  }
   0x2 LB: > { %s25_s15 = sadd.s32 1, %s752_s13  ;;  %p603_p0 = scmp.ge.s32.totalorder %s756_s14, 1  ;;  %s756_s14 = sphi %s784_s14, %s13_s14   ;;  %s752_s13 = sphi %s782_s13, %s892_s13   ;;  %s748_s12 = sphi %s780_s12, %s891_s12  }
   0x3   : > { %p27_p1 = scmp.ge.s32.totalorder %s25_s15, 2  ;;  %p159_p2 = scmp.lt.s32.totalorder %s756_s14, 3 }
   0x5   : > { %s894_s15 = smov (%p27_p1, %s25_s15), 0  ;;  %p160_p3 = pnand %p603_p0, %p159_p2 }
   0x6   : > { %v709_v0 = vld [vmem:[%s888_s1 + $0x40] sm:$0xff] (!%p160_p3)   ;;  %v758_v2 = vmov (!%p160_p3), 0.0   ;;  %v711_v3 = vld [vmem:[%s888_s1 + $0x48] sm:$0xff] (!%p160_p3)   ;;  %vm759_vm0 = vmmov (!%p160_p3), 0   ;;  %v713_v5 = vld [vmem:[%s888_s1 + $0x50] sm:$0xff] (!%p160_p3)   ;;  %p193_p4 = scmp.lt.s32.totalorder (!%p160_p3), %s748_s12, 1 }
   0x7   : > { %163 = sbr.rel (%p160_p3) target bundleno = 267 (0x10b), region = 32  ;;  %v710_v1 = vld [vmem:[%s888_s1] sm:$0xff] (!%p160_p3)   ;;  %668 = vmatprep.subr.bf16.mxu1 (!%p160_p3), %v758_v2  ;;  %640 = vmatprep.subr.bf16.mxu0 (!%p160_p3), %v709_v0  ;;  %v712_v4 = vld [vmem:[%s888_s1 + $0x8] sm:$0xff] (!%p160_p3)   ;;  %v714_v6 = vld [vmem:[%s888_s1 + $0x10] sm:$0xff] (!%p160_p3)   ;;  %vm408_vm1 = vcmask (!%p160_p3), 654336   ;;  %vm506_vm2 = vcmask (!%p160_p3), 519168  }
   0x8   : > { %641 = vmatpush3.bf16.msra.mxu0 (!%p160_p3), %v710_v1  ;;  %678 = vmatprep.mubr.msk.bf16.mxu1 (!%p160_p3), %vm759_vm0, %v758_v2  ;;  %v715_v7 = vld [vmem:[%s888_s1 + $0x58] sm:$0xff] (!%p160_p3)   ;;  %v717_v8 = vld [vmem:[%s888_s1 + $0x80] sm:$0xff] (!%p160_p3)   ;;  %v720_v10 = vld [vmem:[%s888_s1 + $0x88] sm:$0xff] (!%p160_p3)  }
   0x9   : > { %642 = vmatprep.subr.bf16.mxu0 (!%p160_p3), %v711_v3  ;;  %v716_v9 = vld [vmem:[%s888_s1 + $0x18] sm:$0xff] (!%p160_p3)   ;;  %669 = vmatpush3.bf16.msra.mxu1 (!%p160_p3), %v717_v8  ;;  %v718_v11 = vld [vmem:[%s888_s1 + $0x60] sm:$0xff] (!%p160_p3)   ;;  %v723_v12 = vld [vmem:[%s888_s1 + $0x90] sm:$0xff] (!%p160_p3)  }
   0xa   : > { %670 = vmatprep.subr.bf16.mxu1 (!%p160_p3), %v758_v2  ;;  %v719_v13 = vld [vmem:[%s888_s1 + $0x20] sm:$0xff] (!%p160_p3)   ;;  %v721_v14 = vld [vmem:[%s888_s1 + $0x68] sm:$0xff] (!%p160_p3)   ;;  %v726_v15 = vld [vmem:[%s888_s1 + $0x98] sm:$0xff] (!%p160_p3)  }
   0xb   : > { %v722_v16 = vld [vmem:[%s888_s1 + $0x28] sm:$0xff] (!%p160_p3)   ;;  %v724_v17 = vld [vmem:[%s888_s1 + $0x70] sm:$0xff] (!%p160_p3)   ;;  %v732_v19 = vld [vmem:[%s888_s1 + $0xa0] sm:$0xff] (!%p160_p3)  }
   0xc   : > { %643 = vmatpush3.bf16.msra.mxu0 (!%p160_p3), %v712_v4  ;;  %v725_v20 = vld [vmem:[%s888_s1 + $0x30] sm:$0xff] (!%p160_p3)   ;;  %v727_v21 = vld [vmem:[%s888_s1 + $0x78] sm:$0xff] (!%p160_p3)   ;;  %v607_v31 = vld [vmem:[%s889_s2] ss:$0 sm:$0xff] (!%p160_p3) }
   0xd   : > { %644 = vmatprep.subr.bf16.mxu0 (!%p160_p3), %v713_v5  ;;  %671 = vmatpush3.bf16.msra.mxu1 (!%p160_p3), %v720_v10  ;;  %v728_v23 = vld [vmem:[%s888_s1 + $0x38] sm:$0xff] (!%p160_p3)  }
   0xe   : > { %s896_s12 = smov (!%p193_p4, %s748_s12), 1  ;;  %672 = vmatprep.subr.bf16.mxu1 %v758_v2 }
   0xf   : > { %s682_s17 = smul.u32 24, %s896_s12  ;;  %s637_s18 = sshll.u32 %s896_s12, 3 }
  0x10   : > { %645 = vmatpush3.bf16.msra.mxu0 %v714_v6  ;;  %s211_s21 = scalar_lea.vmem %s890_s3, %s637_s18 }
  0x11   : > { %646 = vmatprep.subr.bf16.mxu0 %v715_v7  ;;  %673 = vmatpush3.bf16.msra.mxu1 %v723_v12  ;;  %s201_s26 = scalar_lea.vmem %s887_s0, %s682_s17 }
  0x12   : > { %674 = vmatprep.subr.bf16.mxu1 %v758_v2  ;;  %v731_v18 = vld [vmem:[%s201_s26 + $0x4] ss:$12 sps:$4 sm:$0xff]   ;;  %v733_v22 = vld [vmem:[%s201_s26 + $0x8] ss:$12 sps:$4 sm:$0xff]   ;;  %v729_v24 = vld [vmem:[%s201_s26] ss:$12 sps:$4 sm:$0xff]  }
  0x13   : > { %444 = vmatprep.mubr.bf16.mxu0 %v731_v18 }
  0x14   : > { %647 = vmatpush3.bf16.msra.mxu0 %v716_v9 }
  0x15   : > { %648 = vmatprep.subr.bf16.mxu0 %v718_v11  ;;  %675 = vmatpush3.bf16.msra.mxu1 %v726_v15 }
  0x16   : > { %676 = vmatprep.subr.bf16.mxu1 %v758_v2 }
  0x18   : > { %649 = vmatpush3.bf16.msra.mxu0 %v719_v13 }
  0x19   : > { %650 = vmatprep.subr.bf16.mxu0 %v721_v14  ;;  %677 = vmatpush3.bf16.msra.mxu1 %v732_v19 }
  0x1c   : > { %651 = vmatpush3.bf16.msra.mxu0 %v722_v16  ;;  %679 = vmatmul.mubr.msk.bf16.vlgmr.msra.gmra.mrb[0].mxu1 %vm408_vm1, %v733_v22 }
  0x1d   : > { %652 = vmatprep.subr.bf16.mxu0 %v724_v17 }
  0x20   : > { %653 = vmatpush3.bf16.msra.mxu0 %v725_v20 }
  0x21   : > { %654 = vmatprep.subr.bf16.mxu0 %v727_v21 }
  0x24   : > { %655 = vmatpush3.bf16.msra.mxu0 %v728_v23 }
  0x27   : > { %445 = vmatmul.mubr.bf16.vlgmr.msra.gmra.mrb[0].mxu0 %v729_v24 }
  0xef   : > { %v487_v25 = vpop.f32.mrb[0].mxu1 }
  0xf0   : > { %v680_v26 = vpop.f32.mrb[1].mxu1 }
  0xf1   : > { %v490_v27 = vpop.f32.mrb[2].mxu1 }
  0xf2   : > { %v681_v28 = vpop.f32.mrb[3].mxu1 }
  0xfa   : > { %v656_v29 = vpop.f32.mrb[0].mxu0 }
  0xfb   : > { %v657_v30 = vpop.f32.mrb[1].mxu0 }
  0xfc   : > { %v658_v32 = vadd.f32 %v657_v30, %v656_v29  ;;  %v659_v33 = vpop.f32.mrb[2].mxu0 }
  0xfd   : > { %v660_v34 = vpop.f32.mrb[3].mxu0 }
  0xfe   : > { %v447_v35 = vadd.f32 %v658_v32, %v607_v31  ;;  %v661_v36 = vadd.f32 %v660_v34, %v659_v33 }
 0x100   : > { %v488_v37 = vadd.f32 %v487_v25, %v447_v35  ;;  %v450_v38 = vadd.f32 %v661_v36, %v607_v31 }
 0x102   : > { %v494_v39 = vmul.f32 0.2, %v488_v37  ;;  %v491_v40 = vadd.f32 %v490_v27, %v450_v38 }
 0x104   : > { %v496_v41 = vmax.f32 %v488_v37, %v494_v39  ;;  %v495_v42 = vmul.f32 0.2, %v491_v40 }
 0x106   : > { %v638_v43 = vpack.c.bf16 %v496_v41, %v496_v41  ;;  %v497_v44 = vmax.f32 %v491_v40, %v495_v42 }
 0x108   : > { %507 = vst.msk [vmem:[%s211_s21] sm:$0xf] %vm506_vm2, %v638_v43  ;;  %v639_v45 = vpack.c.bf16 %v497_v44, %v497_v44 }
 0x10a   : > { %508 = vst.msk [vmem:[%s211_s21 + $0x4] sm:$0xf] %vm506_vm2, %v639_v45 }
 0x10b PF: > { %s13_s14 = sadd.s32 1, %s756_s14   ;;  %s891_s12 = smov %s752_s13 }
 0x10c   : > { %p10_p5 = scmp.ge.s32.totalorder %s13_s14, 4   ;;  %s892_s13 = smov %s894_s15 }
 0x10e   :  { %12 = sbr.rel (!%p10_p5) target bundleno = 2 (0x2), region = 62 }

// kernel: neg.18
= control target key start
LH: loop header
LB: loop body
LE: loop exit
PB: predicated region body
PF: predicated region fallthrough
CT: control target
= control target key end

     0   :  { %s136_s0 = inlined_call_operand.vmem [shape: f32[2,64,32], index: 0, kind: input, shape index: {}]   ;;  %s137_s1 = inlined_call_operand.vmem [shape: f32[2,64,32], index: 1, kind: output, shape index: {}]  }
   0x1   :  { %v2_v0 = vld [vmem:[%s136_s0] sm:$0xff]  ;;  %v66_v2 = vld [vmem:[%s136_s0 + $0x8] sm:$0xff]  ;;  %v70_v7 = vld [vmem:[%s136_s0 + $0x10] sm:$0xff] }
   0x2   :  { %v64_v1 = vld [vmem:[%s136_s0 + $0x20] sm:$0xff]  ;;  %v5_v3 = vxor.u32 2147483648, %v2_v0  ;;  %v20_v5 = vxor.u32 2147483648, %v66_v2  ;;  %v68_v6 = vld [vmem:[%s136_s0 + $0x28] sm:$0xff]  ;;  %v72_v8 = vld [vmem:[%s136_s0 + $0x30] sm:$0xff]  ;;  %v36_v10 = vxor.u32 2147483648, %v70_v7 }
   0x3   :  { %v12_v4 = vxor.u32 2147483648, %v64_v1  ;;  %v28_v9 = vxor.u32 2147483648, %v68_v6  ;;  %v44_v11 = vxor.u32 2147483648, %v72_v8  ;;  %v74_v12 = vld [vmem:[%s136_s0 + $0x18] sm:$0xff] }
   0x4   :  { %v76_v13 = vld [vmem:[%s136_s0 + $0x38] sm:$0xff]  ;;  %7 = vst [vmem:[%s137_s1] sm:$0xff] %v5_v3  ;;  %67 = vst [vmem:[%s137_s1 + $0x8] sm:$0xff] %v20_v5  ;;  %v52_v14 = vxor.u32 2147483648, %v74_v12 }
   0x5   :  { %65 = vst [vmem:[%s137_s1 + $0x20] sm:$0xff] %v12_v4  ;;  %v60_v15 = vxor.u32 2147483648, %v76_v13  ;;  %69 = vst [vmem:[%s137_s1 + $0x28] sm:$0xff] %v28_v9 }
   0x6   :  { %71 = vst [vmem:[%s137_s1 + $0x10] sm:$0xff] %v36_v10  ;;  %73 = vst [vmem:[%s137_s1 + $0x30] sm:$0xff] %v44_v11 }
   0x7   :  { %75 = vst [vmem:[%s137_s1 + $0x18] sm:$0xff] %v52_v14  ;;  %77 = vst [vmem:[%s137_s1 + $0x38] sm:$0xff] %v60_v15 }

// kernel: forward.9
= control target key start
LH: loop header
LB: loop body
LE: loop exit
PB: predicated region body
PF: predicated region fallthrough
CT: control target
= control target key end

     0   :  { %s2052_s21 = smov 0   ;;  %s2054_s22 = smov 0   ;;  %s2482_s0 = inlined_call_operand.vmem [shape: bf16[2,64,64], index: 0, kind: input, shape index: {}]   ;;  %s2483_s1 = inlined_call_operand.vmem [shape: bf16[64,512], index: 1, kind: input, shape index: {}]   ;;  %s2484_s2 = inlined_call_operand.vmem [shape: f32[1,512], index: 2, kind: input, shape index: {}]   ;;  %s2485_s3 = inlined_call_operand.vmem [shape: bf16[512,256], index: 3, kind: input, shape index: {}]   ;;  %s2486_s4 = inlined_call_operand.vmem [shape: f32[1,256], index: 4, kind: input, shape index: {}]   ;;  %s2487_s5 = inlined_call_operand.vmem [shape: bf16[256,128], index: 5, kind: input, shape index: {}]   ;;  %s2488_s6 = inlined_call_operand.vmem [shape: bf16[2,64,128], index: 6, kind: output, shape index: {}]  }
   0x1   :  { %s2056_s23 = smov 0  }
   0x2 LB: > { %s28_s24 = sadd.s32 1, %s2010_s22  ;;  %p1583_p0 = scmp.ge.s32.totalorder %s2014_s23, 1  ;;  %s2014_s23 = sphi %s2056_s23, %s16_s23   ;;  %s2010_s22 = sphi %s2054_s22, %s2490_s22   ;;  %s2006_s21 = sphi %s2052_s21, %s2489_s21  }
   0x3   : > { %p30_p1 = scmp.ge.s32.totalorder %s28_s24, 2  ;;  %p233_p2 = scmp.lt.s32.totalorder %s2014_s23, 3 }
   0x5   : > { %s2492_s24 = smov (%p30_p1, %s28_s24), 0  ;;  %p234_p3 = pnand %p1583_p0, %p233_p2 }
   0x6   : > { %v1852_v0 = vld [vmem:[%s2483_s1 + $0x4] ss:$16 sps:$4 sm:$0xff] (!%p234_p3)   ;;  %p272_p4 = scmp.lt.s32.totalorder (!%p234_p3), %s2006_s21, 1  ;;  %v1854_v1 = vld [vmem:[%s2483_s1 + $0xc] ss:$16 sps:$4 sm:$0xff] (!%p234_p3)   ;;  %v2016_v2 = vmov (!%p234_p3), 0  }
   0x7   : > { %237 = sbr.rel (%p234_p3) target bundleno = 718 (0x2ce), region = 44  ;;  %483 = vmatprep.mubr.bf16.mxu0 (!%p234_p3), %v2016_v2  ;;  %556 = vmatprep.mubr.bf16.mxu1 (!%p234_p3), %v2016_v2  ;;  %v1856_v3 = vld [vmem:[%s2483_s1] ss:$16 sps:$4 sm:$0xff] (!%p234_p3)   ;;  %v1857_v4 = vld [vmem:[%s2483_s1 + $0x8] ss:$16 sps:$4 sm:$0xff] (!%p234_p3)   ;;  %vm438_vm0 = vcmask (!%p234_p3), 523264  }
   0x8   : > { %451 = vmatprep.subr.bf16.mxu0 (!%p234_p3), %v1852_v0  ;;  %524 = vmatprep.subr.bf16.mxu1 (!%p234_p3), %v1854_v1  ;;  %v1858_v5 = vld [vmem:[%s2483_s1 + $0x24] ss:$16 sps:$4 sm:$0xff] (!%p234_p3)   ;;  %v1860_v6 = vld [vmem:[%s2483_s1 + $0x2c] ss:$16 sps:$4 sm:$0xff] (!%p234_p3)   ;;  %v1862_v7 = vld [vmem:[%s2483_s1 + $0x20] ss:$16 sps:$4 sm:$0xff] (!%p234_p3)  }
   0x9   : > { %452 = vmatpush1.bf16.msra.mxu0 (!%p234_p3), %v1856_v3  ;;  %525 = vmatpush1.bf16.msra.mxu1 (!%p234_p3), %v1857_v4  ;;  %v1863_v8 = vld [vmem:[%s2483_s1 + $0x28] ss:$16 sps:$4 sm:$0xff] (!%p234_p3)   ;;  %v1864_v9 = vld [vmem:[%s2483_s1 + $0x44] ss:$16 sps:$4 sm:$0xff] (!%p234_p3)   ;;  %v1866_v10 = vld [vmem:[%s2483_s1 + $0x4c] ss:$16 sps:$4 sm:$0xff] (!%p234_p3)  }
   0xa   : > { %453 = vmatprep.subr.bf16.mxu0 (!%p234_p3), %v1858_v5  ;;  %526 = vmatprep.subr.bf16.mxu1 (!%p234_p3), %v1860_v6  ;;  %v1868_v11 = vld [vmem:[%s2483_s1 + $0x40] ss:$16 sps:$4 sm:$0xff] (!%p234_p3)   ;;  %v1869_v12 = vld [vmem:[%s2483_s1 + $0x48] ss:$16 sps:$4 sm:$0xff] (!%p234_p3)   ;;  %v1870_v13 = vld [vmem:[%s2483_s1 + $0x64] ss:$16 sps:$4 sm:$0xff] (!%p234_p3)  }
   0xb   : > { %v1872_v14 = vld [vmem:[%s2483_s1 + $0x6c] ss:$16 sps:$4 sm:$0xff] (!%p234_p3)   ;;  %v1874_v15 = vld [vmem:[%s2483_s1 + $0x60] ss:$16 sps:$4 sm:$0xff] (!%p234_p3)   ;;  %v1875_v16 = vld [vmem:[%s2483_s1 + $0x68] ss:$16 sps:$4 sm:$0xff] (!%p234_p3)  }
   0xc   : > { %v1882_v18 = vld [vmem:[%s2485_s3 + $0x4] ss:$8 sps:$4 sm:$0xff] (!%p234_p3)   ;;  %v1880_v19 = vld [vmem:[%s2485_s3] ss:$8 sps:$4 sm:$0xff] (!%p234_p3)   ;;  %v1888_v22 = vld [vmem:[%s2485_s3 + $0x14] ss:$8 sps:$4 sm:$0xff] (!%p234_p3)  }
   0xd   : > { %454 = vmatpush1.bf16.msra.mxu0 (!%p234_p3), %v1862_v7  ;;  %527 = vmatpush1.bf16.msra.mxu1 (!%p234_p3), %v1863_v8  ;;  %v1885_v20 = vld [vmem:[%s2485_s3 + $0x104] ss:$8 sps:$4 sm:$0xff] (!%p234_p3)   ;;  %v1883_v21 = vld [vmem:[%s2485_s3 + $0x100] ss:$8 sps:$4 sm:$0xff] (!%p234_p3)   ;;  %v1891_v23 = vld [vmem:[%s2485_s3 + $0x114] ss:$8 sps:$4 sm:$0xff] (!%p234_p3)  }
   0xe   : > { %s2494_s21 = smov (!%p272_p4, %s2006_s21), 1  ;;  %455 = vmatprep.subr.bf16.mxu0 %v1864_v9  ;;  %528 = vmatprep.subr.bf16.mxu1 %v1866_v10  ;;  %v1886_v24 = vld [vmem:[%s2485_s3 + $0x10] ss:$8 sps:$4 sm:$0xff]   ;;  %v1894_v26 = vld [vmem:[%s2485_s3 + $0x24] ss:$8 sps:$4 sm:$0xff]  }
   0xf   : > { %s1706_s19 = sshll.u32 %s2494_s21, 5  ;;  %v1889_v25 = vld [vmem:[%s2485_s3 + $0x110] ss:$8 sps:$4 sm:$0xff]   ;;  %v1892_v28 = vld [vmem:[%s2485_s3 + $0x20] ss:$8 sps:$4 sm:$0xff]  }
  0x10   : > { %s2122_s12 = scalar_lea.vmem %s2482_s0, %s1706_s19  ;;  %v1897_v29 = vld [vmem:[%s2485_s3 + $0x124] ss:$8 sps:$4 sm:$0xff]   ;;  %v1895_v30 = vld [vmem:[%s2485_s3 + $0x120] ss:$8 sps:$4 sm:$0xff]   ;;  %v1900_v31 = vld [vmem:[%s2485_s3 + $0x34] ss:$8 sps:$4 sm:$0xff]   ;;  %s289_s15 = scalar_lea.vmem %s2488_s6, %s1706_s19 }
  0x11   : > { %456 = vmatpush1.bf16.msra.mxu0 %v1868_v11  ;;  %529 = vmatpush1.bf16.msra.mxu1 %v1869_v12  ;;  %v1876_v17 = vld [vmem:[%s2122_s12] sm:$0xff]   ;;  %v1877_v27 = vld [vmem:[%s2122_s12 + $0x8] sm:$0xff]   ;;  %v1903_v32 = vld [vmem:[%s2485_s3 + $0x134] ss:$8 sps:$4 sm:$0xff]  }
  0x12   : > { %457 = vmatprep.subr.bf16.mxu0 %v1870_v13  ;;  %530 = vmatprep.subr.bf16.mxu1 %v1872_v14  ;;  %v1898_v33 = vld [vmem:[%s2485_s3 + $0x30] ss:$8 sps:$4 sm:$0xff]   ;;  %v1906_v35 = vld [vmem:[%s2485_s3 + $0x44] ss:$8 sps:$4 sm:$0xff]   ;;  %v1904_v37 = vld [vmem:[%s2485_s3 + $0x40] ss:$8 sps:$4 sm:$0xff]  }
  0x13   : > { %v1901_v34 = vld [vmem:[%s2485_s3 + $0x130] ss:$8 sps:$4 sm:$0xff]   ;;  %v1909_v38 = vld [vmem:[%s2485_s3 + $0x144] ss:$8 sps:$4 sm:$0xff]   ;;  %v1907_v39 = vld [vmem:[%s2485_s3 + $0x140] ss:$8 sps:$4 sm:$0xff]  }
  0x14   : > { %v1878_v36 = vld [vmem:[%s2122_s12 + $0x10] sm:$0xff]   ;;  %v1918_v44 = vld [vmem:[%s2485_s3 + $0x64] ss:$8 sps:$4 sm:$0xff]   ;;  %v1879_v45 = vld [vmem:[%s2122_s12 + $0x18] sm:$0xff]  }
  0x15   : > { %458 = vmatpush1.bf16.msra.mxu0 %v1874_v15  ;;  %531 = vmatpush1.bf16.msra.mxu1 %v1875_v16  ;;  %v1912_v40 = vld [vmem:[%s2485_s3 + $0x54] ss:$8 sps:$4 sm:$0xff]   ;;  %v1910_v42 = vld [vmem:[%s2485_s3 + $0x50] ss:$8 sps:$4 sm:$0xff]   ;;  %v1921_v46 = vld [vmem:[%s2485_s3 + $0x164] ss:$8 sps:$4 sm:$0xff]  }
  0x16   : > { %1073 = vmatprep.subr.bf16.mxu1 %v1882_v18  ;;  %1146 = vmatprep.subr.bf16.mxu0 %v1885_v20  ;;  %v1915_v41 = vld [vmem:[%s2485_s3 + $0x154] ss:$8 sps:$4 sm:$0xff]   ;;  %v1913_v43 = vld [vmem:[%s2485_s3 + $0x150] ss:$8 sps:$4 sm:$0xff]   ;;  %v1916_v47 = vld [vmem:[%s2485_s3 + $0x60] ss:$8 sps:$4 sm:$0xff]  }
  0x17   : > { %v1919_v48 = vld [vmem:[%s2485_s3 + $0x160] ss:$8 sps:$4 sm:$0xff]   ;;  %v1924_v49 = vld [vmem:[%s2485_s3 + $0x74] ss:$8 sps:$4 sm:$0xff]   ;;  %v1922_v51 = vld [vmem:[%s2485_s3 + $0x70] ss:$8 sps:$4 sm:$0xff]  }
  0x18   : > { %1608 = vmatmul.mubr.msk.bf16.vlgmr.msra.gmra.mrb[0].mxu0 %vm438_vm0, %v1876_v17  ;;  %1612 = vmatmul.mubr.msk.bf16.vlgmr.msra.gmra.mrb[0].mxu1 %vm438_vm0, %v1876_v17  ;;  %v1927_v50 = vld [vmem:[%s2485_s3 + $0x174] ss:$8 sps:$4 sm:$0xff]   ;;  %v1925_v52 = vld [vmem:[%s2485_s3 + $0x170] ss:$8 sps:$4 sm:$0xff]   ;;  %v1930_v53 = vld [vmem:[%s2485_s3 + $0x84] ss:$8 sps:$4 sm:$0xff]  }
  0x19   : > { %493 = vmatprep.mubr.bf16.mxu0 %v2016_v2  ;;  %566 = vmatprep.mubr.bf16.mxu1 %v2016_v2  ;;  %v1928_v54 = vld [vmem:[%s2485_s3 + $0x80] ss:$8 sps:$4 sm:$0xff]   ;;  %v1933_v55 = vld [vmem:[%s2485_s3 + $0x184] ss:$8 sps:$4 sm:$0xff]   ;;  %v1936_v57 = vld [vmem:[%s2485_s3 + $0x94] ss:$8 sps:$4 sm:$0xff]  }
  0x1a   : > { %1074 = vmatpush1.bf16.msra.mxu1 %v1880_v19  ;;  %1147 = vmatpush1.bf16.msra.mxu0 %v1883_v21  ;;  %v1931_v56 = vld [vmem:[%s2485_s3 + $0x180] ss:$8 sps:$4 sm:$0xff]   ;;  %v1939_v58 = vld [vmem:[%s2485_s3 + $0x194] ss:$8 sps:$4 sm:$0xff]   ;;  %v1934_v59 = vld [vmem:[%s2485_s3 + $0x90] ss:$8 sps:$4 sm:$0xff]  }
  0x1b   : > { %1075 = vmatprep.subr.bf16.mxu1 %v1888_v22  ;;  %1148 = vmatprep.subr.bf16.mxu0 %v1891_v23  ;;  %v1937_v60 = vld [vmem:[%s2485_s3 + $0x190] ss:$8 sps:$4 sm:$0xff]   ;;  %v1942_v61 = vld [vmem:[%s2485_s3 + $0xa4] ss:$8 sps:$4 sm:$0xff]   ;;  %v1940_v63 = vld [vmem:[%s2485_s3 + $0xa0] ss:$8 sps:$4 sm:$0xff]   ;;  %v318_v22 = vlaneseq }
  0x1c   : > { %v1945_v62 = vld [vmem:[%s2485_s3 + $0x1a4] ss:$8 sps:$4 sm:$0xff]   ;;  %v1943_v0 = vld [vmem:[%s2485_s3 + $0x1a0] ss:$8 sps:$4 sm:$0xff]   ;;  %v1948_v1 = vld [vmem:[%s2485_s3 + $0xb4] ss:$8 sps:$4 sm:$0xff]  }
  0x1d   : > { %v1946_v3 = vld [vmem:[%s2485_s3 + $0xb0] ss:$8 sps:$4 sm:$0xff]   ;;  %v1954_v5 = vld [vmem:[%s2485_s3 + $0xc4] ss:$8 sps:$4 sm:$0xff]   ;;  %v1952_v7 = vld [vmem:[%s2485_s3 + $0xc0] ss:$8 sps:$4 sm:$0xff]  }
  0x1e   : > { %1076 = vmatpush1.bf16.msra.mxu1 %v1886_v24  ;;  %1149 = vmatpush1.bf16.msra.mxu0 %v1889_v25  ;;  %v1949_v4 = vld [vmem:[%s2485_s3 + $0x1b0] ss:$8 sps:$4 sm:$0xff]   ;;  %v1957_v6 = vld [vmem:[%s2485_s3 + $0x1c4] ss:$8 sps:$4 sm:$0xff]   ;;  %v1955_v8 = vld [vmem:[%s2485_s3 + $0x1c0] ss:$8 sps:$4 sm:$0xff]  }
  0x1f   : > { %1077 = vmatprep.subr.bf16.mxu1 %v1894_v26  ;;  %1150 = vmatprep.subr.bf16.mxu0 %v1897_v29  ;;  %v1960_v9 = vld [vmem:[%s2485_s3 + $0xd4] ss:$8 sps:$4 sm:$0xff]   ;;  %v1958_v11 = vld [vmem:[%s2485_s3 + $0xd0] ss:$8 sps:$4 sm:$0xff]   ;;  %v1966_v13 = vld [vmem:[%s2485_s3 + $0xe4] ss:$8 sps:$4 sm:$0xff]  }
  0x20   : > { %1609 = vmatmul.mubr.msk.bf16.gmra.mrb[4].mxu0 %vm438_vm0, %v1877_v27  ;;  %1613 = vmatmul.mubr.msk.bf16.gmra.mrb[4].mxu1 %vm438_vm0, %v1877_v27  ;;  %v1963_v10 = vld [vmem:[%s2485_s3 + $0x1d4] ss:$8 sps:$4 sm:$0xff]   ;;  %v1961_v12 = vld [vmem:[%s2485_s3 + $0x1d0] ss:$8 sps:$4 sm:$0xff]   ;;  %v1969_v14 = vld [vmem:[%s2485_s3 + $0x1e4] ss:$8 sps:$4 sm:$0xff]  }
  0x21   : > { %503 = vmatprep.mubr.bf16.mxu0 %v2016_v2  ;;  %576 = vmatprep.mubr.bf16.mxu1 %v2016_v2  ;;  %v1964_v15 = vld [vmem:[%s2485_s3 + $0xe0] ss:$8 sps:$4 sm:$0xff]   ;;  %v1972_v17 = vld [vmem:[%s2485_s3 + $0xf4] ss:$8 sps:$4 sm:$0xff]   ;;  %v1970_v19 = vld [vmem:[%s2485_s3 + $0xf0] ss:$8 sps:$4 sm:$0xff]  }
  0x22   : > { %1078 = vmatpush1.bf16.msra.mxu1 %v1892_v28  ;;  %1151 = vmatpush1.bf16.msra.mxu0 %v1895_v30  ;;  %v1967_v16 = vld [vmem:[%s2485_s3 + $0x1e0] ss:$8 sps:$4 sm:$0xff]   ;;  %v1975_v18 = vld [vmem:[%s2485_s3 + $0x1f4] ss:$8 sps:$4 sm:$0xff]   ;;  %v1973_v20 = vld [vmem:[%s2485_s3 + $0x1f0] ss:$8 sps:$4 sm:$0xff]  }
  0x23   : > { %1079 = vmatprep.subr.bf16.mxu1 %v1900_v31  ;;  %1152 = vmatprep.subr.bf16.mxu0 %v1903_v32  ;;  %v1976_v21 = vld [vmem:[%s2487_s5 + $0x40] sm:$0xff]   ;;  %v2343_v23 = vshrl.u32 %v318_v22, 7 }
  0x24   : > { %v316_v26 = vld [vmem:[%s2484_s2] sm:$0xf] }
  0x25   : > { %v320_v24 = vsub.s32 0, %v2343_v23  ;;  %v328_v25 = vsub.s32 2, %v2343_v23  ;;  %v324_v27 = vsub.s32 1, %v2343_v23  ;;  %v332_v28 = vsub.s32 3, %v2343_v23 }
  0x26   : > { %1080 = vmatpush1.bf16.msra.mxu1 %v1898_v33  ;;  %1153 = vmatpush1.bf16.msra.mxu0 %v1901_v34 }
  0x27   : > { %1081 = vmatprep.subr.bf16.mxu1 %v1906_v35  ;;  %1154 = vmatprep.subr.bf16.mxu0 %v1909_v38  ;;  %v2354_v29 = vrot.slane %v316_v26, %v320_v24  ;;  %v2356_v30 = vrot.slane %v316_v26, %v328_v25  ;;  %v2360_v31 = vrot.slane %v316_v26, %v324_v27 }
  0x28   : > { %1610 = vmatmul.mubr.msk.bf16.gmra.mrb[8].mxu0 %vm438_vm0, %v1878_v36  ;;  %1614 = vmatmul.mubr.msk.bf16.gmra.mrb[8].mxu1 %vm438_vm0, %v1878_v36  ;;  %v2362_v32 = vrot.slane %v316_v26, %v332_v28 }
  0x29   : > { %513 = vmatprep.mubr.bf16.mxu0 %v2016_v2  ;;  %586 = vmatprep.mubr.bf16.mxu1 %v2016_v2  ;;  %v1951_v2 = vld [vmem:[%s2485_s3 + $0x1b4] ss:$8 sps:$4 sm:$0xff]  }
  0x2a   : > { %1082 = vmatpush1.bf16.msra.mxu1 %v1904_v37  ;;  %1155 = vmatpush1.bf16.msra.mxu0 %v1907_v39 }
  0x2b   : > { %1083 = vmatprep.subr.bf16.mxu1 %v1912_v40  ;;  %1156 = vmatprep.subr.bf16.mxu0 %v1915_v41 }
  0x2e   : > { %1084 = vmatpush1.bf16.msra.mxu1 %v1910_v42  ;;  %1157 = vmatpush1.bf16.msra.mxu0 %v1913_v43 }
  0x2f   : > { %1085 = vmatprep.subr.bf16.mxu1 %v1918_v44  ;;  %1158 = vmatprep.subr.bf16.mxu0 %v1921_v46 }
  0x30   : > { %1611 = vmatmul.mubr.msk.bf16.gmra.mrb[12].mxu0 %vm438_vm0, %v1879_v45  ;;  %1615 = vmatmul.mubr.msk.bf16.gmra.mrb[12].mxu1 %vm438_vm0, %v1879_v45 }
  0x32   : > { %1086 = vmatpush1.bf16.msra.mxu1 %v1916_v47  ;;  %1159 = vmatpush1.bf16.msra.mxu0 %v1919_v48 }
  0x33   : > { %1087 = vmatprep.subr.bf16.mxu1 %v1924_v49  ;;  %1160 = vmatprep.subr.bf16.mxu0 %v1927_v50 }
  0x36   : > { %1088 = vmatpush1.bf16.msra.mxu1 %v1922_v51  ;;  %1161 = vmatpush1.bf16.msra.mxu0 %v1925_v52 }
  0x37   : > { %1089 = vmatprep.subr.bf16.mxu1 %v1930_v53  ;;  %1162 = vmatprep.subr.bf16.mxu0 %v1933_v55 }
  0x3a   : > { %1090 = vmatpush1.bf16.msra.mxu1 %v1928_v54  ;;  %1163 = vmatpush1.bf16.msra.mxu0 %v1931_v56 }
  0x3b   : > { %1091 = vmatprep.subr.bf16.mxu1 %v1936_v57  ;;  %1164 = vmatprep.subr.bf16.mxu0 %v1939_v58 }
  0x3e   : > { %1092 = vmatpush1.bf16.msra.mxu1 %v1934_v59  ;;  %1165 = vmatpush1.bf16.msra.mxu0 %v1937_v60 }
  0x3f   : > { %1093 = vmatprep.subr.bf16.mxu1 %v1942_v61  ;;  %1166 = vmatprep.subr.bf16.mxu0 %v1945_v62 }
  0x42   : > { %1094 = vmatpush1.bf16.msra.mxu1 %v1940_v63  ;;  %1167 = vmatpush1.bf16.msra.mxu0 %v1943_v0 }
  0x43   : > { %1095 = vmatprep.subr.bf16.mxu1 %v1948_v1  ;;  %1168 = vmatprep.subr.bf16.mxu0 %v1951_v2 }
  0x46   : > { %1096 = vmatpush1.bf16.msra.mxu1 %v1946_v3  ;;  %1169 = vmatpush1.bf16.msra.mxu0 %v1949_v4 }
  0x47   : > { %1097 = vmatprep.subr.bf16.mxu1 %v1954_v5  ;;  %1170 = vmatprep.subr.bf16.mxu0 %v1957_v6 }
  0x4a   : > { %1098 = vmatpush1.bf16.msra.mxu1 %v1952_v7  ;;  %1171 = vmatpush1.bf16.msra.mxu0 %v1955_v8 }
  0x4b   : > { %1099 = vmatprep.subr.bf16.mxu1 %v1960_v9  ;;  %1172 = vmatprep.subr.bf16.mxu0 %v1963_v10 }
  0x4e   : > { %1100 = vmatpush1.bf16.msra.mxu1 %v1958_v11  ;;  %1173 = vmatpush1.bf16.msra.mxu0 %v1961_v12 }
  0x4f   : > { %1101 = vmatprep.subr.bf16.mxu1 %v1966_v13  ;;  %1174 = vmatprep.subr.bf16.mxu0 %v1969_v14 }
  0x52   : > { %1102 = vmatpush1.bf16.msra.mxu1 %v1964_v15  ;;  %1175 = vmatpush1.bf16.msra.mxu0 %v1967_v16  ;;  %v1977_v15 = vld [vmem:[%s2487_s5] sm:$0xff]   ;;  %v1978_v16 = vld [vmem:[%s2487_s5 + $0x48] sm:$0xff]  }
  0x53   : > { %1103 = vmatprep.subr.bf16.mxu1 %v1972_v17  ;;  %1176 = vmatprep.subr.bf16.mxu0 %v1975_v18 }
  0x56   : > { %1104 = vmatpush1.bf16.msra.mxu1 %v1970_v19  ;;  %1177 = vmatpush1.bf16.msra.mxu0 %v1973_v20 }
  0x57   : > { %1739 = vmatprep.subr.bf16.mxu0 %v1976_v21  ;;  %1779 = vmatprep.subr.bf16.mxu1 %v1976_v21 }
  0xeb   : > { %v485_v33 = vpop.f32.mrb[0].mxu0  ;;  %v558_v34 = vpop.f32.mrb[0].mxu1 }
  0xec   : > { %v486_v35 = vadd.f32 %v485_v33, %v2354_v29  ;;  %v559_v36 = vadd.f32 %v558_v34, %v2356_v30  ;;  %v487_v37 = vpop.f32.mrb[1].mxu0  ;;  %v560_v38 = vpop.f32.mrb[1].mxu1 }
  0xed   : > { %v488_v39 = vadd.f32 %v487_v37, %v2360_v31  ;;  %v561_v40 = vadd.f32 %v560_v38, %v2362_v32  ;;  %v489_v41 = vpop.f32.mrb[2].mxu0  ;;  %v562_v42 = vpop.f32.mrb[2].mxu1 }
  0xee   : > { %v597_v43 = vmul.f32 0.2, %v486_v35  ;;  %v599_v44 = vmul.f32 0.2, %v559_v36  ;;  %v490_v45 = vadd.f32 %v489_v41, %v2354_v29  ;;  %v563_v46 = vadd.f32 %v562_v42, %v2356_v30  ;;  %v491_v47 = vpop.f32.mrb[3].mxu0  ;;  %v564_v48 = vpop.f32.mrb[3].mxu1 }
  0xef   : > { %v598_v49 = vmul.f32 0.2, %v488_v39  ;;  %v600_v50 = vmul.f32 0.2, %v561_v40  ;;  %v492_v51 = vadd.f32 %v491_v47, %v2360_v31  ;;  %v565_v52 = vadd.f32 %v564_v48, %v2362_v32 }
  0xf0   : > { %v601_v53 = vmul.f32 0.2, %v490_v45  ;;  %v603_v54 = vmul.f32 0.2, %v563_v46  ;;  %v629_v57 = vmax.f32 %v486_v35, %v597_v43  ;;  %v631_v58 = vmax.f32 %v559_v36, %v599_v44  ;;  %v1980_v43 = vld [vmem:[%s2487_s5 + $0x50] sm:$0xff]  }
  0xf1   : > { %v602_v55 = vmul.f32 0.2, %v492_v51  ;;  %v604_v56 = vmul.f32 0.2, %v565_v52  ;;  %v630_v61 = vmax.f32 %v488_v39, %v598_v49  ;;  %v632_v62 = vmax.f32 %v561_v40, %v600_v50  ;;  %v1979_v39 = vld [vmem:[%s2487_s5 + $0x8] sm:$0xff]  }
  0xf2   : > { %v633_v59 = vmax.f32 %v490_v45, %v601_v53  ;;  %v635_v60 = vmax.f32 %v563_v46, %v603_v54 }
  0xf3   : > { %v634_v63 = vmax.f32 %v492_v51, %v602_v55  ;;  %v636_v0 = vmax.f32 %v565_v52, %v604_v56  ;;  %v495_v1 = vpop.f32.mrb[4].mxu0  ;;  %v568_v2 = vpop.f32.mrb[4].mxu1 }
  0xf4   : > { %v661_v3 = vpack.c.bf16 %v633_v59, %v629_v57  ;;  %v663_v4 = vpack.c.bf16 %v635_v60, %v631_v58  ;;  %v496_v5 = vadd.f32 %v495_v1, %v2354_v29  ;;  %v569_v6 = vadd.f32 %v568_v2, %v2356_v30  ;;  %v497_v7 = vpop.f32.mrb[5].mxu0  ;;  %v570_v8 = vpop.f32.mrb[5].mxu1 }
  0xf5   : > { %v498_v9 = vadd.f32 %v497_v7, %v2360_v31  ;;  %v571_v10 = vadd.f32 %v570_v8, %v2362_v32  ;;  %v499_v11 = vpop.f32.mrb[6].mxu0  ;;  %v572_v12 = vpop.f32.mrb[6].mxu1  ;;  %v662_v13 = vpack.c.bf16 %v634_v63, %v630_v61  ;;  %v664_v14 = vpack.c.bf16 %v636_v0, %v632_v62  ;;  %v1981_v62 = vld [vmem:[%s2487_s5 + $0x10] sm:$0xff]   ;;  %v1982_v63 = vld [vmem:[%s2487_s5 + $0x58] sm:$0xff]  }
  0xf6   : > { %v605_v17 = vmul.f32 0.2, %v496_v5  ;;  %v607_v18 = vmul.f32 0.2, %v569_v6  ;;  %v500_v19 = vadd.f32 %v499_v11, %v2354_v29  ;;  %v573_v20 = vadd.f32 %v572_v12, %v2356_v30  ;;  %v501_v21 = vpop.f32.mrb[7].mxu0  ;;  %v574_v22 = vpop.f32.mrb[7].mxu1 }
  0xf7   : > { %v606_v25 = vmul.f32 0.2, %v498_v9  ;;  %v608_v26 = vmul.f32 0.2, %v571_v10  ;;  %v502_v28 = vadd.f32 %v501_v21, %v2360_v31  ;;  %v575_v33 = vadd.f32 %v574_v22, %v2362_v32  ;;  %1105 = vmatprep.mubr.bf16.mxu1 %v662_v13  ;;  %1178 = vmatprep.mubr.bf16.mxu0 %v664_v14 }
  0xf8   : > { %v609_v34 = vmul.f32 0.2, %v500_v19  ;;  %v611_v35 = vmul.f32 0.2, %v573_v20  ;;  %1106 = vmatmul.mubr.bf16.vlgmr.msra.gmra.mrb[16].mxu1 %v661_v3  ;;  %1179 = vmatmul.mubr.bf16.vlgmr.msra.gmra.mrb[16].mxu0 %v663_v4  ;;  %v637_v36 = vmax.f32 %v496_v5, %v605_v17  ;;  %v639_v40 = vmax.f32 %v569_v6, %v607_v18 }
  0xf9   : > { %v610_v37 = vmul.f32 0.2, %v502_v28  ;;  %v612_v38 = vmul.f32 0.2, %v575_v33  ;;  %1740 = vmatpush3.bf16.msra.mxu0 %v1977_v15  ;;  %1787 = vmatpush3.bf16.msra.mxu1 %v1977_v15  ;;  %v638_v44 = vmax.f32 %v498_v9, %v606_v25  ;;  %v640_v45 = vmax.f32 %v571_v10, %v608_v26  ;;  %v1983_v15 = vld [vmem:[%s2487_s5 + $0x18] sm:$0xff]  }
  0xfa   : > { %v641_v41 = vmax.f32 %v500_v19, %v609_v34  ;;  %v643_v42 = vmax.f32 %v573_v20, %v611_v35  ;;  %1741 = vmatprep.subr.bf16.mxu0 %v1978_v16  ;;  %1780 = vmatprep.subr.bf16.mxu1 %v1978_v16  ;;  %v1984_v19 = vld [vmem:[%s2487_s5 + $0x60] sm:$0xff]  }
  0xfb   : > { %v642_v46 = vmax.f32 %v502_v28, %v610_v37  ;;  %v644_v47 = vmax.f32 %v575_v33, %v612_v38  ;;  %v505_v48 = vpop.f32.mrb[8].mxu0  ;;  %v578_v49 = vpop.f32.mrb[8].mxu1 }
  0xfc   : > { %v506_v50 = vadd.f32 %v505_v48, %v2354_v29  ;;  %v579_v51 = vadd.f32 %v578_v49, %v2356_v30  ;;  %v507_v52 = vpop.f32.mrb[9].mxu0  ;;  %v580_v53 = vpop.f32.mrb[9].mxu1  ;;  %v665_v54 = vpack.c.bf16 %v641_v41, %v637_v36  ;;  %v667_v55 = vpack.c.bf16 %v643_v42, %v639_v40 }
  0xfd   : > { %v508_v56 = vadd.f32 %v507_v52, %v2360_v31  ;;  %v581_v57 = vadd.f32 %v580_v53, %v2362_v32  ;;  %v509_v58 = vpop.f32.mrb[10].mxu0  ;;  %v582_v59 = vpop.f32.mrb[10].mxu1  ;;  %v666_v60 = vpack.c.bf16 %v642_v46, %v638_v44  ;;  %v668_v61 = vpack.c.bf16 %v644_v47, %v640_v45  ;;  %1742 = vmatpush3.bf16.msra.mxu0 %v1979_v39 }
  0xfe   : > { %v613_v0 = vmul.f32 0.2, %v506_v50  ;;  %v615_v1 = vmul.f32 0.2, %v579_v51  ;;  %v510_v2 = vadd.f32 %v509_v58, %v2354_v29  ;;  %v583_v3 = vadd.f32 %v582_v59, %v2356_v30  ;;  %v511_v4 = vpop.f32.mrb[11].mxu0  ;;  %v584_v5 = vpop.f32.mrb[11].mxu1  ;;  %1743 = vmatprep.subr.bf16.mxu0 %v1980_v43  ;;  %1788 = vmatpush3.bf16.msra.mxu1 %v1979_v39 }
  0xff   : > { %v614_v6 = vmul.f32 0.2, %v508_v56  ;;  %v616_v7 = vmul.f32 0.2, %v581_v57  ;;  %v512_v8 = vadd.f32 %v511_v4, %v2360_v31  ;;  %v585_v9 = vadd.f32 %v584_v5, %v2362_v32  ;;  %1115 = vmatprep.mubr.bf16.mxu1 %v666_v60  ;;  %1188 = vmatprep.mubr.bf16.mxu0 %v668_v61  ;;  %v1986_v4 = vld [vmem:[%s2487_s5 + $0x68] sm:$0xff]  }
 0x100   : > { %v617_v10 = vmul.f32 0.2, %v510_v2  ;;  %v619_v11 = vmul.f32 0.2, %v583_v3  ;;  %1116 = vmatmul.mubr.bf16.gmra.mrb[20].mxu1 %v665_v54  ;;  %1189 = vmatmul.mubr.bf16.gmra.mrb[20].mxu0 %v667_v55  ;;  %v645_v12 = vmax.f32 %v506_v50, %v613_v0  ;;  %v647_v16 = vmax.f32 %v579_v51, %v615_v1  ;;  %v1987_v5 = vld [vmem:[%s2487_s5 + $0x28] sm:$0xff]  }
 0x101   : > { %v618_v13 = vmul.f32 0.2, %v512_v8  ;;  %v620_v14 = vmul.f32 0.2, %v585_v9  ;;  %1744 = vmatpush3.bf16.msra.mxu0 %v1981_v62  ;;  %1781 = vmatprep.subr.bf16.mxu1 %v1980_v43  ;;  %v646_v20 = vmax.f32 %v508_v56, %v614_v6  ;;  %v648_v21 = vmax.f32 %v581_v57, %v616_v7  ;;  %v1988_v6 = vld [vmem:[%s2487_s5 + $0x70] sm:$0xff]  }
 0x102   : > { %v649_v17 = vmax.f32 %v510_v2, %v617_v10  ;;  %v651_v18 = vmax.f32 %v583_v3, %v619_v11  ;;  %1745 = vmatprep.subr.bf16.mxu0 %v1982_v63  ;;  %1789 = vmatpush3.bf16.msra.mxu1 %v1981_v62  ;;  %v1985_v3 = vld [vmem:[%s2487_s5 + $0x20] sm:$0xff]   ;;  %v1989_v7 = vld [vmem:[%s2487_s5 + $0x30] sm:$0xff]  }
 0x103   : > { %v650_v22 = vmax.f32 %v512_v8, %v618_v13  ;;  %v652_v25 = vmax.f32 %v585_v9, %v620_v14  ;;  %v515_v26 = vpop.f32.mrb[12].mxu0  ;;  %v588_v28 = vpop.f32.mrb[12].mxu1  ;;  %1782 = vmatprep.subr.bf16.mxu1 %v1982_v63  ;;  %v1990_v8 = vld [vmem:[%s2487_s5 + $0x78] sm:$0xff]   ;;  %v741_v10 = vld [vmem:[%s2486_s4] sm:$0x3] }
 0x104   : > { %v516_v33 = vadd.f32 %v515_v26, %v2354_v29  ;;  %v589_v34 = vadd.f32 %v588_v28, %v2356_v30  ;;  %v517_v35 = vpop.f32.mrb[13].mxu0  ;;  %v590_v36 = vpop.f32.mrb[13].mxu1  ;;  %v669_v37 = vpack.c.bf16 %v649_v17, %v645_v12  ;;  %v671_v38 = vpack.c.bf16 %v651_v18, %v647_v16  ;;  %v1991_v9 = vld [vmem:[%s2487_s5 + $0x38] sm:$0xff]  }
 0x105   : > { %v518_v39 = vadd.f32 %v517_v35, %v2360_v31  ;;  %v591_v40 = vadd.f32 %v590_v36, %v2362_v32  ;;  %v519_v41 = vpop.f32.mrb[14].mxu0  ;;  %v592_v42 = vpop.f32.mrb[14].mxu1  ;;  %v670_v43 = vpack.c.bf16 %v650_v22, %v646_v20  ;;  %v672_v44 = vpack.c.bf16 %v652_v25, %v648_v21  ;;  %1746 = vmatpush3.bf16.msra.mxu0 %v1983_v15 }
 0x106   : > { %v621_v45 = vmul.f32 0.2, %v516_v33  ;;  %v623_v46 = vmul.f32 0.2, %v589_v34  ;;  %v520_v47 = vadd.f32 %v519_v41, %v2354_v29  ;;  %v593_v48 = vadd.f32 %v592_v42, %v2356_v30  ;;  %v521_v49 = vpop.f32.mrb[15].mxu0  ;;  %v594_v50 = vpop.f32.mrb[15].mxu1  ;;  %1747 = vmatprep.subr.bf16.mxu0 %v1984_v19  ;;  %1790 = vmatpush3.bf16.msra.mxu1 %v1983_v15 }
 0x107   : > { %v622_v51 = vmul.f32 0.2, %v518_v39  ;;  %v624_v52 = vmul.f32 0.2, %v591_v40  ;;  %v522_v53 = vadd.f32 %v521_v49, %v2360_v31  ;;  %v595_v54 = vadd.f32 %v594_v50, %v2362_v32  ;;  %1125 = vmatprep.mubr.bf16.mxu1 %v670_v43  ;;  %1198 = vmatprep.mubr.bf16.mxu0 %v672_v44 }
 0x108   : > { %v625_v55 = vmul.f32 0.2, %v520_v47  ;;  %v627_v56 = vmul.f32 0.2, %v593_v48  ;;  %1126 = vmatmul.mubr.bf16.gmra.mrb[24].mxu1 %v669_v37  ;;  %1199 = vmatmul.mubr.bf16.gmra.mrb[24].mxu0 %v671_v38  ;;  %v653_v30 = vmax.f32 %v516_v33, %v621_v45  ;;  %v655_v58 = vmax.f32 %v589_v34, %v623_v46 }
 0x109   : > { %v626_v57 = vmul.f32 0.2, %v522_v53  ;;  %v628_v29 = vmul.f32 0.2, %v595_v54  ;;  %1783 = vmatprep.subr.bf16.mxu1 %v1984_v19  ;;  %v654_v61 = vmax.f32 %v518_v39, %v622_v51  ;;  %v656_v62 = vmax.f32 %v591_v40, %v624_v52  ;;  %1748 = vmatpush3.bf16.msra.mxu0 %v1985_v3 }
 0x10a   : > { %v657_v59 = vmax.f32 %v520_v47, %v625_v55  ;;  %v659_v60 = vmax.f32 %v593_v48, %v627_v56  ;;  %1791 = vmatpush3.bf16.msra.mxu1 %v1985_v3  ;;  %1749 = vmatprep.subr.bf16.mxu0 %v1986_v4  ;;  %v2446_v11 = vrot.slane %v741_v10, %v320_v24 }
 0x10b   : > { %v658_v63 = vmax.f32 %v522_v53, %v626_v57  ;;  %v660_v0 = vmax.f32 %v595_v54, %v628_v29  ;;  %1784 = vmatprep.subr.bf16.mxu1 %v1986_v4  ;;  %v2450_v12 = vrot.slane %v741_v10, %v324_v27 }
 0x10c   : > { %v673_v31 = vpack.c.bf16 %v657_v59, %v653_v30  ;;  %v675_v1 = vpack.c.bf16 %v659_v60, %v655_v58 }
 0x10d   : > { %v674_v32 = vpack.c.bf16 %v658_v63, %v654_v61  ;;  %v676_v2 = vpack.c.bf16 %v660_v0, %v656_v62  ;;  %1750 = vmatpush3.bf16.msra.mxu0 %v1987_v5 }
 0x10e   : > { %1792 = vmatpush3.bf16.msra.mxu1 %v1987_v5  ;;  %1751 = vmatprep.subr.bf16.mxu0 %v1988_v6 }
 0x10f   : > { %1135 = vmatprep.mubr.bf16.mxu1 %v674_v32  ;;  %1208 = vmatprep.mubr.bf16.mxu0 %v676_v2 }
 0x110   : > { %1136 = vmatmul.mubr.bf16.gmra.mrb[28].mxu1 %v673_v31  ;;  %1209 = vmatmul.mubr.bf16.gmra.mrb[28].mxu0 %v675_v1 }
 0x111   : > { %1785 = vmatprep.subr.bf16.mxu1 %v1988_v6  ;;  %1752 = vmatpush3.bf16.msra.mxu0 %v1989_v7 }
 0x112   : > { %1793 = vmatpush3.bf16.msra.mxu1 %v1989_v7  ;;  %1753 = vmatprep.subr.bf16.mxu0 %v1990_v8 }
 0x113   : > { %1786 = vmatprep.subr.bf16.mxu1 %v1990_v8 }
 0x115   : > { %1754 = vmatpush3.bf16.msra.mxu0 %v1991_v9 }
 0x116   : > { %1794 = vmatpush3.bf16.msra.mxu1 %v1991_v9 }
 0x1cb   : > { %v1107_v13 = vpop.f32.mrb[16].mxu1  ;;  %v1180_v14 = vpop.f32.mrb[16].mxu0 }
 0x1cc   : > { %v1108_v15 = vadd.f32 %v1107_v13, %v2446_v11  ;;  %v1109_v16 = vpop.f32.mrb[17].mxu1  ;;  %v1182_v17 = vpop.f32.mrb[17].mxu0 }
 0x1cd   : > { %v1110_v18 = vadd.f32 %v1109_v16, %v2450_v12  ;;  %v1111_v19 = vpop.f32.mrb[18].mxu1  ;;  %v1184_v20 = vpop.f32.mrb[18].mxu0 }
 0x1ce   : > { %v1181_v21 = vadd.f32 %v1180_v14, %v1108_v15  ;;  %v1112_v22 = vadd.f32 %v1111_v19, %v2446_v11  ;;  %v1113_v25 = vpop.f32.mrb[19].mxu1  ;;  %v1186_v24 = vpop.f32.mrb[19].mxu0 }
 0x1cf   : > { %v1183_v26 = vadd.f32 %v1182_v17, %v1110_v18  ;;  %v1114_v23 = vadd.f32 %v1113_v25, %v2450_v12 }
 0x1d0   : > { %v1219_v27 = vmul.f32 0.2, %v1181_v21  ;;  %v1185_v28 = vadd.f32 %v1184_v20, %v1112_v22 }
 0x1d1   : > { %v1220_v33 = vmul.f32 0.2, %v1183_v26  ;;  %v1187_v34 = vadd.f32 %v1186_v24, %v1114_v23 }
 0x1d2   : > { %v1221_v35 = vmul.f32 0.2, %v1185_v28  ;;  %v1235_v39 = vmax.f32 %v1181_v21, %v1219_v27 }
 0x1d3   : > { %v1222_v36 = vmul.f32 0.2, %v1187_v34  ;;  %v1117_v37 = vpop.f32.mrb[20].mxu1  ;;  %v1190_v38 = vpop.f32.mrb[20].mxu0  ;;  %v1236_v44 = vmax.f32 %v1183_v26, %v1220_v33 }
 0x1d4   : > { %v1237_v40 = vmax.f32 %v1185_v28, %v1221_v35  ;;  %v1118_v41 = vadd.f32 %v1117_v37, %v2446_v11  ;;  %v1119_v42 = vpop.f32.mrb[21].mxu1  ;;  %v1192_v43 = vpop.f32.mrb[21].mxu0 }
 0x1d5   : > { %v1238_v45 = vmax.f32 %v1187_v34, %v1222_v36  ;;  %v1120_v46 = vadd.f32 %v1119_v42, %v2450_v12  ;;  %v1121_v47 = vpop.f32.mrb[22].mxu1  ;;  %v1194_v48 = vpop.f32.mrb[22].mxu0 }
 0x1d6   : > { %v1251_v49 = vpack.c.bf16 %v1237_v40, %v1235_v39  ;;  %v1191_v50 = vadd.f32 %v1190_v38, %v1118_v41  ;;  %v1122_v51 = vadd.f32 %v1121_v47, %v2446_v11  ;;  %v1123_v52 = vpop.f32.mrb[23].mxu1  ;;  %v1196_v53 = vpop.f32.mrb[23].mxu0 }
 0x1d7   : > { %v1193_v54 = vadd.f32 %v1192_v43, %v1120_v46  ;;  %v1124_v55 = vadd.f32 %v1123_v52, %v2450_v12  ;;  %v1252_v56 = vpack.c.bf16 %v1238_v45, %v1236_v44 }
 0x1d8   : > { %v1223_v57 = vmul.f32 0.2, %v1191_v50  ;;  %v1195_v29 = vadd.f32 %v1194_v48, %v1122_v51 }
 0x1d9   : > { %v1224_v30 = vmul.f32 0.2, %v1193_v54  ;;  %v1197_v58 = vadd.f32 %v1196_v53, %v1124_v55  ;;  %1419 = vmatprep.mubr.bf16.mxu0 %v1252_v56 }
 0x1da   : > { %v1225_v59 = vmul.f32 0.2, %v1195_v29  ;;  %1420 = vmatmul.mubr.bf16.vlgmr.msra.gmra.mrb[32].mxu0 %v1251_v49  ;;  %v1239_v63 = vmax.f32 %v1191_v50, %v1223_v57 }
 0x1db   : > { %v1226_v60 = vmul.f32 0.2, %v1197_v58  ;;  %v1127_v61 = vpop.f32.mrb[24].mxu1  ;;  %v1200_v62 = vpop.f32.mrb[24].mxu0  ;;  %v1240_v2 = vmax.f32 %v1193_v54, %v1224_v30 }
 0x1dc   : > { %v1241_v0 = vmax.f32 %v1195_v29, %v1225_v59  ;;  %v1128_v31 = vadd.f32 %v1127_v61, %v2446_v11  ;;  %v1129_v1 = vpop.f32.mrb[25].mxu1  ;;  %v1202_v32 = vpop.f32.mrb[25].mxu0 }
 0x1dd   : > { %v1242_v3 = vmax.f32 %v1197_v58, %v1226_v60  ;;  %v1130_v4 = vadd.f32 %v1129_v1, %v2450_v12  ;;  %v1131_v5 = vpop.f32.mrb[26].mxu1  ;;  %v1204_v6 = vpop.f32.mrb[26].mxu0 }
 0x1de   : > { %v1201_v7 = vadd.f32 %v1200_v62, %v1128_v31  ;;  %v1132_v8 = vadd.f32 %v1131_v5, %v2446_v11  ;;  %v1133_v9 = vpop.f32.mrb[27].mxu1  ;;  %v1206_v10 = vpop.f32.mrb[27].mxu0  ;;  %v1253_v13 = vpack.c.bf16 %v1241_v0, %v1239_v63 }
 0x1df   : > { %v1203_v14 = vadd.f32 %v1202_v32, %v1130_v4  ;;  %v1134_v15 = vadd.f32 %v1133_v9, %v2450_v12  ;;  %v1254_v16 = vpack.c.bf16 %v1242_v3, %v1240_v2 }
 0x1e0   : > { %v1227_v17 = vmul.f32 0.2, %v1201_v7  ;;  %v1205_v18 = vadd.f32 %v1204_v6, %v1132_v8 }
 0x1e1   : > { %v1228_v19 = vmul.f32 0.2, %v1203_v14  ;;  %v1207_v20 = vadd.f32 %v1206_v10, %v1134_v15  ;;  %1427 = vmatprep.mubr.bf16.mxu0 %v1254_v16 }
 0x1e2   : > { %v1229_v21 = vmul.f32 0.2, %v1205_v18  ;;  %1428 = vmatmul.mubr.bf16.gmra.mrb[36].mxu0 %v1253_v13  ;;  %v1243_v26 = vmax.f32 %v1201_v7, %v1227_v17 }
 0x1e3   : > { %v1230_v22 = vmul.f32 0.2, %v1207_v20  ;;  %v1137_v25 = vpop.f32.mrb[28].mxu1  ;;  %v1210_v24 = vpop.f32.mrb[28].mxu0  ;;  %v1244_v34 = vmax.f32 %v1203_v14, %v1228_v19 }
 0x1e4   : > { %v1245_v23 = vmax.f32 %v1205_v18, %v1229_v21  ;;  %v1138_v27 = vadd.f32 %v1137_v25, %v2446_v11  ;;  %v1139_v28 = vpop.f32.mrb[29].mxu1  ;;  %v1212_v33 = vpop.f32.mrb[29].mxu0 }
 0x1e5   : > { %v1246_v35 = vmax.f32 %v1207_v20, %v1230_v22  ;;  %v1140_v36 = vadd.f32 %v1139_v28, %v2450_v12  ;;  %v1141_v37 = vpop.f32.mrb[30].mxu1  ;;  %v1214_v38 = vpop.f32.mrb[30].mxu0 }
 0x1e6   : > { %v1255_v39 = vpack.c.bf16 %v1245_v23, %v1243_v26  ;;  %v1211_v40 = vadd.f32 %v1210_v24, %v1138_v27  ;;  %v1142_v41 = vadd.f32 %v1141_v37, %v2446_v11  ;;  %v1143_v42 = vpop.f32.mrb[31].mxu1  ;;  %v1216_v43 = vpop.f32.mrb[31].mxu0 }
 0x1e7   : > { %v1213_v44 = vadd.f32 %v1212_v33, %v1140_v36  ;;  %v1144_v45 = vadd.f32 %v1143_v42, %v2450_v12  ;;  %v1256_v46 = vpack.c.bf16 %v1246_v35, %v1244_v34 }
 0x1e8   : > { %v1231_v47 = vmul.f32 0.2, %v1211_v40  ;;  %v1215_v48 = vadd.f32 %v1214_v38, %v1142_v41 }
 0x1e9   : > { %v1232_v49 = vmul.f32 0.2, %v1213_v44  ;;  %v1217_v50 = vadd.f32 %v1216_v43, %v1144_v45  ;;  %1435 = vmatprep.mubr.bf16.mxu1 %v1256_v46 }
 0x1ea   : > { %v1233_v51 = vmul.f32 0.2, %v1215_v48  ;;  %1436 = vmatmul.mubr.bf16.vlgmr.msra.gmra.mrb[32].mxu1 %v1255_v39  ;;  %v1247_v53 = vmax.f32 %v1211_v40, %v1231_v47 }
 0x1eb   : > { %v1234_v52 = vmul.f32 0.2, %v1217_v50  ;;  %v1248_v55 = vmax.f32 %v1213_v44, %v1232_v49 }
 0x1ec   : > { %v1249_v54 = vmax.f32 %v1215_v48, %v1233_v51 }
 0x1ed   : > { %v1250_v56 = vmax.f32 %v1217_v50, %v1234_v52 }
 0x1ee   : > { %v1257_v11 = vpack.c.bf16 %v1249_v54, %v1247_v53 }
 0x1ef   : > { %v1258_v57 = vpack.c.bf16 %v1250_v56, %v1248_v55 }
 0x1f1   : > { %1443 = vmatprep.mubr.bf16.mxu1 %v1258_v57 }
 0x1f2   : > { %1444 = vmatmul.mubr.bf16.gmra.mrb[36].mxu1 %v1257_v11 }
 0x2ad   : > { %v1755_v29 = vpop.f32.mrb[32].mxu0 }
 0x2ae   : > { %v1756_v12 = vpop.f32.mrb[33].mxu0 }
 0x2af   : > { %v1757_v30 = vadd.f32 %v1756_v12, %v1755_v29  ;;  %v1758_v58 = vpop.f32.mrb[34].mxu0 }
 0x2b0   : > { %v1759_v59 = vpop.f32.mrb[35].mxu0 }
 0x2b1   : > { %v1760_v60 = vadd.f32 %v1759_v59, %v1758_v58 }
 0x2b3   : > { %v1719_v61 = vpack.c.bf16 %v1760_v60, %v1757_v30 }
 0x2b5   : > { %1720 = vst [vmem:[%s289_s15] sm:$0xff] %v1719_v61   ;;  %v1761_v62 = vpop.f32.mrb[36].mxu0 }
 0x2b6   : > { %v1762_v63 = vpop.f32.mrb[37].mxu0 }
 0x2b7   : > { %v1763_v0 = vadd.f32 %v1762_v63, %v1761_v62  ;;  %v1764_v31 = vpop.f32.mrb[38].mxu0 }
 0x2b8   : > { %v1765_v1 = vpop.f32.mrb[39].mxu0 }
 0x2b9   : > { %v1766_v32 = vadd.f32 %v1765_v1, %v1764_v31 }
 0x2bb   : > { %v1724_v2 = vpack.c.bf16 %v1766_v32, %v1763_v0 }
 0x2bd   : > { %1736 = vst [vmem:[%s289_s15 + $0x8] sm:$0xff] %v1724_v2   ;;  %v1767_v3 = vpop.f32.mrb[32].mxu1 }
 0x2be   : > { %v1768_v4 = vpop.f32.mrb[33].mxu1 }
 0x2bf   : > { %v1769_v5 = vadd.f32 %v1768_v4, %v1767_v3  ;;  %v1770_v6 = vpop.f32.mrb[34].mxu1 }
 0x2c0   : > { %v1771_v7 = vpop.f32.mrb[35].mxu1 }
 0x2c1   : > { %v1772_v8 = vadd.f32 %v1771_v7, %v1770_v6 }
 0x2c3   : > { %v1729_v9 = vpack.c.bf16 %v1772_v8, %v1769_v5 }
 0x2c5   : > { %1737 = vst [vmem:[%s289_s15 + $0x10] sm:$0xff] %v1729_v9   ;;  %v1773_v10 = vpop.f32.mrb[36].mxu1 }
 0x2c6   : > { %v1774_v13 = vpop.f32.mrb[37].mxu1 }
 0x2c7   : > { %v1775_v14 = vadd.f32 %v1774_v13, %v1773_v10  ;;  %v1776_v15 = vpop.f32.mrb[38].mxu1 }
 0x2c8   : > { %v1777_v16 = vpop.f32.mrb[39].mxu1 }
 0x2c9   : > { %v1778_v17 = vadd.f32 %v1777_v16, %v1776_v15 }
 0x2cb   : > { %v1734_v18 = vpack.c.bf16 %v1778_v17, %v1775_v14 }
 0x2cd   : > { %1738 = vst [vmem:[%s289_s15 + $0x18] sm:$0xff] %v1734_v18  }
 0x2ce PF: > { %s16_s23 = sadd.s32 1, %s2014_s23   ;;  %s2489_s21 = smov %s2010_s22 }
 0x2cf   : > { %p13_p5 = scmp.ge.s32.totalorder %s16_s23, 4   ;;  %s2490_s22 = smov %s2492_s24 }
 0x2d1   :  { %15 = sbr.rel (!%p13_p5) target bundleno = 2 (0x2), region = 74 }

</bundles_post_ra>
